<compile_context>
chip_gen: v7x
topology: tpu7x:2x2x1
jax: 0.10.0
libtpu: 0.0.40
codegen_flags: <defaults>
</compile_context>

<pallas_src>
import functools
import math

import jax
import jax.numpy as jnp
import numpy as np
from jax.experimental import pallas as pl
from jax.experimental.pallas import tpu as pltpu

F32 = jnp.float32

# ----------------------------- configuration --------------------------------
VOCAB = 40            # size of the (synthetic) symbol table
D_MODEL = 32          # encoder_hidden == decoder_hidden
N_HEAD = 2
D_HEAD = 16
FF_HID = 64           # Electra FFN hidden
FFT_K = (9, 1)        # FFT-block conv kernel sizes
FFT_CONV_HID = 64
N_MEL = 8             # n_mel_channels
VP_FILTER = 32        # variance-predictor filter size
VP_K = 3
N_BINS = 16
POSTNET_DIM = 32
POSTNET_K = 5
POSTNET_N = 5
N_ENC_LAYERS = 1
N_DEC_LAYERS = 1
MAX_POS = 64
N_SPEAKER = 4

# --------------------------- in-kernel helpers -------------------------------


def _ln_apply(x, g, b, eps):
    mu = jnp.mean(x, axis=-1, keepdims=True)
    var = jnp.mean((x - mu) ** 2, axis=-1, keepdims=True)
    return (x - mu) * jax.lax.rsqrt(var + eps) * g + b


def _mha(x, bias, wqkv, bqkv, wo_ref, bo, *, H, Dh, scale):
    """Multi-head self-attention on one sequence.

    x: (T, D) value, bias: (1, T) additive key bias, wqkv/bqkv: fused QKV
    weight/bias values, wo_ref: (H*Dh, D) output-projection ref.
    Heads are recombined as a sum of per-head projections (== concat + proj).
    """
    qkv = jnp.dot(x, wqkv, preferred_element_type=F32) + bqkv      # (T, 3*H*Dh)
    attn = None
    for hd in range(H):
        q = qkv[:, hd * Dh:(hd + 1) * Dh]
        k = qkv[:, (H + hd) * Dh:(H + hd + 1) * Dh]
        v = qkv[:, (2 * H + hd) * Dh:(2 * H + hd + 1) * Dh]
        s = jnp.dot(q, k.T, preferred_element_type=F32) * scale + bias
        s = s - jnp.max(s, axis=-1, keepdims=True)
        p = jnp.exp(s)
        p = p / jnp.sum(p, axis=-1, keepdims=True)
        ctx = jnp.dot(p, v, preferred_element_type=F32)
        part = jnp.dot(ctx, wo_ref[pl.ds(hd * Dh, Dh), :],
                       preferred_element_type=F32)
        attn = part if attn is None else attn + part
    return attn + bo


def _conv1d_same(h, w2d, cb, pad_ref, col_ref, *, K, Cin, T):
    """'same' 1-D conv via im2col: one (T, K*Cin) x (K*Cin, Cout) matmul.

    pad_ref rows outside [P, P+T) must already be zero (zeroed once per kernel).
    """
    if K == 1:
        return jnp.dot(h, w2d, preferred_element_type=F32) + cb
    P = (K - 1) // 2
    pad_ref[pl.ds(P, T), pl.ds(0, Cin)] = h
    for k in range(K):
        col_ref[:, pl.ds(k * Cin, Cin)] = pad_ref[pl.ds(k, T), pl.ds(0, Cin)]
    return jnp.dot(col_ref[:, pl.ds(0, K * Cin)], w2d,
                   preferred_element_type=F32) + cb


# ------------------------------ Pallas kernels -------------------------------


def _layernorm_kernel(x_ref, g_ref, b_ref, o_ref, *, eps):
    o_ref[...] = _ln_apply(x_ref[...], g_ref[...], b_ref[...], eps)


def layernorm(x, g, b, eps=1e-5):
    shape = x.shape
    D = shape[-1]
    x2 = x.reshape(-1, D)
    out = pl.pallas_call(
        functools.partial(_layernorm_kernel, eps=eps),
        out_shape=jax.ShapeDtypeStruct(x2.shape, F32),
    )(x2, g.reshape(1, D), b.reshape(1, D))
    return out.reshape(shape)


def _encoder_layer_kernel(h_ref, vrow_ref, wqkv_ref, bqkv_ref, wo_ref, bo_ref,
                          g1_ref, be1_ref, fw1_ref, fb1_ref, fw2_ref, fb2_ref,
                          g2_ref, be2_ref, o_ref, *, B, H, Dh, scale, eps):
    """One fused Electra-style encoder layer (whole batch, VMEM resident)."""
    wqkv, bqkv, bo = wqkv_ref[...], bqkv_ref[...], bo_ref[...]
    g1, be1 = g1_ref[...], be1_ref[...]
    g2, be2 = g2_ref[...], be2_ref[...]
    fw1, fb1 = fw1_ref[...], fb1_ref[...]
    fw2, fb2 = fw2_ref[...], fb2_ref[...]
    for bi in range(B):
        x = h_ref[bi]                                   # (T, D)
        bias = (vrow_ref[bi] - 1.0) * 1e9               # 0 valid / -1e9 pad
        attn = _mha(x, bias, wqkv, bqkv, wo_ref, bo, H=H, Dh=Dh, scale=scale)
        h1 = _ln_apply(x + attn, g1, be1, eps)
        ff = jax.nn.gelu(jnp.dot(h1, fw1, preferred_element_type=F32) + fb1)
        ff = jnp.dot(ff, fw2, preferred_element_type=F32) + fb2
        o_ref[bi] = _ln_apply(h1 + ff, g2, be2, eps)


def encoder_layer(h, valid_row, lp):
    B, T, D = h.shape
    a = lp["attn"]
    wqkv = jnp.concatenate([a["q"]["w"], a["k"]["w"], a["v"]["w"]], axis=1)
    bqkv = jnp.concatenate([a["q"]["b"], a["k"]["b"], a["v"]["b"]]).reshape(1, -1)
    return pl.pallas_call(
        functools.partial(_encoder_layer_kernel, B=B, H=N_HEAD, Dh=D_HEAD,
                          scale=1.0 / math.sqrt(D_HEAD), eps=1e-5),
        out_shape=jax.ShapeDtypeStruct((B, T, D), F32),
    )(h, valid_row, wqkv, bqkv,
      a["o"]["w"], a["o"]["b"].reshape(1, D),
      lp["ln1"]["g"].reshape(1, D), lp["ln1"]["b"].reshape(1, D),
      lp["ff1"]["w"], lp["ff1"]["b"].reshape(1, -1),
      lp["ff2"]["w"], lp["ff2"]["b"].reshape(1, -1),
      lp["ln2"]["g"].reshape(1, D), lp["ln2"]["b"].reshape(1, D))


def _fft_layer_kernel(h_ref, pos_ref, vrow_ref, vcol_ref,
                      wqkv_ref, bqkv_ref, wo_ref, bo_ref,
                      g1_ref, be1_ref, cw1_ref, cb1_ref, cw2_ref, cb2_ref,
                      g2_ref, be2_ref, o_ref, pad_ref, col_ref,
                      *, B, T, H, Dh, K, D, scale, eps):
    """One fused FFT block: pos add + MHA + LN + mask + conv FFN + LN + mask."""
    pad_ref[...] = jnp.zeros(pad_ref.shape, F32)
    wqkv, bqkv, bo = wqkv_ref[...], bqkv_ref[...], bo_ref[...]
    g1, be1 = g1_ref[...], be1_ref[...]
    g2, be2 = g2_ref[...], be2_ref[...]
    cw1, cb1 = cw1_ref[...], cb1_ref[...]
    cw2, cb2 = cw2_ref[...], cb2_ref[...]
    pos = pos_ref[...]
    for bi in range(B):
        x = h_ref[bi] + pos                             # (T, D)
        vcol = vcol_ref[bi]                             # (T, 1), 1=valid
        bias = (vrow_ref[bi] - 1.0) * 1e9               # (1, T)
        attn = _mha(x, bias, wqkv, bqkv, wo_ref, bo, H=H, Dh=Dh, scale=scale)
        h1 = _ln_apply(x + attn, g1, be1, eps) * vcol
        c = _conv1d_same(h1, cw1, cb1, pad_ref, col_ref, K=K, Cin=D, T=T)
        c = jnp.maximum(c, 0.0)
        c = jnp.dot(c, cw2, preferred_element_type=F32) + cb2   # K=1 conv
        o_ref[bi] = _ln_apply(h1 + c, g2, be2, eps) * vcol


def fft_layer(h, pos, valid_row, valid_col, lp):
    B, T, D = h.shape
    a = lp["attn"]
    wqkv = jnp.concatenate([a["q"]["w"], a["k"]["w"], a["v"]["w"]], axis=1)
    bqkv = jnp.concatenate([a["q"]["b"], a["k"]["b"], a["v"]["b"]]).reshape(1, -1)
    K1, _, CH = lp["c1"]["w"].shape
    cw1 = lp["c1"]["w"].reshape(K1 * D, CH)             # im2col weight layout
    cw2 = lp["c2"]["w"].reshape(-1, D)                  # K2 == 1
    return pl.pallas_call(
        functools.partial(_fft_layer_kernel, B=B, T=T, H=N_HEAD, Dh=D_HEAD,
                          K=K1, D=D, scale=1.0 / math.sqrt(D_HEAD), eps=1e-5),
        out_shape=jax.ShapeDtypeStruct((B, T, D), F32),
        scratch_shapes=[pltpu.VMEM((T + K1 - 1, D), F32),
                        pltpu.VMEM((T, K1 * D), F32)],
    )(h, pos, valid_row, valid_col, wqkv, bqkv,
      a["o"]["w"], a["o"]["b"].reshape(1, D),
      lp["ln1"]["g"].reshape(1, D), lp["ln1"]["b"].reshape(1, D),
      cw1, lp["c1"]["b"].reshape(1, CH),
      cw2, lp["c2"]["b"].reshape(1, D),
      lp["ln2"]["g"].reshape(1, D), lp["ln2"]["b"].reshape(1, D))


def _vp_kernel(x_ref, vcol_ref, cw1_ref, cb1_ref, g1_ref, b1_ref,
               cw2_ref, cb2_ref, g2_ref, b2_ref, wo_ref, bo_ref,
               o_ref, pad_ref, col_ref, *, B, T, K, D, F, eps):
    """Fused variance predictor: conv+relu+LN, conv+relu+LN, linear, mask."""
    pad_ref[...] = jnp.zeros(pad_ref.shape, F32)
    cw1, cb1 = cw1_ref[...], cb1_ref[...]
    g1, b1 = g1_ref[...], b1_ref[...]
    cw2, cb2 = cw2_ref[...], cb2_ref[...]
    g2, b2 = g2_ref[...], b2_ref[...]
    wo, bo = wo_ref[...], bo_ref[...]
    for bi in range(B):
        h = x_ref[bi]                                    # (T, D)
        h = jnp.maximum(
            _conv1d_same(h, cw1, cb1, pad_ref, col_ref, K=K, Cin=D, T=T), 0.0)
        h = _ln_apply(h, g1, b1, eps)
        h = jnp.maximum(
            _conv1d_same(h, cw2, cb2, pad_ref, col_ref, K=K, Cin=F, T=T), 0.0)
        h = _ln_apply(h, g2, b2, eps)
        out = jnp.dot(h, wo, preferred_element_type=F32) + bo    # (T, 1)
        o_ref[bi] = out * vcol_ref[bi]


def variance_predictor(vp, x, valid_col):
    B, T, D = x.shape
    K, _, Fdim = vp["c1"]["w"].shape
    max_cin = max(D, Fdim)
    out = pl.pallas_call(
        functools.partial(_vp_kernel, B=B, T=T, K=K, D=D, F=Fdim, eps=1e-5),
        out_shape=jax.ShapeDtypeStruct((B, T, 1), F32),
        scratch_shapes=[pltpu.VMEM((T + K - 1, max_cin), F32),
                        pltpu.VMEM((T, K * max_cin), F32)],
    )(x, valid_col,
      vp["c1"]["w"].reshape(K * D, Fdim), vp["c1"]["b"].reshape(1, Fdim),
      vp["ln1"]["g"].reshape(1, Fdim), vp["ln1"]["b"].reshape(1, Fdim),
      vp["c2"]["w"].reshape(K * Fdim, Fdim), vp["c2"]["b"].reshape(1, Fdim),
      vp["ln2"]["g"].reshape(1, Fdim), vp["ln2"]["b"].reshape(1, Fdim),
      vp["out"]["w"], vp["out"]["b"].reshape(1, 1))
    return out[:, :, 0]


def _mel_cat_kernel(dec_ref, va_ref, wm_ref, bm_ref, wd_ref, bd_ref, o_ref,
                    *, B, n_mel, n_rest):
    """Fused mel_linear(decoder_out) ++ mel_linear_dec(va_out) -> (B,T,32)."""
    wm, bm = wm_ref[...], bm_ref[...]
    wd, bd = wd_ref[...], bd_ref[...]
    for bi in range(B):
        mel = jnp.dot(dec_ref[bi], wm, preferred_element_type=F32) + bm
        enc = jnp.dot(va_ref[bi], wd, preferred_element_type=F32) + bd
        o_ref[bi, :, pl.ds(0, n_mel)] = mel
        o_ref[bi, :, pl.ds(n_mel, n_rest)] = enc


def mel_cat(dec_out, va_out, mel_p, dec_p):
    B, T, _ = dec_out.shape
    n_rest = int(dec_p["w"].shape[1])
    return pl.pallas_call(
        functools.partial(_mel_cat_kernel, B=B, n_mel=N_MEL, n_rest=n_rest),
        out_shape=jax.ShapeDtypeStruct((B, T, N_MEL + n_rest), F32),
    )(dec_out, va_out, mel_p["w"], mel_p["b"].reshape(1, -1),
      dec_p["w"], dec_p["b"].reshape(1, -1))


def _postnet_kernel(x_ref, wm_ref, bm_ref, *rest, B, T, K, n_layers, cins):
    """Fused mel_linear + 5-layer PostNet conv stack + residual."""
    conv_refs = rest[:2 * n_layers]
    o_ref, pad_ref, col_ref = rest[2 * n_layers:]
    pad_ref[...] = jnp.zeros(pad_ref.shape, F32)
    wm, bm = wm_ref[...], bm_ref[...]
    for bi in range(B):
        mel = jnp.dot(x_ref[bi], wm, preferred_element_type=F32) + bm  # (T, 8)
        h = mel
        for li in range(n_layers):
            w2d = conv_refs[2 * li][...]
            cb = conv_refs[2 * li + 1][...]
            h = _conv1d_same(h, w2d, cb, pad_ref, col_ref,
                             K=K, Cin=cins[li], T=T)
            if li < n_layers - 1:
                h = jnp.tanh(h)
        o_ref[bi] = h + mel


def postnet_fused(pp, mel_p, x):
    B, T, _ = x.shape
    layers = pp["layers"]
    n = len(layers)
    cins = tuple(int(lp["w"].shape[1]) for lp in layers)
    max_cin = max(cins)
    K = int(layers[0]["w"].shape[0])
    conv_args = []
    for lp in layers:
        Kl, Ci, Co = lp["w"].shape
        conv_args += [lp["w"].reshape(Kl * Ci, Co), lp["b"].reshape(1, Co)]
    return pl.pallas_call(
        functools.partial(_postnet_kernel, B=B, T=T, K=K, n_layers=n, cins=cins),
        out_shape=jax.ShapeDtypeStruct((B, T, N_MEL), F32),
        scratch_shapes=[pltpu.VMEM((T + K - 1, max_cin), F32),
                        pltpu.VMEM((T, K * max_cin), F32)],
    )(x, mel_p["w"], mel_p["b"].reshape(1, -1), *conv_args)


# ------------------------------ model pieces --------------------------------


def get_mask_from_lengths(lengths, max_len):
    ids = jnp.arange(max_len)
    return ids[None, :] >= lengths[:, None]      # True = padding


def electra_encoder(p, texts, attn_valid, token_type):
    # TODO(synk): the original loads pretrained ElectraModel weights from disk;
    # here a structurally similar transformer encoder is initialized in-script.
    B, T = texts.shape
    h = (p["word_emb"][texts] + p["pos_emb"][:T][None, :, :]
         + p["type_emb"][token_type])
    h = layernorm(h, p["emb_ln"]["g"], p["emb_ln"]["b"])
    vrow = attn_valid.astype(F32)[:, None, :]                # (B, 1, T) 1=valid
    for lp in p["layers"]:
        h = encoder_layer(h, vrow, lp)
    return h


def decoder(p, x, mel_mask):
    B, T, D = x.shape
    valid = (~mel_mask).astype(F32)
    vrow = valid[:, None, :]
    vcol = valid[:, :, None]
    h = x
    for li, lp in enumerate(p["layers"]):
        pos = p["pos_table"][:T] if li == 0 else jnp.zeros((T, D), F32)
        h = fft_layer(h, pos, vrow, vcol, lp)
    return h, mel_mask


def length_regulator(x, durations, max_len):
    # Data-dependent repeat_interleave -> static-shape gather (JAX glue).
    B, T, D = x.shape
    cum = jnp.cumsum(durations, axis=1)                       # (B, T)
    mel_len = cum[:, -1]
    frames = jnp.arange(max_len)
    idx = jax.vmap(lambda c: jnp.searchsorted(c, frames, side="right"))(cum)
    idx = jnp.minimum(idx, T - 1)
    out = jnp.take_along_axis(x, idx[:, :, None], axis=1)
    valid = frames[None, :] < mel_len[:, None]
    out = out * valid[:, :, None].astype(x.dtype)
    return out, mel_len


def variance_adaptor(p, x, src_mask, mel_mask, max_mel_len,
                     p_target, e_target, d_target,
                     p_control, e_control, d_control):
    # TODO(synk): original repo also passes `texts` (silence-id handling); omitted.
    src_valid_col = (~src_mask).astype(F32)[:, :, None]       # (B, T, 1)

    log_d_pred = variance_predictor(p["duration"], x, src_valid_col)

    pitch_pred = variance_predictor(p["pitch"], x, src_valid_col)
    if p_target is not None:
        pitch_idx = jnp.searchsorted(p["pitch_bins"], p_target)
    else:
        pitch_idx = jnp.searchsorted(p["pitch_bins"], pitch_pred * p_control)
    x = x + p["pitch_emb"][pitch_idx]

    energy_pred = variance_predictor(p["energy"], x, src_valid_col)
    if e_target is not None:
        energy_idx = jnp.searchsorted(p["energy_bins"], e_target)
    else:
        energy_idx = jnp.searchsorted(p["energy_bins"], energy_pred * e_control)
    x = x + p["energy_emb"][energy_idx]

    if d_target is not None:
        x, mel_len = length_regulator(x, d_target, max_mel_len)
        d_rounded = d_target
    else:
        d_rounded = jnp.maximum(
            jnp.round((jnp.exp(log_d_pred) - 1.0) * d_control), 0.0
        ).astype(jnp.int32)
        x, mel_len = length_regulator(x, d_rounded, max_mel_len)
        mel_mask = get_mask_from_lengths(mel_len, max_mel_len)

    return x, pitch_pred, energy_pred, log_d_pred, d_rounded, mel_len, mel_mask


def fastspeech2_forward(params, speakers, texts, src_lens, max_src_len,
                        mels=None, mel_lens=None, max_mel_len=None,
                        p_targets=None, e_targets=None, d_targets=None,
                        p_control=1.0, e_control=1.0, d_control=1.0):
    src_masks_new = get_mask_from_lengths(src_lens, max_src_len)
    max_src_inner = max_src_len - 2
    # NOTE: matches the reference module exactly: raw src_lens against the
    # inner (max_src_len - 2) length.
    src_masks = get_mask_from_lengths(src_lens, max_src_inner)
    masks_new = 1 - src_masks_new.astype(jnp.int32)
    seg_id = masks_new
    mel_masks = (get_mask_from_lengths(mel_lens, max_mel_len)
                 if mel_lens is not None else None)

    output = electra_encoder(params["encoder"], texts, masks_new, seg_id)
    output = output[:, 1:1 + max_src_inner, :]        # split [1, inner, 1]

    if params.get("speaker_emb") is not None:
        output = output + params["speaker_emb"][speakers][:, None, :]

    (output, p_pred, e_pred, log_d_pred, d_rounded, mel_lens_out,
     mel_masks) = variance_adaptor(
        params["variance_adaptor"], output, src_masks, mel_masks, max_mel_len,
        p_targets, e_targets, d_targets, p_control, e_control, d_control)

    va_out = output                                   # (B, M, D)

    # first decoder + fused (mel_linear | mel_linear_dec | concat)
    dec_out, mel_masks = decoder(params["decoder"], va_out, mel_masks)
    output_cat = mel_cat(dec_out, va_out,
                         params["mel_linear"], params["mel_linear_dec"])
    output_mel = output_cat[:, :, :N_MEL]             # returned `output`

    # second decoder on the 32-wide concatenated slab
    dec2_out, mel_masks = decoder(params["decoder_new"], output_cat, mel_masks)

    # fused mel_linear + PostNet + residual
    postnet_output = postnet_fused(params["postnet"], params["mel_linear"],
                                   dec2_out)

    return (output_mel, postnet_output, p_pred, e_pred, log_d_pred, d_rounded,
            src_masks, mel_masks, src_lens, mel_lens_out)


# ----------------------------- parameter init --------------------------------


class _KeyGen:
    def __init__(self, key):
        self.key = key

    def __call__(self):
        self.key, sub = jax.random.split(self.key)
        return sub


def _dense(key, d_in, d_out):
    k1, k2 = jax.random.split(key)
    return {"w": 0.05 * jax.random.normal(k1, (d_in, d_out), F32),
            "b": 0.01 * jax.random.normal(k2, (d_out,), F32)}


def _conv(key, k, c_in, c_out):
    k1, k2 = jax.random.split(key)
    return {"w": 0.05 * jax.random.normal(k1, (k, c_in, c_out), F32),
            "b": 0.01 * jax.random.normal(k2, (c_out,), F32)}


def _ln_p(d):
    return {"g": jnp.ones((d,), F32), "b": jnp.zeros((d,), F32)}


def _postnet_layer(kg, k, c_in, c_out):
    conv = _conv(kg(), k, c_in, c_out)
    gamma = 1.0 + 0.1 * jax.random.normal(kg(), (c_out,), F32)
    beta = 0.1 * jax.random.normal(kg(), (c_out,), F32)
    scale = gamma / jnp.sqrt(1.0 + 1e-5)   # BN eval: running mean 0, var 1
    return {"w": conv["w"] * scale[None, None, :],
            "b": conv["b"] * scale + beta}


def sinusoid_table(n_pos, d):
    pos = np.arange(n_pos)[:, None].astype(np.float64)
    i = np.arange(d)[None, :]
    angle = pos / np.power(10000.0, 2 * (i // 2) / d)
    table = np.zeros((n_pos, d))
    table[:, 0::2] = np.sin(angle[:, 0::2])
    table[:, 1::2] = np.cos(angle[:, 1::2])
    return jnp.asarray(table, F32)


def init_params(key):
    kg = _KeyGen(key)

    def attn_p():
        return {"q": _dense(kg(), D_MODEL, N_HEAD * D_HEAD),
                "k": _dense(kg(), D_MODEL, N_HEAD * D_HEAD),
                "v": _dense(kg(), D_MODEL, N_HEAD * D_HEAD),
                "o": _dense(kg(), N_HEAD * D_HEAD, D_MODEL)}

    def enc_layer():
        return {"attn": attn_p(), "ln1": _ln_p(D_MODEL),
                "ff1": _dense(kg(), D_MODEL, FF_HID),
                "ff2": _dense(kg(), FF_HID, D_MODEL),
                "ln2": _ln_p(D_MODEL)}

    def fft_layer_p():
        return {"attn": attn_p(), "ln1": _ln_p(D_MODEL),
                "c1": _conv(kg(), FFT_K[0], D_MODEL, FFT_CONV_HID),
                "c2": _conv(kg(), FFT_K[1], FFT_CONV_HID, D_MODEL),
                "ln2": _ln_p(D_MODEL)}

    def var_pred():
        return {"c1": _conv(kg(), VP_K, D_MODEL, VP_FILTER), "ln1": _ln_p(VP_FILTER),
                "c2": _conv(kg(), VP_K, VP_FILTER, VP_FILTER), "ln2": _ln_p(VP_FILTER),
                "out": _dense(kg(), VP_FILTER, 1)}

    pos_table = sinusoid_table(MAX_POS, D_MODEL)

    return {
        "encoder": {
            "word_emb": 0.05 * jax.random.normal(kg(), (VOCAB, D_MODEL), F32),
            "pos_emb": 0.05 * jax.random.normal(kg(), (MAX_POS, D_MODEL), F32),
            "type_emb": 0.05 * jax.random.normal(kg(), (2, D_MODEL), F32),
            "emb_ln": _ln_p(D_MODEL),
            "layers": [enc_layer() for _ in range(N_ENC_LAYERS)],
        },
        "variance_adaptor": {
            "duration": var_pred(), "pitch": var_pred(), "energy": var_pred(),
            "pitch_bins": jnp.linspace(-1.0, 1.0, N_BINS - 1),
            "energy_bins": jnp.linspace(0.0, 1.0, N_BINS - 1),
            "pitch_emb": 0.05 * jax.random.normal(kg(), (N_BINS, D_MODEL), F32),
            "energy_emb": 0.05 * jax.random.normal(kg(), (N_BINS, D_MODEL), F32),
        },
        "decoder": {"pos_table": pos_table,
                    "layers": [fft_layer_p() for _ in range(N_DEC_LAYERS)]},
        "decoder_new": {"pos_table": pos_table,
                        "layers": [fft_layer_p() for _ in range(N_DEC_LAYERS)]},
        "mel_linear_dec": _dense(kg(), D_MODEL, D_MODEL - N_MEL),
        "mel_linear": _dense(kg(), D_MODEL, N_MEL),
        "postnet": {"layers":
            [_postnet_layer(kg, POSTNET_K, N_MEL, POSTNET_DIM)]
            + [_postnet_layer(kg, POSTNET_K, POSTNET_DIM, POSTNET_DIM)
               for _ in range(POSTNET_N - 2)]
            + [_postnet_layer(kg, POSTNET_K, POSTNET_DIM, N_MEL)]},
        "speaker_emb": 0.05 * jax.random.normal(kg(), (N_SPEAKER, D_MODEL), F32),
    }


# ---------------------------------- main -------------------------------------

if __name__ == "__main__":
    root = jax.random.PRNGKey(0)
    pkey, tkey, pk1, pk2 = jax.random.split(root, 4)
    params = init_params(pkey)

    B = 2
    MAX_SRC = 10                 # includes [CLS]/[SEP]-style boundary tokens
    INNER = MAX_SRC - 2
    MAX_MEL = 24

    speakers = jnp.array([0, 1], jnp.int32)
    texts = jax.random.randint(tkey, (B, MAX_SRC), 0, VOCAB, jnp.int32)
    src_lens = jnp.array([10, 7], jnp.int32)
    d_targets = jnp.array([[3, 3, 3, 3, 3, 3, 3, 3],
                           [3, 3, 3, 3, 2, 2, 2, 0]], jnp.int32)
    mel_lens = d_targets.sum(-1)                       # [24, 18]
    p_targets = jax.random.uniform(pk1, (B, INNER), minval=-1.0, maxval=1.0)
    e_targets = jax.random.uniform(pk2, (B, INNER), minval=0.0, maxval=1.0)

    fwd = jax.jit(fastspeech2_forward,
                  static_argnames=("max_src_len", "max_mel_len"))
    outs = fwd(params, speakers, texts, src_lens,
               max_src_len=MAX_SRC,
               mel_lens=mel_lens, max_mel_len=MAX_MEL,
               p_targets=p_targets, e_targets=e_targets, d_targets=d_targets)
    jax.block_until_ready(outs)
    print("KERNEL_OK")
</pallas_src>

<mosaic_0001>
module attributes {stable_mosaic.version = 11 : i64} {
  func.func @_layernorm_kernel(%arg0: memref<20x32xf32, #tpu.memory_space<vmem>>, %arg1: memref<1x32xf32, #tpu.memory_space<vmem>>, %arg2: memref<1x32xf32, #tpu.memory_space<vmem>>, %arg3: memref<20x32xf32, #tpu.memory_space<vmem>>) attributes {dimension_semantics = [], scalar_prefetch = 0 : i64, scratch_operands = 0 : i64, tpu.core_type = #tpu.core_type<tc>} {
    %c0 = arith.constant 0 : index
    %c0_0 = arith.constant 0 : index
    %0 = vector.load %arg0[%c0, %c0_0] : memref<20x32xf32, #tpu.memory_space<vmem>>, vector<20x32xf32>
    %c0_1 = arith.constant 0 : index
    %c0_2 = arith.constant 0 : index
    %1 = vector.load %arg1[%c0_1, %c0_2] : memref<1x32xf32, #tpu.memory_space<vmem>>, vector<1x32xf32>
    %c0_3 = arith.constant 0 : index
    %c0_4 = arith.constant 0 : index
    %2 = vector.load %arg2[%c0_3, %c0_4] : memref<1x32xf32, #tpu.memory_space<vmem>>, vector<1x32xf32>
    %cst = arith.constant dense<0.000000e+00> : vector<20xf32>
    %3 = vector.multi_reduction <add>, %0, %cst [1] : vector<20x32xf32> to vector<20xf32>
    %4 = vector.shape_cast %3 : vector<20xf32> to vector<20x1xf32>
    %cst_5 = arith.constant 3.200000e+01 : f32
    %5 = vector.broadcast %cst_5 : f32 to vector<20x1xf32>
    %6 = arith.divf %4, %5 : vector<20x1xf32>
    %7 = vector.broadcast %6 : vector<20x1xf32> to vector<20x32xf32>
    %8 = arith.subf %0, %7 : vector<20x32xf32>
    %9 = arith.mulf %8, %8 : vector<20x32xf32>
    %cst_6 = arith.constant dense<0.000000e+00> : vector<20xf32>
    %10 = vector.multi_reduction <add>, %9, %cst_6 [1] : vector<20x32xf32> to vector<20xf32>
    %11 = vector.shape_cast %10 : vector<20xf32> to vector<20x1xf32>
    %cst_7 = arith.constant 3.200000e+01 : f32
    %12 = vector.broadcast %cst_7 : f32 to vector<20x1xf32>
    %13 = arith.divf %11, %12 : vector<20x1xf32>
    %14 = vector.broadcast %6 : vector<20x1xf32> to vector<20x32xf32>
    %15 = arith.subf %0, %14 : vector<20x32xf32>
    %cst_8 = arith.constant 9.99999974E-6 : f32
    %16 = vector.broadcast %cst_8 : f32 to vector<20x1xf32>
    %17 = arith.addf %13, %16 : vector<20x1xf32>
    %18 = math.rsqrt %17 : vector<20x1xf32>
    %19 = vector.broadcast %18 : vector<20x1xf32> to vector<20x32xf32>
    %20 = arith.mulf %15, %19 : vector<20x32xf32>
    %21 = vector.broadcast %1 : vector<1x32xf32> to vector<20x32xf32>
    %22 = arith.mulf %20, %21 : vector<20x32xf32>
    %23 = vector.broadcast %2 : vector<1x32xf32> to vector<20x32xf32>
    %24 = arith.addf %22, %23 : vector<20x32xf32>
    %c0_9 = arith.constant 0 : index
    %c0_10 = arith.constant 0 : index
    %25 = vector.load %arg3[%c0_9, %c0_10] : memref<20x32xf32, #tpu.memory_space<vmem>>, vector<20x32xf32>
    tpu.vector_store %arg3[%c0_9, %c0_10], %24 {strides = array<i32>} : memref<20x32xf32, #tpu.memory_space<vmem>>, vector<20x32xf32>,
    return
  }
}

module attributes {stable_mosaic.version = 11 : i64} {
  func.func @_encoder_layer_kernel(%arg0: memref<2x10x32xf32, #tpu.memory_space<vmem>>, %arg1: memref<2x1x10xf32, #tpu.memory_space<vmem>>, %arg2: memref<32x96xf32, #tpu.memory_space<vmem>>, %arg3: memref<1x96xf32, #tpu.memory_space<vmem>>, %arg4: memref<32x32xf32, #tpu.memory_space<vmem>>, %arg5: memref<1x32xf32, #tpu.memory_space<vmem>>, %arg6: memref<1x32xf32, #tpu.memory_space<vmem>>, %arg7: memref<1x32xf32, #tpu.memory_space<vmem>>, %arg8: memref<32x64xf32, #tpu.memory_space<vmem>>, %arg9: memref<1x64xf32, #tpu.memory_space<vmem>>, %arg10: memref<64x32xf32, #tpu.memory_space<vmem>>, %arg11: memref<1x32xf32, #tpu.memory_space<vmem>>, %arg12: memref<1x32xf32, #tpu.memory_space<vmem>>, %arg13: memref<1x32xf32, #tpu.memory_space<vmem>>, %arg14: memref<2x10x32xf32, #tpu.memory_space<vmem>>) attributes {dimension_semantics = [], scalar_prefetch = 0 : i64, scratch_operands = 0 : i64, tpu.core_type = #tpu.core_type<tc>} {
    %c0 = arith.constant 0 : index
    %c0_0 = arith.constant 0 : index
    %0 = vector.load %arg2[%c0, %c0_0] : memref<32x96xf32, #tpu.memory_space<vmem>>, vector<32x96xf32>
    %c0_1 = arith.constant 0 : index
    %c0_2 = arith.constant 0 : index
    %1 = vector.load %arg3[%c0_1, %c0_2] : memref<1x96xf32, #tpu.memory_space<vmem>>, vector<1x96xf32>
    %c0_3 = arith.constant 0 : index
    %c0_4 = arith.constant 0 : index
    %2 = vector.load %arg5[%c0_3, %c0_4] : memref<1x32xf32, #tpu.memory_space<vmem>>, vector<1x32xf32>
    %c0_5 = arith.constant 0 : index
    %c0_6 = arith.constant 0 : index
    %3 = vector.load %arg6[%c0_5, %c0_6] : memref<1x32xf32, #tpu.memory_space<vmem>>, vector<1x32xf32>
    %c0_7 = arith.constant 0 : index
    %c0_8 = arith.constant 0 : index
    %4 = vector.load %arg7[%c0_7, %c0_8] : memref<1x32xf32, #tpu.memory_space<vmem>>, vector<1x32xf32>
    %c0_9 = arith.constant 0 : index
    %c0_10 = arith.constant 0 : index
    %5 = vector.load %arg12[%c0_9, %c0_10] : memref<1x32xf32, #tpu.memory_space<vmem>>, vector<1x32xf32>
    %c0_11 = arith.constant 0 : index
    %c0_12 = arith.constant 0 : index
    %6 = vector.load %arg13[%c0_11, %c0_12] : memref<1x32xf32, #tpu.memory_space<vmem>>, vector<1x32xf32>
    %c0_13 = arith.constant 0 : index
    %c0_14 = arith.constant 0 : index
    %7 = vector.load %arg8[%c0_13, %c0_14] : memref<32x64xf32, #tpu.memory_space<vmem>>, vector<32x64xf32>
    %c0_15 = arith.constant 0 : index
    %c0_16 = arith.constant 0 : index
    %8 = vector.load %arg9[%c0_15, %c0_16] : memref<1x64xf32, #tpu.memory_space<vmem>>, vector<1x64xf32>
    %c0_17 = arith.constant 0 : index
    %c0_18 = arith.constant 0 : index
    %9 = vector.load %arg10[%c0_17, %c0_18] : memref<64x32xf32, #tpu.memory_space<vmem>>, vector<64x32xf32>
    %c0_19 = arith.constant 0 : index
    %c0_20 = arith.constant 0 : index
    %10 = vector.load %arg11[%c0_19, %c0_20] : memref<1x32xf32, #tpu.memory_space<vmem>>, vector<1x32xf32>
    %c0_21 = arith.constant 0 : index
    %c0_22 = arith.constant 0 : index
    %c0_23 = arith.constant 0 : index
    %11 = vector.load %arg0[%c0_21, %c0_22, %c0_23] : memref<2x10x32xf32, #tpu.memory_space<vmem>>, vector<1x10x32xf32>
    %12 = vector.shape_cast %11 : vector<1x10x32xf32> to vector<10x32xf32>
    %c0_24 = arith.constant 0 : index
    %c0_25 = arith.constant 0 : index
    %c0_26 = arith.constant 0 : index
    %13 = vector.load %arg1[%c0_24, %c0_25, %c0_26] : memref<2x1x10xf32, #tpu.memory_space<vmem>>, vector<1x1x10xf32>
    %14 = vector.shape_cast %13 : vector<1x1x10xf32> to vector<1x10xf32>
    %cst = arith.constant 1.000000e+00 : f32
    %15 = vector.broadcast %cst : f32 to vector<1x10xf32>
    %16 = arith.subf %14, %15 : vector<1x10xf32>
    %cst_27 = arith.constant 1.000000e+09 : f32
    %17 = vector.broadcast %cst_27 : f32 to vector<1x10xf32>
    %18 = arith.mulf %16, %17 : vector<1x10xf32>
    %cst_28 = arith.constant dense<0.000000e+00> : vector<10x96xf32>
    %19 = tpu.matmul %12, %0, %cst_28 {dimension_numbers = #tpu.dot_dimension_numbers<[1], [0], [0], [1], [0, 0, 1, 1], [], []>} : vector<10x32xf32>, vector<32x96xf32>, vector<10x96xf32> -> vector<10x96xf32>
    %20 = vector.broadcast %1 : vector<1x96xf32> to vector<10x96xf32>
    %21 = arith.addf %19, %20 : vector<10x96xf32>
    %22 = vector.extract_strided_slice %21 {offsets = [0, 0], sizes = [10, 16], strides = [1, 1]} : vector<10x96xf32> to vector<10x16xf32>
    %23 = vector.extract_strided_slice %21 {offsets = [0, 32], sizes = [10, 16], strides = [1, 1]} : vector<10x96xf32> to vector<10x16xf32>
    %24 = vector.extract_strided_slice %21 {offsets = [0, 64], sizes = [10, 16], strides = [1, 1]} : vector<10x96xf32> to vector<10x16xf32>
    %25 = tpu.transpose %23, [1, 0] : vector<10x16xf32> -> vector<16x10xf32>
    %cst_29 = arith.constant dense<0.000000e+00> : vector<10x10xf32>
    %26 = tpu.matmul %22, %25, %cst_29 {dimension_numbers = #tpu.dot_dimension_numbers<[1], [0], [0], [1], [0, 0, 1, 1], [], []>} : vector<10x16xf32>, vector<16x10xf32>, vector<10x10xf32> -> vector<10x10xf32>
    %cst_30 = arith.constant 2.500000e-01 : f32
    %27 = vector.broadcast %cst_30 : f32 to vector<10x10xf32>
    %28 = arith.mulf %26, %27 : vector<10x10xf32>
    %29 = vector.broadcast %18 : vector<1x10xf32> to vector<10x10xf32>
    %30 = arith.addf %28, %29 : vector<10x10xf32>
    %cst_31 = arith.constant dense<0xFF800000> : vector<10xf32>
    %31 = vector.multi_reduction <maximumf>, %30, %cst_31 [1] : vector<10x10xf32> to vector<10xf32>
    %32 = vector.shape_cast %31 : vector<10xf32> to vector<10x1xf32>
    %33 = vector.broadcast %32 : vector<10x1xf32> to vector<10x10xf32>
    %34 = arith.subf %30, %33 : vector<10x10xf32>
    %35 = math.exp %34 : vector<10x10xf32>
    %cst_32 = arith.constant dense<0.000000e+00> : vector<10xf32>
    %36 = vector.multi_reduction <add>, %35, %cst_32 [1] : vector<10x10xf32> to vector<10xf32>
    %37 = vector.shape_cast %36 : vector<10xf32> to vector<10x1xf32>
    %38 = vector.broadcast %37 : vector<10x1xf32> to vector<10x10xf32>
    %39 = arith.divf %35, %38 : vector<10x10xf32>
    %cst_33 = arith.constant dense<0.000000e+00> : vector<10x16xf32>
    %40 = tpu.matmul %39, %24, %cst_33 {dimension_numbers = #tpu.dot_dimension_numbers<[1], [0], [0], [1], [0, 0, 1, 1], [], []>} : vector<10x10xf32>, vector<10x16xf32>, vector<10x16xf32> -> vector<10x16xf32>
    %c0_34 = arith.constant 0 : index
    %c0_35 = arith.constant 0 : index
    %41 = vector.load %arg4[%c0_34, %c0_35] : memref<32x32xf32, #tpu.memory_space<vmem>>, vector<16x32xf32>
    %cst_36 = arith.constant dense<0.000000e+00> : vector<10x32xf32>
    %42 = tpu.matmul %40, %41, %cst_36 {dimension_numbers = #tpu.dot_dimension_numbers<[1], [0], [0], [1], [0, 0, 1, 1], [], []>} : vector<10x16xf32>, vector<16x32xf32>, vector<10x32xf32> -> vector<10x32xf32>
    %43 = vector.extract_strided_slice %21 {offsets = [0, 16], sizes = [10, 16], strides = [1, 1]} : vector<10x96xf32> to vector<10x16xf32>
    %44 = vector.extract_strided_slice %21 {offsets = [0, 48], sizes = [10, 16], strides = [1, 1]} : vector<10x96xf32> to vector<10x16xf32>
    %45 = vector.extract_strided_slice %21 {offsets = [0, 80], sizes = [10, 16], strides = [1, 1]} : vector<10x96xf32> to vector<10x16xf32>
    %46 = tpu.transpose %44, [1, 0] : vector<10x16xf32> -> vector<16x10xf32>
    %cst_37 = arith.constant dense<0.000000e+00> : vector<10x10xf32>
    %47 = tpu.matmul %43, %46, %cst_37 {dimension_numbers = #tpu.dot_dimension_numbers<[1], [0], [0], [1], [0, 0, 1, 1], [], []>} : vector<10x16xf32>, vector<16x10xf32>, vector<10x10xf32> -> vector<10x10xf32>
    %cst_38 = arith.constant 2.500000e-01 : f32
    %48 = vector.broadcast %cst_38 : f32 to vector<10x10xf32>
    %49 = arith.mulf %47, %48 : vector<10x10xf32>
    %50 = vector.broadcast %18 : vector<1x10xf32> to vector<10x10xf32>
    %51 = arith.addf %49, %50 : vector<10x10xf32>
    %cst_39 = arith.constant dense<0xFF800000> : vector<10xf32>
    %52 = vector.multi_reduction <maximumf>, %51, %cst_39 [1] : vector<10x10xf32> to vector<10xf32>
    %53 = vector.shape_cast %52 : vector<10xf32> to vector<10x1xf32>
    %54 = vector.broadcast %53 : vector<10x1xf32> to vector<10x10xf32>
    %55 = arith.subf %51, %54 : vector<10x10xf32>
    %56 = math.exp %55 : vector<10x10xf32>
    %cst_40 = arith.constant dense<0.000000e+00> : vector<10xf32>
    %57 = vector.multi_reduction <add>, %56, %cst_40 [1] : vector<10x10xf32> to vector<10xf32>
    %58 = vector.shape_cast %57 : vector<10xf32> to vector<10x1xf32>
    %59 = vector.broadcast %58 : vector<10x1xf32> to vector<10x10xf32>
    %60 = arith.divf %56, %59 : vector<10x10xf32>
    %cst_41 = arith.constant dense<0.000000e+00> : vector<10x16xf32>
    %61 = tpu.matmul %60, %45, %cst_41 {dimension_numbers = #tpu.dot_dimension_numbers<[1], [0], [0], [1], [0, 0, 1, 1], [], []>} : vector<10x10xf32>, vector<10x16xf32>, vector<10x16xf32> -> vector<10x16xf32>
    %c16 = arith.constant 16 : index
    %c0_42 = arith.constant 0 : index
    %62 = vector.load %arg4[%c16, %c0_42] : memref<32x32xf32, #tpu.memory_space<vmem>>, vector<16x32xf32>
    %cst_43 = arith.constant dense<0.000000e+00> : vector<10x32xf32>
    %63 = tpu.matmul %61, %62, %cst_43 {dimension_numbers = #tpu.dot_dimension_numbers<[1], [0], [0], [1], [0, 0, 1, 1], [], []>} : vector<10x16xf32>, vector<16x32xf32>, vector<10x32xf32> -> vector<10x32xf32>
    %64 = arith.addf %42, %63 : vector<10x32xf32>
    %65 = vector.broadcast %2 : vector<1x32xf32> to vector<10x32xf32>
    %66 = arith.addf %64, %65 : vector<10x32xf32>
    %67 = arith.addf %12, %66 : vector<10x32xf32>
    %cst_44 = arith.constant dense<0.000000e+00> : vector<10xf32>
    %68 = vector.multi_reduction <add>, %67, %cst_44 [1] : vector<10x32xf32> to vector<10xf32>
    %69 = vector.shape_cast %68 : vector<10xf32> to vector<10x1xf32>
    %cst_45 = arith.constant 3.200000e+01 : f32
    %70 = vector.broadcast %cst_45 : f32 to vector<10x1xf32>
    %71 = arith.divf %69, %70 : vector<10x1xf32>
    %72 = vector.broadcast %71 : vector<10x1xf32> to vector<10x32xf32>
    %73 = arith.subf %67, %72 : vector<10x32xf32>
    %74 = arith.mulf %73, %73 : vector<10x32xf32>
    %cst_46 = arith.constant dense<0.000000e+00> : vector<10xf32>
    %75 = vector.multi_reduction <add>, %74, %cst_46 [1] : vector<10x32xf32> to vector<10xf32>
    %76 = vector.shape_cast %75 : vector<10xf32> to vector<10x1xf32>
    %cst_47 = arith.constant 3.200000e+01 : f32
    %77 = vector.broadcast %cst_47 : f32 to vector<10x1xf32>
    %78 = arith.divf %76, %77 : vector<10x1xf32>
    %79 = vector.broadcast %71 : vector<10x1xf32> to vector<10x32xf32>
    %80 = arith.subf %67, %79 : vector<10x32xf32>
    %cst_48 = arith.constant 9.99999974E-6 : f32
    %81 = vector.broadcast %cst_48 : f32 to vector<10x1xf32>
    %82 = arith.addf %78, %81 : vector<10x1xf32>
    %83 = math.rsqrt %82 : vector<10x1xf32>
    %84 = vector.broadcast %83 : vector<10x1xf32> to vector<10x32xf32>
    %85 = arith.mulf %80, %84 : vector<10x32xf32>
    %86 = vector.broadcast %3 : vector<1x32xf32> to vector<10x32xf32>
    %87 = arith.mulf %85, %86 : vector<10x32xf32>
    %88 = vector.broadcast %4 : vector<1x32xf32> to vector<10x32xf32>
    %89 = arith.addf %87, %88 : vector<10x32xf32>
    %cst_49 = arith.constant dense<0.000000e+00> : vector<10x64xf32>
    %90 = tpu.matmul %89, %7, %cst_49 {dimension_numbers = #tpu.dot_dimension_numbers<[1], [0], [0], [1], [0, 0, 1, 1], [], []>} : vector<10x32xf32>, vector<32x64xf32>, vector<10x64xf32> -> vector<10x64xf32>
    %91 = vector.broadcast %8 : vector<1x64xf32> to vector<10x64xf32>
    %92 = arith.addf %90, %91 : vector<10x64xf32>
    %93 = arith.mulf %92, %92 : vector<10x64xf32>
    %94 = arith.mulf %92, %93 : vector<10x64xf32>
    %cst_50 = arith.constant 4.471500e-02 : f32
    %95 = vector.broadcast %cst_50 : f32 to vector<10x64xf32>
    %96 = arith.mulf %95, %94 : vector<10x64xf32>
    %97 = arith.addf %92, %96 : vector<10x64xf32>
    %cst_51 = arith.constant 0.797884583 : f32
    %98 = vector.broadcast %cst_51 : f32 to vector<10x64xf32>
    %99 = arith.mulf %98, %97 : vector<10x64xf32>
    %100 = math.tanh %99 : vector<10x64xf32>
    %cst_52 = arith.constant 1.000000e+00 : f32
    %101 = vector.broadcast %cst_52 : f32 to vector<10x64xf32>
    %102 = arith.addf %101, %100 : vector<10x64xf32>
    %cst_53 = arith.constant 5.000000e-01 : f32
    %103 = vector.broadcast %cst_53 : f32 to vector<10x64xf32>
    %104 = arith.mulf %103, %102 : vector<10x64xf32>
    %105 = arith.mulf %92, %104 : vector<10x64xf32>
    %cst_54 = arith.constant dense<0.000000e+00> : vector<10x32xf32>
    %106 = tpu.matmul %105, %9, %cst_54 {dimension_numbers = #tpu.dot_dimension_numbers<[1], [0], [0], [1], [0, 0, 1, 1], [], []>} : vector<10x64xf32>, vector<64x32xf32>, vector<10x32xf32> -> vector<10x32xf32>
    %107 = vector.broadcast %10 : vector<1x32xf32> to vector<10x32xf32>
    %108 = arith.addf %106, %107 : vector<10x32xf32>
    %109 = arith.addf %89, %108 : vector<10x32xf32>
    %cst_55 = arith.constant dense<0.000000e+00> : vector<10xf32>
    %110 = vector.multi_reduction <add>, %109, %cst_55 [1] : vector<10x32xf32> to vector<10xf32>
    %111 = vector.shape_cast %110 : vector<10xf32> to vector<10x1xf32>
    %cst_56 = arith.constant 3.200000e+01 : f32
    %112 = vector.broadcast %cst_56 : f32 to vector<10x1xf32>
    %113 = arith.divf %111, %112 : vector<10x1xf32>
    %114 = vector.broadcast %113 : vector<10x1xf32> to vector<10x32xf32>
    %115 = arith.subf %109, %114 : vector<10x32xf32>
    %116 = arith.mulf %115, %115 : vector<10x32xf32>
    %cst_57 = arith.constant dense<0.000000e+00> : vector<10xf32>
    %117 = vector.multi_reduction <add>, %116, %cst_57 [1] : vector<10x32xf32> to vector<10xf32>
    %118 = vector.shape_cast %117 : vector<10xf32> to vector<10x1xf32>
    %cst_58 = arith.constant 3.200000e+01 : f32
    %119 = vector.broadcast %cst_58 : f32 to vector<10x1xf32>
    %120 = arith.divf %118, %119 : vector<10x1xf32>
    %121 = vector.broadcast %113 : vector<10x1xf32> to vector<10x32xf32>
    %122 = arith.subf %109, %121 : vector<10x32xf32>
    %cst_59 = arith.constant 9.99999974E-6 : f32
    %123 = vector.broadcast %cst_59 : f32 to vector<10x1xf32>
    %124 = arith.addf %120, %123 : vector<10x1xf32>
    %125 = math.rsqrt %124 : vector<10x1xf32>
    %126 = vector.broadcast %125 : vector<10x1xf32> to vector<10x32xf32>
    %127 = arith.mulf %122, %126 : vector<10x32xf32>
    %128 = vector.broadcast %5 : vector<1x32xf32> to vector<10x32xf32>
    %129 = arith.mulf %127, %128 : vector<10x32xf32>
    %130 = vector.broadcast %6 : vector<1x32xf32> to vector<10x32xf32>
    %131 = arith.addf %129, %130 : vector<10x32xf32>
    %c0_60 = arith.constant 0 : index
    %c0_61 = arith.constant 0 : index
    %c0_62 = arith.constant 0 : index
    %132 = vector.load %arg14[%c0_60, %c0_61, %c0_62] : memref<2x10x32xf32, #tpu.memory_space<vmem>>, vector<1x10x32xf32>
    %133 = vector.shape_cast %132 : vector<1x10x32xf32> to vector<10x32xf32>
    %134 = vector.shape_cast %131 : vector<10x32xf32> to vector<1x10x32xf32>
    tpu.vector_store %arg14[%c0_60, %c0_61, %c0_62], %134 {strides = array<i32>} : memref<2x10x32xf32, #tpu.memory_space<vmem>>, vector<1x10x32xf32>,
    %c1 = arith.constant 1 : index
    %c0_63 = arith.constant 0 : index
    %c0_64 = arith.constant 0 : index
    %135 = vector.load %arg0[%c1, %c0_63, %c0_64] : memref<2x10x32xf32, #tpu.memory_space<vmem>>, vector<1x10x32xf32>
    %136 = vector.shape_cast %135 : vector<1x10x32xf32> to vector<10x32xf32>
    %c1_65 = arith.constant 1 : index
    %c0_66 = arith.constant 0 : index
    %c0_67 = arith.constant 0 : index
    %137 = vector.load %arg1[%c1_65, %c0_66, %c0_67] : memref<2x1x10xf32, #tpu.memory_space<vmem>>, vector<1x1x10xf32>
    %138 = vector.shape_cast %137 : vector<1x1x10xf32> to vector<1x10xf32>
    %cst_68 = arith.constant 1.000000e+00 : f32
    %139 = vector.broadcast %cst_68 : f32 to vector<1x10xf32>
    %140 = arith.subf %138, %139 : vector<1x10xf32>
    %cst_69 = arith.constant 1.000000e+09 : f32
    %141 = vector.broadcast %cst_69 : f32 to vector<1x10xf32>
    %142 = arith.mulf %140, %141 : vector<1x10xf32>
    %cst_70 = arith.constant dense<0.000000e+00> : vector<10x96xf32>
    %143 = tpu.matmul %136, %0, %cst_70 {dimension_numbers = #tpu.dot_dimension_numbers<[1], [0], [0], [1], [0, 0, 1, 1], [], []>} : vector<10x32xf32>, vector<32x96xf32>, vector<10x96xf32> -> vector<10x96xf32>
    %144 = vector.broadcast %1 : vector<1x96xf32> to vector<10x96xf32>
    %145 = arith.addf %143, %144 : vector<10x96xf32>
    %146 = vector.extract_strided_slice %145 {offsets = [0, 0], sizes = [10, 16], strides = [1, 1]} : vector<10x96xf32> to vector<10x16xf32>
    %147 = vector.extract_strided_slice %145 {offsets = [0, 32], sizes = [10, 16], strides = [1, 1]} : vector<10x96xf32> to vector<10x16xf32>
    %148 = vector.extract_strided_slice %145 {offsets = [0, 64], sizes = [10, 16], strides = [1, 1]} : vector<10x96xf32> to vector<10x16xf32>
    %149 = tpu.transpose %147, [1, 0] : vector<10x16xf32> -> vector<16x10xf32>
    %cst_71 = arith.constant dense<0.000000e+00> : vector<10x10xf32>
    %150 = tpu.matmul %146, %149, %cst_71 {dimension_numbers = #tpu.dot_dimension_numbers<[1], [0], [0], [1], [0, 0, 1, 1], [], []>} : vector<10x16xf32>, vector<16x10xf32>, vector<10x10xf32> -> vector<10x10xf32>
    %cst_72 = arith.constant 2.500000e-01 : f32
    %151 = vector.broadcast %cst_72 : f32 to vector<10x10xf32>
    %152 = arith.mulf %150, %151 : vector<10x10xf32>
    %153 = vector.broadcast %142 : vector<1x10xf32> to vector<10x10xf32>
    %154 = arith.addf %152, %153 : vector<10x10xf32>
    %cst_73 = arith.constant dense<0xFF800000> : vector<10xf32>
    %155 = vector.multi_reduction <maximumf>, %154, %cst_73 [1] : vector<10x10xf32> to vector<10xf32>
    %156 = vector.shape_cast %155 : vector<10xf32> to vector<10x1xf32>
    %157 = vector.broadcast %156 : vector<10x1xf32> to vector<10x10xf32>
    %158 = arith.subf %154, %157 : vector<10x10xf32>
    %159 = math.exp %158 : vector<10x10xf32>
    %cst_74 = arith.constant dense<0.000000e+00> : vector<10xf32>
    %160 = vector.multi_reduction <add>, %159, %cst_74 [1] : vector<10x10xf32> to vector<10xf32>
    %161 = vector.shape_cast %160 : vector<10xf32> to vector<10x1xf32>
    %162 = vector.broadcast %161 : vector<10x1xf32> to vector<10x10xf32>
    %163 = arith.divf %159, %162 : vector<10x10xf32>
    %cst_75 = arith.constant dense<0.000000e+00> : vector<10x16xf32>
    %164 = tpu.matmul %163, %148, %cst_75 {dimension_numbers = #tpu.dot_dimension_numbers<[1], [0], [0], [1], [0, 0, 1, 1], [], []>} : vector<10x10xf32>, vector<10x16xf32>, vector<10x16xf32> -> vector<10x16xf32>
    %c0_76 = arith.constant 0 : index
    %c0_77 = arith.constant 0 : index
    %165 = vector.load %arg4[%c0_76, %c0_77] : memref<32x32xf32, #tpu.memory_space<vmem>>, vector<16x32xf32>
    %cst_78 = arith.constant dense<0.000000e+00> : vector<10x32xf32>
    %166 = tpu.matmul %164, %165, %cst_78 {dimension_numbers = #tpu.dot_dimension_numbers<[1], [0], [0], [1], [0, 0, 1, 1], [], []>} : vector<10x16xf32>, vector<16x32xf32>, vector<10x32xf32> -> vector<10x32xf32>
    %167 = vector.extract_strided_slice %145 {offsets = [0, 16], sizes = [10, 16], strides = [1, 1]} : vector<10x96xf32> to vector<10x16xf32>
    %168 = vector.extract_strided_slice %145 {offsets = [0, 48], sizes = [10, 16], strides = [1, 1]} : vector<10x96xf32> to vector<10x16xf32>
    %169 = vector.extract_strided_slice %145 {offsets = [0, 80], sizes = [10, 16], strides = [1, 1]} : vector<10x96xf32> to vector<10x16xf32>
    %170 = tpu.transpose %168, [1, 0] : vector<10x16xf32> -> vector<16x10xf32>
    %cst_79 = arith.constant dense<0.000000e+00> : vector<10x10xf32>
    %171 = tpu.matmul %167, %170, %cst_79 {dimension_numbers = #tpu.dot_dimension_numbers<[1], [0], [0], [1], [0, 0, 1, 1], [], []>} : vector<10x16xf32>, vector<16x10xf32>, vector<10x10xf32> -> vector<10x10xf32>
    %cst_80 = arith.constant 2.500000e-01 : f32
    %172 = vector.broadcast %cst_80 : f32 to vector<10x10xf32>
    %173 = arith.mulf %171, %172 : vector<10x10xf32>
    %174 = vector.broadcast %142 : vector<1x10xf32> to vector<10x10xf32>
    %175 = arith.addf %173, %174 : vector<10x10xf32>
    %cst_81 = arith.constant dense<0xFF800000> : vector<10xf32>
    %176 = vector.multi_reduction <maximumf>, %175, %cst_81 [1] : vector<10x10xf32> to vector<10xf32>
    %177 = vector.shape_cast %176 : vector<10xf32> to vector<10x1xf32>
    %178 = vector.broadcast %177 : vector<10x1xf32> to vector<10x10xf32>
    %179 = arith.subf %175, %178 : vector<10x10xf32>
    %180 = math.exp %179 : vector<10x10xf32>
    %cst_82 = arith.constant dense<0.000000e+00> : vector<10xf32>
    %181 = vector.multi_reduction <add>, %180, %cst_82 [1] : vector<10x10xf32> to vector<10xf32>
    %182 = vector.shape_cast %181 : vector<10xf32> to vector<10x1xf32>
    %183 = vector.broadcast %182 : vector<10x1xf32> to vector<10x10xf32>
    %184 = arith.divf %180, %183 : vector<10x10xf32>
    %cst_83 = arith.constant dense<0.000000e+00> : vector<10x16xf32>
    %185 = tpu.matmul %184, %169, %cst_83 {dimension_numbers = #tpu.dot_dimension_numbers<[1], [0], [0], [1], [0, 0, 1, 1], [], []>} : vector<10x10xf32>, vector<10x16xf32>, vector<10x16xf32> -> vector<10x16xf32>
    %c16_84 = arith.constant 16 : index
    %c0_85 = arith.constant 0 : index
    %186 = vector.load %arg4[%c16_84, %c0_85] : memref<32x32xf32, #tpu.memory_space<vmem>>, vector<16x32xf32>
    %cst_86 = arith.constant dense<0.000000e+00> : vector<10x32xf32>
    %187 = tpu.matmul %185, %186, %cst_86 {dimension_numbers = #tpu.dot_dimension_numbers<[1], [0], [0], [1], [0, 0, 1, 1], [], []>} : vector<10x16xf32>, vector<16x32xf32>, vector<10x32xf32> -> vector<10x32xf32>
    %188 = arith.addf %166, %187 : vector<10x32xf32>
    %189 = vector.broadcast %2 : vector<1x32xf32> to vector<10x32xf32>
    %190 = arith.addf %188, %189 : vector<10x32xf32>
    %191 = arith.addf %136, %190 : vector<10x32xf32>
    %cst_87 = arith.constant dense<0.000000e+00> : vector<10xf32>
    %192 = vector.multi_reduction <add>, %191, %cst_87 [1] : vector<10x32xf32> to vector<10xf32>
    %193 = vector.shape_cast %192 : vector<10xf32> to vector<10x1xf32>
    %cst_88 = arith.constant 3.200000e+01 : f32
    %194 = vector.broadcast %cst_88 : f32 to vector<10x1xf32>
    %195 = arith.divf %193, %194 : vector<10x1xf32>
    %196 = vector.broadcast %195 : vector<10x1xf32> to vector<10x32xf32>
    %197 = arith.subf %191, %196 : vector<10x32xf32>
    %198 = arith.mulf %197, %197 : vector<10x32xf32>
    %cst_89 = arith.constant dense<0.000000e+00> : vector<10xf32>
    %199 = vector.multi_reduction <add>, %198, %cst_89 [1] : vector<10x32xf32> to vector<10xf32>
    %200 = vector.shape_cast %199 : vector<10xf32> to vector<10x1xf32>
    %cst_90 = arith.constant 3.200000e+01 : f32
    %201 = vector.broadcast %cst_90 : f32 to vector<10x1xf32>
    %202 = arith.divf %200, %201 : vector<10x1xf32>
    %203 = vector.broadcast %195 : vector<10x1xf32> to vector<10x32xf32>
    %204 = arith.subf %191, %203 : vector<10x32xf32>
    %cst_91 = arith.constant 9.99999974E-6 : f32
    %205 = vector.broadcast %cst_91 : f32 to vector<10x1xf32>
    %206 = arith.addf %202, %205 : vector<10x1xf32>
    %207 = math.rsqrt %206 : vector<10x1xf32>
    %208 = vector.broadcast %207 : vector<10x1xf32> to vector<10x32xf32>
    %209 = arith.mulf %204, %208 : vector<10x32xf32>
    %210 = vector.broadcast %3 : vector<1x32xf32> to vector<10x32xf32>
    %211 = arith.mulf %209, %210 : vector<10x32xf32>
    %212 = vector.broadcast %4 : vector<1x32xf32> to vector<10x32xf32>
    %213 = arith.addf %211, %212 : vector<10x32xf32>
    %cst_92 = arith.constant dense<0.000000e+00> : vector<10x64xf32>
    %214 = tpu.matmul %213, %7, %cst_92 {dimension_numbers = #tpu.dot_dimension_numbers<[1], [0], [0], [1], [0, 0, 1, 1], [], []>} : vector<10x32xf32>, vector<32x64xf32>, vector<10x64xf32> -> vector<10x64xf32>
    %215 = vector.broadcast %8 : vector<1x64xf32> to vector<10x64xf32>
    %216 = arith.addf %214, %215 : vector<10x64xf32>
    %217 = arith.mulf %216, %216 : vector<10x64xf32>
    %218 = arith.mulf %216, %217 : vector<10x64xf32>
    %cst_93 = arith.constant 4.471500e-02 : f32
    %219 = vector.broadcast %cst_93 : f32 to vector<10x64xf32>
    %220 = arith.mulf %219, %218 : vector<10x64xf32>
    %221 = arith.addf %216, %220 : vector<10x64xf32>
    %cst_94 = arith.constant 0.797884583 : f32
    %222 = vector.broadcast %cst_94 : f32 to vector<10x64xf32>
    %223 = arith.mulf %222, %221 : vector<10x64xf32>
    %224 = math.tanh %223 : vector<10x64xf32>
    %cst_95 = arith.constant 1.000000e+00 : f32
    %225 = vector.broadcast %cst_95 : f32 to vector<10x64xf32>
    %226 = arith.addf %225, %224 : vector<10x64xf32>
    %cst_96 = arith.constant 5.000000e-01 : f32
    %227 = vector.broadcast %cst_96 : f32 to vector<10x64xf32>
    %228 = arith.mulf %227, %226 : vector<10x64xf32>
    %229 = arith.mulf %216, %228 : vector<10x64xf32>
    %cst_97 = arith.constant dense<0.000000e+00> : vector<10x32xf32>
    %230 = tpu.matmul %229, %9, %cst_97 {dimension_numbers = #tpu.dot_dimension_numbers<[1], [0], [0], [1], [0, 0, 1, 1], [], []>} : vector<10x64xf32>, vector<64x32xf32>, vector<10x32xf32> -> vector<10x32xf32>
    %231 = vector.broadcast %10 : vector<1x32xf32> to vector<10x32xf32>
    %232 = arith.addf %230, %231 : vector<10x32xf32>
    %233 = arith.addf %213, %232 : vector<10x32xf32>
    %cst_98 = arith.constant dense<0.000000e+00> : vector<10xf32>
    %234 = vector.multi_reduction <add>, %233, %cst_98 [1] : vector<10x32xf32> to vector<10xf32>
    %235 = vector.shape_cast %234 : vector<10xf32> to vector<10x1xf32>
    %cst_99 = arith.constant 3.200000e+01 : f32
    %236 = vector.broadcast %cst_99 : f32 to vector<10x1xf32>
    %237 = arith.divf %235, %236 : vector<10x1xf32>
    %238 = vector.broadcast %237 : vector<10x1xf32> to vector<10x32xf32>
    %239 = arith.subf %233, %238 : vector<10x32xf32>
    %240 = arith.mulf %239, %239 : vector<10x32xf32>
    %cst_100 = arith.constant dense<0.000000e+00> : vector<10xf32>
    %241 = vector.multi_reduction <add>, %240, %cst_100 [1] : vector<10x32xf32> to vector<10xf32>
    %242 = vector.shape_cast %241 : vector<10xf32> to vector<10x1xf32>
    %cst_101 = arith.constant 3.200000e+01 : f32
    %243 = vector.broadcast %cst_101 : f32 to vector<10x1xf32>
    %244 = arith.divf %242, %243 : vector<10x1xf32>
    %245 = vector.broadcast %237 : vector<10x1xf32> to vector<10x32xf32>
    %246 = arith.subf %233, %245 : vector<10x32xf32>
    %cst_102 = arith.constant 9.99999974E-6 : f32
    %247 = vector.broadcast %cst_102 : f32 to vector<10x1xf32>
    %248 = arith.addf %244, %247 : vector<10x1xf32>
    %249 = math.rsqrt %248 : vector<10x1xf32>
    %250 = vector.broadcast %249 : vector<10x1xf32> to vector<10x32xf32>
    %251 = arith.mulf %246, %250 : vector<10x32xf32>
    %252 = vector.broadcast %5 : vector<1x32xf32> to vector<10x32xf32>
    %253 = arith.mulf %251, %252 : vector<10x32xf32>
    %254 = vector.broadcast %6 : vector<1x32xf32> to vector<10x32xf32>
    %255 = arith.addf %253, %254 : vector<10x32xf32>
    %c1_103 = arith.constant 1 : index
    %c0_104 = arith.constant 0 : index
    %c0_105 = arith.constant 0 : index
    %256 = vector.load %arg14[%c1_103, %c0_104, %c0_105] : memref<2x10x32xf32, #tpu.memory_space<vmem>>, vector<1x10x32xf32>
    %257 = vector.shape_cast %256 : vector<1x10x32xf32> to vector<10x32xf32>
    %258 = vector.shape_cast %255 : vector<10x32xf32> to vector<1x10x32xf32>
    tpu.vector_store %arg14[%c1_103, %c0_104, %c0_105], %258 {strides = array<i32>} : memref<2x10x32xf32, #tpu.memory_space<vmem>>, vector<1x10x32xf32>,
    return
  }
}

module attributes {stable_mosaic.version = 11 : i64} {
  func.func @_fft_layer_kernel(%arg0: memref<2x24x32xf32, #tpu.memory_space<vmem>>, %arg1: memref<24x32xf32, #tpu.memory_space<vmem>>, %arg2: memref<2x1x24xf32, #tpu.memory_space<vmem>>, %arg3: memref<2x24x1xf32, #tpu.memory_space<vmem>>, %arg4: memref<32x96xf32, #tpu.memory_space<vmem>>, %arg5: memref<1x96xf32, #tpu.memory_space<vmem>>, %arg6: memref<32x32xf32, #tpu.memory_space<vmem>>, %arg7: memref<1x32xf32, #tpu.memory_space<vmem>>, %arg8: memref<1x32xf32, #tpu.memory_space<vmem>>, %arg9: memref<1x32xf32, #tpu.memory_space<vmem>>, %arg10: memref<288x64xf32, #tpu.memory_space<vmem>>, %arg11: memref<1x64xf32, #tpu.memory_space<vmem>>, %arg12: memref<64x32xf32, #tpu.memory_space<vmem>>, %arg13: memref<1x32xf32, #tpu.memory_space<vmem>>, %arg14: memref<1x32xf32, #tpu.memory_space<vmem>>, %arg15: memref<1x32xf32, #tpu.memory_space<vmem>>, %arg16: memref<2x24x32xf32, #tpu.memory_space<vmem>>, %arg17: memref<32x32xf32, #tpu.memory_space<vmem>>, %arg18: memref<24x288xf32, #tpu.memory_space<vmem>>) attributes {dimension_semantics = [], scalar_prefetch = 0 : i64, scratch_operands = 2 : i64, tpu.core_type = #tpu.core_type<tc>} {
    %cst = arith.constant 0.000000e+00 : f32
    %0 = vector.broadcast %cst : f32 to vector<32x32xf32>
    %c0 = arith.constant 0 : index
    %c0_0 = arith.constant 0 : index
    %1 = vector.load %arg17[%c0, %c0_0] : memref<32x32xf32, #tpu.memory_space<vmem>>, vector<32x32xf32>
    tpu.vector_store %arg17[%c0, %c0_0], %0 {strides = array<i32>} : memref<32x32xf32, #tpu.memory_space<vmem>>, vector<32x32xf32>,
    %c0_1 = arith.constant 0 : index
    %c0_2 = arith.constant 0 : index
    %2 = vector.load %arg4[%c0_1, %c0_2] : memref<32x96xf32, #tpu.memory_space<vmem>>, vector<32x96xf32>
    %c0_3 = arith.constant 0 : index
    %c0_4 = arith.constant 0 : index
    %3 = vector.load %arg5[%c0_3, %c0_4] : memref<1x96xf32, #tpu.memory_space<vmem>>, vector<1x96xf32>
    %c0_5 = arith.constant 0 : index
    %c0_6 = arith.constant 0 : index
    %4 = vector.load %arg7[%c0_5, %c0_6] : memref<1x32xf32, #tpu.memory_space<vmem>>, vector<1x32xf32>
    %c0_7 = arith.constant 0 : index
    %c0_8 = arith.constant 0 : index
    %5 = vector.load %arg8[%c0_7, %c0_8] : memref<1x32xf32, #tpu.memory_space<vmem>>, vector<1x32xf32>
    %c0_9 = arith.constant 0 : index
    %c0_10 = arith.constant 0 : index
    %6 = vector.load %arg9[%c0_9, %c0_10] : memref<1x32xf32, #tpu.memory_space<vmem>>, vector<1x32xf32>
    %c0_11 = arith.constant 0 : index
    %c0_12 = arith.constant 0 : index
    %7 = vector.load %arg14[%c0_11, %c0_12] : memref<1x32xf32, #tpu.memory_space<vmem>>, vector<1x32xf32>
    %c0_13 = arith.constant 0 : index
    %c0_14 = arith.constant 0 : index
    %8 = vector.load %arg15[%c0_13, %c0_14] : memref<1x32xf32, #tpu.memory_space<vmem>>, vector<1x32xf32>
    %c0_15 = arith.constant 0 : index
    %c0_16 = arith.constant 0 : index
    %9 = vector.load %arg10[%c0_15, %c0_16] : memref<288x64xf32, #tpu.memory_space<vmem>>, vector<288x64xf32>
    %c0_17 = arith.constant 0 : index
    %c0_18 = arith.constant 0 : index
    %10 = vector.load %arg11[%c0_17, %c0_18] : memref<1x64xf32, #tpu.memory_space<vmem>>, vector<1x64xf32>
    %c0_19 = arith.constant 0 : index
    %c0_20 = arith.constant 0 : index
    %11 = vector.load %arg12[%c0_19, %c0_20] : memref<64x32xf32, #tpu.memory_space<vmem>>, vector<64x32xf32>
    %c0_21 = arith.constant 0 : index
    %c0_22 = arith.constant 0 : index
    %12 = vector.load %arg13[%c0_21, %c0_22] : memref<1x32xf32, #tpu.memory_space<vmem>>, vector<1x32xf32>
    %c0_23 = arith.constant 0 : index
    %c0_24 = arith.constant 0 : index
    %13 = vector.load %arg1[%c0_23, %c0_24] : memref<24x32xf32, #tpu.memory_space<vmem>>, vector<24x32xf32>
    %c0_25 = arith.constant 0 : index
    %c0_26 = arith.constant 0 : index
    %c0_27 = arith.constant 0 : index
    %14 = vector.load %arg0[%c0_25, %c0_26, %c0_27] : memref<2x24x32xf32, #tpu.memory_space<vmem>>, vector<1x24x32xf32>
    %15 = vector.shape_cast %14 : vector<1x24x32xf32> to vector<24x32xf32>
    %16 = arith.addf %15, %13 : vector<24x32xf32>
    %c0_28 = arith.constant 0 : index
    %c0_29 = arith.constant 0 : index
    %c0_30 = arith.constant 0 : index
    %17 = vector.load %arg3[%c0_28, %c0_29, %c0_30] : memref<2x24x1xf32, #tpu.memory_space<vmem>>, vector<1x24x1xf32>
    %18 = vector.shape_cast %17 : vector<1x24x1xf32> to vector<24x1xf32>
    %c0_31 = arith.constant 0 : index
    %c0_32 = arith.constant 0 : index
    %c0_33 = arith.constant 0 : index
    %19 = vector.load %arg2[%c0_31, %c0_32, %c0_33] : memref<2x1x24xf32, #tpu.memory_space<vmem>>, vector<1x1x24xf32>
    %20 = vector.shape_cast %19 : vector<1x1x24xf32> to vector<1x24xf32>
    %cst_34 = arith.constant 1.000000e+00 : f32
    %21 = vector.broadcast %cst_34 : f32 to vector<1x24xf32>
    %22 = arith.subf %20, %21 : vector<1x24xf32>
    %cst_35 = arith.constant 1.000000e+09 : f32
    %23 = vector.broadcast %cst_35 : f32 to vector<1x24xf32>
    %24 = arith.mulf %22, %23 : vector<1x24xf32>
    %cst_36 = arith.constant dense<0.000000e+00> : vector<24x96xf32>
    %25 = tpu.matmul %16, %2, %cst_36 {dimension_numbers = #tpu.dot_dimension_numbers<[1], [0], [0], [1], [0, 0, 1, 1], [], []>} : vector<24x32xf32>, vector<32x96xf32>, vector<24x96xf32> -> vector<24x96xf32>
    %26 = vector.broadcast %3 : vector<1x96xf32> to vector<24x96xf32>
    %27 = arith.addf %25, %26 : vector<24x96xf32>
    %28 = vector.extract_strided_slice %27 {offsets = [0, 0], sizes = [24, 16], strides = [1, 1]} : vector<24x96xf32> to vector<24x16xf32>
    %29 = vector.extract_strided_slice %27 {offsets = [0, 32], sizes = [24, 16], strides = [1, 1]} : vector<24x96xf32> to vector<24x16xf32>
    %30 = vector.extract_strided_slice %27 {offsets = [0, 64], sizes = [24, 16], strides = [1, 1]} : vector<24x96xf32> to vector<24x16xf32>
    %31 = tpu.transpose %29, [1, 0] : vector<24x16xf32> -> vector<16x24xf32>
    %cst_37 = arith.constant dense<0.000000e+00> : vector<24x24xf32>
    %32 = tpu.matmul %28, %31, %cst_37 {dimension_numbers = #tpu.dot_dimension_numbers<[1], [0], [0], [1], [0, 0, 1, 1], [], []>} : vector<24x16xf32>, vector<16x24xf32>, vector<24x24xf32> -> vector<24x24xf32>
    %cst_38 = arith.constant 2.500000e-01 : f32
    %33 = vector.broadcast %cst_38 : f32 to vector<24x24xf32>
    %34 = arith.mulf %32, %33 : vector<24x24xf32>
    %35 = vector.broadcast %24 : vector<1x24xf32> to vector<24x24xf32>
    %36 = arith.addf %34, %35 : vector<24x24xf32>
    %cst_39 = arith.constant dense<0xFF800000> : vector<24xf32>
    %37 = vector.multi_reduction <maximumf>, %36, %cst_39 [1] : vector<24x24xf32> to vector<24xf32>
    %38 = vector.shape_cast %37 : vector<24xf32> to vector<24x1xf32>
    %39 = vector.broadcast %38 : vector<24x1xf32> to vector<24x24xf32>
    %40 = arith.subf %36, %39 : vector<24x24xf32>
    %41 = math.exp %40 : vector<24x24xf32>
    %cst_40 = arith.constant dense<0.000000e+00> : vector<24xf32>
    %42 = vector.multi_reduction <add>, %41, %cst_40 [1] : vector<24x24xf32> to vector<24xf32>
    %43 = vector.shape_cast %42 : vector<24xf32> to vector<24x1xf32>
    %44 = vector.broadcast %43 : vector<24x1xf32> to vector<24x24xf32>
    %45 = arith.divf %41, %44 : vector<24x24xf32>
    %cst_41 = arith.constant dense<0.000000e+00> : vector<24x16xf32>
    %46 = tpu.matmul %45, %30, %cst_41 {dimension_numbers = #tpu.dot_dimension_numbers<[1], [0], [0], [1], [0, 0, 1, 1], [], []>} : vector<24x24xf32>, vector<24x16xf32>, vector<24x16xf32> -> vector<24x16xf32>
    %c0_42 = arith.constant 0 : index
    %c0_43 = arith.constant 0 : index
    %47 = vector.load %arg6[%c0_42, %c0_43] : memref<32x32xf32, #tpu.memory_space<vmem>>, vector<16x32xf32>
    %cst_44 = arith.constant dense<0.000000e+00> : vector<24x32xf32>
    %48 = tpu.matmul %46, %47, %cst_44 {dimension_numbers = #tpu.dot_dimension_numbers<[1], [0], [0], [1], [0, 0, 1, 1], [], []>} : vector<24x16xf32>, vector<16x32xf32>, vector<24x32xf32> -> vector<24x32xf32>
    %49 = vector.extract_strided_slice %27 {offsets = [0, 16], sizes = [24, 16], strides = [1, 1]} : vector<24x96xf32> to vector<24x16xf32>
    %50 = vector.extract_strided_slice %27 {offsets = [0, 48], sizes = [24, 16], strides = [1, 1]} : vector<24x96xf32> to vector<24x16xf32>
    %51 = vector.extract_strided_slice %27 {offsets = [0, 80], sizes = [24, 16], strides = [1, 1]} : vector<24x96xf32> to vector<24x16xf32>
    %52 = tpu.transpose %50, [1, 0] : vector<24x16xf32> -> vector<16x24xf32>
    %cst_45 = arith.constant dense<0.000000e+00> : vector<24x24xf32>
    %53 = tpu.matmul %49, %52, %cst_45 {dimension_numbers = #tpu.dot_dimension_numbers<[1], [0], [0], [1], [0, 0, 1, 1], [], []>} : vector<24x16xf32>, vector<16x24xf32>, vector<24x24xf32> -> vector<24x24xf32>
    %cst_46 = arith.constant 2.500000e-01 : f32
    %54 = vector.broadcast %cst_46 : f32 to vector<24x24xf32>
    %55 = arith.mulf %53, %54 : vector<24x24xf32>
    %56 = vector.broadcast %24 : vector<1x24xf32> to vector<24x24xf32>
    %57 = arith.addf %55, %56 : vector<24x24xf32>
    %cst_47 = arith.constant dense<0xFF800000> : vector<24xf32>
    %58 = vector.multi_reduction <maximumf>, %57, %cst_47 [1] : vector<24x24xf32> to vector<24xf32>
    %59 = vector.shape_cast %58 : vector<24xf32> to vector<24x1xf32>
    %60 = vector.broadcast %59 : vector<24x1xf32> to vector<24x24xf32>
    %61 = arith.subf %57, %60 : vector<24x24xf32>
    %62 = math.exp %61 : vector<24x24xf32>
    %cst_48 = arith.constant dense<0.000000e+00> : vector<24xf32>
    %63 = vector.multi_reduction <add>, %62, %cst_48 [1] : vector<24x24xf32> to vector<24xf32>
    %64 = vector.shape_cast %63 : vector<24xf32> to vector<24x1xf32>
    %65 = vector.broadcast %64 : vector<24x1xf32> to vector<24x24xf32>
    %66 = arith.divf %62, %65 : vector<24x24xf32>
    %cst_49 = arith.constant dense<0.000000e+00> : vector<24x16xf32>
    %67 = tpu.matmul %66, %51, %cst_49 {dimension_numbers = #tpu.dot_dimension_numbers<[1], [0], [0], [1], [0, 0, 1, 1], [], []>} : vector<24x24xf32>, vector<24x16xf32>, vector<24x16xf32> -> vector<24x16xf32>
    %c16 = arith.constant 16 : index
    %c0_50 = arith.constant 0 : index
    %68 = vector.load %arg6[%c16, %c0_50] : memref<32x32xf32, #tpu.memory_space<vmem>>, vector<16x32xf32>
    %cst_51 = arith.constant dense<0.000000e+00> : vector<24x32xf32>
    %69 = tpu.matmul %67, %68, %cst_51 {dimension_numbers = #tpu.dot_dimension_numbers<[1], [0], [0], [1], [0, 0, 1, 1], [], []>} : vector<24x16xf32>, vector<16x32xf32>, vector<24x32xf32> -> vector<24x32xf32>
    %70 = arith.addf %48, %69 : vector<24x32xf32>
    %71 = vector.broadcast %4 : vector<1x32xf32> to vector<24x32xf32>
    %72 = arith.addf %70, %71 : vector<24x32xf32>
    %73 = arith.addf %16, %72 : vector<24x32xf32>
    %cst_52 = arith.constant dense<0.000000e+00> : vector<24xf32>
    %74 = vector.multi_reduction <add>, %73, %cst_52 [1] : vector<24x32xf32> to vector<24xf32>
    %75 = vector.shape_cast %74 : vector<24xf32> to vector<24x1xf32>
    %cst_53 = arith.constant 3.200000e+01 : f32
    %76 = vector.broadcast %cst_53 : f32 to vector<24x1xf32>
    %77 = arith.divf %75, %76 : vector<24x1xf32>
    %78 = vector.broadcast %77 : vector<24x1xf32> to vector<24x32xf32>
    %79 = arith.subf %73, %78 : vector<24x32xf32>
    %80 = arith.mulf %79, %79 : vector<24x32xf32>
    %cst_54 = arith.constant dense<0.000000e+00> : vector<24xf32>
    %81 = vector.multi_reduction <add>, %80, %cst_54 [1] : vector<24x32xf32> to vector<24xf32>
    %82 = vector.shape_cast %81 : vector<24xf32> to vector<24x1xf32>
    %cst_55 = arith.constant 3.200000e+01 : f32
    %83 = vector.broadcast %cst_55 : f32 to vector<24x1xf32>
    %84 = arith.divf %82, %83 : vector<24x1xf32>
    %85 = vector.broadcast %77 : vector<24x1xf32> to vector<24x32xf32>
    %86 = arith.subf %73, %85 : vector<24x32xf32>
    %cst_56 = arith.constant 9.99999974E-6 : f32
    %87 = vector.broadcast %cst_56 : f32 to vector<24x1xf32>
    %88 = arith.addf %84, %87 : vector<24x1xf32>
    %89 = math.rsqrt %88 : vector<24x1xf32>
    %90 = vector.broadcast %89 : vector<24x1xf32> to vector<24x32xf32>
    %91 = arith.mulf %86, %90 : vector<24x32xf32>
    %92 = vector.broadcast %5 : vector<1x32xf32> to vector<24x32xf32>
    %93 = arith.mulf %91, %92 : vector<24x32xf32>
    %94 = vector.broadcast %6 : vector<1x32xf32> to vector<24x32xf32>
    %95 = arith.addf %93, %94 : vector<24x32xf32>
    %96 = vector.broadcast %18 : vector<24x1xf32> to vector<24x32xf32>
    %97 = arith.mulf %95, %96 : vector<24x32xf32>
    %c4 = arith.constant 4 : index
    %c0_57 = arith.constant 0 : index
    %98 = vector.load %arg17[%c4, %c0_57] : memref<32x32xf32, #tpu.memory_space<vmem>>, vector<24x32xf32>
    tpu.vector_store %arg17[%c4, %c0_57], %97 {strides = array<i32>} : memref<32x32xf32, #tpu.memory_space<vmem>>, vector<24x32xf32>,
    %c0_58 = arith.constant 0 : index
    %c0_59 = arith.constant 0 : index
    %99 = vector.load %arg17[%c0_58, %c0_59] : memref<32x32xf32, #tpu.memory_space<vmem>>, vector<24x32xf32>
    %c0_60 = arith.constant 0 : index
    %c0_61 = arith.constant 0 : index
    %100 = vector.load %arg18[%c0_60, %c0_61] : memref<24x288xf32, #tpu.memory_space<vmem>>, vector<24x32xf32>
    tpu.vector_store %arg18[%c0_60, %c0_61], %99 {strides = array<i32>} : memref<24x288xf32, #tpu.memory_space<vmem>>, vector<24x32xf32>,
    %c1 = arith.constant 1 : index
    %c0_62 = arith.constant 0 : index
    %101 = vector.load %arg17[%c1, %c0_62] : memref<32x32xf32, #tpu.memory_space<vmem>>, vector<24x32xf32>
    %c0_63 = arith.constant 0 : index
    %c32 = arith.constant 32 : index
    %102 = vector.load %arg18[%c0_63, %c32] : memref<24x288xf32, #tpu.memory_space<vmem>>, vector<24x32xf32>
    tpu.vector_store %arg18[%c0_63, %c32], %101 {strides = array<i32>} : memref<24x288xf32, #tpu.memory_space<vmem>>, vector<24x32xf32>,
    %c2 = arith.constant 2 : index
    %c0_64 = arith.constant 0 : index
    %103 = vector.load %arg17[%c2, %c0_64] : memref<32x32xf32, #tpu.memory_space<vmem>>, vector<24x32xf32>
    %c0_65 = arith.constant 0 : index
    %c64 = arith.constant 64 : index
    %104 = vector.load %arg18[%c0_65, %c64] : memref<24x288xf32, #tpu.memory_space<vmem>>, vector<24x32xf32>
    tpu.vector_store %arg18[%c0_65, %c64], %103 {strides = array<i32>} : memref<24x288xf32, #tpu.memory_space<vmem>>, vector<24x32xf32>,
    %c3 = arith.constant 3 : index
    %c0_66 = arith.constant 0 : index
    %105 = vector.load %arg17[%c3, %c0_66] : memref<32x32xf32, #tpu.memory_space<vmem>>, vector<24x32xf32>
    %c0_67 = arith.constant 0 : index
    %c96 = arith.constant 96 : index
    %106 = vector.load %arg18[%c0_67, %c96] : memref<24x288xf32, #tpu.memory_space<vmem>>, vector<24x32xf32>
    tpu.vector_store %arg18[%c0_67, %c96], %105 {strides = array<i32>} : memref<24x288xf32, #tpu.memory_space<vmem>>, vector<24x32xf32>,
    %c4_68 = arith.constant 4 : index
    %c0_69 = arith.constant 0 : index
    %107 = vector.load %arg17[%c4_68, %c0_69] : memref<32x32xf32, #tpu.memory_space<vmem>>, vector<24x32xf32>
    %c0_70 = arith.constant 0 : index
    %c128 = arith.constant 128 : index
    %108 = vector.load %arg18[%c0_70, %c128] : memref<24x288xf32, #tpu.memory_space<vmem>>, vector<24x32xf32>
    tpu.vector_store %arg18[%c0_70, %c128], %107 {strides = array<i32>} : memref<24x288xf32, #tpu.memory_space<vmem>>, vector<24x32xf32>,
    %c5 = arith.constant 5 : index
    %c0_71 = arith.constant 0 : index
    %109 = vector.load %arg17[%c5, %c0_71] : memref<32x32xf32, #tpu.memory_space<vmem>>, vector<24x32xf32>
    %c0_72 = arith.constant 0 : index
    %c160 = arith.constant 160 : index
    %110 = vector.load %arg18[%c0_72, %c160] : memref<24x288xf32, #tpu.memory_space<vmem>>, vector<24x32xf32>
    tpu.vector_store %arg18[%c0_72, %c160], %109 {strides = array<i32>} : memref<24x288xf32, #tpu.memory_space<vmem>>, vector<24x32xf32>,
    %c6 = arith.constant 6 : index
    %c0_73 = arith.constant 0 : index
    %111 = vector.load %arg17[%c6, %c0_73] : memref<32x32xf32, #tpu.memory_space<vmem>>, vector<24x32xf32>
    %c0_74 = arith.constant 0 : index
    %c192 = arith.constant 192 : index
    %112 = vector.load %arg18[%c0_74, %c192] : memref<24x288xf32, #tpu.memory_space<vmem>>, vector<24x32xf32>
    tpu.vector_store %arg18[%c0_74, %c192], %111 {strides = array<i32>} : memref<24x288xf32, #tpu.memory_space<vmem>>, vector<24x32xf32>,
    %c7 = arith.constant 7 : index
    %c0_75 = arith.constant 0 : index
    %113 = vector.load %arg17[%c7, %c0_75] : memref<32x32xf32, #tpu.memory_space<vmem>>, vector<24x32xf32>
    %c0_76 = arith.constant 0 : index
    %c224 = arith.constant 224 : index
    %114 = vector.load %arg18[%c0_76, %c224] : memref<24x288xf32, #tpu.memory_space<vmem>>, vector<24x32xf32>
    tpu.vector_store %arg18[%c0_76, %c224], %113 {strides = array<i32>} : memref<24x288xf32, #tpu.memory_space<vmem>>, vector<24x32xf32>,
    %c8 = arith.constant 8 : index
    %c0_77 = arith.constant 0 : index
    %115 = vector.load %arg17[%c8, %c0_77] : memref<32x32xf32, #tpu.memory_space<vmem>>, vector<24x32xf32>
    %c0_78 = arith.constant 0 : index
    %c256 = arith.constant 256 : index
    %116 = vector.load %arg18[%c0_78, %c256] : memref<24x288xf32, #tpu.memory_space<vmem>>, vector<24x32xf32>
    tpu.vector_store %arg18[%c0_78, %c256], %115 {strides = array<i32>} : memref<24x288xf32, #tpu.memory_space<vmem>>, vector<24x32xf32>,
    %c0_79 = arith.constant 0 : index
    %c0_80 = arith.constant 0 : index
    %117 = vector.load %arg18[%c0_79, %c0_80] : memref<24x288xf32, #tpu.memory_space<vmem>>, vector<24x288xf32>
    %cst_81 = arith.constant dense<0.000000e+00> : vector<24x64xf32>
    %118 = tpu.matmul %117, %9, %cst_81 {dimension_numbers = #tpu.dot_dimension_numbers<[1], [0], [0], [1], [0, 0, 1, 1], [], []>} : vector<24x288xf32>, vector<288x64xf32>, vector<24x64xf32> -> vector<24x64xf32>
    %119 = vector.broadcast %10 : vector<1x64xf32> to vector<24x64xf32>
    %120 = arith.addf %118, %119 : vector<24x64xf32>
    %cst_82 = arith.constant 0.000000e+00 : f32
    %121 = vector.broadcast %cst_82 : f32 to vector<24x64xf32>
    %122 = arith.maximumf %120, %121 : vector<24x64xf32>
    %cst_83 = arith.constant dense<0.000000e+00> : vector<24x32xf32>
    %123 = tpu.matmul %122, %11, %cst_83 {dimension_numbers = #tpu.dot_dimension_numbers<[1], [0], [0], [1], [0, 0, 1, 1], [], []>} : vector<24x64xf32>, vector<64x32xf32>, vector<24x32xf32> -> vector<24x32xf32>
    %124 = vector.broadcast %12 : vector<1x32xf32> to vector<24x32xf32>
    %125 = arith.addf %123, %124 : vector<24x32xf32>
    %126 = arith.addf %97, %125 : vector<24x32xf32>
    %cst_84 = arith.constant dense<0.000000e+00> : vector<24xf32>
    %127 = vector.multi_reduction <add>, %126, %cst_84 [1] : vector<24x32xf32> to vector<24xf32>
    %128 = vector.shape_cast %127 : vector<24xf32> to vector<24x1xf32>
    %cst_85 = arith.constant 3.200000e+01 : f32
    %129 = vector.broadcast %cst_85 : f32 to vector<24x1xf32>
    %130 = arith.divf %128, %129 : vector<24x1xf32>
    %131 = vector.broadcast %130 : vector<24x1xf32> to vector<24x32xf32>
    %132 = arith.subf %126, %131 : vector<24x32xf32>
    %133 = arith.mulf %132, %132 : vector<24x32xf32>
    %cst_86 = arith.constant dense<0.000000e+00> : vector<24xf32>
    %134 = vector.multi_reduction <add>, %133, %cst_86 [1] : vector<24x32xf32> to vector<24xf32>
    %135 = vector.shape_cast %134 : vector<24xf32> to vector<24x1xf32>
    %cst_87 = arith.constant 3.200000e+01 : f32
    %136 = vector.broadcast %cst_87 : f32 to vector<24x1xf32>
    %137 = arith.divf %135, %136 : vector<24x1xf32>
    %138 = vector.broadcast %130 : vector<24x1xf32> to vector<24x32xf32>
    %139 = arith.subf %126, %138 : vector<24x32xf32>
    %cst_88 = arith.constant 9.99999974E-6 : f32
    %140 = vector.broadcast %cst_88 : f32 to vector<24x1xf32>
    %141 = arith.addf %137, %140 : vector<24x1xf32>
    %142 = math.rsqrt %141 : vector<24x1xf32>
    %143 = vector.broadcast %142 : vector<24x1xf32> to vector<24x32xf32>
    %144 = arith.mulf %139, %143 : vector<24x32xf32>
    %145 = vector.broadcast %7 : vector<1x32xf32> to vector<24x32xf32>
    %146 = arith.mulf %144, %145 : vector<24x32xf32>
    %147 = vector.broadcast %8 : vector<1x32xf32> to vector<24x32xf32>
    %148 = arith.addf %146, %147 : vector<24x32xf32>
    %149 = vector.broadcast %18 : vector<24x1xf32> to vector<24x32xf32>
    %150 = arith.mulf %148, %149 : vector<24x32xf32>
    %c0_89 = arith.constant 0 : index
    %c0_90 = arith.constant 0 : index
    %c0_91 = arith.constant 0 : index
    %151 = vector.load %arg16[%c0_89, %c0_90, %c0_91] : memref<2x24x32xf32, #tpu.memory_space<vmem>>, vector<1x24x32xf32>
    %152 = vector.shape_cast %151 : vector<1x24x32xf32> to vector<24x32xf32>
    %153 = vector.shape_cast %150 : vector<24x32xf32> to vector<1x24x32xf32>
    tpu.vector_store %arg16[%c0_89, %c0_90, %c0_91], %153 {strides = array<i32>} : memref<2x24x32xf32, #tpu.memory_space<vmem>>, vector<1x24x32xf32>,
    %c1_92 = arith.constant 1 : index
    %c0_93 = arith.constant 0 : index
    %c0_94 = arith.constant 0 : index
    %154 = vector.load %arg0[%c1_92, %c0_93, %c0_94] : memref<2x24x32xf32, #tpu.memory_space<vmem>>, vector<1x24x32xf32>
    %155 = vector.shape_cast %154 : vector<1x24x32xf32> to vector<24x32xf32>
    %156 = arith.addf %155, %13 : vector<24x32xf32>
    %c1_95 = arith.constant 1 : index
    %c0_96 = arith.constant 0 : index
    %c0_97 = arith.constant 0 : index
    %157 = vector.load %arg3[%c1_95, %c0_96, %c0_97] : memref<2x24x1xf32, #tpu.memory_space<vmem>>, vector<1x24x1xf32>
    %158 = vector.shape_cast %157 : vector<1x24x1xf32> to vector<24x1xf32>
    %c1_98 = arith.constant 1 : index
    %c0_99 = arith.constant 0 : index
    %c0_100 = arith.constant 0 : index
    %159 = vector.load %arg2[%c1_98, %c0_99, %c0_100] : memref<2x1x24xf32, #tpu.memory_space<vmem>>, vector<1x1x24xf32>
    %160 = vector.shape_cast %159 : vector<1x1x24xf32> to vector<1x24xf32>
    %cst_101 = arith.constant 1.000000e+00 : f32
    %161 = vector.broadcast %cst_101 : f32 to vector<1x24xf32>
    %162 = arith.subf %160, %161 : vector<1x24xf32>
    %cst_102 = arith.constant 1.000000e+09 : f32
    %163 = vector.broadcast %cst_102 : f32 to vector<1x24xf32>
    %164 = arith.mulf %162, %163 : vector<1x24xf32>
    %cst_103 = arith.constant dense<0.000000e+00> : vector<24x96xf32>
    %165 = tpu.matmul %156, %2, %cst_103 {dimension_numbers = #tpu.dot_dimension_numbers<[1], [0], [0], [1], [0, 0, 1, 1], [], []>} : vector<24x32xf32>, vector<32x96xf32>, vector<24x96xf32> -> vector<24x96xf32>
    %166 = vector.broadcast %3 : vector<1x96xf32> to vector<24x96xf32>
    %167 = arith.addf %165, %166 : vector<24x96xf32>
    %168 = vector.extract_strided_slice %167 {offsets = [0, 0], sizes = [24, 16], strides = [1, 1]} : vector<24x96xf32> to vector<24x16xf32>
    %169 = vector.extract_strided_slice %167 {offsets = [0, 32], sizes = [24, 16], strides = [1, 1]} : vector<24x96xf32> to vector<24x16xf32>
    %170 = vector.extract_strided_slice %167 {offsets = [0, 64], sizes = [24, 16], strides = [1, 1]} : vector<24x96xf32> to vector<24x16xf32>
    %171 = tpu.transpose %169, [1, 0] : vector<24x16xf32> -> vector<16x24xf32>
    %cst_104 = arith.constant dense<0.000000e+00> : vector<24x24xf32>
    %172 = tpu.matmul %168, %171, %cst_104 {dimension_numbers = #tpu.dot_dimension_numbers<[1], [0], [0], [1], [0, 0, 1, 1], [], []>} : vector<24x16xf32>, vector<16x24xf32>, vector<24x24xf32> -> vector<24x24xf32>
    %cst_105 = arith.constant 2.500000e-01 : f32
    %173 = vector.broadcast %cst_105 : f32 to vector<24x24xf32>
    %174 = arith.mulf %172, %173 : vector<24x24xf32>
    %175 = vector.broadcast %164 : vector<1x24xf32> to vector<24x24xf32>
    %176 = arith.addf %174, %175 : vector<24x24xf32>
    %cst_106 = arith.constant dense<0xFF800000> : vector<24xf32>
    %177 = vector.multi_reduction <maximumf>, %176, %cst_106 [1] : vector<24x24xf32> to vector<24xf32>
    %178 = vector.shape_cast %177 : vector<24xf32> to vector<24x1xf32>
    %179 = vector.broadcast %178 : vector<24x1xf32> to vector<24x24xf32>
    %180 = arith.subf %176, %179 : vector<24x24xf32>
    %181 = math.exp %180 : vector<24x24xf32>
    %cst_107 = arith.constant dense<0.000000e+00> : vector<24xf32>
    %182 = vector.multi_reduction <add>, %181, %cst_107 [1] : vector<24x24xf32> to vector<24xf32>
    %183 = vector.shape_cast %182 : vector<24xf32> to vector<24x1xf32>
    %184 = vector.broadcast %183 : vector<24x1xf32> to vector<24x24xf32>
    %185 = arith.divf %181, %184 : vector<24x24xf32>
    %cst_108 = arith.constant dense<0.000000e+00> : vector<24x16xf32>
    %186 = tpu.matmul %185, %170, %cst_108 {dimension_numbers = #tpu.dot_dimension_numbers<[1], [0], [0], [1], [0, 0, 1, 1], [], []>} : vector<24x24xf32>, vector<24x16xf32>, vector<24x16xf32> -> vector<24x16xf32>
    %c0_109 = arith.constant 0 : index
    %c0_110 = arith.constant 0 : index
    %187 = vector.load %arg6[%c0_109, %c0_110] : memref<32x32xf32, #tpu.memory_space<vmem>>, vector<16x32xf32>
    %cst_111 = arith.constant dense<0.000000e+00> : vector<24x32xf32>
    %188 = tpu.matmul %186, %187, %cst_111 {dimension_numbers = #tpu.dot_dimension_numbers<[1], [0], [0], [1], [0, 0, 1, 1], [], []>} : vector<24x16xf32>, vector<16x32xf32>, vector<24x32xf32> -> vector<24x32xf32>
    %189 = vector.extract_strided_slice %167 {offsets = [0, 16], sizes = [24, 16], strides = [1, 1]} : vector<24x96xf32> to vector<24x16xf32>
    %190 = vector.extract_strided_slice %167 {offsets = [0, 48], sizes = [24, 16], strides = [1, 1]} : vector<24x96xf32> to vector<24x16xf32>
    %191 = vector.extract_strided_slice %167 {offsets = [0, 80], sizes = [24, 16], strides = [1, 1]} : vector<24x96xf32> to vector<24x16xf32>
    %192 = tpu.transpose %190, [1, 0] : vector<24x16xf32> -> vector<16x24xf32>
    %cst_112 = arith.constant dense<0.000000e+00> : vector<24x24xf32>
    %193 = tpu.matmul %189, %192, %cst_112 {dimension_numbers = #tpu.dot_dimension_numbers<[1], [0], [0], [1], [0, 0, 1, 1], [], []>} : vector<24x16xf32>, vector<16x24xf32>, vector<24x24xf32> -> vector<24x24xf32>
    %cst_113 = arith.constant 2.500000e-01 : f32
    %194 = vector.broadcast %cst_113 : f32 to vector<24x24xf32>
    %195 = arith.mulf %193, %194 : vector<24x24xf32>
    %196 = vector.broadcast %164 : vector<1x24xf32> to vector<24x24xf32>
    %197 = arith.addf %195, %196 : vector<24x24xf32>
    %cst_114 = arith.constant dense<0xFF800000> : vector<24xf32>
    %198 = vector.multi_reduction <maximumf>, %197, %cst_114 [1] : vector<24x24xf32> to vector<24xf32>
    %199 = vector.shape_cast %198 : vector<24xf32> to vector<24x1xf32>
    %200 = vector.broadcast %199 : vector<24x1xf32> to vector<24x24xf32>
    %201 = arith.subf %197, %200 : vector<24x24xf32>
    %202 = math.exp %201 : vector<24x24xf32>
    %cst_115 = arith.constant dense<0.000000e+00> : vector<24xf32>
    %203 = vector.multi_reduction <add>, %202, %cst_115 [1] : vector<24x24xf32> to vector<24xf32>
    %204 = vector.shape_cast %203 : vector<24xf32> to vector<24x1xf32>
    %205 = vector.broadcast %204 : vector<24x1xf32> to vector<24x24xf32>
    %206 = arith.divf %202, %205 : vector<24x24xf32>
    %cst_116 = arith.constant dense<0.000000e+00> : vector<24x16xf32>
    %207 = tpu.matmul %206, %191, %cst_116 {dimension_numbers = #tpu.dot_dimension_numbers<[1], [0], [0], [1], [0, 0, 1, 1], [], []>} : vector<24x24xf32>, vector<24x16xf32>, vector<24x16xf32> -> vector<24x16xf32>
    %c16_117 = arith.constant 16 : index
    %c0_118 = arith.constant 0 : index
    %208 = vector.load %arg6[%c16_117, %c0_118] : memref<32x32xf32, #tpu.memory_space<vmem>>, vector<16x32xf32>
    %cst_119 = arith.constant dense<0.000000e+00> : vector<24x32xf32>
    %209 = tpu.matmul %207, %208, %cst_119 {dimension_numbers = #tpu.dot_dimension_numbers<[1], [0], [0], [1], [0, 0, 1, 1], [], []>} : vector<24x16xf32>, vector<16x32xf32>, vector<24x32xf32> -> vector<24x32xf32>
    %210 = arith.addf %188, %209 : vector<24x32xf32>
    %211 = vector.broadcast %4 : vector<1x32xf32> to vector<24x32xf32>
    %212 = arith.addf %210, %211 : vector<24x32xf32>
    %213 = arith.addf %156, %212 : vector<24x32xf32>
    %cst_120 = arith.constant dense<0.000000e+00> : vector<24xf32>
    %214 = vector.multi_reduction <add>, %213, %cst_120 [1] : vector<24x32xf32> to vector<24xf32>
    %215 = vector.shape_cast %214 : vector<24xf32> to vector<24x1xf32>
    %cst_121 = arith.constant 3.200000e+01 : f32
    %216 = vector.broadcast %cst_121 : f32 to vector<24x1xf32>
    %217 = arith.divf %215, %216 : vector<24x1xf32>
    %218 = vector.broadcast %217 : vector<24x1xf32> to vector<24x32xf32>
    %219 = arith.subf %213, %218 : vector<24x32xf32>
    %220 = arith.mulf %219, %219 : vector<24x32xf32>
    %cst_122 = arith.constant dense<0.000000e+00> : vector<24xf32>
    %221 = vector.multi_reduction <add>, %220, %cst_122 [1] : vector<24x32xf32> to vector<24xf32>
    %222 = vector.shape_cast %221 : vector<24xf32> to vector<24x1xf32>
    %cst_123 = arith.constant 3.200000e+01 : f32
    %223 = vector.broadcast %cst_123 : f32 to vector<24x1xf32>
    %224 = arith.divf %222, %223 : vector<24x1xf32>
    %225 = vector.broadcast %217 : vector<24x1xf32> to vector<24x32xf32>
    %226 = arith.subf %213, %225 : vector<24x32xf32>
    %cst_124 = arith.constant 9.99999974E-6 : f32
    %227 = vector.broadcast %cst_124 : f32 to vector<24x1xf32>
    %228 = arith.addf %224, %227 : vector<24x1xf32>
    %229 = math.rsqrt %228 : vector<24x1xf32>
    %230 = vector.broadcast %229 : vector<24x1xf32> to vector<24x32xf32>
    %231 = arith.mulf %226, %230 : vector<24x32xf32>
    %232 = vector.broadcast %5 : vector<1x32xf32> to vector<24x32xf32>
    %233 = arith.mulf %231, %232 : vector<24x32xf32>
    %234 = vector.broadcast %6 : vector<1x32xf32> to vector<24x32xf32>
    %235 = arith.addf %233, %234 : vector<24x32xf32>
    %236 = vector.broadcast %158 : vector<24x1xf32> to vector<24x32xf32>
    %237 = arith.mulf %235, %236 : vector<24x32xf32>
    %c4_125 = arith.constant 4 : index
    %c0_126 = arith.constant 0 : index
    %238 = vector.load %arg17[%c4_125, %c0_126] : memref<32x32xf32, #tpu.memory_space<vmem>>, vector<24x32xf32>
    tpu.vector_store %arg17[%c4_125, %c0_126], %237 {strides = array<i32>} : memref<32x32xf32, #tpu.memory_space<vmem>>, vector<24x32xf32>,
    %c0_127 = arith.constant 0 : index
    %c0_128 = arith.constant 0 : index
    %239 = vector.load %arg17[%c0_127, %c0_128] : memref<32x32xf32, #tpu.memory_space<vmem>>, vector<24x32xf32>
    %c0_129 = arith.constant 0 : index
    %c0_130 = arith.constant 0 : index
    %240 = vector.load %arg18[%c0_129, %c0_130] : memref<24x288xf32, #tpu.memory_space<vmem>>, vector<24x32xf32>
    tpu.vector_store %arg18[%c0_129, %c0_130], %239 {strides = array<i32>} : memref<24x288xf32, #tpu.memory_space<vmem>>, vector<24x32xf32>,
    %c1_131 = arith.constant 1 : index
    %c0_132 = arith.constant 0 : index
    %241 = vector.load %arg17[%c1_131, %c0_132] : memref<32x32xf32, #tpu.memory_space<vmem>>, vector<24x32xf32>
    %c0_133 = arith.constant 0 : index
    %c32_134 = arith.constant 32 : index
    %242 = vector.load %arg18[%c0_133, %c32_134] : memref<24x288xf32, #tpu.memory_space<vmem>>, vector<24x32xf32>
    tpu.vector_store %arg18[%c0_133, %c32_134], %241 {strides = array<i32>} : memref<24x288xf32, #tpu.memory_space<vmem>>, vector<24x32xf32>,
    %c2_135 = arith.constant 2 : index
    %c0_136 = arith.constant 0 : index
    %243 = vector.load %arg17[%c2_135, %c0_136] : memref<32x32xf32, #tpu.memory_space<vmem>>, vector<24x32xf32>
    %c0_137 = arith.constant 0 : index
    %c64_138 = arith.constant 64 : index
    %244 = vector.load %arg18[%c0_137, %c64_138] : memref<24x288xf32, #tpu.memory_space<vmem>>, vector<24x32xf32>
    tpu.vector_store %arg18[%c0_137, %c64_138], %243 {strides = array<i32>} : memref<24x288xf32, #tpu.memory_space<vmem>>, vector<24x32xf32>,
    %c3_139 = arith.constant 3 : index
    %c0_140 = arith.constant 0 : index
    %245 = vector.load %arg17[%c3_139, %c0_140] : memref<32x32xf32, #tpu.memory_space<vmem>>, vector<24x32xf32>
    %c0_141 = arith.constant 0 : index
    %c96_142 = arith.constant 96 : index
    %246 = vector.load %arg18[%c0_141, %c96_142] : memref<24x288xf32, #tpu.memory_space<vmem>>, vector<24x32xf32>
    tpu.vector_store %arg18[%c0_141, %c96_142], %245 {strides = array<i32>} : memref<24x288xf32, #tpu.memory_space<vmem>>, vector<24x32xf32>,
    %c4_143 = arith.constant 4 : index
    %c0_144 = arith.constant 0 : index
    %247 = vector.load %arg17[%c4_143, %c0_144] : memref<32x32xf32, #tpu.memory_space<vmem>>, vector<24x32xf32>
    %c0_145 = arith.constant 0 : index
    %c128_146 = arith.constant 128 : index
    %248 = vector.load %arg18[%c0_145, %c128_146] : memref<24x288xf32, #tpu.memory_space<vmem>>, vector<24x32xf32>
    tpu.vector_store %arg18[%c0_145, %c128_146], %247 {strides = array<i32>} : memref<24x288xf32, #tpu.memory_space<vmem>>, vector<24x32xf32>,
    %c5_147 = arith.constant 5 : index
    %c0_148 = arith.constant 0 : index
    %249 = vector.load %arg17[%c5_147, %c0_148] : memref<32x32xf32, #tpu.memory_space<vmem>>, vector<24x32xf32>
    %c0_149 = arith.constant 0 : index
    %c160_150 = arith.constant 160 : index
    %250 = vector.load %arg18[%c0_149, %c160_150] : memref<24x288xf32, #tpu.memory_space<vmem>>, vector<24x32xf32>
    tpu.vector_store %arg18[%c0_149, %c160_150], %249 {strides = array<i32>} : memref<24x288xf32, #tpu.memory_space<vmem>>, vector<24x32xf32>,
    %c6_151 = arith.constant 6 : index
    %c0_152 = arith.constant 0 : index
    %251 = vector.load %arg17[%c6_151, %c0_152] : memref<32x32xf32, #tpu.memory_space<vmem>>, vector<24x32xf32>
    %c0_153 = arith.constant 0 : index
    %c192_154 = arith.constant 192 : index
    %252 = vector.load %arg18[%c0_153, %c192_154] : memref<24x288xf32, #tpu.memory_space<vmem>>, vector<24x32xf32>
    tpu.vector_store %arg18[%c0_153, %c192_154], %251 {strides = array<i32>} : memref<24x288xf32, #tpu.memory_space<vmem>>, vector<24x32xf32>,
    %c7_155 = arith.constant 7 : index
    %c0_156 = arith.constant 0 : index
    %253 = vector.load %arg17[%c7_155, %c0_156] : memref<32x32xf32, #tpu.memory_space<vmem>>, vector<24x32xf32>
    %c0_157 = arith.constant 0 : index
    %c224_158 = arith.constant 224 : index
    %254 = vector.load %arg18[%c0_157, %c224_158] : memref<24x288xf32, #tpu.memory_space<vmem>>, vector<24x32xf32>
    tpu.vector_store %arg18[%c0_157, %c224_158], %253 {strides = array<i32>} : memref<24x288xf32, #tpu.memory_space<vmem>>, vector<24x32xf32>,
    %c8_159 = arith.constant 8 : index
    %c0_160 = arith.constant 0 : index
    %255 = vector.load %arg17[%c8_159, %c0_160] : memref<32x32xf32, #tpu.memory_space<vmem>>, vector<24x32xf32>
    %c0_161 = arith.constant 0 : index
    %c256_162 = arith.constant 256 : index
    %256 = vector.load %arg18[%c0_161, %c256_162] : memref<24x288xf32, #tpu.memory_space<vmem>>, vector<24x32xf32>
    tpu.vector_store %arg18[%c0_161, %c256_162], %255 {strides = array<i32>} : memref<24x288xf32, #tpu.memory_space<vmem>>, vector<24x32xf32>,
    %c0_163 = arith.constant 0 : index
    %c0_164 = arith.constant 0 : index
    %257 = vector.load %arg18[%c0_163, %c0_164] : memref<24x288xf32, #tpu.memory_space<vmem>>, vector<24x288xf32>
    %cst_165 = arith.constant dense<0.000000e+00> : vector<24x64xf32>
    %258 = tpu.matmul %257, %9, %cst_165 {dimension_numbers = #tpu.dot_dimension_numbers<[1], [0], [0], [1], [0, 0, 1, 1], [], []>} : vector<24x288xf32>, vector<288x64xf32>, vector<24x64xf32> -> vector<24x64xf32>
    %259 = vector.broadcast %10 : vector<1x64xf32> to vector<24x64xf32>
    %260 = arith.addf %258, %259 : vector<24x64xf32>
    %cst_166 = arith.constant 0.000000e+00 : f32
    %261 = vector.broadcast %cst_166 : f32 to vector<24x64xf32>
    %262 = arith.maximumf %260, %261 : vector<24x64xf32>
    %cst_167 = arith.constant dense<0.000000e+00> : vector<24x32xf32>
    %263 = tpu.matmul %262, %11, %cst_167 {dimension_numbers = #tpu.dot_dimension_numbers<[1], [0], [0], [1], [0, 0, 1, 1], [], []>} : vector<24x64xf32>, vector<64x32xf32>, vector<24x32xf32> -> vector<24x32xf32>
    %264 = vector.broadcast %12 : vector<1x32xf32> to vector<24x32xf32>
    %265 = arith.addf %263, %264 : vector<24x32xf32>
    %266 = arith.addf %237, %265 : vector<24x32xf32>
    %cst_168 = arith.constant dense<0.000000e+00> : vector<24xf32>
    %267 = vector.multi_reduction <add>, %266, %cst_168 [1] : vector<24x32xf32> to vector<24xf32>
    %268 = vector.shape_cast %267 : vector<24xf32> to vector<24x1xf32>
    %cst_169 = arith.constant 3.200000e+01 : f32
    %269 = vector.broadcast %cst_169 : f32 to vector<24x1xf32>
    %270 = arith.divf %268, %269 : vector<24x1xf32>
    %271 = vector.broadcast %270 : vector<24x1xf32> to vector<24x32xf32>
    %272 = arith.subf %266, %271 : vector<24x32xf32>
    %273 = arith.mulf %272, %272 : vector<24x32xf32>
    %cst_170 = arith.constant dense<0.000000e+00> : vector<24xf32>
    %274 = vector.multi_reduction <add>, %273, %cst_170 [1] : vector<24x32xf32> to vector<24xf32>
    %275 = vector.shape_cast %274 : vector<24xf32> to vector<24x1xf32>
    %cst_171 = arith.constant 3.200000e+01 : f32
    %276 = vector.broadcast %cst_171 : f32 to vector<24x1xf32>
    %277 = arith.divf %275, %276 : vector<24x1xf32>
    %278 = vector.broadcast %270 : vector<24x1xf32> to vector<24x32xf32>
    %279 = arith.subf %266, %278 : vector<24x32xf32>
    %cst_172 = arith.constant 9.99999974E-6 : f32
    %280 = vector.broadcast %cst_172 : f32 to vector<24x1xf32>
    %281 = arith.addf %277, %280 : vector<24x1xf32>
    %282 = math.rsqrt %281 : vector<24x1xf32>
    %283 = vector.broadcast %282 : vector<24x1xf32> to vector<24x32xf32>
    %284 = arith.mulf %279, %283 : vector<24x32xf32>
    %285 = vector.broadcast %7 : vector<1x32xf32> to vector<24x32xf32>
    %286 = arith.mulf %284, %285 : vector<24x32xf32>
    %287 = vector.broadcast %8 : vector<1x32xf32> to vector<24x32xf32>
    %288 = arith.addf %286, %287 : vector<24x32xf32>
    %289 = vector.broadcast %158 : vector<24x1xf32> to vector<24x32xf32>
    %290 = arith.mulf %288, %289 : vector<24x32xf32>
    %c1_173 = arith.constant 1 : index
    %c0_174 = arith.constant 0 : index
    %c0_175 = arith.constant 0 : index
    %291 = vector.load %arg16[%c1_173, %c0_174, %c0_175] : memref<2x24x32xf32, #tpu.memory_space<vmem>>, vector<1x24x32xf32>
    %292 = vector.shape_cast %291 : vector<1x24x32xf32> to vector<24x32xf32>
    %293 = vector.shape_cast %290 : vector<24x32xf32> to vector<1x24x32xf32>
    tpu.vector_store %arg16[%c1_173, %c0_174, %c0_175], %293 {strides = array<i32>} : memref<2x24x32xf32, #tpu.memory_space<vmem>>, vector<1x24x32xf32>,
    return
  }
}

module attributes {stable_mosaic.version = 11 : i64} {
  func.func @_mel_cat_kernel(%arg0: memref<2x24x32xf32, #tpu.memory_space<vmem>>, %arg1: memref<2x24x32xf32, #tpu.memory_space<vmem>>, %arg2: memref<32x8xf32, #tpu.memory_space<vmem>>, %arg3: memref<1x8xf32, #tpu.memory_space<vmem>>, %arg4: memref<32x24xf32, #tpu.memory_space<vmem>>, %arg5: memref<1x24xf32, #tpu.memory_space<vmem>>, %arg6: memref<2x24x32xf32, #tpu.memory_space<vmem>>) attributes {dimension_semantics = [], scalar_prefetch = 0 : i64, scratch_operands = 0 : i64, tpu.core_type = #tpu.core_type<tc>} {
    %c0 = arith.constant 0 : index
    %c0_0 = arith.constant 0 : index
    %0 = vector.load %arg2[%c0, %c0_0] : memref<32x8xf32, #tpu.memory_space<vmem>>, vector<32x8xf32>
    %c0_1 = arith.constant 0 : index
    %c0_2 = arith.constant 0 : index
    %1 = vector.load %arg3[%c0_1, %c0_2] : memref<1x8xf32, #tpu.memory_space<vmem>>, vector<1x8xf32>
    %c0_3 = arith.constant 0 : index
    %c0_4 = arith.constant 0 : index
    %2 = vector.load %arg4[%c0_3, %c0_4] : memref<32x24xf32, #tpu.memory_space<vmem>>, vector<32x24xf32>
    %c0_5 = arith.constant 0 : index
    %c0_6 = arith.constant 0 : index
    %3 = vector.load %arg5[%c0_5, %c0_6] : memref<1x24xf32, #tpu.memory_space<vmem>>, vector<1x24xf32>
    %c0_7 = arith.constant 0 : index
    %c0_8 = arith.constant 0 : index
    %c0_9 = arith.constant 0 : index
    %4 = vector.load %arg0[%c0_7, %c0_8, %c0_9] : memref<2x24x32xf32, #tpu.memory_space<vmem>>, vector<1x24x32xf32>
    %5 = vector.shape_cast %4 : vector<1x24x32xf32> to vector<24x32xf32>
    %cst = arith.constant dense<0.000000e+00> : vector<24x8xf32>
    %6 = tpu.matmul %5, %0, %cst {dimension_numbers = #tpu.dot_dimension_numbers<[1], [0], [0], [1], [0, 0, 1, 1], [], []>} : vector<24x32xf32>, vector<32x8xf32>, vector<24x8xf32> -> vector<24x8xf32>
    %7 = vector.broadcast %1 : vector<1x8xf32> to vector<24x8xf32>
    %8 = arith.addf %6, %7 : vector<24x8xf32>
    %c0_10 = arith.constant 0 : index
    %c0_11 = arith.constant 0 : index
    %c0_12 = arith.constant 0 : index
    %9 = vector.load %arg1[%c0_10, %c0_11, %c0_12] : memref<2x24x32xf32, #tpu.memory_space<vmem>>, vector<1x24x32xf32>
    %10 = vector.shape_cast %9 : vector<1x24x32xf32> to vector<24x32xf32>
    %cst_13 = arith.constant dense<0.000000e+00> : vector<24x24xf32>
    %11 = tpu.matmul %10, %2, %cst_13 {dimension_numbers = #tpu.dot_dimension_numbers<[1], [0], [0], [1], [0, 0, 1, 1], [], []>} : vector<24x32xf32>, vector<32x24xf32>, vector<24x24xf32> -> vector<24x24xf32>
    %12 = vector.broadcast %3 : vector<1x24xf32> to vector<24x24xf32>
    %13 = arith.addf %11, %12 : vector<24x24xf32>
    %c0_14 = arith.constant 0 : index
    %c0_15 = arith.constant 0 : index
    %c0_16 = arith.constant 0 : index
    %14 = vector.load %arg6[%c0_14, %c0_15, %c0_16] : memref<2x24x32xf32, #tpu.memory_space<vmem>>, vector<1x24x8xf32>
    %15 = vector.shape_cast %14 : vector<1x24x8xf32> to vector<24x8xf32>
    %16 = vector.shape_cast %8 : vector<24x8xf32> to vector<1x24x8xf32>
    tpu.vector_store %arg6[%c0_14, %c0_15, %c0_16], %16 {strides = array<i32>} : memref<2x24x32xf32, #tpu.memory_space<vmem>>, vector<1x24x8xf32>,
    %c0_17 = arith.constant 0 : index
    %c0_18 = arith.constant 0 : index
    %c8 = arith.constant 8 : index
    %17 = vector.load %arg6[%c0_17, %c0_18, %c8] : memref<2x24x32xf32, #tpu.memory_space<vmem>>, vector<1x24x24xf32>
    %18 = vector.shape_cast %17 : vector<1x24x24xf32> to vector<24x24xf32>
    %19 = vector.shape_cast %13 : vector<24x24xf32> to vector<1x24x24xf32>
    tpu.vector_store %arg6[%c0_17, %c0_18, %c8], %19 {strides = array<i32>} : memref<2x24x32xf32, #tpu.memory_space<vmem>>, vector<1x24x24xf32>,
    %c1 = arith.constant 1 : index
    %c0_19 = arith.constant 0 : index
    %c0_20 = arith.constant 0 : index
    %20 = vector.load %arg0[%c1, %c0_19, %c0_20] : memref<2x24x32xf32, #tpu.memory_space<vmem>>, vector<1x24x32xf32>
    %21 = vector.shape_cast %20 : vector<1x24x32xf32> to vector<24x32xf32>
    %cst_21 = arith.constant dense<0.000000e+00> : vector<24x8xf32>
    %22 = tpu.matmul %21, %0, %cst_21 {dimension_numbers = #tpu.dot_dimension_numbers<[1], [0], [0], [1], [0, 0, 1, 1], [], []>} : vector<24x32xf32>, vector<32x8xf32>, vector<24x8xf32> -> vector<24x8xf32>
    %23 = vector.broadcast %1 : vector<1x8xf32> to vector<24x8xf32>
    %24 = arith.addf %22, %23 : vector<24x8xf32>
    %c1_22 = arith.constant 1 : index
    %c0_23 = arith.constant 0 : index
    %c0_24 = arith.constant 0 : index
    %25 = vector.load %arg1[%c1_22, %c0_23, %c0_24] : memref<2x24x32xf32, #tpu.memory_space<vmem>>, vector<1x24x32xf32>
    %26 = vector.shape_cast %25 : vector<1x24x32xf32> to vector<24x32xf32>
    %cst_25 = arith.constant dense<0.000000e+00> : vector<24x24xf32>
    %27 = tpu.matmul %26, %2, %cst_25 {dimension_numbers = #tpu.dot_dimension_numbers<[1], [0], [0], [1], [0, 0, 1, 1], [], []>} : vector<24x32xf32>, vector<32x24xf32>, vector<24x24xf32> -> vector<24x24xf32>
    %28 = vector.broadcast %3 : vector<1x24xf32> to vector<24x24xf32>
    %29 = arith.addf %27, %28 : vector<24x24xf32>
    %c1_26 = arith.constant 1 : index
    %c0_27 = arith.constant 0 : index
    %c0_28 = arith.constant 0 : index
    %30 = vector.load %arg6[%c1_26, %c0_27, %c0_28] : memref<2x24x32xf32, #tpu.memory_space<vmem>>, vector<1x24x8xf32>
    %31 = vector.shape_cast %30 : vector<1x24x8xf32> to vector<24x8xf32>
    %32 = vector.shape_cast %24 : vector<24x8xf32> to vector<1x24x8xf32>
    tpu.vector_store %arg6[%c1_26, %c0_27, %c0_28], %32 {strides = array<i32>} : memref<2x24x32xf32, #tpu.memory_space<vmem>>, vector<1x24x8xf32>,
    %c1_29 = arith.constant 1 : index
    %c0_30 = arith.constant 0 : index
    %c8_31 = arith.constant 8 : index
    %33 = vector.load %arg6[%c1_29, %c0_30, %c8_31] : memref<2x24x32xf32, #tpu.memory_space<vmem>>, vector<1x24x24xf32>
    %34 = vector.shape_cast %33 : vector<1x24x24xf32> to vector<24x24xf32>
    %35 = vector.shape_cast %29 : vector<24x24xf32> to vector<1x24x24xf32>
    tpu.vector_store %arg6[%c1_29, %c0_30, %c8_31], %35 {strides = array<i32>} : memref<2x24x32xf32, #tpu.memory_space<vmem>>, vector<1x24x24xf32>,
    return
  }
}

module attributes {stable_mosaic.version = 11 : i64} {
  func.func @_postnet_kernel(%arg0: memref<2x24x32xf32, #tpu.memory_space<vmem>>, %arg1: memref<32x8xf32, #tpu.memory_space<vmem>>, %arg2: memref<1x8xf32, #tpu.memory_space<vmem>>, %arg3: memref<40x32xf32, #tpu.memory_space<vmem>>, %arg4: memref<1x32xf32, #tpu.memory_space<vmem>>, %arg5: memref<160x32xf32, #tpu.memory_space<vmem>>, %arg6: memref<1x32xf32, #tpu.memory_space<vmem>>, %arg7: memref<160x32xf32, #tpu.memory_space<vmem>>, %arg8: memref<1x32xf32, #tpu.memory_space<vmem>>, %arg9: memref<160x32xf32, #tpu.memory_space<vmem>>, %arg10: memref<1x32xf32, #tpu.memory_space<vmem>>, %arg11: memref<160x8xf32, #tpu.memory_space<vmem>>, %arg12: memref<1x8xf32, #tpu.memory_space<vmem>>, %arg13: memref<2x24x8xf32, #tpu.memory_space<vmem>>, %arg14: memref<28x32xf32, #tpu.memory_space<vmem>>, %arg15: memref<24x160xf32, #tpu.memory_space<vmem>>) attributes {dimension_semantics = [], scalar_prefetch = 0 : i64, scratch_operands = 2 : i64, tpu.core_type = #tpu.core_type<tc>} {
    %cst = arith.constant 0.000000e+00 : f32
    %0 = vector.broadcast %cst : f32 to vector<28x32xf32>
    %c0 = arith.constant 0 : index
    %c0_0 = arith.constant 0 : index
    %1 = vector.load %arg14[%c0, %c0_0] : memref<28x32xf32, #tpu.memory_space<vmem>>, vector<28x32xf32>
    tpu.vector_store %arg14[%c0, %c0_0], %0 {strides = array<i32>} : memref<28x32xf32, #tpu.memory_space<vmem>>, vector<28x32xf32>,
    %c0_1 = arith.constant 0 : index
    %c0_2 = arith.constant 0 : index
    %2 = vector.load %arg1[%c0_1, %c0_2] : memref<32x8xf32, #tpu.memory_space<vmem>>, vector<32x8xf32>
    %c0_3 = arith.constant 0 : index
    %c0_4 = arith.constant 0 : index
    %3 = vector.load %arg2[%c0_3, %c0_4] : memref<1x8xf32, #tpu.memory_space<vmem>>, vector<1x8xf32>
    %c0_5 = arith.constant 0 : index
    %c0_6 = arith.constant 0 : index
    %c0_7 = arith.constant 0 : index
    %4 = vector.load %arg0[%c0_5, %c0_6, %c0_7] : memref<2x24x32xf32, #tpu.memory_space<vmem>>, vector<1x24x32xf32>
    %5 = vector.shape_cast %4 : vector<1x24x32xf32> to vector<24x32xf32>
    %cst_8 = arith.constant dense<0.000000e+00> : vector<24x8xf32>
    %6 = tpu.matmul %5, %2, %cst_8 {dimension_numbers = #tpu.dot_dimension_numbers<[1], [0], [0], [1], [0, 0, 1, 1], [], []>} : vector<24x32xf32>, vector<32x8xf32>, vector<24x8xf32> -> vector<24x8xf32>
    %7 = vector.broadcast %3 : vector<1x8xf32> to vector<24x8xf32>
    %8 = arith.addf %6, %7 : vector<24x8xf32>
    %c0_9 = arith.constant 0 : index
    %c0_10 = arith.constant 0 : index
    %9 = vector.load %arg3[%c0_9, %c0_10] : memref<40x32xf32, #tpu.memory_space<vmem>>, vector<40x32xf32>
    %c0_11 = arith.constant 0 : index
    %c0_12 = arith.constant 0 : index
    %10 = vector.load %arg4[%c0_11, %c0_12] : memref<1x32xf32, #tpu.memory_space<vmem>>, vector<1x32xf32>
    %c2 = arith.constant 2 : index
    %c0_13 = arith.constant 0 : index
    %11 = vector.load %arg14[%c2, %c0_13] : memref<28x32xf32, #tpu.memory_space<vmem>>, vector<24x8xf32>
    tpu.vector_store %arg14[%c2, %c0_13], %8 {strides = array<i32>} : memref<28x32xf32, #tpu.memory_space<vmem>>, vector<24x8xf32>,
    %c0_14 = arith.constant 0 : index
    %c0_15 = arith.constant 0 : index
    %12 = vector.load %arg14[%c0_14, %c0_15] : memref<28x32xf32, #tpu.memory_space<vmem>>, vector<24x8xf32>
    %c0_16 = arith.constant 0 : index
    %c0_17 = arith.constant 0 : index
    %13 = vector.load %arg15[%c0_16, %c0_17] : memref<24x160xf32, #tpu.memory_space<vmem>>, vector<24x8xf32>
    tpu.vector_store %arg15[%c0_16, %c0_17], %12 {strides = array<i32>} : memref<24x160xf32, #tpu.memory_space<vmem>>, vector<24x8xf32>,
    %c1 = arith.constant 1 : index
    %c0_18 = arith.constant 0 : index
    %14 = vector.load %arg14[%c1, %c0_18] : memref<28x32xf32, #tpu.memory_space<vmem>>, vector<24x8xf32>
    %c0_19 = arith.constant 0 : index
    %c8 = arith.constant 8 : index
    %15 = vector.load %arg15[%c0_19, %c8] : memref<24x160xf32, #tpu.memory_space<vmem>>, vector<24x8xf32>
    tpu.vector_store %arg15[%c0_19, %c8], %14 {strides = array<i32>} : memref<24x160xf32, #tpu.memory_space<vmem>>, vector<24x8xf32>,
    %c2_20 = arith.constant 2 : index
    %c0_21 = arith.constant 0 : index
    %16 = vector.load %arg14[%c2_20, %c0_21] : memref<28x32xf32, #tpu.memory_space<vmem>>, vector<24x8xf32>
    %c0_22 = arith.constant 0 : index
    %c16 = arith.constant 16 : index
    %17 = vector.load %arg15[%c0_22, %c16] : memref<24x160xf32, #tpu.memory_space<vmem>>, vector<24x8xf32>
    tpu.vector_store %arg15[%c0_22, %c16], %16 {strides = array<i32>} : memref<24x160xf32, #tpu.memory_space<vmem>>, vector<24x8xf32>,
    %c3 = arith.constant 3 : index
    %c0_23 = arith.constant 0 : index
    %18 = vector.load %arg14[%c3, %c0_23] : memref<28x32xf32, #tpu.memory_space<vmem>>, vector<24x8xf32>
    %c0_24 = arith.constant 0 : index
    %c24 = arith.constant 24 : index
    %19 = vector.load %arg15[%c0_24, %c24] : memref<24x160xf32, #tpu.memory_space<vmem>>, vector<24x8xf32>
    tpu.vector_store %arg15[%c0_24, %c24], %18 {strides = array<i32>} : memref<24x160xf32, #tpu.memory_space<vmem>>, vector<24x8xf32>,
    %c4 = arith.constant 4 : index
    %c0_25 = arith.constant 0 : index
    %20 = vector.load %arg14[%c4, %c0_25] : memref<28x32xf32, #tpu.memory_space<vmem>>, vector<24x8xf32>
    %c0_26 = arith.constant 0 : index
    %c32 = arith.constant 32 : index
    %21 = vector.load %arg15[%c0_26, %c32] : memref<24x160xf32, #tpu.memory_space<vmem>>, vector<24x8xf32>
    tpu.vector_store %arg15[%c0_26, %c32], %20 {strides = array<i32>} : memref<24x160xf32, #tpu.memory_space<vmem>>, vector<24x8xf32>,
    %c0_27 = arith.constant 0 : index
    %c0_28 = arith.constant 0 : index
    %22 = vector.load %arg15[%c0_27, %c0_28] : memref<24x160xf32, #tpu.memory_space<vmem>>, vector<24x40xf32>
    %cst_29 = arith.constant dense<0.000000e+00> : vector<24x32xf32>
    %23 = tpu.matmul %22, %9, %cst_29 {dimension_numbers = #tpu.dot_dimension_numbers<[1], [0], [0], [1], [0, 0, 1, 1], [], []>} : vector<24x40xf32>, vector<40x32xf32>, vector<24x32xf32> -> vector<24x32xf32>
    %24 = vector.broadcast %10 : vector<1x32xf32> to vector<24x32xf32>
    %25 = arith.addf %23, %24 : vector<24x32xf32>
    %26 = math.tanh %25 : vector<24x32xf32>
    %c0_30 = arith.constant 0 : index
    %c0_31 = arith.constant 0 : index
    %27 = vector.load %arg5[%c0_30, %c0_31] : memref<160x32xf32, #tpu.memory_space<vmem>>, vector<160x32xf32>
    %c0_32 = arith.constant 0 : index
    %c0_33 = arith.constant 0 : index
    %28 = vector.load %arg6[%c0_32, %c0_33] : memref<1x32xf32, #tpu.memory_space<vmem>>, vector<1x32xf32>
    %c2_34 = arith.constant 2 : index
    %c0_35 = arith.constant 0 : index
    %29 = vector.load %arg14[%c2_34, %c0_35] : memref<28x32xf32, #tpu.memory_space<vmem>>, vector<24x32xf32>
    tpu.vector_store %arg14[%c2_34, %c0_35], %26 {strides = array<i32>} : memref<28x32xf32, #tpu.memory_space<vmem>>, vector<24x32xf32>,
    %c0_36 = arith.constant 0 : index
    %c0_37 = arith.constant 0 : index
    %30 = vector.load %arg14[%c0_36, %c0_37] : memref<28x32xf32, #tpu.memory_space<vmem>>, vector<24x32xf32>
    %c0_38 = arith.constant 0 : index
    %c0_39 = arith.constant 0 : index
    %31 = vector.load %arg15[%c0_38, %c0_39] : memref<24x160xf32, #tpu.memory_space<vmem>>, vector<24x32xf32>
    tpu.vector_store %arg15[%c0_38, %c0_39], %30 {strides = array<i32>} : memref<24x160xf32, #tpu.memory_space<vmem>>, vector<24x32xf32>,
    %c1_40 = arith.constant 1 : index
    %c0_41 = arith.constant 0 : index
    %32 = vector.load %arg14[%c1_40, %c0_41] : memref<28x32xf32, #tpu.memory_space<vmem>>, vector<24x32xf32>
    %c0_42 = arith.constant 0 : index
    %c32_43 = arith.constant 32 : index
    %33 = vector.load %arg15[%c0_42, %c32_43] : memref<24x160xf32, #tpu.memory_space<vmem>>, vector<24x32xf32>
    tpu.vector_store %arg15[%c0_42, %c32_43], %32 {strides = array<i32>} : memref<24x160xf32, #tpu.memory_space<vmem>>, vector<24x32xf32>,
    %c2_44 = arith.constant 2 : index
    %c0_45 = arith.constant 0 : index
    %34 = vector.load %arg14[%c2_44, %c0_45] : memref<28x32xf32, #tpu.memory_space<vmem>>, vector<24x32xf32>
    %c0_46 = arith.constant 0 : index
    %c64 = arith.constant 64 : index
    %35 = vector.load %arg15[%c0_46, %c64] : memref<24x160xf32, #tpu.memory_space<vmem>>, vector<24x32xf32>
    tpu.vector_store %arg15[%c0_46, %c64], %34 {strides = array<i32>} : memref<24x160xf32, #tpu.memory_space<vmem>>, vector<24x32xf32>,
    %c3_47 = arith.constant 3 : index
    %c0_48 = arith.constant 0 : index
    %36 = vector.load %arg14[%c3_47, %c0_48] : memref<28x32xf32, #tpu.memory_space<vmem>>, vector<24x32xf32>
    %c0_49 = arith.constant 0 : index
    %c96 = arith.constant 96 : index
    %37 = vector.load %arg15[%c0_49, %c96] : memref<24x160xf32, #tpu.memory_space<vmem>>, vector<24x32xf32>
    tpu.vector_store %arg15[%c0_49, %c96], %36 {strides = array<i32>} : memref<24x160xf32, #tpu.memory_space<vmem>>, vector<24x32xf32>,
    %c4_50 = arith.constant 4 : index
    %c0_51 = arith.constant 0 : index
    %38 = vector.load %arg14[%c4_50, %c0_51] : memref<28x32xf32, #tpu.memory_space<vmem>>, vector<24x32xf32>
    %c0_52 = arith.constant 0 : index
    %c128 = arith.constant 128 : index
    %39 = vector.load %arg15[%c0_52, %c128] : memref<24x160xf32, #tpu.memory_space<vmem>>, vector<24x32xf32>
    tpu.vector_store %arg15[%c0_52, %c128], %38 {strides = array<i32>} : memref<24x160xf32, #tpu.memory_space<vmem>>, vector<24x32xf32>,
    %c0_53 = arith.constant 0 : index
    %c0_54 = arith.constant 0 : index
    %40 = vector.load %arg15[%c0_53, %c0_54] : memref<24x160xf32, #tpu.memory_space<vmem>>, vector<24x160xf32>
    %cst_55 = arith.constant dense<0.000000e+00> : vector<24x32xf32>
    %41 = tpu.matmul %40, %27, %cst_55 {dimension_numbers = #tpu.dot_dimension_numbers<[1], [0], [0], [1], [0, 0, 1, 1], [], []>} : vector<24x160xf32>, vector<160x32xf32>, vector<24x32xf32> -> vector<24x32xf32>
    %42 = vector.broadcast %28 : vector<1x32xf32> to vector<24x32xf32>
    %43 = arith.addf %41, %42 : vector<24x32xf32>
    %44 = math.tanh %43 : vector<24x32xf32>
    %c0_56 = arith.constant 0 : index
    %c0_57 = arith.constant 0 : index
    %45 = vector.load %arg7[%c0_56, %c0_57] : memref<160x32xf32, #tpu.memory_space<vmem>>, vector<160x32xf32>
    %c0_58 = arith.constant 0 : index
    %c0_59 = arith.constant 0 : index
    %46 = vector.load %arg8[%c0_58, %c0_59] : memref<1x32xf32, #tpu.memory_space<vmem>>, vector<1x32xf32>
    %c2_60 = arith.constant 2 : index
    %c0_61 = arith.constant 0 : index
    %47 = vector.load %arg14[%c2_60, %c0_61] : memref<28x32xf32, #tpu.memory_space<vmem>>, vector<24x32xf32>
    tpu.vector_store %arg14[%c2_60, %c0_61], %44 {strides = array<i32>} : memref<28x32xf32, #tpu.memory_space<vmem>>, vector<24x32xf32>,
    %c0_62 = arith.constant 0 : index
    %c0_63 = arith.constant 0 : index
    %48 = vector.load %arg14[%c0_62, %c0_63] : memref<28x32xf32, #tpu.memory_space<vmem>>, vector<24x32xf32>
    %c0_64 = arith.constant 0 : index
    %c0_65 = arith.constant 0 : index
    %49 = vector.load %arg15[%c0_64, %c0_65] : memref<24x160xf32, #tpu.memory_space<vmem>>, vector<24x32xf32>
    tpu.vector_store %arg15[%c0_64, %c0_65], %48 {strides = array<i32>} : memref<24x160xf32, #tpu.memory_space<vmem>>, vector<24x32xf32>,
    %c1_66 = arith.constant 1 : index
    %c0_67 = arith.constant 0 : index
    %50 = vector.load %arg14[%c1_66, %c0_67] : memref<28x32xf32, #tpu.memory_space<vmem>>, vector<24x32xf32>
    %c0_68 = arith.constant 0 : index
    %c32_69 = arith.constant 32 : index
    %51 = vector.load %arg15[%c0_68, %c32_69] : memref<24x160xf32, #tpu.memory_space<vmem>>, vector<24x32xf32>
    tpu.vector_store %arg15[%c0_68, %c32_69], %50 {strides = array<i32>} : memref<24x160xf32, #tpu.memory_space<vmem>>, vector<24x32xf32>,
    %c2_70 = arith.constant 2 : index
    %c0_71 = arith.constant 0 : index
    %52 = vector.load %arg14[%c2_70, %c0_71] : memref<28x32xf32, #tpu.memory_space<vmem>>, vector<24x32xf32>
    %c0_72 = arith.constant 0 : index
    %c64_73 = arith.constant 64 : index
    %53 = vector.load %arg15[%c0_72, %c64_73] : memref<24x160xf32, #tpu.memory_space<vmem>>, vector<24x32xf32>
    tpu.vector_store %arg15[%c0_72, %c64_73], %52 {strides = array<i32>} : memref<24x160xf32, #tpu.memory_space<vmem>>, vector<24x32xf32>,
    %c3_74 = arith.constant 3 : index
    %c0_75 = arith.constant 0 : index
    %54 = vector.load %arg14[%c3_74, %c0_75] : memref<28x32xf32, #tpu.memory_space<vmem>>, vector<24x32xf32>
    %c0_76 = arith.constant 0 : index
    %c96_77 = arith.constant 96 : index
    %55 = vector.load %arg15[%c0_76, %c96_77] : memref<24x160xf32, #tpu.memory_space<vmem>>, vector<24x32xf32>
    tpu.vector_store %arg15[%c0_76, %c96_77], %54 {strides = array<i32>} : memref<24x160xf32, #tpu.memory_space<vmem>>, vector<24x32xf32>,
    %c4_78 = arith.constant 4 : index
    %c0_79 = arith.constant 0 : index
    %56 = vector.load %arg14[%c4_78, %c0_79] : memref<28x32xf32, #tpu.memory_space<vmem>>, vector<24x32xf32>
    %c0_80 = arith.constant 0 : index
    %c128_81 = arith.constant 128 : index
    %57 = vector.load %arg15[%c0_80, %c128_81] : memref<24x160xf32, #tpu.memory_space<vmem>>, vector<24x32xf32>
    tpu.vector_store %arg15[%c0_80, %c128_81], %56 {strides = array<i32>} : memref<24x160xf32, #tpu.memory_space<vmem>>, vector<24x32xf32>,
    %c0_82 = arith.constant 0 : index
    %c0_83 = arith.constant 0 : index
    %58 = vector.load %arg15[%c0_82, %c0_83] : memref<24x160xf32, #tpu.memory_space<vmem>>, vector<24x160xf32>
    %cst_84 = arith.constant dense<0.000000e+00> : vector<24x32xf32>
    %59 = tpu.matmul %58, %45, %cst_84 {dimension_numbers = #tpu.dot_dimension_numbers<[1], [0], [0], [1], [0, 0, 1, 1], [], []>} : vector<24x160xf32>, vector<160x32xf32>, vector<24x32xf32> -> vector<24x32xf32>
    %60 = vector.broadcast %46 : vector<1x32xf32> to vector<24x32xf32>
    %61 = arith.addf %59, %60 : vector<24x32xf32>
    %62 = math.tanh %61 : vector<24x32xf32>
    %c0_85 = arith.constant 0 : index
    %c0_86 = arith.constant 0 : index
    %63 = vector.load %arg9[%c0_85, %c0_86] : memref<160x32xf32, #tpu.memory_space<vmem>>, vector<160x32xf32>
    %c0_87 = arith.constant 0 : index
    %c0_88 = arith.constant 0 : index
    %64 = vector.load %arg10[%c0_87, %c0_88] : memref<1x32xf32, #tpu.memory_space<vmem>>, vector<1x32xf32>
    %c2_89 = arith.constant 2 : index
    %c0_90 = arith.constant 0 : index
    %65 = vector.load %arg14[%c2_89, %c0_90] : memref<28x32xf32, #tpu.memory_space<vmem>>, vector<24x32xf32>
    tpu.vector_store %arg14[%c2_89, %c0_90], %62 {strides = array<i32>} : memref<28x32xf32, #tpu.memory_space<vmem>>, vector<24x32xf32>,
    %c0_91 = arith.constant 0 : index
    %c0_92 = arith.constant 0 : index
    %66 = vector.load %arg14[%c0_91, %c0_92] : memref<28x32xf32, #tpu.memory_space<vmem>>, vector<24x32xf32>
    %c0_93 = arith.constant 0 : index
    %c0_94 = arith.constant 0 : index
    %67 = vector.load %arg15[%c0_93, %c0_94] : memref<24x160xf32, #tpu.memory_space<vmem>>, vector<24x32xf32>
    tpu.vector_store %arg15[%c0_93, %c0_94], %66 {strides = array<i32>} : memref<24x160xf32, #tpu.memory_space<vmem>>, vector<24x32xf32>,
    %c1_95 = arith.constant 1 : index
    %c0_96 = arith.constant 0 : index
    %68 = vector.load %arg14[%c1_95, %c0_96] : memref<28x32xf32, #tpu.memory_space<vmem>>, vector<24x32xf32>
    %c0_97 = arith.constant 0 : index
    %c32_98 = arith.constant 32 : index
    %69 = vector.load %arg15[%c0_97, %c32_98] : memref<24x160xf32, #tpu.memory_space<vmem>>, vector<24x32xf32>
    tpu.vector_store %arg15[%c0_97, %c32_98], %68 {strides = array<i32>} : memref<24x160xf32, #tpu.memory_space<vmem>>, vector<24x32xf32>,
    %c2_99 = arith.constant 2 : index
    %c0_100 = arith.constant 0 : index
    %70 = vector.load %arg14[%c2_99, %c0_100] : memref<28x32xf32, #tpu.memory_space<vmem>>, vector<24x32xf32>
    %c0_101 = arith.constant 0 : index
    %c64_102 = arith.constant 64 : index
    %71 = vector.load %arg15[%c0_101, %c64_102] : memref<24x160xf32, #tpu.memory_space<vmem>>, vector<24x32xf32>
    tpu.vector_store %arg15[%c0_101, %c64_102], %70 {strides = array<i32>} : memref<24x160xf32, #tpu.memory_space<vmem>>, vector<24x32xf32>,
    %c3_103 = arith.constant 3 : index
    %c0_104 = arith.constant 0 : index
    %72 = vector.load %arg14[%c3_103, %c0_104] : memref<28x32xf32, #tpu.memory_space<vmem>>, vector<24x32xf32>
    %c0_105 = arith.constant 0 : index
    %c96_106 = arith.constant 96 : index
    %73 = vector.load %arg15[%c0_105, %c96_106] : memref<24x160xf32, #tpu.memory_space<vmem>>, vector<24x32xf32>
    tpu.vector_store %arg15[%c0_105, %c96_106], %72 {strides = array<i32>} : memref<24x160xf32, #tpu.memory_space<vmem>>, vector<24x32xf32>,
    %c4_107 = arith.constant 4 : index
    %c0_108 = arith.constant 0 : index
    %74 = vector.load %arg14[%c4_107, %c0_108] : memref<28x32xf32, #tpu.memory_space<vmem>>, vector<24x32xf32>
    %c0_109 = arith.constant 0 : index
    %c128_110 = arith.constant 128 : index
    %75 = vector.load %arg15[%c0_109, %c128_110] : memref<24x160xf32, #tpu.memory_space<vmem>>, vector<24x32xf32>
    tpu.vector_store %arg15[%c0_109, %c128_110], %74 {strides = array<i32>} : memref<24x160xf32, #tpu.memory_space<vmem>>, vector<24x32xf32>,
    %c0_111 = arith.constant 0 : index
    %c0_112 = arith.constant 0 : index
    %76 = vector.load %arg15[%c0_111, %c0_112] : memref<24x160xf32, #tpu.memory_space<vmem>>, vector<24x160xf32>
    %cst_113 = arith.constant dense<0.000000e+00> : vector<24x32xf32>
    %77 = tpu.matmul %76, %63, %cst_113 {dimension_numbers = #tpu.dot_dimension_numbers<[1], [0], [0], [1], [0, 0, 1, 1], [], []>} : vector<24x160xf32>, vector<160x32xf32>, vector<24x32xf32> -> vector<24x32xf32>
    %78 = vector.broadcast %64 : vector<1x32xf32> to vector<24x32xf32>
    %79 = arith.addf %77, %78 : vector<24x32xf32>
    %80 = math.tanh %79 : vector<24x32xf32>
    %c0_114 = arith.constant 0 : index
    %c0_115 = arith.constant 0 : index
    %81 = vector.load %arg11[%c0_114, %c0_115] : memref<160x8xf32, #tpu.memory_space<vmem>>, vector<160x8xf32>
    %c0_116 = arith.constant 0 : index
    %c0_117 = arith.constant 0 : index
    %82 = vector.load %arg12[%c0_116, %c0_117] : memref<1x8xf32, #tpu.memory_space<vmem>>, vector<1x8xf32>
    %c2_118 = arith.constant 2 : index
    %c0_119 = arith.constant 0 : index
    %83 = vector.load %arg14[%c2_118, %c0_119] : memref<28x32xf32, #tpu.memory_space<vmem>>, vector<24x32xf32>
    tpu.vector_store %arg14[%c2_118, %c0_119], %80 {strides = array<i32>} : memref<28x32xf32, #tpu.memory_space<vmem>>, vector<24x32xf32>,
    %c0_120 = arith.constant 0 : index
    %c0_121 = arith.constant 0 : index
    %84 = vector.load %arg14[%c0_120, %c0_121] : memref<28x32xf32, #tpu.memory_space<vmem>>, vector<24x32xf32>
    %c0_122 = arith.constant 0 : index
    %c0_123 = arith.constant 0 : index
    %85 = vector.load %arg15[%c0_122, %c0_123] : memref<24x160xf32, #tpu.memory_space<vmem>>, vector<24x32xf32>
    tpu.vector_store %arg15[%c0_122, %c0_123], %84 {strides = array<i32>} : memref<24x160xf32, #tpu.memory_space<vmem>>, vector<24x32xf32>,
    %c1_124 = arith.constant 1 : index
    %c0_125 = arith.constant 0 : index
    %86 = vector.load %arg14[%c1_124, %c0_125] : memref<28x32xf32, #tpu.memory_space<vmem>>, vector<24x32xf32>
    %c0_126 = arith.constant 0 : index
    %c32_127 = arith.constant 32 : index
    %87 = vector.load %arg15[%c0_126, %c32_127] : memref<24x160xf32, #tpu.memory_space<vmem>>, vector<24x32xf32>
    tpu.vector_store %arg15[%c0_126, %c32_127], %86 {strides = array<i32>} : memref<24x160xf32, #tpu.memory_space<vmem>>, vector<24x32xf32>,
    %c2_128 = arith.constant 2 : index
    %c0_129 = arith.constant 0 : index
    %88 = vector.load %arg14[%c2_128, %c0_129] : memref<28x32xf32, #tpu.memory_space<vmem>>, vector<24x32xf32>
    %c0_130 = arith.constant 0 : index
    %c64_131 = arith.constant 64 : index
    %89 = vector.load %arg15[%c0_130, %c64_131] : memref<24x160xf32, #tpu.memory_space<vmem>>, vector<24x32xf32>
    tpu.vector_store %arg15[%c0_130, %c64_131], %88 {strides = array<i32>} : memref<24x160xf32, #tpu.memory_space<vmem>>, vector<24x32xf32>,
    %c3_132 = arith.constant 3 : index
    %c0_133 = arith.constant 0 : index
    %90 = vector.load %arg14[%c3_132, %c0_133] : memref<28x32xf32, #tpu.memory_space<vmem>>, vector<24x32xf32>
    %c0_134 = arith.constant 0 : index
    %c96_135 = arith.constant 96 : index
    %91 = vector.load %arg15[%c0_134, %c96_135] : memref<24x160xf32, #tpu.memory_space<vmem>>, vector<24x32xf32>
    tpu.vector_store %arg15[%c0_134, %c96_135], %90 {strides = array<i32>} : memref<24x160xf32, #tpu.memory_space<vmem>>, vector<24x32xf32>,
    %c4_136 = arith.constant 4 : index
    %c0_137 = arith.constant 0 : index
    %92 = vector.load %arg14[%c4_136, %c0_137] : memref<28x32xf32, #tpu.memory_space<vmem>>, vector<24x32xf32>
    %c0_138 = arith.constant 0 : index
    %c128_139 = arith.constant 128 : index
    %93 = vector.load %arg15[%c0_138, %c128_139] : memref<24x160xf32, #tpu.memory_space<vmem>>, vector<24x32xf32>
    tpu.vector_store %arg15[%c0_138, %c128_139], %92 {strides = array<i32>} : memref<24x160xf32, #tpu.memory_space<vmem>>, vector<24x32xf32>,
    %c0_140 = arith.constant 0 : index
    %c0_141 = arith.constant 0 : index
    %94 = vector.load %arg15[%c0_140, %c0_141] : memref<24x160xf32, #tpu.memory_space<vmem>>, vector<24x160xf32>
    %cst_142 = arith.constant dense<0.000000e+00> : vector<24x8xf32>
    %95 = tpu.matmul %94, %81, %cst_142 {dimension_numbers = #tpu.dot_dimension_numbers<[1], [0], [0], [1], [0, 0, 1, 1], [], []>} : vector<24x160xf32>, vector<160x8xf32>, vector<24x8xf32> -> vector<24x8xf32>
    %96 = vector.broadcast %82 : vector<1x8xf32> to vector<24x8xf32>
    %97 = arith.addf %95, %96 : vector<24x8xf32>
    %98 = arith.addf %97, %8 : vector<24x8xf32>
    %c0_143 = arith.constant 0 : index
    %c0_144 = arith.constant 0 : index
    %c0_145 = arith.constant 0 : index
    %99 = vector.load %arg13[%c0_143, %c0_144, %c0_145] : memref<2x24x8xf32, #tpu.memory_space<vmem>>, vector<1x24x8xf32>
    %100 = vector.shape_cast %99 : vector<1x24x8xf32> to vector<24x8xf32>
    %101 = vector.shape_cast %98 : vector<24x8xf32> to vector<1x24x8xf32>
    tpu.vector_store %arg13[%c0_143, %c0_144, %c0_145], %101 {strides = array<i32>} : memref<2x24x8xf32, #tpu.memory_space<vmem>>, vector<1x24x8xf32>,
    %c1_146 = arith.constant 1 : index
    %c0_147 = arith.constant 0 : index
    %c0_148 = arith.constant 0 : index
    %102 = vector.load %arg0[%c1_146, %c0_147, %c0_148] : memref<2x24x32xf32, #tpu.memory_space<vmem>>, vector<1x24x32xf32>
    %103 = vector.shape_cast %102 : vector<1x24x32xf32> to vector<24x32xf32>
    %cst_149 = arith.constant dense<0.000000e+00> : vector<24x8xf32>
    %104 = tpu.matmul %103, %2, %cst_149 {dimension_numbers = #tpu.dot_dimension_numbers<[1], [0], [0], [1], [0, 0, 1, 1], [], []>} : vector<24x32xf32>, vector<32x8xf32>, vector<24x8xf32> -> vector<24x8xf32>
    %105 = vector.broadcast %3 : vector<1x8xf32> to vector<24x8xf32>
    %106 = arith.addf %104, %105 : vector<24x8xf32>
    %c0_150 = arith.constant 0 : index
    %c0_151 = arith.constant 0 : index
    %107 = vector.load %arg3[%c0_150, %c0_151] : memref<40x32xf32, #tpu.memory_space<vmem>>, vector<40x32xf32>
    %c0_152 = arith.constant 0 : index
    %c0_153 = arith.constant 0 : index
    %108 = vector.load %arg4[%c0_152, %c0_153] : memref<1x32xf32, #tpu.memory_space<vmem>>, vector<1x32xf32>
    %c2_154 = arith.constant 2 : index
    %c0_155 = arith.constant 0 : index
    %109 = vector.load %arg14[%c2_154, %c0_155] : memref<28x32xf32, #tpu.memory_space<vmem>>, vector<24x8xf32>
    tpu.vector_store %arg14[%c2_154, %c0_155], %106 {strides = array<i32>} : memref<28x32xf32, #tpu.memory_space<vmem>>, vector<24x8xf32>,
    %c0_156 = arith.constant 0 : index
    %c0_157 = arith.constant 0 : index
    %110 = vector.load %arg14[%c0_156, %c0_157] : memref<28x32xf32, #tpu.memory_space<vmem>>, vector<24x8xf32>
    %c0_158 = arith.constant 0 : index
    %c0_159 = arith.constant 0 : index
    %111 = vector.load %arg15[%c0_158, %c0_159] : memref<24x160xf32, #tpu.memory_space<vmem>>, vector<24x8xf32>
    tpu.vector_store %arg15[%c0_158, %c0_159], %110 {strides = array<i32>} : memref<24x160xf32, #tpu.memory_space<vmem>>, vector<24x8xf32>,
    %c1_160 = arith.constant 1 : index
    %c0_161 = arith.constant 0 : index
    %112 = vector.load %arg14[%c1_160, %c0_161] : memref<28x32xf32, #tpu.memory_space<vmem>>, vector<24x8xf32>
    %c0_162 = arith.constant 0 : index
    %c8_163 = arith.constant 8 : index
    %113 = vector.load %arg15[%c0_162, %c8_163] : memref<24x160xf32, #tpu.memory_space<vmem>>, vector<24x8xf32>
    tpu.vector_store %arg15[%c0_162, %c8_163], %112 {strides = array<i32>} : memref<24x160xf32, #tpu.memory_space<vmem>>, vector<24x8xf32>,
    %c2_164 = arith.constant 2 : index
    %c0_165 = arith.constant 0 : index
    %114 = vector.load %arg14[%c2_164, %c0_165] : memref<28x32xf32, #tpu.memory_space<vmem>>, vector<24x8xf32>
    %c0_166 = arith.constant 0 : index
    %c16_167 = arith.constant 16 : index
    %115 = vector.load %arg15[%c0_166, %c16_167] : memref<24x160xf32, #tpu.memory_space<vmem>>, vector<24x8xf32>
    tpu.vector_store %arg15[%c0_166, %c16_167], %114 {strides = array<i32>} : memref<24x160xf32, #tpu.memory_space<vmem>>, vector<24x8xf32>,
    %c3_168 = arith.constant 3 : index
    %c0_169 = arith.constant 0 : index
    %116 = vector.load %arg14[%c3_168, %c0_169] : memref<28x32xf32, #tpu.memory_space<vmem>>, vector<24x8xf32>
    %c0_170 = arith.constant 0 : index
    %c24_171 = arith.constant 24 : index
    %117 = vector.load %arg15[%c0_170, %c24_171] : memref<24x160xf32, #tpu.memory_space<vmem>>, vector<24x8xf32>
    tpu.vector_store %arg15[%c0_170, %c24_171], %116 {strides = array<i32>} : memref<24x160xf32, #tpu.memory_space<vmem>>, vector<24x8xf32>,
    %c4_172 = arith.constant 4 : index
    %c0_173 = arith.constant 0 : index
    %118 = vector.load %arg14[%c4_172, %c0_173] : memref<28x32xf32, #tpu.memory_space<vmem>>, vector<24x8xf32>
    %c0_174 = arith.constant 0 : index
    %c32_175 = arith.constant 32 : index
    %119 = vector.load %arg15[%c0_174, %c32_175] : memref<24x160xf32, #tpu.memory_space<vmem>>, vector<24x8xf32>
    tpu.vector_store %arg15[%c0_174, %c32_175], %118 {strides = array<i32>} : memref<24x160xf32, #tpu.memory_space<vmem>>, vector<24x8xf32>,
    %c0_176 = arith.constant 0 : index
    %c0_177 = arith.constant 0 : index
    %120 = vector.load %arg15[%c0_176, %c0_177] : memref<24x160xf32, #tpu.memory_space<vmem>>, vector<24x40xf32>
    %cst_178 = arith.constant dense<0.000000e+00> : vector<24x32xf32>
    %121 = tpu.matmul %120, %107, %cst_178 {dimension_numbers = #tpu.dot_dimension_numbers<[1], [0], [0], [1], [0, 0, 1, 1], [], []>} : vector<24x40xf32>, vector<40x32xf32>, vector<24x32xf32> -> vector<24x32xf32>
    %122 = vector.broadcast %108 : vector<1x32xf32> to vector<24x32xf32>
    %123 = arith.addf %121, %122 : vector<24x32xf32>
    %124 = math.tanh %123 : vector<24x32xf32>
    %c0_179 = arith.constant 0 : index
    %c0_180 = arith.constant 0 : index
    %125 = vector.load %arg5[%c0_179, %c0_180] : memref<160x32xf32, #tpu.memory_space<vmem>>, vector<160x32xf32>
    %c0_181 = arith.constant 0 : index
    %c0_182 = arith.constant 0 : index
    %126 = vector.load %arg6[%c0_181, %c0_182] : memref<1x32xf32, #tpu.memory_space<vmem>>, vector<1x32xf32>
    %c2_183 = arith.constant 2 : index
    %c0_184 = arith.constant 0 : index
    %127 = vector.load %arg14[%c2_183, %c0_184] : memref<28x32xf32, #tpu.memory_space<vmem>>, vector<24x32xf32>
    tpu.vector_store %arg14[%c2_183, %c0_184], %124 {strides = array<i32>} : memref<28x32xf32, #tpu.memory_space<vmem>>, vector<24x32xf32>,
    %c0_185 = arith.constant 0 : index
    %c0_186 = arith.constant 0 : index
    %128 = vector.load %arg14[%c0_185, %c0_186] : memref<28x32xf32, #tpu.memory_space<vmem>>, vector<24x32xf32>
    %c0_187 = arith.constant 0 : index
    %c0_188 = arith.constant 0 : index
    %129 = vector.load %arg15[%c0_187, %c0_188] : memref<24x160xf32, #tpu.memory_space<vmem>>, vector<24x32xf32>
    tpu.vector_store %arg15[%c0_187, %c0_188], %128 {strides = array<i32>} : memref<24x160xf32, #tpu.memory_space<vmem>>, vector<24x32xf32>,
    %c1_189 = arith.constant 1 : index
    %c0_190 = arith.constant 0 : index
    %130 = vector.load %arg14[%c1_189, %c0_190] : memref<28x32xf32, #tpu.memory_space<vmem>>, vector<24x32xf32>
    %c0_191 = arith.constant 0 : index
    %c32_192 = arith.constant 32 : index
    %131 = vector.load %arg15[%c0_191, %c32_192] : memref<24x160xf32, #tpu.memory_space<vmem>>, vector<24x32xf32>
    tpu.vector_store %arg15[%c0_191, %c32_192], %130 {strides = array<i32>} : memref<24x160xf32, #tpu.memory_space<vmem>>, vector<24x32xf32>,
    %c2_193 = arith.constant 2 : index
    %c0_194 = arith.constant 0 : index
    %132 = vector.load %arg14[%c2_193, %c0_194] : memref<28x32xf32, #tpu.memory_space<vmem>>, vector<24x32xf32>
    %c0_195 = arith.constant 0 : index
    %c64_196 = arith.constant 64 : index
    %133 = vector.load %arg15[%c0_195, %c64_196] : memref<24x160xf32, #tpu.memory_space<vmem>>, vector<24x32xf32>
    tpu.vector_store %arg15[%c0_195, %c64_196], %132 {strides = array<i32>} : memref<24x160xf32, #tpu.memory_space<vmem>>, vector<24x32xf32>,
    %c3_197 = arith.constant 3 : index
    %c0_198 = arith.constant 0 : index
    %134 = vector.load %arg14[%c3_197, %c0_198] : memref<28x32xf32, #tpu.memory_space<vmem>>, vector<24x32xf32>
    %c0_199 = arith.constant 0 : index
    %c96_200 = arith.constant 96 : index
    %135 = vector.load %arg15[%c0_199, %c96_200] : memref<24x160xf32, #tpu.memory_space<vmem>>, vector<24x32xf32>
    tpu.vector_store %arg15[%c0_199, %c96_200], %134 {strides = array<i32>} : memref<24x160xf32, #tpu.memory_space<vmem>>, vector<24x32xf32>,
    %c4_201 = arith.constant 4 : index
    %c0_202 = arith.constant 0 : index
    %136 = vector.load %arg14[%c4_201, %c0_202] : memref<28x32xf32, #tpu.memory_space<vmem>>, vector<24x32xf32>
    %c0_203 = arith.constant 0 : index
    %c128_204 = arith.constant 128 : index
    %137 = vector.load %arg15[%c0_203, %c128_204] : memref<24x160xf32, #tpu.memory_space<vmem>>, vector<24x32xf32>
    tpu.vector_store %arg15[%c0_203, %c128_204], %136 {strides = array<i32>} : memref<24x160xf32, #tpu.memory_space<vmem>>, vector<24x32xf32>,
    %c0_205 = arith.constant 0 : index
    %c0_206 = arith.constant 0 : index
    %138 = vector.load %arg15[%c0_205, %c0_206] : memref<24x160xf32, #tpu.memory_space<vmem>>, vector<24x160xf32>
    %cst_207 = arith.constant dense<0.000000e+00> : vector<24x32xf32>
    %139 = tpu.matmul %138, %125, %cst_207 {dimension_numbers = #tpu.dot_dimension_numbers<[1], [0], [0], [1], [0, 0, 1, 1], [], []>} : vector<24x160xf32>, vector<160x32xf32>, vector<24x32xf32> -> vector<24x32xf32>
    %140 = vector.broadcast %126 : vector<1x32xf32> to vector<24x32xf32>
    %141 = arith.addf %139, %140 : vector<24x32xf32>
    %142 = math.tanh %141 : vector<24x32xf32>
    %c0_208 = arith.constant 0 : index
    %c0_209 = arith.constant 0 : index
    %143 = vector.load %arg7[%c0_208, %c0_209] : memref<160x32xf32, #tpu.memory_space<vmem>>, vector<160x32xf32>
    %c0_210 = arith.constant 0 : index
    %c0_211 = arith.constant 0 : index
    %144 = vector.load %arg8[%c0_210, %c0_211] : memref<1x32xf32, #tpu.memory_space<vmem>>, vector<1x32xf32>
    %c2_212 = arith.constant 2 : index
    %c0_213 = arith.constant 0 : index
    %145 = vector.load %arg14[%c2_212, %c0_213] : memref<28x32xf32, #tpu.memory_space<vmem>>, vector<24x32xf32>
    tpu.vector_store %arg14[%c2_212, %c0_213], %142 {strides = array<i32>} : memref<28x32xf32, #tpu.memory_space<vmem>>, vector<24x32xf32>,
    %c0_214 = arith.constant 0 : index
    %c0_215 = arith.constant 0 : index
    %146 = vector.load %arg14[%c0_214, %c0_215] : memref<28x32xf32, #tpu.memory_space<vmem>>, vector<24x32xf32>
    %c0_216 = arith.constant 0 : index
    %c0_217 = arith.constant 0 : index
    %147 = vector.load %arg15[%c0_216, %c0_217] : memref<24x160xf32, #tpu.memory_space<vmem>>, vector<24x32xf32>
    tpu.vector_store %arg15[%c0_216, %c0_217], %146 {strides = array<i32>} : memref<24x160xf32, #tpu.memory_space<vmem>>, vector<24x32xf32>,
    %c1_218 = arith.constant 1 : index
    %c0_219 = arith.constant 0 : index
    %148 = vector.load %arg14[%c1_218, %c0_219] : memref<28x32xf32, #tpu.memory_space<vmem>>, vector<24x32xf32>
    %c0_220 = arith.constant 0 : index
    %c32_221 = arith.constant 32 : index
    %149 = vector.load %arg15[%c0_220, %c32_221] : memref<24x160xf32, #tpu.memory_space<vmem>>, vector<24x32xf32>
    tpu.vector_store %arg15[%c0_220, %c32_221], %148 {strides = array<i32>} : memref<24x160xf32, #tpu.memory_space<vmem>>, vector<24x32xf32>,
    %c2_222 = arith.constant 2 : index
    %c0_223 = arith.constant 0 : index
    %150 = vector.load %arg14[%c2_222, %c0_223] : memref<28x32xf32, #tpu.memory_space<vmem>>, vector<24x32xf32>
    %c0_224 = arith.constant 0 : index
    %c64_225 = arith.constant 64 : index
    %151 = vector.load %arg15[%c0_224, %c64_225] : memref<24x160xf32, #tpu.memory_space<vmem>>, vector<24x32xf32>
    tpu.vector_store %arg15[%c0_224, %c64_225], %150 {strides = array<i32>} : memref<24x160xf32, #tpu.memory_space<vmem>>, vector<24x32xf32>,
    %c3_226 = arith.constant 3 : index
    %c0_227 = arith.constant 0 : index
    %152 = vector.load %arg14[%c3_226, %c0_227] : memref<28x32xf32, #tpu.memory_space<vmem>>, vector<24x32xf32>
    %c0_228 = arith.constant 0 : index
    %c96_229 = arith.constant 96 : index
    %153 = vector.load %arg15[%c0_228, %c96_229] : memref<24x160xf32, #tpu.memory_space<vmem>>, vector<24x32xf32>
    tpu.vector_store %arg15[%c0_228, %c96_229], %152 {strides = array<i32>} : memref<24x160xf32, #tpu.memory_space<vmem>>, vector<24x32xf32>,
    %c4_230 = arith.constant 4 : index
    %c0_231 = arith.constant 0 : index
    %154 = vector.load %arg14[%c4_230, %c0_231] : memref<28x32xf32, #tpu.memory_space<vmem>>, vector<24x32xf32>
    %c0_232 = arith.constant 0 : index
    %c128_233 = arith.constant 128 : index
    %155 = vector.load %arg15[%c0_232, %c128_233] : memref<24x160xf32, #tpu.memory_space<vmem>>, vector<24x32xf32>
    tpu.vector_store %arg15[%c0_232, %c128_233], %154 {strides = array<i32>} : memref<24x160xf32, #tpu.memory_space<vmem>>, vector<24x32xf32>,
    %c0_234 = arith.constant 0 : index
    %c0_235 = arith.constant 0 : index
    %156 = vector.load %arg15[%c0_234, %c0_235] : memref<24x160xf32, #tpu.memory_space<vmem>>, vector<24x160xf32>
    %cst_236 = arith.constant dense<0.000000e+00> : vector<24x32xf32>
    %157 = tpu.matmul %156, %143, %cst_236 {dimension_numbers = #tpu.dot_dimension_numbers<[1], [0], [0], [1], [0, 0, 1, 1], [], []>} : vector<24x160xf32>, vector<160x32xf32>, vector<24x32xf32> -> vector<24x32xf32>
    %158 = vector.broadcast %144 : vector<1x32xf32> to vector<24x32xf32>
    %159 = arith.addf %157, %158 : vector<24x32xf32>
    %160 = math.tanh %159 : vector<24x32xf32>
    %c0_237 = arith.constant 0 : index
    %c0_238 = arith.constant 0 : index
    %161 = vector.load %arg9[%c0_237, %c0_238] : memref<160x32xf32, #tpu.memory_space<vmem>>, vector<160x32xf32>
    %c0_239 = arith.constant 0 : index
    %c0_240 = arith.constant 0 : index
    %162 = vector.load %arg10[%c0_239, %c0_240] : memref<1x32xf32, #tpu.memory_space<vmem>>, vector<1x32xf32>
    %c2_241 = arith.constant 2 : index
    %c0_242 = arith.constant 0 : index
    %163 = vector.load %arg14[%c2_241, %c0_242] : memref<28x32xf32, #tpu.memory_space<vmem>>, vector<24x32xf32>
    tpu.vector_store %arg14[%c2_241, %c0_242], %160 {strides = array<i32>} : memref<28x32xf32, #tpu.memory_space<vmem>>, vector<24x32xf32>,
    %c0_243 = arith.constant 0 : index
    %c0_244 = arith.constant 0 : index
    %164 = vector.load %arg14[%c0_243, %c0_244] : memref<28x32xf32, #tpu.memory_space<vmem>>, vector<24x32xf32>
    %c0_245 = arith.constant 0 : index
    %c0_246 = arith.constant 0 : index
    %165 = vector.load %arg15[%c0_245, %c0_246] : memref<24x160xf32, #tpu.memory_space<vmem>>, vector<24x32xf32>
    tpu.vector_store %arg15[%c0_245, %c0_246], %164 {strides = array<i32>} : memref<24x160xf32, #tpu.memory_space<vmem>>, vector<24x32xf32>,
    %c1_247 = arith.constant 1 : index
    %c0_248 = arith.constant 0 : index
    %166 = vector.load %arg14[%c1_247, %c0_248] : memref<28x32xf32, #tpu.memory_space<vmem>>, vector<24x32xf32>
    %c0_249 = arith.constant 0 : index
    %c32_250 = arith.constant 32 : index
    %167 = vector.load %arg15[%c0_249, %c32_250] : memref<24x160xf32, #tpu.memory_space<vmem>>, vector<24x32xf32>
    tpu.vector_store %arg15[%c0_249, %c32_250], %166 {strides = array<i32>} : memref<24x160xf32, #tpu.memory_space<vmem>>, vector<24x32xf32>,
    %c2_251 = arith.constant 2 : index
    %c0_252 = arith.constant 0 : index
    %168 = vector.load %arg14[%c2_251, %c0_252] : memref<28x32xf32, #tpu.memory_space<vmem>>, vector<24x32xf32>
    %c0_253 = arith.constant 0 : index
    %c64_254 = arith.constant 64 : index
    %169 = vector.load %arg15[%c0_253, %c64_254] : memref<24x160xf32, #tpu.memory_space<vmem>>, vector<24x32xf32>
    tpu.vector_store %arg15[%c0_253, %c64_254], %168 {strides = array<i32>} : memref<24x160xf32, #tpu.memory_space<vmem>>, vector<24x32xf32>,
    %c3_255 = arith.constant 3 : index
    %c0_256 = arith.constant 0 : index
    %170 = vector.load %arg14[%c3_255, %c0_256] : memref<28x32xf32, #tpu.memory_space<vmem>>, vector<24x32xf32>
    %c0_257 = arith.constant 0 : index
    %c96_258 = arith.constant 96 : index
    %171 = vector.load %arg15[%c0_257, %c96_258] : memref<24x160xf32, #tpu.memory_space<vmem>>, vector<24x32xf32>
    tpu.vector_store %arg15[%c0_257, %c96_258], %170 {strides = array<i32>} : memref<24x160xf32, #tpu.memory_space<vmem>>, vector<24x32xf32>,
    %c4_259 = arith.constant 4 : index
    %c0_260 = arith.constant 0 : index
    %172 = vector.load %arg14[%c4_259, %c0_260] : memref<28x32xf32, #tpu.memory_space<vmem>>, vector<24x32xf32>
    %c0_261 = arith.constant 0 : index
    %c128_262 = arith.constant 128 : index
    %173 = vector.load %arg15[%c0_261, %c128_262] : memref<24x160xf32, #tpu.memory_space<vmem>>, vector<24x32xf32>
    tpu.vector_store %arg15[%c0_261, %c128_262], %172 {strides = array<i32>} : memref<24x160xf32, #tpu.memory_space<vmem>>, vector<24x32xf32>,
    %c0_263 = arith.constant 0 : index
    %c0_264 = arith.constant 0 : index
    %174 = vector.load %arg15[%c0_263, %c0_264] : memref<24x160xf32, #tpu.memory_space<vmem>>, vector<24x160xf32>
    %cst_265 = arith.constant dense<0.000000e+00> : vector<24x32xf32>
    %175 = tpu.matmul %174, %161, %cst_265 {dimension_numbers = #tpu.dot_dimension_numbers<[1], [0], [0], [1], [0, 0, 1, 1], [], []>} : vector<24x160xf32>, vector<160x32xf32>, vector<24x32xf32> -> vector<24x32xf32>
    %176 = vector.broadcast %162 : vector<1x32xf32> to vector<24x32xf32>
    %177 = arith.addf %175, %176 : vector<24x32xf32>
    %178 = math.tanh %177 : vector<24x32xf32>
    %c0_266 = arith.constant 0 : index
    %c0_267 = arith.constant 0 : index
    %179 = vector.load %arg11[%c0_266, %c0_267] : memref<160x8xf32, #tpu.memory_space<vmem>>, vector<160x8xf32>
    %c0_268 = arith.constant 0 : index
    %c0_269 = arith.constant 0 : index
    %180 = vector.load %arg12[%c0_268, %c0_269] : memref<1x8xf32, #tpu.memory_space<vmem>>, vector<1x8xf32>
    %c2_270 = arith.constant 2 : index
    %c0_271 = arith.constant 0 : index
    %181 = vector.load %arg14[%c2_270, %c0_271] : memref<28x32xf32, #tpu.memory_space<vmem>>, vector<24x32xf32>
    tpu.vector_store %arg14[%c2_270, %c0_271], %178 {strides = array<i32>} : memref<28x32xf32, #tpu.memory_space<vmem>>, vector<24x32xf32>,
    %c0_272 = arith.constant 0 : index
    %c0_273 = arith.constant 0 : index
    %182 = vector.load %arg14[%c0_272, %c0_273] : memref<28x32xf32, #tpu.memory_space<vmem>>, vector<24x32xf32>
    %c0_274 = arith.constant 0 : index
    %c0_275 = arith.constant 0 : index
    %183 = vector.load %arg15[%c0_274, %c0_275] : memref<24x160xf32, #tpu.memory_space<vmem>>, vector<24x32xf32>
    tpu.vector_store %arg15[%c0_274, %c0_275], %182 {strides = array<i32>} : memref<24x160xf32, #tpu.memory_space<vmem>>, vector<24x32xf32>,
    %c1_276 = arith.constant 1 : index
    %c0_277 = arith.constant 0 : index
    %184 = vector.load %arg14[%c1_276, %c0_277] : memref<28x32xf32, #tpu.memory_space<vmem>>, vector<24x32xf32>
    %c0_278 = arith.constant 0 : index
    %c32_279 = arith.constant 32 : index
    %185 = vector.load %arg15[%c0_278, %c32_279] : memref<24x160xf32, #tpu.memory_space<vmem>>, vector<24x32xf32>
    tpu.vector_store %arg15[%c0_278, %c32_279], %184 {strides = array<i32>} : memref<24x160xf32, #tpu.memory_space<vmem>>, vector<24x32xf32>,
    %c2_280 = arith.constant 2 : index
    %c0_281 = arith.constant 0 : index
    %186 = vector.load %arg14[%c2_280, %c0_281] : memref<28x32xf32, #tpu.memory_space<vmem>>, vector<24x32xf32>
    %c0_282 = arith.constant 0 : index
    %c64_283 = arith.constant 64 : index
    %187 = vector.load %arg15[%c0_282, %c64_283] : memref<24x160xf32, #tpu.memory_space<vmem>>, vector<24x32xf32>
    tpu.vector_store %arg15[%c0_282, %c64_283], %186 {strides = array<i32>} : memref<24x160xf32, #tpu.memory_space<vmem>>, vector<24x32xf32>,
    %c3_284 = arith.constant 3 : index
    %c0_285 = arith.constant 0 : index
    %188 = vector.load %arg14[%c3_284, %c0_285] : memref<28x32xf32, #tpu.memory_space<vmem>>, vector<24x32xf32>
    %c0_286 = arith.constant 0 : index
    %c96_287 = arith.constant 96 : index
    %189 = vector.load %arg15[%c0_286, %c96_287] : memref<24x160xf32, #tpu.memory_space<vmem>>, vector<24x32xf32>
    tpu.vector_store %arg15[%c0_286, %c96_287], %188 {strides = array<i32>} : memref<24x160xf32, #tpu.memory_space<vmem>>, vector<24x32xf32>,
    %c4_288 = arith.constant 4 : index
    %c0_289 = arith.constant 0 : index
    %190 = vector.load %arg14[%c4_288, %c0_289] : memref<28x32xf32, #tpu.memory_space<vmem>>, vector<24x32xf32>
    %c0_290 = arith.constant 0 : index
    %c128_291 = arith.constant 128 : index
    %191 = vector.load %arg15[%c0_290, %c128_291] : memref<24x160xf32, #tpu.memory_space<vmem>>, vector<24x32xf32>
    tpu.vector_store %arg15[%c0_290, %c128_291], %190 {strides = array<i32>} : memref<24x160xf32, #tpu.memory_space<vmem>>, vector<24x32xf32>,
    %c0_292 = arith.constant 0 : index
    %c0_293 = arith.constant 0 : index
    %192 = vector.load %arg15[%c0_292, %c0_293] : memref<24x160xf32, #tpu.memory_space<vmem>>, vector<24x160xf32>
    %cst_294 = arith.constant dense<0.000000e+00> : vector<24x8xf32>
    %193 = tpu.matmul %192, %179, %cst_294 {dimension_numbers = #tpu.dot_dimension_numbers<[1], [0], [0], [1], [0, 0, 1, 1], [], []>} : vector<24x160xf32>, vector<160x8xf32>, vector<24x8xf32> -> vector<24x8xf32>
    %194 = vector.broadcast %180 : vector<1x8xf32> to vector<24x8xf32>
    %195 = arith.addf %193, %194 : vector<24x8xf32>
    %196 = arith.addf %195, %106 : vector<24x8xf32>
    %c1_295 = arith.constant 1 : index
    %c0_296 = arith.constant 0 : index
    %c0_297 = arith.constant 0 : index
    %197 = vector.load %arg13[%c1_295, %c0_296, %c0_297] : memref<2x24x8xf32, #tpu.memory_space<vmem>>, vector<1x24x8xf32>
    %198 = vector.shape_cast %197 : vector<1x24x8xf32> to vector<24x8xf32>
    %199 = vector.shape_cast %196 : vector<24x8xf32> to vector<1x24x8xf32>
    tpu.vector_store %arg13[%c1_295, %c0_296, %c0_297], %199 {strides = array<i32>} : memref<2x24x8xf32, #tpu.memory_space<vmem>>, vector<1x24x8xf32>,
    return
  }
}

module attributes {stable_mosaic.version = 11 : i64} {
  func.func @_vp_kernel(%arg0: memref<2x8x32xf32, #tpu.memory_space<vmem>>, %arg1: memref<2x8x1xf32, #tpu.memory_space<vmem>>, %arg2: memref<96x32xf32, #tpu.memory_space<vmem>>, %arg3: memref<1x32xf32, #tpu.memory_space<vmem>>, %arg4: memref<1x32xf32, #tpu.memory_space<vmem>>, %arg5: memref<1x32xf32, #tpu.memory_space<vmem>>, %arg6: memref<96x32xf32, #tpu.memory_space<vmem>>, %arg7: memref<1x32xf32, #tpu.memory_space<vmem>>, %arg8: memref<1x32xf32, #tpu.memory_space<vmem>>, %arg9: memref<1x32xf32, #tpu.memory_space<vmem>>, %arg10: memref<32x1xf32, #tpu.memory_space<vmem>>, %arg11: memref<1x1xf32, #tpu.memory_space<vmem>>, %arg12: memref<2x8x1xf32, #tpu.memory_space<vmem>>, %arg13: memref<10x32xf32, #tpu.memory_space<vmem>>, %arg14: memref<8x96xf32, #tpu.memory_space<vmem>>) attributes {dimension_semantics = [], scalar_prefetch = 0 : i64, scratch_operands = 2 : i64, tpu.core_type = #tpu.core_type<tc>} {
    %cst = arith.constant 0.000000e+00 : f32
    %0 = vector.broadcast %cst : f32 to vector<10x32xf32>
    %c0 = arith.constant 0 : index
    %c0_0 = arith.constant 0 : index
    %1 = vector.load %arg13[%c0, %c0_0] : memref<10x32xf32, #tpu.memory_space<vmem>>, vector<10x32xf32>
    tpu.vector_store %arg13[%c0, %c0_0], %0 {strides = array<i32>} : memref<10x32xf32, #tpu.memory_space<vmem>>, vector<10x32xf32>,
    %c0_1 = arith.constant 0 : index
    %c0_2 = arith.constant 0 : index
    %2 = vector.load %arg2[%c0_1, %c0_2] : memref<96x32xf32, #tpu.memory_space<vmem>>, vector<96x32xf32>
    %c0_3 = arith.constant 0 : index
    %c0_4 = arith.constant 0 : index
    %3 = vector.load %arg3[%c0_3, %c0_4] : memref<1x32xf32, #tpu.memory_space<vmem>>, vector<1x32xf32>
    %c0_5 = arith.constant 0 : index
    %c0_6 = arith.constant 0 : index
    %4 = vector.load %arg4[%c0_5, %c0_6] : memref<1x32xf32, #tpu.memory_space<vmem>>, vector<1x32xf32>
    %c0_7 = arith.constant 0 : index
    %c0_8 = arith.constant 0 : index
    %5 = vector.load %arg5[%c0_7, %c0_8] : memref<1x32xf32, #tpu.memory_space<vmem>>, vector<1x32xf32>
    %c0_9 = arith.constant 0 : index
    %c0_10 = arith.constant 0 : index
    %6 = vector.load %arg6[%c0_9, %c0_10] : memref<96x32xf32, #tpu.memory_space<vmem>>, vector<96x32xf32>
    %c0_11 = arith.constant 0 : index
    %c0_12 = arith.constant 0 : index
    %7 = vector.load %arg7[%c0_11, %c0_12] : memref<1x32xf32, #tpu.memory_space<vmem>>, vector<1x32xf32>
    %c0_13 = arith.constant 0 : index
    %c0_14 = arith.constant 0 : index
    %8 = vector.load %arg8[%c0_13, %c0_14] : memref<1x32xf32, #tpu.memory_space<vmem>>, vector<1x32xf32>
    %c0_15 = arith.constant 0 : index
    %c0_16 = arith.constant 0 : index
    %9 = vector.load %arg9[%c0_15, %c0_16] : memref<1x32xf32, #tpu.memory_space<vmem>>, vector<1x32xf32>
    %c0_17 = arith.constant 0 : index
    %c0_18 = arith.constant 0 : index
    %10 = vector.load %arg10[%c0_17, %c0_18] : memref<32x1xf32, #tpu.memory_space<vmem>>, vector<32x1xf32>
    %c0_19 = arith.constant 0 : index
    %c0_20 = arith.constant 0 : index
    %11 = vector.load %arg11[%c0_19, %c0_20] : memref<1x1xf32, #tpu.memory_space<vmem>>, vector<1x1xf32>
    %c0_21 = arith.constant 0 : index
    %c0_22 = arith.constant 0 : index
    %c0_23 = arith.constant 0 : index
    %12 = vector.load %arg0[%c0_21, %c0_22, %c0_23] : memref<2x8x32xf32, #tpu.memory_space<vmem>>, vector<1x8x32xf32>
    %13 = vector.shape_cast %12 : vector<1x8x32xf32> to vector<8x32xf32>
    %c1 = arith.constant 1 : index
    %c0_24 = arith.constant 0 : index
    %14 = vector.load %arg13[%c1, %c0_24] : memref<10x32xf32, #tpu.memory_space<vmem>>, vector<8x32xf32>
    tpu.vector_store %arg13[%c1, %c0_24], %13 {strides = array<i32>} : memref<10x32xf32, #tpu.memory_space<vmem>>, vector<8x32xf32>,
    %c0_25 = arith.constant 0 : index
    %c0_26 = arith.constant 0 : index
    %15 = vector.load %arg13[%c0_25, %c0_26] : memref<10x32xf32, #tpu.memory_space<vmem>>, vector<8x32xf32>
    %c0_27 = arith.constant 0 : index
    %c0_28 = arith.constant 0 : index
    %16 = vector.load %arg14[%c0_27, %c0_28] : memref<8x96xf32, #tpu.memory_space<vmem>>, vector<8x32xf32>
    tpu.vector_store %arg14[%c0_27, %c0_28], %15 {strides = array<i32>} : memref<8x96xf32, #tpu.memory_space<vmem>>, vector<8x32xf32>,
    %c1_29 = arith.constant 1 : index
    %c0_30 = arith.constant 0 : index
    %17 = vector.load %arg13[%c1_29, %c0_30] : memref<10x32xf32, #tpu.memory_space<vmem>>, vector<8x32xf32>
    %c0_31 = arith.constant 0 : index
    %c32 = arith.constant 32 : index
    %18 = vector.load %arg14[%c0_31, %c32] : memref<8x96xf32, #tpu.memory_space<vmem>>, vector<8x32xf32>
    tpu.vector_store %arg14[%c0_31, %c32], %17 {strides = array<i32>} : memref<8x96xf32, #tpu.memory_space<vmem>>, vector<8x32xf32>,
    %c2 = arith.constant 2 : index
    %c0_32 = arith.constant 0 : index
    %19 = vector.load %arg13[%c2, %c0_32] : memref<10x32xf32, #tpu.memory_space<vmem>>, vector<8x32xf32>
    %c0_33 = arith.constant 0 : index
    %c64 = arith.constant 64 : index
    %20 = vector.load %arg14[%c0_33, %c64] : memref<8x96xf32, #tpu.memory_space<vmem>>, vector<8x32xf32>
    tpu.vector_store %arg14[%c0_33, %c64], %19 {strides = array<i32>} : memref<8x96xf32, #tpu.memory_space<vmem>>, vector<8x32xf32>,
    %c0_34 = arith.constant 0 : index
    %c0_35 = arith.constant 0 : index
    %21 = vector.load %arg14[%c0_34, %c0_35] : memref<8x96xf32, #tpu.memory_space<vmem>>, vector<8x96xf32>
    %cst_36 = arith.constant dense<0.000000e+00> : vector<8x32xf32>
    %22 = tpu.matmul %21, %2, %cst_36 {dimension_numbers = #tpu.dot_dimension_numbers<[1], [0], [0], [1], [0, 0, 1, 1], [], []>} : vector<8x96xf32>, vector<96x32xf32>, vector<8x32xf32> -> vector<8x32xf32>
    %23 = vector.broadcast %3 : vector<1x32xf32> to vector<8x32xf32>
    %24 = arith.addf %22, %23 : vector<8x32xf32>
    %cst_37 = arith.constant 0.000000e+00 : f32
    %25 = vector.broadcast %cst_37 : f32 to vector<8x32xf32>
    %26 = arith.maximumf %24, %25 : vector<8x32xf32>
    %cst_38 = arith.constant dense<0.000000e+00> : vector<8xf32>
    %27 = vector.multi_reduction <add>, %26, %cst_38 [1] : vector<8x32xf32> to vector<8xf32>
    %28 = vector.shape_cast %27 : vector<8xf32> to vector<8x1xf32>
    %cst_39 = arith.constant 3.200000e+01 : f32
    %29 = vector.broadcast %cst_39 : f32 to vector<8x1xf32>
    %30 = arith.divf %28, %29 : vector<8x1xf32>
    %31 = vector.broadcast %30 : vector<8x1xf32> to vector<8x32xf32>
    %32 = arith.subf %26, %31 : vector<8x32xf32>
    %33 = arith.mulf %32, %32 : vector<8x32xf32>
    %cst_40 = arith.constant dense<0.000000e+00> : vector<8xf32>
    %34 = vector.multi_reduction <add>, %33, %cst_40 [1] : vector<8x32xf32> to vector<8xf32>
    %35 = vector.shape_cast %34 : vector<8xf32> to vector<8x1xf32>
    %cst_41 = arith.constant 3.200000e+01 : f32
    %36 = vector.broadcast %cst_41 : f32 to vector<8x1xf32>
    %37 = arith.divf %35, %36 : vector<8x1xf32>
    %38 = vector.broadcast %30 : vector<8x1xf32> to vector<8x32xf32>
    %39 = arith.subf %26, %38 : vector<8x32xf32>
    %cst_42 = arith.constant 9.99999974E-6 : f32
    %40 = vector.broadcast %cst_42 : f32 to vector<8x1xf32>
    %41 = arith.addf %37, %40 : vector<8x1xf32>
    %42 = math.rsqrt %41 : vector<8x1xf32>
    %43 = vector.broadcast %42 : vector<8x1xf32> to vector<8x32xf32>
    %44 = arith.mulf %39, %43 : vector<8x32xf32>
    %45 = vector.broadcast %4 : vector<1x32xf32> to vector<8x32xf32>
    %46 = arith.mulf %44, %45 : vector<8x32xf32>
    %47 = vector.broadcast %5 : vector<1x32xf32> to vector<8x32xf32>
    %48 = arith.addf %46, %47 : vector<8x32xf32>
    %c1_43 = arith.constant 1 : index
    %c0_44 = arith.constant 0 : index
    %49 = vector.load %arg13[%c1_43, %c0_44] : memref<10x32xf32, #tpu.memory_space<vmem>>, vector<8x32xf32>
    tpu.vector_store %arg13[%c1_43, %c0_44], %48 {strides = array<i32>} : memref<10x32xf32, #tpu.memory_space<vmem>>, vector<8x32xf32>,
    %c0_45 = arith.constant 0 : index
    %c0_46 = arith.constant 0 : index
    %50 = vector.load %arg13[%c0_45, %c0_46] : memref<10x32xf32, #tpu.memory_space<vmem>>, vector<8x32xf32>
    %c0_47 = arith.constant 0 : index
    %c0_48 = arith.constant 0 : index
    %51 = vector.load %arg14[%c0_47, %c0_48] : memref<8x96xf32, #tpu.memory_space<vmem>>, vector<8x32xf32>
    tpu.vector_store %arg14[%c0_47, %c0_48], %50 {strides = array<i32>} : memref<8x96xf32, #tpu.memory_space<vmem>>, vector<8x32xf32>,
    %c1_49 = arith.constant 1 : index
    %c0_50 = arith.constant 0 : index
    %52 = vector.load %arg13[%c1_49, %c0_50] : memref<10x32xf32, #tpu.memory_space<vmem>>, vector<8x32xf32>
    %c0_51 = arith.constant 0 : index
    %c32_52 = arith.constant 32 : index
    %53 = vector.load %arg14[%c0_51, %c32_52] : memref<8x96xf32, #tpu.memory_space<vmem>>, vector<8x32xf32>
    tpu.vector_store %arg14[%c0_51, %c32_52], %52 {strides = array<i32>} : memref<8x96xf32, #tpu.memory_space<vmem>>, vector<8x32xf32>,
    %c2_53 = arith.constant 2 : index
    %c0_54 = arith.constant 0 : index
    %54 = vector.load %arg13[%c2_53, %c0_54] : memref<10x32xf32, #tpu.memory_space<vmem>>, vector<8x32xf32>
    %c0_55 = arith.constant 0 : index
    %c64_56 = arith.constant 64 : index
    %55 = vector.load %arg14[%c0_55, %c64_56] : memref<8x96xf32, #tpu.memory_space<vmem>>, vector<8x32xf32>
    tpu.vector_store %arg14[%c0_55, %c64_56], %54 {strides = array<i32>} : memref<8x96xf32, #tpu.memory_space<vmem>>, vector<8x32xf32>,
    %c0_57 = arith.constant 0 : index
    %c0_58 = arith.constant 0 : index
    %56 = vector.load %arg14[%c0_57, %c0_58] : memref<8x96xf32, #tpu.memory_space<vmem>>, vector<8x96xf32>
    %cst_59 = arith.constant dense<0.000000e+00> : vector<8x32xf32>
    %57 = tpu.matmul %56, %6, %cst_59 {dimension_numbers = #tpu.dot_dimension_numbers<[1], [0], [0], [1], [0, 0, 1, 1], [], []>} : vector<8x96xf32>, vector<96x32xf32>, vector<8x32xf32> -> vector<8x32xf32>
    %58 = vector.broadcast %7 : vector<1x32xf32> to vector<8x32xf32>
    %59 = arith.addf %57, %58 : vector<8x32xf32>
    %cst_60 = arith.constant 0.000000e+00 : f32
    %60 = vector.broadcast %cst_60 : f32 to vector<8x32xf32>
    %61 = arith.maximumf %59, %60 : vector<8x32xf32>
    %cst_61 = arith.constant dense<0.000000e+00> : vector<8xf32>
    %62 = vector.multi_reduction <add>, %61, %cst_61 [1] : vector<8x32xf32> to vector<8xf32>
    %63 = vector.shape_cast %62 : vector<8xf32> to vector<8x1xf32>
    %cst_62 = arith.constant 3.200000e+01 : f32
    %64 = vector.broadcast %cst_62 : f32 to vector<8x1xf32>
    %65 = arith.divf %63, %64 : vector<8x1xf32>
    %66 = vector.broadcast %65 : vector<8x1xf32> to vector<8x32xf32>
    %67 = arith.subf %61, %66 : vector<8x32xf32>
    %68 = arith.mulf %67, %67 : vector<8x32xf32>
    %cst_63 = arith.constant dense<0.000000e+00> : vector<8xf32>
    %69 = vector.multi_reduction <add>, %68, %cst_63 [1] : vector<8x32xf32> to vector<8xf32>
    %70 = vector.shape_cast %69 : vector<8xf32> to vector<8x1xf32>
    %cst_64 = arith.constant 3.200000e+01 : f32
    %71 = vector.broadcast %cst_64 : f32 to vector<8x1xf32>
    %72 = arith.divf %70, %71 : vector<8x1xf32>
    %73 = vector.broadcast %65 : vector<8x1xf32> to vector<8x32xf32>
    %74 = arith.subf %61, %73 : vector<8x32xf32>
    %cst_65 = arith.constant 9.99999974E-6 : f32
    %75 = vector.broadcast %cst_65 : f32 to vector<8x1xf32>
    %76 = arith.addf %72, %75 : vector<8x1xf32>
    %77 = math.rsqrt %76 : vector<8x1xf32>
    %78 = vector.broadcast %77 : vector<8x1xf32> to vector<8x32xf32>
    %79 = arith.mulf %74, %78 : vector<8x32xf32>
    %80 = vector.broadcast %8 : vector<1x32xf32> to vector<8x32xf32>
    %81 = arith.mulf %79, %80 : vector<8x32xf32>
    %82 = vector.broadcast %9 : vector<1x32xf32> to vector<8x32xf32>
    %83 = arith.addf %81, %82 : vector<8x32xf32>
    %cst_66 = arith.constant dense<0.000000e+00> : vector<8x1xf32>
    %84 = tpu.matmul %83, %10, %cst_66 {dimension_numbers = #tpu.dot_dimension_numbers<[1], [0], [0], [1], [0, 0, 1, 1], [], []>} : vector<8x32xf32>, vector<32x1xf32>, vector<8x1xf32> -> vector<8x1xf32>
    %85 = vector.broadcast %11 : vector<1x1xf32> to vector<8x1xf32>
    %86 = arith.addf %84, %85 : vector<8x1xf32>
    %c0_67 = arith.constant 0 : index
    %c0_68 = arith.constant 0 : index
    %c0_69 = arith.constant 0 : index
    %87 = vector.load %arg1[%c0_67, %c0_68, %c0_69] : memref<2x8x1xf32, #tpu.memory_space<vmem>>, vector<1x8x1xf32>
    %88 = vector.shape_cast %87 : vector<1x8x1xf32> to vector<8x1xf32>
    %89 = arith.mulf %86, %88 : vector<8x1xf32>
    %c0_70 = arith.constant 0 : index
    %c0_71 = arith.constant 0 : index
    %c0_72 = arith.constant 0 : index
    %90 = vector.load %arg12[%c0_70, %c0_71, %c0_72] : memref<2x8x1xf32, #tpu.memory_space<vmem>>, vector<1x8x1xf32>
    %91 = vector.shape_cast %90 : vector<1x8x1xf32> to vector<8x1xf32>
    %92 = vector.shape_cast %89 : vector<8x1xf32> to vector<1x8x1xf32>
    tpu.vector_store %arg12[%c0_70, %c0_71, %c0_72], %92 {strides = array<i32>} : memref<2x8x1xf32, #tpu.memory_space<vmem>>, vector<1x8x1xf32>,
    %c1_73 = arith.constant 1 : index
    %c0_74 = arith.constant 0 : index
    %c0_75 = arith.constant 0 : index
    %93 = vector.load %arg0[%c1_73, %c0_74, %c0_75] : memref<2x8x32xf32, #tpu.memory_space<vmem>>, vector<1x8x32xf32>
    %94 = vector.shape_cast %93 : vector<1x8x32xf32> to vector<8x32xf32>
    %c1_76 = arith.constant 1 : index
    %c0_77 = arith.constant 0 : index
    %95 = vector.load %arg13[%c1_76, %c0_77] : memref<10x32xf32, #tpu.memory_space<vmem>>, vector<8x32xf32>
    tpu.vector_store %arg13[%c1_76, %c0_77], %94 {strides = array<i32>} : memref<10x32xf32, #tpu.memory_space<vmem>>, vector<8x32xf32>,
    %c0_78 = arith.constant 0 : index
    %c0_79 = arith.constant 0 : index
    %96 = vector.load %arg13[%c0_78, %c0_79] : memref<10x32xf32, #tpu.memory_space<vmem>>, vector<8x32xf32>
    %c0_80 = arith.constant 0 : index
    %c0_81 = arith.constant 0 : index
    %97 = vector.load %arg14[%c0_80, %c0_81] : memref<8x96xf32, #tpu.memory_space<vmem>>, vector<8x32xf32>
    tpu.vector_store %arg14[%c0_80, %c0_81], %96 {strides = array<i32>} : memref<8x96xf32, #tpu.memory_space<vmem>>, vector<8x32xf32>,
    %c1_82 = arith.constant 1 : index
    %c0_83 = arith.constant 0 : index
    %98 = vector.load %arg13[%c1_82, %c0_83] : memref<10x32xf32, #tpu.memory_space<vmem>>, vector<8x32xf32>
    %c0_84 = arith.constant 0 : index
    %c32_85 = arith.constant 32 : index
    %99 = vector.load %arg14[%c0_84, %c32_85] : memref<8x96xf32, #tpu.memory_space<vmem>>, vector<8x32xf32>
    tpu.vector_store %arg14[%c0_84, %c32_85], %98 {strides = array<i32>} : memref<8x96xf32, #tpu.memory_space<vmem>>, vector<8x32xf32>,
    %c2_86 = arith.constant 2 : index
    %c0_87 = arith.constant 0 : index
    %100 = vector.load %arg13[%c2_86, %c0_87] : memref<10x32xf32, #tpu.memory_space<vmem>>, vector<8x32xf32>
    %c0_88 = arith.constant 0 : index
    %c64_89 = arith.constant 64 : index
    %101 = vector.load %arg14[%c0_88, %c64_89] : memref<8x96xf32, #tpu.memory_space<vmem>>, vector<8x32xf32>
    tpu.vector_store %arg14[%c0_88, %c64_89], %100 {strides = array<i32>} : memref<8x96xf32, #tpu.memory_space<vmem>>, vector<8x32xf32>,
    %c0_90 = arith.constant 0 : index
    %c0_91 = arith.constant 0 : index
    %102 = vector.load %arg14[%c0_90, %c0_91] : memref<8x96xf32, #tpu.memory_space<vmem>>, vector<8x96xf32>
    %cst_92 = arith.constant dense<0.000000e+00> : vector<8x32xf32>
    %103 = tpu.matmul %102, %2, %cst_92 {dimension_numbers = #tpu.dot_dimension_numbers<[1], [0], [0], [1], [0, 0, 1, 1], [], []>} : vector<8x96xf32>, vector<96x32xf32>, vector<8x32xf32> -> vector<8x32xf32>
    %104 = vector.broadcast %3 : vector<1x32xf32> to vector<8x32xf32>
    %105 = arith.addf %103, %104 : vector<8x32xf32>
    %cst_93 = arith.constant 0.000000e+00 : f32
    %106 = vector.broadcast %cst_93 : f32 to vector<8x32xf32>
    %107 = arith.maximumf %105, %106 : vector<8x32xf32>
    %cst_94 = arith.constant dense<0.000000e+00> : vector<8xf32>
    %108 = vector.multi_reduction <add>, %107, %cst_94 [1] : vector<8x32xf32> to vector<8xf32>
    %109 = vector.shape_cast %108 : vector<8xf32> to vector<8x1xf32>
    %cst_95 = arith.constant 3.200000e+01 : f32
    %110 = vector.broadcast %cst_95 : f32 to vector<8x1xf32>
    %111 = arith.divf %109, %110 : vector<8x1xf32>
    %112 = vector.broadcast %111 : vector<8x1xf32> to vector<8x32xf32>
    %113 = arith.subf %107, %112 : vector<8x32xf32>
    %114 = arith.mulf %113, %113 : vector<8x32xf32>
    %cst_96 = arith.constant dense<0.000000e+00> : vector<8xf32>
    %115 = vector.multi_reduction <add>, %114, %cst_96 [1] : vector<8x32xf32> to vector<8xf32>
    %116 = vector.shape_cast %115 : vector<8xf32> to vector<8x1xf32>
    %cst_97 = arith.constant 3.200000e+01 : f32
    %117 = vector.broadcast %cst_97 : f32 to vector<8x1xf32>
    %118 = arith.divf %116, %117 : vector<8x1xf32>
    %119 = vector.broadcast %111 : vector<8x1xf32> to vector<8x32xf32>
    %120 = arith.subf %107, %119 : vector<8x32xf32>
    %cst_98 = arith.constant 9.99999974E-6 : f32
    %121 = vector.broadcast %cst_98 : f32 to vector<8x1xf32>
    %122 = arith.addf %118, %121 : vector<8x1xf32>
    %123 = math.rsqrt %122 : vector<8x1xf32>
    %124 = vector.broadcast %123 : vector<8x1xf32> to vector<8x32xf32>
    %125 = arith.mulf %120, %124 : vector<8x32xf32>
    %126 = vector.broadcast %4 : vector<1x32xf32> to vector<8x32xf32>
    %127 = arith.mulf %125, %126 : vector<8x32xf32>
    %128 = vector.broadcast %5 : vector<1x32xf32> to vector<8x32xf32>
    %129 = arith.addf %127, %128 : vector<8x32xf32>
    %c1_99 = arith.constant 1 : index
    %c0_100 = arith.constant 0 : index
    %130 = vector.load %arg13[%c1_99, %c0_100] : memref<10x32xf32, #tpu.memory_space<vmem>>, vector<8x32xf32>
    tpu.vector_store %arg13[%c1_99, %c0_100], %129 {strides = array<i32>} : memref<10x32xf32, #tpu.memory_space<vmem>>, vector<8x32xf32>,
    %c0_101 = arith.constant 0 : index
    %c0_102 = arith.constant 0 : index
    %131 = vector.load %arg13[%c0_101, %c0_102] : memref<10x32xf32, #tpu.memory_space<vmem>>, vector<8x32xf32>
    %c0_103 = arith.constant 0 : index
    %c0_104 = arith.constant 0 : index
    %132 = vector.load %arg14[%c0_103, %c0_104] : memref<8x96xf32, #tpu.memory_space<vmem>>, vector<8x32xf32>
    tpu.vector_store %arg14[%c0_103, %c0_104], %131 {strides = array<i32>} : memref<8x96xf32, #tpu.memory_space<vmem>>, vector<8x32xf32>,
    %c1_105 = arith.constant 1 : index
    %c0_106 = arith.constant 0 : index
    %133 = vector.load %arg13[%c1_105, %c0_106] : memref<10x32xf32, #tpu.memory_space<vmem>>, vector<8x32xf32>
    %c0_107 = arith.constant 0 : index
    %c32_108 = arith.constant 32 : index
    %134 = vector.load %arg14[%c0_107, %c32_108] : memref<8x96xf32, #tpu.memory_space<vmem>>, vector<8x32xf32>
    tpu.vector_store %arg14[%c0_107, %c32_108], %133 {strides = array<i32>} : memref<8x96xf32, #tpu.memory_space<vmem>>, vector<8x32xf32>,
    %c2_109 = arith.constant 2 : index
    %c0_110 = arith.constant 0 : index
    %135 = vector.load %arg13[%c2_109, %c0_110] : memref<10x32xf32, #tpu.memory_space<vmem>>, vector<8x32xf32>
    %c0_111 = arith.constant 0 : index
    %c64_112 = arith.constant 64 : index
    %136 = vector.load %arg14[%c0_111, %c64_112] : memref<8x96xf32, #tpu.memory_space<vmem>>, vector<8x32xf32>
    tpu.vector_store %arg14[%c0_111, %c64_112], %135 {strides = array<i32>} : memref<8x96xf32, #tpu.memory_space<vmem>>, vector<8x32xf32>,
    %c0_113 = arith.constant 0 : index
    %c0_114 = arith.constant 0 : index
    %137 = vector.load %arg14[%c0_113, %c0_114] : memref<8x96xf32, #tpu.memory_space<vmem>>, vector<8x96xf32>
    %cst_115 = arith.constant dense<0.000000e+00> : vector<8x32xf32>
    %138 = tpu.matmul %137, %6, %cst_115 {dimension_numbers = #tpu.dot_dimension_numbers<[1], [0], [0], [1], [0, 0, 1, 1], [], []>} : vector<8x96xf32>, vector<96x32xf32>, vector<8x32xf32> -> vector<8x32xf32>
    %139 = vector.broadcast %7 : vector<1x32xf32> to vector<8x32xf32>
    %140 = arith.addf %138, %139 : vector<8x32xf32>
    %cst_116 = arith.constant 0.000000e+00 : f32
    %141 = vector.broadcast %cst_116 : f32 to vector<8x32xf32>
    %142 = arith.maximumf %140, %141 : vector<8x32xf32>
    %cst_117 = arith.constant dense<0.000000e+00> : vector<8xf32>
    %143 = vector.multi_reduction <add>, %142, %cst_117 [1] : vector<8x32xf32> to vector<8xf32>
    %144 = vector.shape_cast %143 : vector<8xf32> to vector<8x1xf32>
    %cst_118 = arith.constant 3.200000e+01 : f32
    %145 = vector.broadcast %cst_118 : f32 to vector<8x1xf32>
    %146 = arith.divf %144, %145 : vector<8x1xf32>
    %147 = vector.broadcast %146 : vector<8x1xf32> to vector<8x32xf32>
    %148 = arith.subf %142, %147 : vector<8x32xf32>
    %149 = arith.mulf %148, %148 : vector<8x32xf32>
    %cst_119 = arith.constant dense<0.000000e+00> : vector<8xf32>
    %150 = vector.multi_reduction <add>, %149, %cst_119 [1] : vector<8x32xf32> to vector<8xf32>
    %151 = vector.shape_cast %150 : vector<8xf32> to vector<8x1xf32>
    %cst_120 = arith.constant 3.200000e+01 : f32
    %152 = vector.broadcast %cst_120 : f32 to vector<8x1xf32>
    %153 = arith.divf %151, %152 : vector<8x1xf32>
    %154 = vector.broadcast %146 : vector<8x1xf32> to vector<8x32xf32>
    %155 = arith.subf %142, %154 : vector<8x32xf32>
    %cst_121 = arith.constant 9.99999974E-6 : f32
    %156 = vector.broadcast %cst_121 : f32 to vector<8x1xf32>
    %157 = arith.addf %153, %156 : vector<8x1xf32>
    %158 = math.rsqrt %157 : vector<8x1xf32>
    %159 = vector.broadcast %158 : vector<8x1xf32> to vector<8x32xf32>
    %160 = arith.mulf %155, %159 : vector<8x32xf32>
    %161 = vector.broadcast %8 : vector<1x32xf32> to vector<8x32xf32>
    %162 = arith.mulf %160, %161 : vector<8x32xf32>
    %163 = vector.broadcast %9 : vector<1x32xf32> to vector<8x32xf32>
    %164 = arith.addf %162, %163 : vector<8x32xf32>
    %cst_122 = arith.constant dense<0.000000e+00> : vector<8x1xf32>
    %165 = tpu.matmul %164, %10, %cst_122 {dimension_numbers = #tpu.dot_dimension_numbers<[1], [0], [0], [1], [0, 0, 1, 1], [], []>} : vector<8x32xf32>, vector<32x1xf32>, vector<8x1xf32> -> vector<8x1xf32>
    %166 = vector.broadcast %11 : vector<1x1xf32> to vector<8x1xf32>
    %167 = arith.addf %165, %166 : vector<8x1xf32>
    %c1_123 = arith.constant 1 : index
    %c0_124 = arith.constant 0 : index
    %c0_125 = arith.constant 0 : index
    %168 = vector.load %arg1[%c1_123, %c0_124, %c0_125] : memref<2x8x1xf32, #tpu.memory_space<vmem>>, vector<1x8x1xf32>
    %169 = vector.shape_cast %168 : vector<1x8x1xf32> to vector<8x1xf32>
    %170 = arith.mulf %167, %169 : vector<8x1xf32>
    %c1_126 = arith.constant 1 : index
    %c0_127 = arith.constant 0 : index
    %c0_128 = arith.constant 0 : index
    %171 = vector.load %arg12[%c1_126, %c0_127, %c0_128] : memref<2x8x1xf32, #tpu.memory_space<vmem>>, vector<1x8x1xf32>
    %172 = vector.shape_cast %171 : vector<1x8x1xf32> to vector<8x1xf32>
    %173 = vector.shape_cast %170 : vector<8x1xf32> to vector<1x8x1xf32>
    tpu.vector_store %arg12[%c1_126, %c0_127, %c0_128], %173 {strides = array<i32>} : memref<2x8x1xf32, #tpu.memory_space<vmem>>, vector<1x8x1xf32>,
    return
  }
}

</mosaic_0001>

<bundles_post_ra>
// kernel: custom-call.6
= control target key start
LH: loop header
LB: loop body
LE: loop exit
PB: predicated region body
PF: predicated region fallthrough
CT: control target
= control target key end

     0   :  { %s6_s0 = inlined_call_operand.vmem [shape: u32[2,8], index: 0, kind: output, shape index: {}]  }

// kernel: ne.7
= control target key start
LH: loop header
LB: loop body
LE: loop exit
PB: predicated region body
PF: predicated region fallthrough
CT: control target
= control target key end

     0   :  { %v15_v2 = vmov 0   ;;  %s40_s0 = inlined_call_operand.vmem [shape: f32[2,8], index: 0, kind: input, shape index: {}, may-alias: {0,1}]   ;;  %s41_s1 = inlined_call_operand.vmem [shape: f32[2,8], index: 1, kind: input, shape index: {}, may-alias: {0,1}]   ;;  %s42_s2 = inlined_call_operand.vmem [shape: pred[2,8], index: 2, kind: output, shape index: {}]  }
   0x1   :  { %v3_v0 = vld [vmem:[%s40_s0] sm:$0x3] }
   0x2   :  { %v4_v1 = vld [vmem:[%s41_s1] sm:$0x3] }
   0x3   :  { %vm7_vm0 = vcmp.ne.f32.partialorder %v3_v0, %v4_v1 }
   0x4   :  { %v8_v3 = vsel %vm7_vm0, 1, %v15_v2 }
   0x5   :  { %v10_v4 = vpack.c.b16 %v15_v2, %v8_v3 }
   0x7   :  { %v11_v5 = vpack.c.b8 %v15_v2, %v10_v4 }
   0x9   :  { %13 = vst [vmem:[%s42_s2] sm:$0x1] %v11_v5 }

// kernel: squeeze.24
= control target key start
LH: loop header
LB: loop body
LE: loop exit
PB: predicated region body
PF: predicated region fallthrough
CT: control target
= control target key end

     0   :  { %vm7_vm0 = vcmask 64512   ;;  %s39_s0 = inlined_call_operand.vmem [shape: f32[16], index: 0, kind: input, shape index: {}]   ;;  %s40_s1 = inlined_call_operand.vmem [shape: f32[2,8], index: 1, kind: output, shape index: {}]  }
   0x1   :  { %v4_v0 = vld [vmem:[%s39_s0] sm:$0x1]  ;;  %s22_s0 = smov 120  }
   0x2   :  { %5 = vst [vmem:[#allocation1] sm:$0x1] %v4_v0 }
   0x9   :  { %v9_v1 = vld [vmem:[#allocation1] sm:$0x1]  }
   0xa   :  { %v6_v2 = vld [vmem:[#allocation1] sm:$0x1]   ;;  %10 = vrot.lane.b32.xlu0 %v9_v1, %s22_s0 }
   0xb   :  { %8 = vst.msk [vmem:[#allocation0] sm:$0x1] %vm7_vm0, %v6_v2  }
  0x7c   :  { %v11_v3 = vpop.permute.xlu0 %10  }
  0x7d   :  { %14 = vst.msk [vmem:[#allocation0 + $0x1] sm:$0x1] %vm7_vm0, %v11_v3  }
  0x84   :  { %v18_v4 = vld [vmem:[#allocation0] sm:$0x3] }
  0x85   :  { %20 = vst [vmem:[%s40_s1] sm:$0x3] %v18_v4 }

// kernel: custom-call.8
= control target key start
LH: loop header
LB: loop body
LE: loop exit
PB: predicated region body
PF: predicated region fallthrough
CT: control target
= control target key end

     0   :  { %s6_s0 = inlined_call_operand.vmem [shape: u32[2,24], index: 0, kind: output, shape index: {}]  }

// kernel: squeeze.25
= control target key start
LH: loop header
LB: loop body
LE: loop exit
PB: predicated region body
PF: predicated region fallthrough
CT: control target
= control target key end

     0   :  { %vm7_vm0 = vcmask 195584   ;;  %s39_s0 = inlined_call_operand.vmem [shape: s32[48], index: 0, kind: input, shape index: {}]   ;;  %s40_s1 = inlined_call_operand.vmem [shape: s32[2,24], index: 1, kind: output, shape index: {}]  }
   0x1   :  { %v4_v0 = vld [vmem:[%s39_s0] sm:$0x1]  ;;  %s22_s0 = smov 104  }
   0x2   :  { %5 = vst [vmem:[#allocation1] sm:$0x1] %v4_v0 }
   0x9   :  { %v9_v1 = vld [vmem:[#allocation1] sm:$0x1]  }
   0xa   :  { %v6_v2 = vld [vmem:[#allocation1] sm:$0x1]   ;;  %10 = vrot.lane.b32.xlu0 %v9_v1, %s22_s0 }
   0xb   :  { %8 = vst.msk [vmem:[#allocation0] sm:$0x1] %vm7_vm0, %v6_v2  }
  0x7c   :  { %v11_v3 = vpop.permute.xlu0 %10  }
  0x7d   :  { %14 = vst.msk [vmem:[#allocation0 + $0x1] sm:$0x1] %vm7_vm0, %v11_v3  }
  0x84   :  { %v18_v4 = vld [vmem:[#allocation0] sm:$0x3] }
  0x85   :  { %20 = vst [vmem:[%s40_s1] sm:$0x3] %v18_v4 }

// kernel: fastspeech2_forward.9
= control target key start
LH: loop header
LB: loop body
LE: loop exit
PB: predicated region body
PF: predicated region fallthrough
CT: control target
= control target key end

     0   :  { %vm19_vm0 = vcmask 261120   ;;  %vm26_vm1 = vcmask 257024   ;;  %s147_s0 = inlined_call_operand.vmem [shape: f32[20,32], index: 0, kind: input, shape index: {}]   ;;  %s148_s1 = inlined_call_operand.vmem [shape: f32[1,32], index: 1, kind: input, shape index: {}]   ;;  %s149_s2 = inlined_call_operand.vmem [shape: f32[1,32], index: 2, kind: input, shape index: {}]   ;;  %s150_s3 = inlined_call_operand.vmem [shape: f32[20,32], index: 3, kind: output, shape index: {}]  }
   0x1   :  { %v14_v0 = vld [vmem:[%s147_s0] sm:$0xff]  ;;  %v16_v1 = vld [vmem:[%s147_s0 + $0x10] sm:$0xf]  ;;  %v15_v2 = vld [vmem:[%s147_s0 + $0x8] sm:$0xff] }
   0x2   :  { %v20_v3 = vsel %vm19_vm0, %v14_v0, 0.0  ;;  %v27_v4 = vsel %vm26_vm1, %v16_v1, 0.0  ;;  %v23_v5 = vsel %vm19_vm0, %v15_v2, 0.0  ;;  %v86_v31 = vld [vmem:[%s148_s1] ss:$0 sm:$0xff] }
   0x3   :  { %21 = vadd.xlane.f32.xlu0 %v20_v3  ;;  %28 = vadd.xlane.f32.xlu1 %v27_v4  ;;  %v87_v33 = vld [vmem:[%s149_s2] ss:$0 sm:$0xff] }
   0x7   :  { %24 = vadd.xlane.f32.xlu0 %v23_v5 }
  0x90   :  { %v22_v6 = vpop.xlane.xlu0 %21  ;;  %v29_v7 = vpop.xlane.xlu1 %28 }
  0x91   :  { %v31_v8 = vmul.f32 0.03125, %v22_v6  ;;  %v33_v9 = vmul.f32 0.03125, %v29_v7 }
  0x93   :  { %v34_v10 = vsub.f32 %v14_v0, %v31_v8  ;;  %v36_v11 = vsub.f32 %v16_v1, %v33_v9 }
  0x94   :  { %v25_v12 = vpop.xlane.xlu0 %24 }
  0x95   :  { %v32_v13 = vmul.f32 0.03125, %v25_v12  ;;  %v37_v14 = vmul.f32 %v34_v10, %v34_v10  ;;  %v39_v15 = vmul.f32 %v36_v11, %v36_v11 }
  0x97   :  { %v35_v16 = vsub.f32 %v15_v2, %v32_v13  ;;  %v40_v17 = vsel %vm19_vm0, %v37_v14, 0.0  ;;  %v46_v18 = vsel %vm26_vm1, %v39_v15, 0.0 }
  0x98   :  { %41 = vadd.xlane.f32.xlu1 %v40_v17 }
  0x99   :  { %v38_v19 = vmul.f32 %v35_v16, %v35_v16 }
  0x9b   :  { %v43_v20 = vsel %vm19_vm0, %v38_v19, 0.0 }
  0x9c   :  { %47 = vadd.xlane.f32.xlu1 %v46_v18  ;;  %44 = vadd.xlane.f32.xlu0 %v43_v20 }
 0x125   :  { %v42_v21 = vpop.xlane.xlu1 %41 }
 0x126   :  { %v49_v22 = vmul.f32 0.03125, %v42_v21 }
 0x128   :  { %v52_v23 = vadd.f32 1e-05, %v49_v22 }
 0x129   :  { %v48_v24 = vpop.xlane.xlu1 %47  ;;  %v45_v25 = vpop.xlane.xlu0 %44 }
 0x12a   :  { %88 = vrsqrt.f32 %v52_v23  ;;  %v51_v26 = vmul.f32 0.03125, %v48_v24  ;;  %v50_v27 = vmul.f32 0.03125, %v45_v25 }
 0x12c   :  { %v54_v28 = vadd.f32 1e-05, %v51_v26  ;;  %v53_v29 = vadd.f32 1e-05, %v50_v27 }
 0x12e   :  { %90 = vrsqrt.f32 %v54_v28 }
 0x12f   :  { %92 = vrsqrt.f32 %v53_v29 }
 0x134   :  { %v89_v30 = vpop.eup %88 }
 0x135   :  { %v58_v32 = vmul.f32 %v89_v30, %v34_v10 }
 0x137   :  { %v67_v34 = vmul.f32 %v86_v31, %v58_v32 }
 0x138   :  { %v91_v35 = vpop.eup %90 }
 0x139   :  { %v93_v36 = vpop.eup %92  ;;  %v76_v37 = vadd.f32 %v87_v33, %v67_v34  ;;  %v60_v38 = vmul.f32 %v91_v35, %v36_v11 }
 0x13a   :  { %v59_v39 = vmul.f32 %v93_v36, %v35_v16 }
 0x13b   :  { %79 = vst.msk [vmem:[%s150_s3] sm:$0xff] %vm19_vm0, %v76_v37  ;;  %v69_v40 = vmul.f32 %v86_v31, %v60_v38 }
 0x13c   :  { %v68_v41 = vmul.f32 %v86_v31, %v59_v39 }
 0x13d   :  { %v78_v42 = vadd.f32 %v87_v33, %v69_v40 }
 0x13e   :  { %v77_v43 = vadd.f32 %v87_v33, %v68_v41 }
 0x13f   :  { %81 = vst.msk [vmem:[%s150_s3 + $0x10] sm:$0xf] %vm26_vm1, %v78_v42 }
 0x140   :  { %80 = vst.msk [vmem:[%s150_s3 + $0x8] sm:$0xff] %vm19_vm0, %v77_v43 }

// kernel: fastspeech2_forward.10
= control target key start
LH: loop header
LB: loop body
LE: loop exit
PB: predicated region body
PF: predicated region fallthrough
CT: control target
= control target key end

     0   :  { %vm82_vm0 = vcmask 261120   ;;  %vm170_vm1 = vcmask 130048   ;;  %s2517_s26 = smov 112   ;;  %s2518_s27 = smov 96   ;;  %v257_v25 = vlaneseq  ;;  %vm268_vm3 = vcmask 74752   ;;  %s2983_s2 = inlined_call_operand.vmem [shape: f32[32,96], index: 2, kind: input, shape index: {}]   ;;  %s2984_s0 = inlined_call_operand.vmem [shape: f32[2,10,32], index: 0, kind: input, shape index: {}]   ;;  %s2985_s3 = inlined_call_operand.vmem [shape: f32[1,96], index: 3, kind: input, shape index: {}]   ;;  %s2986_s1 = inlined_call_operand.vmem [shape: f32[2,1,10], index: 1, kind: input, shape index: {}]   ;;  %s2987_s4 = inlined_call_operand.vmem [shape: f32[32,32], index: 4, kind: input, shape index: {}]   ;;  %s2988_s5 = inlined_call_operand.vmem [shape: f32[1,32], index: 5, kind: input, shape index: {}]   ;;  %s2989_s8 = inlined_call_operand.vmem [shape: f32[32,64], index: 8, kind: input, shape index: {}]   ;;  %s2990_s6 = inlined_call_operand.vmem [shape: f32[1,32], index: 6, kind: input, shape index: {}]   ;;  %s2991_s7 = inlined_call_operand.vmem [shape: f32[1,32], index: 7, kind: input, shape index: {}]   ;;  %s2992_s10 = inlined_call_operand.vmem [shape: f32[64,32], index: 10, kind: input, shape index: {}]   ;;  %s2993_s9 = inlined_call_operand.vmem [shape: f32[1,64], index: 9, kind: input, shape index: {}]   ;;  %s2994_s11 = inlined_call_operand.vmem [shape: f32[1,32], index: 11, kind: input, shape index: {}]   ;;  %s2995_s12 = inlined_call_operand.vmem [shape: f32[1,32], index: 12, kind: input, shape index: {}]   ;;  %s2996_s13 = inlined_call_operand.vmem [shape: f32[1,32], index: 13, kind: input, shape index: {}]   ;;  %s2997_s14 = inlined_call_operand.vmem [shape: f32[2,10,32], index: 14, kind: output, shape index: {}]  }
   0x1   :  { %v47_v0 = vld [vmem:[%s2983_s2] sm:$0xff]  ;;  %v48_v1 = vld [vmem:[%s2983_s2 + $0x8] sm:$0xff]  ;;  %v49_v2 = vld [vmem:[%s2983_s2 + $0x10] sm:$0xff]  ;;  %vm264_vm4 = vcmask 80896   ;;  %s2520_s30 = smov 64   ;;  %s2521_s15 = smov 48  }
   0x2   :  { %v2607_v3 = vpack.c.bf16 %v48_v1, %v47_v0  ;;  %v50_v4 = vld [vmem:[%s2983_s2 + $0x18] sm:$0xff]  ;;  %v2615_v5 = vld [vmem:[%s2984_s0] sm:$0xff]  ;;  %v2628_v7 = vld [vmem:[%s2984_s0 + $0x8] sm:$0x3]  ;;  %v2668_v28 = vshrl.u32 %v257_v25, 7  ;;  %vm299_vm5 = vcmask 1041408  }
   0x3   :  { %v2617_v6 = vpack.c.bf16 %v50_v4, %v49_v2  ;;  %2125 = vmatprep.mubr.msk.f32.mxu1 %vm82_vm0, %v2615_v5  ;;  %v2635_v8 = vld [vmem:[%s2985_s3] ss:$0 sm:$0xff]  ;;  %s2519_s3 = smov 80   ;;  %vm2650_vm2 = vmpackc.low %vm170_vm1, %vm170_vm1  ;;  %vm2522_vm6 = vmmov 1   ;;  %vm761_vm8 = vcmask 254976   ;;  %vm913_vm9 = vcmask 523264  }
   0x4   :  { %2284 = vmatprep.subr.bf16.mxu1 %v2607_v3  ;;  %v73_v26 = vld [vmem:[%s2986_s1] sm:$0x1]  ;;  %v259_v30 = vsub.s32 0, %v2668_v28  ;;  %vm2686_vm7 = vmpackc.low %vm299_vm5, %vm2522_vm6  ;;  %v1997_v17 = vld [vmem:[%s2986_s1 + $0x1] sm:$0x1] }
   0x5   :  { %2286 = vmatpush3.bf16.msra.mxu1 %v2607_v3  ;;  %v1962_v27 = vadd.f32 -1.0, %v73_v26 }
   0x6   :  { %2288 = vmatprep.subr.bf16.mxu1 %v2617_v6 }
   0x7   :  { %v75_v29 = vmul.f32 1e+09, %v1962_v27 }
   0x9   :  { %2290 = vmatpush3.bf16.msra.mxu1 %v2617_v6  ;;  %v260_v31 = vrot.slane %v75_v29, %v259_v30 }
   0xc   :  { %2126 = vmatmul.mubr.msk.f32.vlgmr.msra.gmra.mrb[0].mxu1 %vm82_vm0, %v2628_v7 }
  0xdf   :  { %v2127_v9 = vpop.f32.mrb[0].mxu1 }
  0xe0   :  { %v161_v10 = vadd.f32 %v2127_v9, %v2635_v8  ;;  %v155_v11 = vpop.f32.mrb[1].mxu1 }
  0xe1   :  { %v156_v12 = vadd.f32 %v2635_v8, %v155_v11 }
  0xe3   :  { %379 = vrot.lane.b32.xlu1 %v156_v12, %s2517_s26  ;;  %2132 = vmatprep.mubr.msk.f32.mxu1 %vm170_vm1, %v156_v12  ;;  %v2641_v13 = vpack.i.bf16 %v161_v10, %v156_v12 }
  0xe5   :  { %2422 = vrot.lane.b32.xlu0 %v2641_v13, %s2518_s27 }
  0xe7   :  { %381 = vrot.lane.b32.xlu1 %v161_v10, %s2517_s26 }
  0xe9   :  { %2427 = vrot.lane.b32.xlu0 %v2641_v13, %s2519_s3 }
 0x155   :  { %v380_v23 = vpop.permute.xlu1 %379 }
 0x157   :  { %v2423_v14 = vpop.permute.xlu0 %2422 }
 0x158   :  { %v2425_v15 = vunpack.i.h.bf16 %v2423_v14  ;;  %v2424_v16 = vunpack.i.l.bf16 %v2423_v14 }
 0x159   :  { %v382_v24 = vpop.permute.xlu1 %381 }
 0x15a   :  { %v2291_v18 = vpack.c.bf16 %v2425_v15, %v2424_v16 }
 0x15b   :  { %v2428_v19 = vpop.permute.xlu0 %2427 }
 0x15c   :  { %v2430_v20 = vunpack.i.h.bf16 %v2428_v19  ;;  %v2429_v21 = vunpack.i.l.bf16 %v2428_v19  ;;  %2293 = vmatprep.subr.msk.bf16.mxu1 %vm2650_vm2, %v2291_v18 }
 0x15d   :  { %2296 = vmatpush3.bf16.xpose.msk.msra.mxu1 %vm2650_vm2, %v2291_v18 }
 0x15e   :  { %v2303_v22 = vpack.c.bf16 %v2430_v20, %v2429_v21 }
 0x160   :  { %2305 = vmatprep.subr.msk.bf16.mxu1 %vm2650_vm2, %v2303_v22 }
 0x164   :  { %2133 = vmatmul.mubr.msk.f32.vlgmr.msra.gmra.mrb[2].mxu1 %vm170_vm1, %v161_v10 }
 0x165   :  { %2308 = vmatpush3.bf16.xpose.msk.msra.mxu1 %vm2650_vm2, %v2303_v22  ;;  %2146 = vmatprep.mubr.msk.f32.mxu1 %vm170_vm1, %v380_v23 }
 0x16c   :  { %2147 = vmatmul.mubr.msk.f32.vlgmr.msra.gmra.mrb[4].mxu1 %vm170_vm1, %v382_v24 }
 0x237   :  { %v2134_v32 = vpop.f32.mrb[2].mxu1 }
 0x238   :  { %v255_v33 = vmul.f32 0.25, %v2134_v32  ;;  %v245_v34 = vpop.f32.mrb[3].mxu1 }
 0x239   :  { %v254_v35 = vmul.f32 0.25, %v245_v34  ;;  %v585_v34 = vld [vmem:[%s2987_s4 + $0x18] sm:$0xff] }
 0x23a   :  { %v263_v36 = vadd.f32 %v260_v31, %v255_v33  ;;  %v584_v33 = vld [vmem:[%s2987_s4 + $0x10] sm:$0xff] }
 0x23b   :  { %v262_v37 = vadd.f32 %v260_v31, %v254_v35  ;;  %v2707_v35 = vpack.c.bf16 %v585_v34, %v584_v33  ;;  %v66_v33 = vld [vmem:[%s2992_s10 + $0x20] sm:$0xff]  ;;  %v67_v34 = vld [vmem:[%s2992_s10 + $0x28] sm:$0xff] }
 0x23c   :  { %v269_v38 = vsel %vm268_vm3, %v263_v36, -inf }
 0x23d   :  { %270 = vmax.xlane.f32.xlu1 %v269_v38  ;;  %v265_v39 = vsel %vm264_vm4, %v262_v37, -inf }
 0x23e   :  { %266 = vmax.xlane.f32.xlu0 %v265_v39 }
 0x23f   :  { %v2148_v40 = vpop.f32.mrb[4].mxu1 }
 0x240   :  { %v461_v41 = vpop.f32.mrb[5].mxu1  ;;  %v471_v42 = vmul.f32 0.25, %v2148_v40 }
 0x241   :  { %v470_v43 = vmul.f32 0.25, %v461_v41 }
 0x242   :  { %v473_v46 = vadd.f32 %v471_v42, %v260_v31 }
 0x243   :  { %v472_v44 = vadd.f32 %v470_v43, %v260_v31  ;;  %v2728_v43 = vld [vmem:[%s2988_s5] ss:$0 sm:$0xff] }
 0x244   :  { %v477_v47 = vsel %vm268_vm3, %v473_v46, -inf }
 0x245   :  { %v474_v45 = vsel %vm264_vm4, %v472_v44, -inf }
 0x246   :  { %475 = vmax.xlane.f32.xlu0 %v474_v45 }
 0x24a   :  { %478 = vmax.xlane.f32.xlu0 %v477_v47 }
 0x2ca   :  { %v271_v48 = vpop.xlane.xlu1 %270 }
 0x2cb   :  { %v273_v49 = vsub.f32 %v263_v36, %v271_v48  ;;  %v267_v50 = vpop.xlane.xlu0 %266  ;;  %v377_v36 = vld [vmem:[%s2987_s4] sm:$0xff] }
 0x2cc   :  { %v272_v51 = vsub.f32 %v262_v37, %v267_v50  ;;  %v378_v37 = vld [vmem:[%s2987_s4 + $0x8] sm:$0xff] }
 0x2cd   :  { %v276_v52 = vmul.f32 1.442695, %v273_v49  ;;  %v2717_v38 = vpack.c.bf16 %v378_v37, %v377_v36  ;;  %v2824_v36 = vpack.c.bf16 %v67_v34, %v66_v33  ;;  %v68_v37 = vld [vmem:[%s2992_s10 + $0x30] sm:$0xff] }
 0x2ce   :  { %v274_v53 = vmul.f32 1.442695, %v272_v51 }
 0x2cf   :  { %2461 = vpow2.f32 %v276_v52 }
 0x2d0   :  { %2463 = vpow2.f32 %v274_v53 }
 0x2d3   :  { %v476_v54 = vpop.xlane.xlu0 %475 }
 0x2d4   :  { %v480_v55 = vsub.f32 %v472_v44, %v476_v54 }
 0x2d6   :  { %v482_v56 = vmul.f32 1.442695, %v480_v55 }
 0x2d7   :  { %v479_v57 = vpop.xlane.xlu0 %478 }
 0x2d8   :  { %2465 = vpow2.f32 %v482_v56  ;;  %v481_v58 = vsub.f32 %v473_v46, %v479_v57 }
 0x2d9   :  { %v2462_v59 = vpop.eup %2461 }
 0x2da   :  { %v2464_v60 = vpop.eup %2463  ;;  %v484_v61 = vmul.f32 1.442695, %v481_v58  ;;  %v281_v62 = vsel %vm268_vm3, %v2462_v59, 0.0 }
 0x2db   :  { %282 = vadd.xlane.f32.xlu0 %v281_v62  ;;  %v278_v63 = vsel %vm264_vm4, %v2464_v60, 0.0 }
 0x2dc   :  { %2467 = vpow2.f32 %v484_v61  ;;  %279 = vadd.xlane.f32.xlu1 %v278_v63  ;;  %v58_v61 = vld [vmem:[%s2989_s8 + $0x8] sm:$0xff]  ;;  %v59_v63 = vld [vmem:[%s2989_s8 + $0x10] sm:$0xff] }
 0x2e2   :  { %v2466_v0 = vpop.eup %2465 }
 0x2e3   :  { %v486_v1 = vsel %vm264_vm4, %v2466_v0, 0.0 }
 0x2e4   :  { %487 = vadd.xlane.f32.xlu1 %v486_v1 }
 0x2e6   :  { %v2468_v2 = vpop.eup %2467 }
 0x2e7   :  { %v489_v4 = vsel %vm268_vm3, %v2468_v2, 0.0 }
 0x2e8   :  { %490 = vadd.xlane.f32.xlu0 %v489_v4 }
 0x2f5   :  { %2432 = vrot.lane.b32.xlu1 %v2641_v13, %s2520_s30 }
 0x2fe   :  { %2437 = vrot.lane.b32.xlu0 %v2641_v13, %s2521_s15 }
 0x368   :  { %v283_v10 = vpop.xlane.xlu0 %282 }
 0x369   :  { %v280_v9 = vpop.xlane.xlu1 %279 }
 0x36a   :  { %2469 = vrcp.f32 %v280_v9 }
 0x36b   :  { %2471 = vrcp.f32 %v283_v10 }
 0x371   :  { %v488_v11 = vpop.xlane.xlu1 %487 }
 0x372   :  { %2473 = vrcp.f32 %v488_v11 }
 0x374   :  { %v2470_v12 = vpop.eup %2469 }
 0x375   :  { %v2433_v14 = vpop.permute.xlu1 %2432  ;;  %v491_v15 = vpop.xlane.xlu0 %490  ;;  %v285_v16 = vmul.f32 %v2470_v12, %v2464_v60 }
 0x376   :  { %v2435_v18 = vunpack.i.h.bf16 %v2433_v14  ;;  %v2434_v19 = vunpack.i.l.bf16 %v2433_v14  ;;  %2475 = vrcp.f32 %v491_v15  ;;  %v2472_v21 = vpop.eup %2471  ;;  %v2762_v15 = vld [vmem:[%s2990_s6] ss:$0 sm:$0xff] }
 0x377   :  { %2139 = vmatprep.mubr.msk.f32.mxu0 %vm264_vm4, %v285_v16  ;;  %v287_v27 = vmul.f32 %v2472_v21, %v2462_v59 }
 0x378   :  { %v2297_v13 = vpack.c.bf16 %v2435_v18, %v2434_v19 }
 0x379   :  { %v2438_v22 = vpop.permute.xlu0 %2437 }
 0x37a   :  { %v2440_v23 = vunpack.i.h.bf16 %v2438_v22  ;;  %v2439_v24 = vunpack.i.l.bf16 %v2438_v22  ;;  %2299 = vmatprep.subr.msk.bf16.mxu0 %vm2686_vm7, %v2297_v13 }
 0x37b   :  { %2302 = vmatpush3.bf16.msk.msra.mxu0 %vm2686_vm7, %v2297_v13  ;;  %v2767_v13 = vld [vmem:[%s2991_s7] ss:$0 sm:$0xff] }
 0x37c   :  { %v2474_v25 = vpop.eup %2473  ;;  %v2309_v26 = vpack.c.bf16 %v2440_v23, %v2439_v24 }
 0x37d   :  { %v493_v29 = vmul.f32 %v2474_v25, %v2466_v0  ;;  %v60_v0 = vld [vmem:[%s2989_s8 + $0x18] sm:$0xff]  ;;  %v2780_v25 = vld [vmem:[%s2984_s0 + $0x10] sm:$0xff] }
 0x37e   :  { %2140 = vmatmul.mubr.msk.f32.vlgmr.msra.gmra.mrb[0].mxu0 %vm264_vm4, %v287_v27  ;;  %2311 = vmatprep.subr.msk.bf16.mxu0 %vm2686_vm7, %v2309_v26  ;;  %v2754_v1 = vpack.c.bf16 %v60_v0, %v59_v63  ;;  %v62_v27 = vld [vmem:[%s2992_s10] sm:$0xff] }
 0x37f   :  { %2314 = vmatpush3.bf16.msk.msra.mxu0 %vm2686_vm7, %v2309_v26  ;;  %2153 = vmatprep.mubr.msk.f32.mxu0 %vm264_vm4, %v493_v29  ;;  %v2794_v26 = vld [vmem:[%s2984_s0 + $0x18] sm:$0x3] }
 0x380   :  { %v2476_v31 = vpop.eup %2475  ;;  %2316 = vmatprep.subr.bf16.mxu0 %v2707_v35 }
 0x381   :  { %v495_v32 = vmul.f32 %v2476_v31, %v2468_v2  ;;  %v65_v31 = vld [vmem:[%s2992_s10 + $0x18] sm:$0xff] }
 0x383   :  { %2154 = vmatmul.mubr.msk.f32.vlgmr.msra.gmra.mrb[2].mxu0 %vm264_vm4, %v495_v32 }
 0x384   :  { %2318 = vmatpush3.bf16.msra.mxu0 %v2707_v35 }
 0x385   :  { %2320 = vmatprep.subr.bf16.mxu0 %v2717_v38 }
 0x451   :  { %v2141_v39 = vpop.f32.mrb[0].mxu0 }
 0x452   :  { %v368_v40 = vpop.f32.mrb[1].mxu0 }
 0x456   :  { %v2155_v41 = vpop.f32.mrb[2].mxu0 }
 0x457   :  { %v575_v42 = vpop.f32.mrb[3].mxu0 }
 0x458   :  { %2160 = vmatprep.mubr.msk.f32.mxu0 %vm170_vm1, %v575_v42 }
 0x459   :  { %2161 = vmatmul.mubr.msk.f32.vlgmr.msra.gmra.mrb[4].mxu0 %vm170_vm1, %v2155_v41  ;;  %v2841_v41 = vld [vmem:[%s2993_s9] ss:$0 sm:$0xff] }
 0x45a   :  { %2322 = vmatpush3.bf16.msra.mxu0 %v2717_v38  ;;  %2167 = vmatprep.mubr.msk.f32.mxu0 %vm170_vm1, %v368_v40 }
 0x461   :  { %2168 = vmatmul.mubr.msk.f32.vlgmr.msra.gmra.mrb[4].mxu0 %vm170_vm1, %v2141_v39  ;;  %v69_v39 = vld [vmem:[%s2992_s10 + $0x38] sm:$0xff] }
 0x462   :  { %v2834_v40 = vpack.c.bf16 %v69_v39, %v68_v37 }
 0x534   :  { %v2169_v44 = vpop.f32.mrb[4].mxu0 }
 0x535   :  { %v755_v45 = vadd.f32 %v2169_v44, %v2728_v43  ;;  %v739_v46 = vpop.f32.mrb[5].mxu0 }
 0x536   :  { %v754_v47 = vadd.f32 %v2728_v43, %v739_v46 }
 0x537   :  { %v757_v48 = vadd.f32 %v755_v45, %v2628_v7 }
 0x538   :  { %v756_v49 = vadd.f32 %v754_v47, %v2615_v5  ;;  %v57_v5 = vld [vmem:[%s2989_s8] sm:$0xff] }
 0x539   :  { %v762_v50 = vsel %vm761_vm8, %v757_v48, 0.0  ;;  %v2744_v62 = vpack.c.bf16 %v58_v61, %v57_v5 }
 0x53a   :  { %763 = vadd.xlane.f32.xlu0 %v762_v50  ;;  %v758_v51 = vsel %vm82_vm0, %v756_v49, 0.0 }
 0x53b   :  { %759 = vadd.xlane.f32.xlu1 %v758_v51  ;;  %2324 = vmatprep.subr.bf16.mxu1 %v2744_v62 }
 0x53c   :  { %2326 = vmatpush3.bf16.msra.mxu1 %v2744_v62 }
 0x53d   :  { %2328 = vmatprep.subr.bf16.mxu1 %v2754_v1 }
 0x540   :  { %2330 = vmatpush3.bf16.msra.mxu1 %v2754_v1 }
 0x541   :  { %2348 = vmatprep.subr.bf16.mxu1 %v2607_v3 }
 0x5c7   :  { %v764_v52 = vpop.xlane.xlu0 %763 }
 0x5c8   :  { %v767_v53 = vmul.f32 0.03125, %v764_v52  ;;  %v760_v54 = vpop.xlane.xlu1 %759 }
 0x5c9   :  { %v766_v55 = vmul.f32 0.03125, %v760_v54 }
 0x5ca   :  { %v769_v56 = vsub.f32 %v757_v48, %v767_v53 }
 0x5cb   :  { %v768_v57 = vsub.f32 %v756_v49, %v766_v55 }
 0x5cc   :  { %v771_v58 = vmul.f32 %v769_v56, %v769_v56 }
 0x5cd   :  { %v770_v59 = vmul.f32 %v768_v57, %v768_v57 }
 0x5ce   :  { %v775_v60 = vsel %vm761_vm8, %v771_v58, 0.0 }
 0x5cf   :  { %776 = vadd.xlane.f32.xlu0 %v775_v60  ;;  %v772_v7 = vsel %vm82_vm0, %v770_v59, 0.0 }
 0x5d0   :  { %773 = vadd.xlane.f32.xlu1 %v772_v7 }
 0x65c   :  { %v777_v2 = vpop.xlane.xlu0 %776 }
 0x65d   :  { %v779_v4 = vmul.f32 0.03125, %v777_v2  ;;  %v774_v9 = vpop.xlane.xlu1 %773 }
 0x65e   :  { %v778_v10 = vmul.f32 0.03125, %v774_v9 }
 0x65f   :  { %v781_v11 = vadd.f32 1e-05, %v779_v4 }
 0x660   :  { %v780_v12 = vadd.f32 1e-05, %v778_v10 }
 0x661   :  { %2477 = vrsqrt.f32 %v781_v11 }
 0x662   :  { %2479 = vrsqrt.f32 %v780_v12 }
 0x66b   :  { %v2478_v14 = vpop.eup %2477 }
 0x66c   :  { %v2480_v16 = vpop.eup %2479  ;;  %v785_v18 = vmul.f32 %v2478_v14, %v769_v56 }
 0x66d   :  { %v784_v19 = vmul.f32 %v2480_v16, %v768_v57 }
 0x66e   :  { %v793_v21 = vmul.f32 %v2762_v15, %v785_v18 }
 0x66f   :  { %v792_v22 = vmul.f32 %v2762_v15, %v784_v19 }
 0x670   :  { %v2775_v24 = vadd.f32 %v2767_v13, %v793_v21 }
 0x671   :  { %v2772_v23 = vadd.f32 %v2767_v13, %v792_v22 }
 0x673   :  { %2178 = vmatprep.mubr.msk.f32.mxu1 %vm82_vm0, %v2772_v23 }
 0x674   :  { %2179 = vmatmul.mubr.msk.f32.vlgmr.msra.gmra.mrb[6].mxu1 %vm82_vm0, %v2775_v24 }
 0x675   :  { %2350 = vmatpush3.bf16.msra.mxu1 %v2607_v3  ;;  %2208 = vmatprep.mubr.msk.f32.mxu1 %vm82_vm0, %v2780_v25  ;;  %v63_v3 = vld [vmem:[%s2992_s10 + $0x8] sm:$0xff] }
 0x676   :  { %2352 = vmatprep.subr.bf16.mxu1 %v2617_v6  ;;  %v2804_v29 = vpack.c.bf16 %v63_v3, %v62_v27 }
 0x678   :  { %2332 = vmatprep.subr.bf16.mxu0 %v2804_v29 }
 0x679   :  { %2354 = vmatpush3.bf16.msra.mxu1 %v2617_v6  ;;  %2334 = vmatpush3.bf16.msra.mxu0 %v2804_v29  ;;  %v64_v6 = vld [vmem:[%s2992_s10 + $0x10] sm:$0xff] }
 0x67a   :  { %v2814_v32 = vpack.c.bf16 %v65_v31, %v64_v6  ;;  %v1998_v31 = vadd.f32 -1.0, %v1997_v17 }
 0x67c   :  { %2209 = vmatmul.mubr.msk.f32.vlgmr.msra.gmra.mrb[8].mxu1 %vm82_vm0, %v2794_v26  ;;  %2336 = vmatprep.subr.bf16.mxu0 %v2814_v32  ;;  %v1047_v33 = vmul.f32 1e+09, %v1998_v31 }
 0x67d   :  { %2338 = vmatpush3.bf16.msra.mxu0 %v2814_v32 }
 0x67e   :  { %2340 = vmatprep.subr.bf16.mxu0 %v2824_v36  ;;  %v1224_v34 = vrot.slane %v1047_v33, %v259_v30 }
 0x681   :  { %2342 = vmatpush3.bf16.msra.mxu0 %v2824_v36 }
 0x682   :  { %2344 = vmatprep.subr.bf16.mxu0 %v2834_v40 }
 0x685   :  { %2346 = vmatpush3.bf16.msra.mxu0 %v2834_v40 }
 0x747   :  { %v2180_v42 = vpop.f32.mrb[6].mxu1 }
 0x748   :  { %v886_v44 = vadd.f32 %v2180_v42, %v2841_v41  ;;  %v880_v45 = vpop.f32.mrb[7].mxu1 }
 0x749   :  { %v881_v46 = vadd.f32 %v2841_v41, %v880_v45 }
 0x74a   :  { %v890_v47 = vmul.f32 %v886_v44, %v886_v44 }
 0x74b   :  { %v889_v48 = vmul.f32 %v881_v46, %v881_v46 }
 0x74c   :  { %v892_v49 = vmul.f32 %v890_v47, %v886_v44 }
 0x74d   :  { %v891_v50 = vmul.f32 %v889_v48, %v881_v46 }
 0x74e   :  { %v894_v51 = vmul.f32 0.044715, %v892_v49 }
 0x74f   :  { %v893_v52 = vmul.f32 0.044715, %v891_v50  ;;  %v2210_v53 = vpop.f32.mrb[8].mxu1 }
 0x750   :  { %v896_v54 = vadd.f32 %v894_v51, %v886_v44  ;;  %v1126_v55 = vadd.f32 %v2210_v53, %v2635_v8  ;;  %v1120_v56 = vpop.f32.mrb[9].mxu1 }
 0x751   :  { %v895_v57 = vadd.f32 %v893_v52, %v881_v46  ;;  %v1121_v58 = vadd.f32 %v2635_v8, %v1120_v56 }
 0x752   :  { %v898_v59 = vmul.f32 0.7978846, %v896_v54 }
 0x753   :  { %v897_v60 = vmul.f32 0.7978846, %v895_v57  ;;  %2215 = vmatprep.mubr.msk.f32.mxu1 %vm170_vm1, %v1121_v58  ;;  %v2848_v7 = vpack.i.bf16 %v1126_v55, %v1121_v58 }
 0x754   :  { %2481 = vtanh.f32 %v898_v59 }
 0x755   :  { %2483 = vtanh.f32 %v897_v60  ;;  %2447 = vrot.lane.b32.xlu0 %v2848_v7, %s2519_s3  ;;  %2442 = vrot.lane.b32.xlu1 %v2848_v7, %s2518_s27 }
 0x759   :  { %1340 = vrot.lane.b32.xlu1 %v1121_v58, %s2517_s26 }
 0x75d   :  { %1342 = vrot.lane.b32.xlu1 %v1126_v55, %s2517_s26 }
 0x75e   :  { %v2482_v5 = vpop.eup %2481 }
 0x75f   :  { %v2484_v8 = vpop.eup %2483  ;;  %v902_v61 = vadd.f32 1.0, %v2482_v5 }
 0x760   :  { %v901_v63 = vadd.f32 1.0, %v2484_v8 }
 0x761   :  { %v904_v0 = vmul.f32 0.5, %v902_v61 }
 0x762   :  { %v903_v2 = vmul.f32 0.5, %v901_v63 }
 0x763   :  { %v906_v9 = vmul.f32 %v904_v0, %v886_v44 }
 0x764   :  { %v905_v4 = vmul.f32 %v903_v2, %v881_v46 }
 0x766   :  { %2197 = vmatprep.mubr.msk.f32.mxu0 %vm913_vm9, %v905_v4 }
 0x767   :  { %2198 = vmatmul.mubr.msk.f32.vlgmr.msra.gmra.mrb[6].mxu0 %vm913_vm9, %v906_v9 }
 0x7c7   :  { %v2448_v10 = vpop.permute.xlu0 %2447  ;;  %v2443_v11 = vpop.permute.xlu1 %2442 }
 0x7c8   :  { %v2450_v12 = vunpack.i.h.bf16 %v2448_v10  ;;  %v2449_v14 = vunpack.i.l.bf16 %v2448_v10  ;;  %v2445_v16 = vunpack.i.h.bf16 %v2443_v11  ;;  %v2444_v18 = vunpack.i.l.bf16 %v2443_v11 }
 0x7ca   :  { %v2355_v19 = vpack.c.bf16 %v2445_v16, %v2444_v18  ;;  %v2367_v21 = vpack.c.bf16 %v2450_v12, %v2449_v14 }
 0x7cb   :  { %v1341_v22 = vpop.permute.xlu1 %1340 }
 0x7cc   :  { %2357 = vmatprep.subr.msk.bf16.mxu1 %vm2650_vm2, %v2355_v19 }
 0x7cd   :  { %2360 = vmatpush3.bf16.xpose.msk.msra.mxu1 %vm2650_vm2, %v2355_v19 }
 0x7ce   :  { %2369 = vmatprep.subr.msk.bf16.mxu1 %vm2650_vm2, %v2367_v21 }
 0x7cf   :  { %v1343_v27 = vpop.permute.xlu1 %1342 }
 0x7d4   :  { %2216 = vmatmul.mubr.msk.f32.vlgmr.msra.gmra.mrb[10].mxu1 %vm170_vm1, %v1126_v55 }
 0x7d5   :  { %2372 = vmatpush3.bf16.xpose.msk.msra.mxu1 %vm2650_vm2, %v2367_v21  ;;  %2229 = vmatprep.mubr.msk.f32.mxu1 %vm170_vm1, %v1341_v22 }
 0x7d6   :  { %2388 = vmatprep.subr.bf16.mxu1 %v2744_v62 }
 0x7dc   :  { %2230 = vmatmul.mubr.msk.f32.vlgmr.msra.gmra.mrb[12].mxu1 %vm170_vm1, %v1343_v27 }
 0x7dd   :  { %2390 = vmatpush3.bf16.msra.mxu1 %v2744_v62 }
 0x7de   :  { %2392 = vmatprep.subr.bf16.mxu1 %v2754_v1 }
 0x7e1   :  { %2394 = vmatpush3.bf16.msra.mxu1 %v2754_v1 }
 0x83a   :  { %v2873_v3 = vpop.f32.mrb[6].mxu0 }
 0x83b   :  { %v2875_v6 = vpop.f32.mrb[7].mxu0 }
 0x8a7   :  { %v2217_v37 = vpop.f32.mrb[10].mxu1 }
 0x8a8   :  { %v1219_v39 = vmul.f32 0.25, %v2217_v37  ;;  %v1209_v62 = vpop.f32.mrb[11].mxu1 }
 0x8a9   :  { %v1218_v42 = vmul.f32 0.25, %v1209_v62 }
 0x8aa   :  { %v1227_v44 = vadd.f32 %v1224_v34, %v1219_v39 }
 0x8ab   :  { %v1226_v45 = vadd.f32 %v1224_v34, %v1218_v42 }
 0x8ac   :  { %v1231_v1 = vsel %vm268_vm3, %v1227_v44, -inf }
 0x8ad   :  { %1232 = vmax.xlane.f32.xlu1 %v1231_v1  ;;  %v1228_v46 = vsel %vm264_vm4, %v1226_v45, -inf }
 0x8ae   :  { %1229 = vmax.xlane.f32.xlu0 %v1228_v46 }
 0x8af   :  { %v2231_v47 = vpop.f32.mrb[12].mxu1 }
 0x8b0   :  { %v1422_v48 = vpop.f32.mrb[13].mxu1  ;;  %v1432_v49 = vmul.f32 0.25, %v2231_v47 }
 0x8b1   :  { %v1431_v50 = vmul.f32 0.25, %v1422_v48 }
 0x8b2   :  { %v1434_v30 = vadd.f32 %v1432_v49, %v1224_v34 }
 0x8b3   :  { %v1433_v51 = vadd.f32 %v1431_v50, %v1224_v34 }
 0x8b4   :  { %v1438_v52 = vsel %vm268_vm3, %v1434_v30, -inf }
 0x8b5   :  { %v1435_v28 = vsel %vm264_vm4, %v1433_v51, -inf }
 0x8b6   :  { %1436 = vmax.xlane.f32.xlu0 %v1435_v28 }
 0x8ba   :  { %1439 = vmax.xlane.f32.xlu0 %v1438_v52 }
 0x93a   :  { %v1233_v53 = vpop.xlane.xlu1 %1232 }
 0x93b   :  { %v1235_v54 = vsub.f32 %v1227_v44, %v1233_v53  ;;  %v1230_v55 = vpop.xlane.xlu0 %1229 }
 0x93c   :  { %v1234_v56 = vsub.f32 %v1226_v45, %v1230_v55 }
 0x93d   :  { %v1238_v57 = vmul.f32 1.442695, %v1235_v54 }
 0x93e   :  { %v1236_v58 = vmul.f32 1.442695, %v1234_v56 }
 0x93f   :  { %2485 = vpow2.f32 %v1238_v57 }
 0x940   :  { %2487 = vpow2.f32 %v1236_v58 }
 0x943   :  { %v1437_v59 = vpop.xlane.xlu0 %1436 }
 0x944   :  { %v1441_v60 = vsub.f32 %v1433_v51, %v1437_v59 }
 0x946   :  { %v1443_v5 = vmul.f32 1.442695, %v1441_v60 }
 0x947   :  { %v1440_v8 = vpop.xlane.xlu0 %1439 }
 0x948   :  { %2489 = vpow2.f32 %v1443_v5  ;;  %v1442_v61 = vsub.f32 %v1434_v30, %v1440_v8 }
 0x949   :  { %v2486_v63 = vpop.eup %2485 }
 0x94a   :  { %v2488_v0 = vpop.eup %2487  ;;  %v1445_v2 = vmul.f32 1.442695, %v1442_v61  ;;  %v1243_v4 = vsel %vm268_vm3, %v2486_v63, 0.0 }
 0x94b   :  { %1244 = vadd.xlane.f32.xlu0 %v1243_v4  ;;  %v1240_v9 = vsel %vm264_vm4, %v2488_v0, 0.0 }
 0x94c   :  { %2491 = vpow2.f32 %v1445_v2  ;;  %1241 = vadd.xlane.f32.xlu1 %v1240_v9 }
 0x952   :  { %v2490_v10 = vpop.eup %2489 }
 0x953   :  { %v1447_v11 = vsel %vm264_vm4, %v2490_v10, 0.0 }
 0x954   :  { %1448 = vadd.xlane.f32.xlu1 %v1447_v11 }
 0x956   :  { %v2492_v12 = vpop.eup %2491 }
 0x957   :  { %v1450_v14 = vsel %vm268_vm3, %v2492_v12, 0.0 }
 0x958   :  { %1451 = vadd.xlane.f32.xlu0 %v1450_v14 }
 0x965   :  { %2452 = vrot.lane.b32.xlu1 %v2848_v7, %s2520_s30 }
 0x96e   :  { %2457 = vrot.lane.b32.xlu0 %v2848_v7, %s2521_s15 }
 0x9d8   :  { %v1245_v18 = vpop.xlane.xlu0 %1244 }
 0x9d9   :  { %v1242_v16 = vpop.xlane.xlu1 %1241 }
 0x9da   :  { %2493 = vrcp.f32 %v1242_v16 }
 0x9db   :  { %2495 = vrcp.f32 %v1245_v18 }
 0x9e1   :  { %v1449_v19 = vpop.xlane.xlu1 %1448 }
 0x9e2   :  { %2497 = vrcp.f32 %v1449_v19 }
 0x9e4   :  { %v2494_v21 = vpop.eup %2493 }
 0x9e5   :  { %v2453_v22 = vpop.permute.xlu1 %2452  ;;  %v1452_v27 = vpop.xlane.xlu0 %1451  ;;  %v1247_v17 = vmul.f32 %v2494_v21, %v2488_v0 }
 0x9e6   :  { %v2455_v31 = vunpack.i.h.bf16 %v2453_v22  ;;  %v2454_v33 = vunpack.i.l.bf16 %v2453_v22  ;;  %2499 = vrcp.f32 %v1452_v27  ;;  %v2496_v37 = vpop.eup %2495 }
 0x9e7   :  { %2222 = vmatprep.mubr.msk.f32.mxu0 %vm264_vm4, %v1247_v17  ;;  %v1249_v44 = vmul.f32 %v2496_v37, %v2486_v63 }
 0x9e8   :  { %v2361_v34 = vpack.c.bf16 %v2455_v31, %v2454_v33 }
 0x9e9   :  { %v2458_v39 = vpop.permute.xlu0 %2457 }
 0x9ea   :  { %v2460_v62 = vunpack.i.h.bf16 %v2458_v39  ;;  %v2459_v7 = vunpack.i.l.bf16 %v2458_v39  ;;  %2363 = vmatprep.subr.msk.bf16.mxu0 %vm2686_vm7, %v2361_v34 }
 0x9eb   :  { %2366 = vmatpush3.bf16.msk.msra.mxu0 %vm2686_vm7, %v2361_v34 }
 0x9ec   :  { %v2498_v42 = vpop.eup %2497  ;;  %v2373_v45 = vpack.c.bf16 %v2460_v62, %v2459_v7 }
 0x9ed   :  { %v1454_v1 = vmul.f32 %v2498_v42, %v2490_v10 }
 0x9ee   :  { %2223 = vmatmul.mubr.msk.f32.vlgmr.msra.gmra.mrb[8].mxu0 %vm264_vm4, %v1249_v44  ;;  %2375 = vmatprep.subr.msk.bf16.mxu0 %vm2686_vm7, %v2373_v45 }
 0x9ef   :  { %2378 = vmatpush3.bf16.msk.msra.mxu0 %vm2686_vm7, %v2373_v45  ;;  %2236 = vmatprep.mubr.msk.f32.mxu0 %vm264_vm4, %v1454_v1 }
 0x9f0   :  { %v2500_v46 = vpop.eup %2499  ;;  %2380 = vmatprep.subr.bf16.mxu0 %v2707_v35 }
 0x9f1   :  { %v1456_v47 = vmul.f32 %v2500_v46, %v2492_v12 }
 0x9f3   :  { %2237 = vmatmul.mubr.msk.f32.vlgmr.msra.gmra.mrb[10].mxu0 %vm264_vm4, %v1456_v47 }
 0x9f4   :  { %2382 = vmatpush3.bf16.msra.mxu0 %v2707_v35 }
 0x9f5   :  { %2384 = vmatprep.subr.bf16.mxu0 %v2717_v38 }
 0xac1   :  { %v2224_v48 = vpop.f32.mrb[8].mxu0 }
 0xac2   :  { %v1329_v49 = vpop.f32.mrb[9].mxu0 }
 0xac6   :  { %v2238_v50 = vpop.f32.mrb[10].mxu0 }
 0xac7   :  { %v1536_v51 = vpop.f32.mrb[11].mxu0 }
 0xac8   :  { %2243 = vmatprep.mubr.msk.f32.mxu0 %vm170_vm1, %v1536_v51 }
 0xac9   :  { %2244 = vmatmul.mubr.msk.f32.vlgmr.msra.gmra.mrb[12].mxu0 %vm170_vm1, %v2238_v50 }
 0xaca   :  { %2386 = vmatpush3.bf16.msra.mxu0 %v2717_v38  ;;  %2250 = vmatprep.mubr.msk.f32.mxu0 %vm170_vm1, %v1329_v49 }
 0xacb   :  { %2396 = vmatprep.subr.bf16.mxu0 %v2804_v29 }
 0xad1   :  { %2251 = vmatmul.mubr.msk.f32.vlgmr.msra.gmra.mrb[12].mxu0 %vm170_vm1, %v2224_v48 }
 0xad2   :  { %2398 = vmatpush3.bf16.msra.mxu0 %v2804_v29 }
 0xad3   :  { %2400 = vmatprep.subr.bf16.mxu0 %v2814_v32 }
 0xad6   :  { %2402 = vmatpush3.bf16.msra.mxu0 %v2814_v32 }
 0xad7   :  { %2404 = vmatprep.subr.bf16.mxu0 %v2824_v36 }
 0xada   :  { %2406 = vmatpush3.bf16.msra.mxu0 %v2824_v36  ;;  %v2931_v36 = vld [vmem:[%s2994_s11] ss:$0 sm:$0xff] }
 0xadb   :  { %2408 = vmatprep.subr.bf16.mxu0 %v2834_v40 }
 0xade   :  { %2410 = vmatpush3.bf16.msra.mxu0 %v2834_v40 }
 0xba4   :  { %v2252_v20 = vpop.f32.mrb[12].mxu0 }
 0xba5   :  { %v1710_v35 = vadd.f32 %v2252_v20, %v2728_v43  ;;  %v1700_v38 = vpop.f32.mrb[13].mxu0 }
 0xba6   :  { %v1709_v28 = vadd.f32 %v2728_v43, %v1700_v38  ;;  %v992_v43 = vadd.f32 %v2873_v3, %v2931_v36 }
 0xba7   :  { %v1712_v29 = vadd.f32 %v2794_v26, %v1710_v35 }
 0xba8   :  { %v1711_v30 = vadd.f32 %v2780_v25, %v1709_v28  ;;  %v987_v25 = vadd.f32 %v2931_v36, %v2875_v6  ;;  %v996_v60 = vadd.f32 %v992_v43, %v2775_v24 }
 0xba9   :  { %v1716_v32 = vsel %vm761_vm8, %v1712_v29, 0.0 }
 0xbaa   :  { %1717 = vadd.xlane.f32.xlu0 %v1716_v32  ;;  %v1713_v52 = vsel %vm82_vm0, %v1711_v30, 0.0  ;;  %v995_v8 = vadd.f32 %v987_v25, %v2772_v23  ;;  %v1000_v61 = vsel %vm761_vm8, %v996_v60, 0.0 }
 0xbab   :  { %1714 = vadd.xlane.f32.xlu1 %v1713_v52 }
 0xbac   :  { %v997_v3 = vsel %vm82_vm0, %v995_v8, 0.0 }
 0xc37   :  { %v1718_v40 = vpop.xlane.xlu0 %1717 }
 0xc38   :  { %v1720_v53 = vmul.f32 0.03125, %v1718_v40  ;;  %v1715_v54 = vpop.xlane.xlu1 %1714 }
 0xc39   :  { %v1719_v55 = vmul.f32 0.03125, %v1715_v54 }
 0xc3a   :  { %v1722_v26 = vsub.f32 %v1712_v29, %v1720_v53 }
 0xc3b   :  { %v1721_v56 = vsub.f32 %v1711_v30, %v1719_v55 }
 0xc3c   :  { %v1724_v57 = vmul.f32 %v1722_v26, %v1722_v26 }
 0xc3d   :  { %v1723_v58 = vmul.f32 %v1721_v56, %v1721_v56 }
 0xc3e   :  { %v1728_v59 = vsel %vm761_vm8, %v1724_v57, 0.0 }
 0xc3f   :  { %1729 = vadd.xlane.f32.xlu0 %v1728_v59  ;;  %v1725_v5 = vsel %vm82_vm0, %v1723_v58, 0.0 }
 0xc40   :  { %1726 = vadd.xlane.f32.xlu1 %v1725_v5 }
 0xc43   :  { %1001 = vadd.xlane.f32.xlu0 %v1000_v61 }
 0xc44   :  { %998 = vadd.xlane.f32.xlu1 %v997_v3 }
 0xccc   :  { %v1730_v6 = vpop.xlane.xlu0 %1729 }
 0xccd   :  { %v1732_v63 = vmul.f32 0.03125, %v1730_v6  ;;  %v1727_v0 = vpop.xlane.xlu1 %1726 }
 0xcce   :  { %v1731_v2 = vmul.f32 0.03125, %v1727_v0 }
 0xccf   :  { %v1734_v4 = vadd.f32 1e-05, %v1732_v63 }
 0xcd0   :  { %v1733_v9 = vadd.f32 1e-05, %v1731_v2  ;;  %v1002_v49 = vpop.xlane.xlu0 %1001 }
 0xcd1   :  { %2501 = vrsqrt.f32 %v1734_v4  ;;  %v999_v50 = vpop.xlane.xlu1 %998  ;;  %v1004_v51 = vmul.f32 0.03125, %v1002_v49 }
 0xcd2   :  { %2503 = vrsqrt.f32 %v1733_v9  ;;  %v1003_v20 = vmul.f32 0.03125, %v999_v50 }
 0xcd3   :  { %v1006_v38 = vsub.f32 %v996_v60, %v1004_v51 }
 0xcd4   :  { %v1005_v30 = vsub.f32 %v995_v8, %v1003_v20 }
 0xcd5   :  { %v1008_v54 = vmul.f32 %v1006_v38, %v1006_v38 }
 0xcd6   :  { %v1007_v43 = vmul.f32 %v1005_v30, %v1005_v30 }
 0xcd8   :  { %v1009_v25 = vsel %vm82_vm0, %v1007_v43, 0.0 }
 0xcdb   :  { %v2502_v24 = vpop.eup %2501 }
 0xcdc   :  { %v2504_v10 = vpop.eup %2503  ;;  %v1738_v11 = vmul.f32 %v2502_v24, %v1722_v26  ;;  %v1012_v26 = vsel %vm761_vm8, %v1008_v54, 0.0 }
 0xcdd   :  { %v1737_v12 = vmul.f32 %v2504_v10, %v1721_v56  ;;  %v1993_v10 = vld [vmem:[%s2995_s12] ss:$0 sm:$0xff] }
 0xcde   :  { %v1740_v23 = vmul.f32 %v2762_v15, %v1738_v11 }
 0xcdf   :  { %v1739_v14 = vmul.f32 %v2762_v15, %v1737_v12 }
 0xce0   :  { %v1742_v18 = vadd.f32 %v2767_v13, %v1740_v23  ;;  %v1994_v23 = vld [vmem:[%s2996_s13] ss:$0 sm:$0xff] }
 0xce1   :  { %v1741_v16 = vadd.f32 %v2767_v13, %v1739_v14 }
 0xce3   :  { %2261 = vmatprep.mubr.msk.f32.mxu1 %vm82_vm0, %v1741_v16 }
 0xce4   :  { %2262 = vmatmul.mubr.msk.f32.vlgmr.msra.gmra.mrb[14].mxu1 %vm82_vm0, %v1742_v18 }
 0xdb7   :  { %v2263_v19 = vpop.f32.mrb[14].mxu1 }
 0xdb8   :  { %v1821_v21 = vadd.f32 %v2263_v19, %v2841_v41  ;;  %v1815_v22 = vpop.f32.mrb[15].mxu1 }
 0xdb9   :  { %v1816_v27 = vadd.f32 %v2841_v41, %v1815_v22 }
 0xdba   :  { %v1825_v17 = vmul.f32 %v1821_v21, %v1821_v21 }
 0xdbb   :  { %v1824_v31 = vmul.f32 %v1816_v27, %v1816_v27 }
 0xdbc   :  { %v1827_v33 = vmul.f32 %v1825_v17, %v1821_v21 }
 0xdbd   :  { %v1826_v34 = vmul.f32 %v1824_v31, %v1816_v27 }
 0xdbe   :  { %v1829_v37 = vmul.f32 0.044715, %v1827_v33 }
 0xdbf   :  { %v1828_v15 = vmul.f32 0.044715, %v1826_v34 }
 0xdc0   :  { %v1831_v39 = vadd.f32 %v1829_v37, %v1821_v21 }
 0xdc1   :  { %v1830_v62 = vadd.f32 %v1828_v15, %v1816_v27 }
 0xdc2   :  { %v1833_v7 = vmul.f32 0.7978846, %v1831_v39 }
 0xdc3   :  { %v1832_v13 = vmul.f32 0.7978846, %v1830_v62 }
 0xdc4   :  { %2505 = vtanh.f32 %v1833_v7 }
 0xdc5   :  { %2507 = vtanh.f32 %v1832_v13 }
 0xdce   :  { %v2506_v42 = vpop.eup %2505 }
 0xdcf   :  { %v2508_v44 = vpop.eup %2507  ;;  %v1837_v45 = vadd.f32 1.0, %v2506_v42 }
 0xdd0   :  { %v1836_v1 = vadd.f32 1.0, %v2508_v44 }
 0xdd1   :  { %v1839_v46 = vmul.f32 0.5, %v1837_v45 }
 0xdd2   :  { %v1838_v47 = vmul.f32 0.5, %v1836_v1 }
 0xdd3   :  { %v1841_v41 = vmul.f32 %v1839_v46, %v1821_v21 }
 0xdd4   :  { %v1840_v48 = vmul.f32 %v1838_v47, %v1816_v27 }
 0xdd6   :  { %2280 = vmatprep.mubr.msk.f32.mxu0 %vm913_vm9, %v1840_v48 }
 0xdd7   :  { %2281 = vmatmul.mubr.msk.f32.vlgmr.msra.gmra.mrb[14].mxu0 %vm913_vm9, %v1841_v41 }
 0xeaa   :  { %v2282_v35 = vpop.f32.mrb[14].mxu0 }
 0xeab   :  { %v1920_v28 = vadd.f32 %v2282_v35, %v2931_v36  ;;  %v1914_v29 = vpop.f32.mrb[15].mxu0 }
 0xeac   :  { %v1915_v32 = vadd.f32 %v2931_v36, %v1914_v29 }
 0xead   :  { %v1924_v52 = vadd.f32 %v1920_v28, %v1742_v18 }
 0xeae   :  { %v1923_v40 = vadd.f32 %v1915_v32, %v1741_v16 }
 0xeaf   :  { %v1928_v53 = vsel %vm761_vm8, %v1924_v52, 0.0 }
 0xeb0   :  { %1929 = vadd.xlane.f32.xlu0 %v1928_v53  ;;  %v1925_v55 = vsel %vm82_vm0, %v1923_v40, 0.0 }
 0xeb1   :  { %1926 = vadd.xlane.f32.xlu1 %v1925_v55 }
 0xeb4   :  { %1013 = vadd.xlane.f32.xlu0 %v1012_v26 }
 0xeb5   :  { %1010 = vadd.xlane.f32.xlu1 %v1009_v25 }
 0xf3d   :  { %v1930_v56 = vpop.xlane.xlu0 %1929 }
 0xf3e   :  { %v1932_v57 = vmul.f32 0.03125, %v1930_v56  ;;  %v1927_v58 = vpop.xlane.xlu1 %1926 }
 0xf3f   :  { %v1931_v36 = vmul.f32 0.03125, %v1927_v58 }
 0xf40   :  { %v1934_v59 = vsub.f32 %v1924_v52, %v1932_v57 }
 0xf41   :  { %v1933_v60 = vsub.f32 %v1923_v40, %v1931_v36  ;;  %v1014_v5 = vpop.xlane.xlu0 %1013 }
 0xf42   :  { %v1016_v8 = vmul.f32 0.03125, %v1014_v5  ;;  %v1011_v61 = vpop.xlane.xlu1 %1010  ;;  %v1936_v3 = vmul.f32 %v1934_v59, %v1934_v59 }
 0xf43   :  { %v1015_v6 = vmul.f32 0.03125, %v1011_v61  ;;  %v1935_v63 = vmul.f32 %v1933_v60, %v1933_v60 }
 0xf44   :  { %v1018_v0 = vadd.f32 1e-05, %v1016_v8  ;;  %v1940_v2 = vsel %vm761_vm8, %v1936_v3, 0.0 }
 0xf45   :  { %v1017_v4 = vadd.f32 1e-05, %v1015_v6  ;;  %1941 = vadd.xlane.f32.xlu0 %v1940_v2  ;;  %v1937_v9 = vsel %vm82_vm0, %v1935_v63, 0.0 }
 0xf46   :  { %2509 = vrsqrt.f32 %v1018_v0  ;;  %1938 = vadd.xlane.f32.xlu1 %v1937_v9 }
 0xf47   :  { %2511 = vrsqrt.f32 %v1017_v4 }
 0xf50   :  { %v2510_v24 = vpop.eup %2509 }
 0xf51   :  { %v2512_v11 = vpop.eup %2511  ;;  %v1022_v12 = vmul.f32 %v2510_v24, %v1006_v38 }
 0xf52   :  { %v1021_v14 = vmul.f32 %v2512_v11, %v1005_v30 }
 0xf53   :  { %v1030_v16 = vmul.f32 %v1993_v10, %v1022_v12 }
 0xf54   :  { %v1029_v18 = vmul.f32 %v1993_v10, %v1021_v14 }
 0xf55   :  { %v1038_v19 = vadd.f32 %v1994_v23, %v1030_v16 }
 0xf56   :  { %v1037_v21 = vadd.f32 %v1994_v23, %v1029_v18 }
 0xf57   :  { %1040 = vst.msk [vmem:[%s2997_s14 + $0x8] sm:$0x3] %vm761_vm8, %v1038_v19 }
 0xf58   :  { %1039 = vst.msk [vmem:[%s2997_s14] sm:$0xff] %vm82_vm0, %v1037_v21 }
 0xfd2   :  { %v1942_v22 = vpop.xlane.xlu0 %1941 }
 0xfd3   :  { %v1944_v27 = vmul.f32 0.03125, %v1942_v22  ;;  %v1939_v17 = vpop.xlane.xlu1 %1938 }
 0xfd4   :  { %v1943_v31 = vmul.f32 0.03125, %v1939_v17 }
 0xfd5   :  { %v1946_v33 = vadd.f32 1e-05, %v1944_v27 }
 0xfd6   :  { %v1945_v34 = vadd.f32 1e-05, %v1943_v31 }
 0xfd7   :  { %2513 = vrsqrt.f32 %v1946_v33 }
 0xfd8   :  { %2515 = vrsqrt.f32 %v1945_v34 }
 0xfe1   :  { %v2514_v37 = vpop.eup %2513 }
 0xfe2   :  { %v2516_v15 = vpop.eup %2515  ;;  %v1950_v39 = vmul.f32 %v2514_v37, %v1934_v59 }
 0xfe3   :  { %v1949_v62 = vmul.f32 %v2516_v15, %v1933_v60 }
 0xfe4   :  { %v1952_v7 = vmul.f32 %v1993_v10, %v1950_v39 }
 0xfe5   :  { %v1951_v13 = vmul.f32 %v1993_v10, %v1949_v62 }
 0xfe6   :  { %v1954_v42 = vadd.f32 %v1994_v23, %v1952_v7 }
 0xfe7   :  { %v1953_v44 = vadd.f32 %v1994_v23, %v1951_v13 }
 0xfe8   :  { %2024 = vst.msk [vmem:[%s2997_s14 + $0x18] sm:$0x3] %vm761_vm8, %v1954_v42 }
 0xfe9   :  { %2023 = vst.msk [vmem:[%s2997_s14 + $0x10] sm:$0xff] %vm82_vm0, %v1953_v44 }

// kernel: fastspeech2_forward.15
= control target key start
LH: loop header
LB: loop body
LE: loop exit
PB: predicated region body
PF: predicated region fallthrough
CT: control target
= control target key end

     0   :  { %v609_v0 = vmov 0.0|0.0   ;;  %vm610_vm0 = vmmov 0   ;;  %v611_v4 = vmov 0.0   ;;  %vm42_vm1 = vcmask 261120   ;;  %s612_s13 = smov 8   ;;  %s786_s4 = inlined_call_operand.vmem [shape: f32[32,24], index: 4, kind: input, shape index: {}]   ;;  %s787_s2 = inlined_call_operand.vmem [shape: f32[32,8], index: 2, kind: input, shape index: {}]   ;;  %s788_s1 = inlined_call_operand.vmem [shape: f32[2,24,32], index: 1, kind: input, shape index: {}]   ;;  %s789_s0 = inlined_call_operand.vmem [shape: f32[2,24,32], index: 0, kind: input, shape index: {}]   ;;  %s790_s5 = inlined_call_operand.vmem [shape: f32[1,24], index: 5, kind: input, shape index: {}]   ;;  %s791_s3 = inlined_call_operand.vmem [shape: f32[1,8], index: 3, kind: input, shape index: {}]   ;;  %s792_s6 = inlined_call_operand.vmem [shape: f32[2,24,32], index: 6, kind: output, shape index: {}]  }
   0x1   :  { %587 = vmatprep.subr.bf16.mxu1 %v609_v0  ;;  %v28_v1 = vld [vmem:[%s786_s4] sm:$0xff]  ;;  %v29_v2 = vld [vmem:[%s786_s4 + $0x8] sm:$0xff]  ;;  %v30_v3 = vld [vmem:[%s786_s4 + $0x10] sm:$0xff]  ;;  %538 = vmatprep.mubr.msk.f32.mxu1 %vm610_vm0, %v611_v4  ;;  %vm230_vm2 = vcmask 64512   ;;  %vm246_vm3 = vcmask 261184  }
   0x2   :  { %v588_v5 = vpack.c.bf16 %v29_v2, %v28_v1  ;;  %v31_v6 = vld [vmem:[%s786_s4 + $0x18] sm:$0xff]  ;;  %581 = vmatprep.subr.bf16.mxu0 %v609_v0  ;;  %521 = vmatprep.mubr.msk.f32.mxu0 %vm610_vm0, %v611_v4  ;;  %v23_v8 = vld [vmem:[%s787_s2] sm:$0xff]  ;;  %v24_v9 = vld [vmem:[%s787_s2 + $0x8] sm:$0xff] }
   0x3   :  { %v591_v7 = vpack.c.bf16 %v31_v6, %v30_v3  ;;  %v582_v10 = vpack.c.bf16 %v24_v9, %v23_v8  ;;  %v25_v11 = vld [vmem:[%s787_s2 + $0x10] sm:$0xff]  ;;  %v26_v12 = vld [vmem:[%s787_s2 + $0x18] sm:$0xff]  ;;  %v132_v14 = vld [vmem:[%s788_s1] sm:$0xff] }
   0x4   :  { %589 = vmatpush3.bf16.msra.mxu1 %v588_v5  ;;  %v585_v13 = vpack.c.bf16 %v26_v12, %v25_v11  ;;  %v33_v15 = vld [vmem:[%s789_s0] sm:$0xff]  ;;  %v133_v16 = vld [vmem:[%s788_s1 + $0x8] sm:$0xff]  ;;  %v134_v18 = vld [vmem:[%s788_s1 + $0x10] sm:$0xff] }
   0x5   :  { %590 = vmatprep.subr.bf16.mxu1 %v609_v0  ;;  %583 = vmatpush3.bf16.msra.mxu0 %v582_v10  ;;  %v34_v17 = vld [vmem:[%s789_s0 + $0x8] sm:$0xff]  ;;  %v35_v19 = vld [vmem:[%s789_s0 + $0x10] sm:$0xff]  ;;  %v473_v20 = vld [vmem:[%s788_s1 + $0x18] sm:$0xff] }
   0x6   :  { %584 = vmatprep.subr.bf16.mxu0 %v609_v0  ;;  %v467_v21 = vld [vmem:[%s789_s0 + $0x18] sm:$0xff]  ;;  %v474_v22 = vld [vmem:[%s788_s1 + $0x20] sm:$0xff]  ;;  %v475_v24 = vld [vmem:[%s788_s1 + $0x28] sm:$0xff] }
   0x7   :  { %v468_v23 = vld [vmem:[%s789_s0 + $0x20] sm:$0xff]  ;;  %v469_v25 = vld [vmem:[%s789_s0 + $0x28] sm:$0xff] }
   0x8   :  { %592 = vmatpush3.bf16.msra.mxu1 %v591_v7  ;;  %v463_v26 = vld [vmem:[%s790_s5] ss:$0 sm:$0xff] }
   0x9   :  { %599 = vmatprep.subr.bf16.mxu1 %v609_v0  ;;  %586 = vmatpush3.bf16.msra.mxu0 %v585_v13  ;;  %v459_v30 = vld [vmem:[%s791_s3] ss:$0 sm:$0xff] }
   0xa   :  { %593 = vmatprep.subr.bf16.mxu0 %v609_v0 }
   0xb   :  { %539 = vmatmul.mubr.msk.f32.vlgmr.msra.gmra.mrb[0].mxu1 %vm42_vm1, %v132_v14 }
   0xc   :  { %601 = vmatpush3.bf16.msra.mxu1 %v588_v5  ;;  %541 = vmatprep.mubr.msk.f32.mxu1 %vm610_vm0, %v611_v4 }
   0xd   :  { %602 = vmatprep.subr.bf16.mxu1 %v609_v0  ;;  %522 = vmatmul.mubr.msk.f32.vlgmr.msra.gmra.mrb[0].mxu0 %vm42_vm1, %v33_v15 }
   0xe   :  { %595 = vmatpush3.bf16.msra.mxu0 %v582_v10  ;;  %524 = vmatprep.mubr.msk.f32.mxu0 %vm610_vm0, %v611_v4 }
   0xf   :  { %542 = vmatmul.mubr.msk.f32.gmra.mrb[2].mxu1 %vm42_vm1, %v133_v16  ;;  %596 = vmatprep.subr.bf16.mxu0 %v609_v0 }
  0x10   :  { %544 = vmatprep.mubr.msk.f32.mxu1 %vm610_vm0, %v611_v4  ;;  %604 = vmatpush3.bf16.msra.mxu1 %v591_v7 }
  0x11   :  { %525 = vmatmul.mubr.msk.f32.gmra.mrb[2].mxu0 %vm42_vm1, %v34_v17 }
  0x12   :  { %527 = vmatprep.mubr.msk.f32.mxu0 %vm610_vm0, %v611_v4  ;;  %598 = vmatpush3.bf16.msra.mxu0 %v585_v13 }
  0x13   :  { %545 = vmatmul.mubr.msk.f32.gmra.mrb[4].mxu1 %vm42_vm1, %v134_v18 }
  0x14   :  { %572 = vmatprep.mubr.msk.f32.mxu1 %vm610_vm0, %v611_v4 }
  0x15   :  { %528 = vmatmul.mubr.msk.f32.gmra.mrb[4].mxu0 %vm42_vm1, %v35_v19 }
  0x16   :  { %555 = vmatprep.mubr.msk.f32.mxu0 %vm610_vm0, %v611_v4 }
  0x17   :  { %573 = vmatmul.mubr.msk.f32.vlgmr.msra.gmra.mrb[6].mxu1 %vm42_vm1, %v473_v20 }
  0x18   :  { %575 = vmatprep.mubr.msk.f32.mxu1 %vm610_vm0, %v611_v4 }
  0x19   :  { %556 = vmatmul.mubr.msk.f32.vlgmr.msra.gmra.mrb[6].mxu0 %vm42_vm1, %v467_v21 }
  0x1a   :  { %558 = vmatprep.mubr.msk.f32.mxu0 %vm610_vm0, %v611_v4 }
  0x1b   :  { %576 = vmatmul.mubr.msk.f32.gmra.mrb[8].mxu1 %vm42_vm1, %v474_v22 }
  0x1c   :  { %578 = vmatprep.mubr.msk.f32.mxu1 %vm610_vm0, %v611_v4 }
  0x1d   :  { %559 = vmatmul.mubr.msk.f32.gmra.mrb[8].mxu0 %vm42_vm1, %v468_v23 }
  0x1e   :  { %561 = vmatprep.mubr.msk.f32.mxu0 %vm610_vm0, %v611_v4 }
  0x1f   :  { %579 = vmatmul.mubr.msk.f32.gmra.mrb[10].mxu1 %vm42_vm1, %v475_v24 }
  0x21   :  { %562 = vmatmul.mubr.msk.f32.gmra.mrb[10].mxu0 %vm42_vm1, %v469_v25 }
  0xde   :  { %v216_v27 = vpop.f32.mrb[0].mxu1 }
  0xdf   :  { %v217_v28 = vadd.f32 %v463_v26, %v216_v27  ;;  %v540_v29 = vpop.f32.mrb[1].mxu1 }
  0xe0   :  { %v118_v31 = vpop.f32.mrb[0].mxu0 }
  0xe1   :  { %237 = vrot.lane.b32.xlu0 %v217_v28, %s612_s13  ;;  %v119_v33 = vadd.f32 %v459_v30, %v118_v31  ;;  %v523_v34 = vpop.f32.mrb[1].mxu0 }
  0xe2   :  { %v221_v32 = vpop.f32.mrb[2].mxu1 }
  0xe3   :  { %v222_v35 = vadd.f32 %v463_v26, %v221_v32  ;;  %v543_v36 = vpop.f32.mrb[3].mxu1  ;;  %231 = vst.msk [vmem:[%s792_s6] sm:$0xff] %vm230_vm2, %v119_v33 }
  0xe4   :  { %v123_v37 = vpop.f32.mrb[2].mxu0 }
  0xe5   :  { %239 = vrot.lane.b32.xlu0 %v222_v35, %s612_s13  ;;  %v124_v39 = vadd.f32 %v459_v30, %v123_v37  ;;  %v526_v40 = vpop.f32.mrb[3].mxu0 }
  0xe6   :  { %v226_v38 = vpop.f32.mrb[4].mxu1 }
  0xe7   :  { %v227_v41 = vadd.f32 %v463_v26, %v226_v38  ;;  %v546_v42 = vpop.f32.mrb[5].mxu1  ;;  %232 = vst.msk [vmem:[%s792_s6 + $0x8] sm:$0xff] %vm230_vm2, %v124_v39 }
  0xe8   :  { %v128_v43 = vpop.f32.mrb[4].mxu0 }
  0xe9   :  { %241 = vrot.lane.b32.xlu1 %v227_v41, %s612_s13  ;;  %v129_v45 = vadd.f32 %v459_v30, %v128_v43  ;;  %v529_v46 = vpop.f32.mrb[5].mxu0 }
  0xea   :  { %v422_v44 = vpop.f32.mrb[6].mxu1 }
  0xeb   :  { %v423_v47 = vadd.f32 %v463_v26, %v422_v44  ;;  %v574_v48 = vpop.f32.mrb[7].mxu1  ;;  %233 = vst.msk [vmem:[%s792_s6 + $0x10] sm:$0xff] %vm230_vm2, %v129_v45 }
  0xec   :  { %v329_v49 = vpop.f32.mrb[6].mxu0 }
  0xed   :  { %443 = vrot.lane.b32.xlu1 %v423_v47, %s612_s13  ;;  %v330_v51 = vadd.f32 %v459_v30, %v329_v49  ;;  %v557_v52 = vpop.f32.mrb[7].mxu0 }
  0xee   :  { %v427_v50 = vpop.f32.mrb[8].mxu1 }
  0xef   :  { %v428_v53 = vadd.f32 %v463_v26, %v427_v50  ;;  %v577_v54 = vpop.f32.mrb[9].mxu1  ;;  %479 = vst.msk [vmem:[%s792_s6 + $0x18] sm:$0xff] %vm230_vm2, %v330_v51 }
  0xf0   :  { %v334_v55 = vpop.f32.mrb[8].mxu0 }
  0xf1   :  { %445 = vrot.lane.b32.xlu0 %v428_v53, %s612_s13  ;;  %v335_v57 = vadd.f32 %v459_v30, %v334_v55  ;;  %v560_v58 = vpop.f32.mrb[9].mxu0 }
  0xf2   :  { %v432_v56 = vpop.f32.mrb[10].mxu1 }
  0xf3   :  { %v433_v59 = vadd.f32 %v463_v26, %v432_v56  ;;  %v580_v60 = vpop.f32.mrb[11].mxu1  ;;  %480 = vst.msk [vmem:[%s792_s6 + $0x20] sm:$0xff] %vm230_vm2, %v335_v57 }
  0xf4   :  { %v339_v61 = vpop.f32.mrb[10].mxu0 }
  0xf5   :  { %447 = vrot.lane.b32.xlu1 %v433_v59, %s612_s13  ;;  %v340_v62 = vadd.f32 %v459_v30, %v339_v61  ;;  %v563_v63 = vpop.f32.mrb[11].mxu0 }
  0xf7   :  { %481 = vst.msk [vmem:[%s792_s6 + $0x28] sm:$0xff] %vm230_vm2, %v340_v62 }
 0x153   :  { %v238_v0 = vpop.permute.xlu0 %237 }
 0x154   :  { %247 = vst.msk [vmem:[%s792_s6] sm:$0xff] %vm246_vm3, %v238_v0 }
 0x157   :  { %v240_v1 = vpop.permute.xlu0 %239 }
 0x158   :  { %248 = vst.msk [vmem:[%s792_s6 + $0x8] sm:$0xff] %vm246_vm3, %v240_v1 }
 0x15b   :  { %v242_v2 = vpop.permute.xlu1 %241 }
 0x15c   :  { %249 = vst.msk [vmem:[%s792_s6 + $0x10] sm:$0xff] %vm246_vm3, %v242_v2 }
 0x15f   :  { %v444_v3 = vpop.permute.xlu1 %443 }
 0x160   :  { %482 = vst.msk [vmem:[%s792_s6 + $0x18] sm:$0xff] %vm246_vm3, %v444_v3 }
 0x163   :  { %v446_v4 = vpop.permute.xlu0 %445 }
 0x164   :  { %483 = vst.msk [vmem:[%s792_s6 + $0x20] sm:$0xff] %vm246_vm3, %v446_v4 }
 0x167   :  { %v448_v5 = vpop.permute.xlu1 %447 }
 0x168   :  { %484 = vst.msk [vmem:[%s792_s6 + $0x28] sm:$0xff] %vm246_vm3, %v448_v5 }

// kernel: fastspeech2_forward.12
= control target key start
LH: loop header
LB: loop body
LE: loop exit
PB: predicated region body
PF: predicated region fallthrough
CT: control target
= control target key end

     0   :  { %vm43_vm0 = vcmask 261120   ;;  %vm45_vm1 = vcmask 254976   ;;  %v1015_v0 = vmov 0.0   ;;  %v1016_v2 = vmov 0.0|0.0   ;;  %s1018_s21 = smov 32   ;;  %s1019_s26 = smov 64   ;;  %s1359_s0 = inlined_call_operand.vmem [shape: f32[2,8,32], index: 0, kind: input, shape index: {}]   ;;  %s1360_s2 = inlined_call_operand.vmem [shape: f32[96,32], index: 2, kind: input, shape index: {}]   ;;  %s1361_s3 = inlined_call_operand.vmem [shape: f32[1,32], index: 3, kind: input, shape index: {}]   ;;  %s1362_s6 = inlined_call_operand.vmem [shape: f32[96,32], index: 6, kind: input, shape index: {}]   ;;  %s1363_s4 = inlined_call_operand.vmem [shape: f32[1,32], index: 4, kind: input, shape index: {}]   ;;  %s1364_s5 = inlined_call_operand.vmem [shape: f32[1,32], index: 5, kind: input, shape index: {}]   ;;  %s1365_s7 = inlined_call_operand.vmem [shape: f32[1,32], index: 7, kind: input, shape index: {}]   ;;  %s1366_s10 = inlined_call_operand.vmem [shape: f32[32,1], index: 10, kind: input, shape index: {}]   ;;  %s1367_s8 = inlined_call_operand.vmem [shape: f32[1,32], index: 8, kind: input, shape index: {}]   ;;  %s1368_s9 = inlined_call_operand.vmem [shape: f32[1,32], index: 9, kind: input, shape index: {}]   ;;  %s1369_s11 = inlined_call_operand.<no memory space> [shape: f32[1,1], index: 11, kind: input, shape index: {}]   ;;  %s1370_s1 = inlined_call_operand.vmem [shape: f32[2,8,1], index: 1, kind: input, shape index: {}]   ;;  %s1371_s12 = inlined_call_operand.vmem [shape: f32[2,8,1], index: 12, kind: output, shape index: {}]  }
   0x1   :  { %44 = vst.msk [vmem:[#allocation2] sm:$0xff] %vm43_vm0, %v1015_v0  ;;  %v82_v1 = vld [vmem:[%s1359_s0] sm:$0xff]  ;;  %918 = vmatprep.subr.bf16.mxu0 %v1016_v2  ;;  %v48_v4 = vld [vmem:[%s1360_s2 + $0x8] sm:$0xff]  ;;  %936 = vmatprep.subr.bf16.mxu1 %v1016_v2  ;;  %v49_v6 = vld [vmem:[%s1360_s2 + $0x10] sm:$0xff]  ;;  %vm1017_vm2 = vmmov 0   ;;  %vm91_vm3 = vcmask 523520  }
   0x2   :  { %46 = vst.msk [vmem:[#allocation2 + $0x8] sm:$0x3] %vm45_vm1, %v1015_v0  ;;  %v47_v3 = vld [vmem:[%s1360_s2] sm:$0xff]  ;;  %v50_v7 = vld [vmem:[%s1360_s2 + $0x18] sm:$0xff]  ;;  %812 = vmatprep.mubr.msk.f32.mxu0 %vm1017_vm2, %v1015_v0  ;;  %839 = vmatprep.mubr.msk.f32.mxu1 %vm1017_vm2, %v1015_v0  ;;  %v52_v10 = vld [vmem:[%s1360_s2 + $0x28] sm:$0xff]  ;;  %vm98_vm4 = vcmask 785920  }
   0x3   :  { %83 = vst.msk [vmem:[#allocation2 + $0x1] sm:$0xff] %vm43_vm0, %v82_v1  ;;  %v1100_v5 = vpack.c.bf16 %v48_v4, %v47_v3  ;;  %v1113_v8 = vpack.c.bf16 %v50_v7, %v49_v6  ;;  %v51_v9 = vld [vmem:[%s1360_s2 + $0x20] sm:$0xff]  ;;  %v53_v12 = vld [vmem:[%s1360_s2 + $0x30] sm:$0xff]  ;;  %v54_v15 = vld [vmem:[%s1360_s2 + $0x38] sm:$0xff]  ;;  %vm107_vm5 = vcmask 785408   ;;  %vm414_vm6 = vcmask 7168  }
   0x4   :  { %v1123_v11 = vpack.c.bf16 %v52_v10, %v51_v9  ;;  %v1135_v17 = vpack.c.bf16 %v54_v15, %v53_v12  ;;  %v55_v18 = vld [vmem:[%s1360_s2 + $0x40] sm:$0xff]  ;;  %v56_v19 = vld [vmem:[%s1360_s2 + $0x48] sm:$0xff]  ;;  %v57_v21 = vld [vmem:[%s1360_s2 + $0x50] sm:$0xff] }
   0x5   :  { %920 = vmatpush3.bf16.msra.mxu0 %v1100_v5  ;;  %v1146_v20 = vpack.c.bf16 %v56_v19, %v55_v18  ;;  %v58_v22 = vld [vmem:[%s1360_s2 + $0x58] sm:$0xff]  ;;  %v1169_v27 = vld [vmem:[%s1361_s3] ss:$0 sm:$0xff]  ;;  %v63_v39 = vld [vmem:[%s1362_s6 + $0x8] sm:$0xff] }
   0x6   :  { %921 = vmatprep.subr.bf16.mxu0 %v1016_v2  ;;  %v1156_v23 = vpack.c.bf16 %v58_v22, %v57_v21  ;;  %v62_v38 = vld [vmem:[%s1362_s6] sm:$0xff]  ;;  %v64_v40 = vld [vmem:[%s1362_s6 + $0x10] sm:$0xff]  ;;  %v65_v42 = vld [vmem:[%s1362_s6 + $0x18] sm:$0xff] }
   0x7   :  { %v1183_v41 = vpack.c.bf16 %v63_v39, %v62_v38  ;;  %v1189_v43 = vpack.c.bf16 %v65_v42, %v64_v40  ;;  %v66_v44 = vld [vmem:[%s1362_s6 + $0x20] sm:$0xff]  ;;  %v67_v45 = vld [vmem:[%s1362_s6 + $0x28] sm:$0xff]  ;;  %v68_v47 = vld [vmem:[%s1362_s6 + $0x30] sm:$0xff] }
   0x8   :  { %v1199_v46 = vpack.c.bf16 %v67_v45, %v66_v44  ;;  %v69_v48 = vld [vmem:[%s1362_s6 + $0x38] sm:$0xff]  ;;  %v1217_v54 = vld [vmem:[%s1363_s4] ss:$0 sm:$0xff]  ;;  %v71_v56 = vld [vmem:[%s1362_s6 + $0x48] sm:$0xff] }
   0x9   :  { %923 = vmatpush3.bf16.msra.mxu0 %v1113_v8  ;;  %938 = vmatpush3.bf16.msra.mxu1 %v1183_v41  ;;  %v1209_v49 = vpack.c.bf16 %v69_v48, %v68_v47  ;;  %v70_v55 = vld [vmem:[%s1362_s6 + $0x40] sm:$0xff]  ;;  %v72_v61 = vld [vmem:[%s1362_s6 + $0x50] sm:$0xff]  ;;  %v73_v62 = vld [vmem:[%s1362_s6 + $0x58] sm:$0xff] }
   0xa   :  { %v86_v13 = vld [vmem:[#allocation2 + $0x1] sm:$0xff]  ;;  %924 = vmatprep.subr.bf16.mxu0 %v1016_v2  ;;  %939 = vmatprep.subr.bf16.mxu1 %v1016_v2  ;;  %v1225_v58 = vpack.c.bf16 %v71_v56, %v70_v55  ;;  %v1230_v59 = vld [vmem:[%s1364_s5] ss:$0 sm:$0xff]  ;;  %v1241_v63 = vpack.c.bf16 %v73_v62, %v72_v61  ;;  %v79_v40 = vld [vmem:[%s1366_s10 + $0x10] sm:$0xff] }
   0xb   :  { %v84_v14 = vld [vmem:[#allocation2] sm:$0xff]  ;;  %88 = vrot.lane.b32.xlu0 %v86_v13, %s1018_s21  ;;  %v720_v3 = vld [vmem:[%s1359_s0 + $0x8] sm:$0xff]  ;;  %v80_v42 = vld [vmem:[%s1366_s10 + $0x18] sm:$0xff] }
   0xc   :  { %85 = vst.msk [vmem:[#allocation3] sm:$0xff] %vm43_vm0, %v84_v14  ;;  %v93_v16 = vld [vmem:[#allocation2 + $0x2] sm:$0xff]  ;;  %v958_v44 = vpack.c.bf16 %v80_v42, %v79_v40 }
   0xd   :  { %926 = vmatpush3.bf16.msra.mxu0 %v1123_v11  ;;  %941 = vmatpush3.bf16.msra.mxu1 %v1189_v43  ;;  %v78_v38 = vld [vmem:[%s1366_s10 + $0x8] sm:$0xff] }
   0xe   :  { %927 = vmatprep.subr.bf16.mxu0 %v1016_v2  ;;  %942 = vmatprep.subr.bf16.mxu1 %v1016_v2 }
   0xf   :  { %95 = vrot.lane.b32.xlu0 %v93_v16, %s1019_s26 }
  0x11   :  { %929 = vmatpush3.bf16.msra.mxu0 %v1135_v17  ;;  %944 = vmatpush3.bf16.msra.mxu1 %v1199_v46 }
  0x12   :  { %930 = vmatprep.subr.bf16.mxu0 %v1016_v2  ;;  %945 = vmatprep.subr.bf16.mxu1 %v1016_v2 }
  0x15   :  { %932 = vmatpush3.bf16.msra.mxu0 %v1146_v20  ;;  %947 = vmatpush3.bf16.msra.mxu1 %v1209_v49 }
  0x16   :  { %933 = vmatprep.subr.bf16.mxu0 %v1016_v2  ;;  %948 = vmatprep.subr.bf16.mxu1 %v1016_v2 }
  0x19   :  { %935 = vmatpush3.bf16.msra.mxu0 %v1156_v23  ;;  %950 = vmatpush3.bf16.msra.mxu1 %v1225_v58 }
  0x1a   :  { %954 = vmatprep.subr.bf16.mxu0 %v1016_v2  ;;  %951 = vmatprep.subr.bf16.mxu1 %v1016_v2 }
  0x1d   :  { %953 = vmatpush3.bf16.msra.mxu1 %v1241_v63 }
  0x1e   :  { %960 = vmatprep.subr.bf16.mxu1 %v1016_v2 }
  0x7d   :  { %v89_v24 = vpop.permute.xlu0 %88 }
  0x7e   :  { %92 = vst.msk [vmem:[#allocation3] sm:$0xff] %vm91_vm3, %v89_v24 }
  0x81   :  { %v96_v25 = vpop.permute.xlu0 %95 }
  0x82   :  { %99 = vst.msk [vmem:[#allocation3] sm:$0xff] %vm98_vm4, %v96_v25 }
  0x89   :  { %v100_v26 = vld [vmem:[#allocation3] sm:$0xff] }
  0x8a   :  { %813 = vmatmul.mubr.msk.f32.vlgmr.msra.gmra.mrb[0].mxu0 %vm107_vm5, %v100_v26 }
  0x8b   :  { %850 = vmatprep.mubr.msk.f32.mxu0 %vm1017_vm2, %v1015_v0 }
 0x15d   :  { %v177_v28 = vpop.f32.mrb[0].mxu0 }
 0x15e   :  { %v178_v29 = vadd.f32 %v1169_v27, %v177_v28  ;;  %v814_v30 = vpop.f32.mrb[1].mxu0 }
 0x160   :  { %v181_v31 = vmax.f32 %v178_v29, 0.0 }
 0x162   :  { %v182_v32 = vsel %vm43_vm0, %v181_v31, 0.0 }
 0x163   :  { %183 = vadd.xlane.f32.xlu1 %v182_v32 }
 0x1f0   :  { %v184_v33 = vpop.xlane.xlu1 %183 }
 0x1f1   :  { %v186_v34 = vmul.f32 0.03125, %v184_v33 }
 0x1f3   :  { %v187_v35 = vsub.f32 %v181_v31, %v186_v34 }
 0x1f5   :  { %v188_v36 = vmul.f32 %v187_v35, %v187_v35 }
 0x1f7   :  { %v189_v37 = vsel %vm43_vm0, %v188_v36, 0.0 }
 0x1f8   :  { %190 = vadd.xlane.f32.xlu1 %v189_v37 }
 0x285   :  { %v191_v50 = vpop.xlane.xlu1 %190 }
 0x286   :  { %v192_v51 = vmul.f32 0.03125, %v191_v50 }
 0x288   :  { %v193_v52 = vadd.f32 1e-05, %v192_v51 }
 0x28a   :  { %1007 = vrsqrt.f32 %v193_v52 }
 0x294   :  { %v1008_v53 = vpop.eup %1007 }
 0x295   :  { %v195_v57 = vmul.f32 %v1008_v53, %v187_v35 }
 0x297   :  { %v202_v60 = vmul.f32 %v1217_v54, %v195_v57 }
 0x299   :  { %v209_v1 = vadd.f32 %v1230_v59, %v202_v60  ;;  %v1309_v60 = vld [vmem:[%s1367_s8] ss:$0 sm:$0xff] }
 0x29b   :  { %210 = vst.msk [vmem:[#allocation2 + $0x1] sm:$0xff] %vm43_vm0, %v209_v1  ;;  %v717_v1 = vld [vmem:[%s1368_s9] ss:$0 sm:$0xff] }
 0x2a2   :  { %v219_v4 = vld [vmem:[#allocation2 + $0x2] sm:$0xff] }
 0x2a3   :  { %v213_v6 = vld [vmem:[#allocation2 + $0x1] sm:$0xff]  ;;  %221 = vrot.lane.b32.xlu1 %v219_v4, %s1019_s26 }
 0x2a4   :  { %v211_v7 = vld [vmem:[#allocation2] sm:$0xff]  ;;  %215 = vrot.lane.b32.xlu0 %v213_v6, %s1018_s21 }
 0x2a5   :  { %418 = vst.msk [vmem:[#allocation2 + $0x1] sm:$0xff] %vm43_vm0, %v720_v3  ;;  %212 = vst.msk [vmem:[#allocation3] sm:$0xff] %vm43_vm0, %v211_v7 }
 0x2ac   :  { %v421_v9 = vld [vmem:[#allocation2 + $0x1] sm:$0xff] }
 0x2ad   :  { %423 = vrot.lane.b32.xlu0 %v421_v9, %s1018_s21  ;;  %v427_v10 = vld [vmem:[#allocation2 + $0x2] sm:$0xff] }
 0x2ae   :  { %v419_v14 = vld [vmem:[#allocation2] sm:$0xff] }
 0x2b1   :  { %429 = vrot.lane.b32.xlu0 %v427_v10, %s1019_s26 }
 0x315   :  { %v222_v12 = vpop.permute.xlu1 %221 }
 0x316   :  { %v216_v13 = vpop.permute.xlu0 %215 }
 0x317   :  { %218 = vst.msk [vmem:[#allocation3] sm:$0xff] %vm91_vm3, %v216_v13 }
 0x318   :  { %224 = vst.msk [vmem:[#allocation3] sm:$0xff] %vm98_vm4, %v222_v12 }
 0x31f   :  { %v424_v15 = vpop.permute.xlu0 %423  ;;  %v225_v16 = vld [vmem:[#allocation3] sm:$0xff] }
 0x320   :  { %840 = vmatmul.mubr.msk.f32.vlgmr.msra.gmra.mrb[0].mxu1 %vm107_vm5, %v225_v16  ;;  %420 = vst.msk [vmem:[#allocation3] sm:$0xff] %vm43_vm0, %v419_v14 }
 0x321   :  { %962 = vmatpush3.bf16.msra.mxu1 %v1100_v5  ;;  %426 = vst.msk [vmem:[#allocation3] sm:$0xff] %vm91_vm3, %v424_v15  ;;  %877 = vmatprep.mubr.msk.f32.mxu1 %vm1017_vm2, %v1015_v0 }
 0x322   :  { %963 = vmatprep.subr.bf16.mxu1 %v1016_v2 }
 0x323   :  { %v430_v18 = vpop.permute.xlu0 %429 }
 0x324   :  { %432 = vst.msk [vmem:[#allocation3] sm:$0xff] %vm98_vm4, %v430_v18 }
 0x325   :  { %965 = vmatpush3.bf16.msra.mxu1 %v1113_v8  ;;  %v1282_v8 = vld [vmem:[%s1365_s7] ss:$0 sm:$0xff] }
 0x326   :  { %966 = vmatprep.subr.bf16.mxu1 %v1016_v2 }
 0x329   :  { %968 = vmatpush3.bf16.msra.mxu1 %v1123_v11 }
 0x32a   :  { %969 = vmatprep.subr.bf16.mxu1 %v1016_v2 }
 0x32b   :  { %v433_v5 = vld [vmem:[#allocation3] sm:$0xff] }
 0x32d   :  { %971 = vmatpush3.bf16.msra.mxu1 %v1135_v17 }
 0x32e   :  { %972 = vmatprep.subr.bf16.mxu1 %v1016_v2 }
 0x331   :  { %974 = vmatpush3.bf16.msra.mxu1 %v1146_v20 }
 0x332   :  { %975 = vmatprep.subr.bf16.mxu1 %v1016_v2 }
 0x335   :  { %977 = vmatpush3.bf16.msra.mxu1 %v1156_v23 }
 0x336   :  { %996 = vmatprep.subr.bf16.mxu1 %v1016_v2 }
 0x338   :  { %878 = vmatmul.mubr.msk.f32.vlgmr.msra.gmra.mrb[2].mxu1 %vm107_vm5, %v433_v5 }
 0x339   :  { %915 = vmatprep.mubr.msk.f32.mxu1 %vm1017_vm2, %v1015_v0 }
 0x3f3   :  { %v301_v11 = vpop.f32.mrb[0].mxu1 }
 0x3f4   :  { %v302_v17 = vadd.f32 %v1282_v8, %v301_v11  ;;  %v841_v19 = vpop.f32.mrb[1].mxu1 }
 0x3f6   :  { %v305_v20 = vmax.f32 %v302_v17, 0.0 }
 0x3f8   :  { %v306_v21 = vsel %vm43_vm0, %v305_v20, 0.0 }
 0x3f9   :  { %307 = vadd.xlane.f32.xlu1 %v306_v21 }
 0x40b   :  { %v503_v22 = vpop.f32.mrb[2].mxu1 }
 0x40c   :  { %v504_v23 = vadd.f32 %v1169_v27, %v503_v22  ;;  %v879_v24 = vpop.f32.mrb[3].mxu1  ;;  %v77_v27 = vld [vmem:[%s1366_s10] sm:$0xff] }
 0x40d   :  { %v955_v39 = vpack.c.bf16 %v78_v38, %v77_v27 }
 0x40e   :  { %v507_v25 = vmax.f32 %v504_v23, 0.0 }
 0x40f   :  { %956 = vmatpush3.bf16.msra.mxu0 %v955_v39  ;;  %998 = vmatpush3.bf16.msra.mxu1 %v955_v39 }
 0x410   :  { %v508_v26 = vsel %vm43_vm0, %v507_v25, 0.0  ;;  %957 = vmatprep.subr.bf16.mxu0 %v1016_v2  ;;  %999 = vmatprep.subr.bf16.mxu1 %v1016_v2 }
 0x411   :  { %509 = vadd.xlane.f32.xlu0 %v508_v26  ;;  %v724_v26 = vld [vmem:[%s1370_s1 + $0x8] sm:$0xff] }
 0x413   :  { %959 = vmatpush3.bf16.msra.mxu0 %v958_v44  ;;  %1001 = vmatpush3.bf16.msra.mxu1 %v958_v44 }
 0x414   :  { %978 = vmatprep.subr.bf16.mxu0 %v1016_v2 }
 0x486   :  { %v308_v28 = vpop.xlane.xlu1 %307 }
 0x487   :  { %v309_v29 = vmul.f32 0.03125, %v308_v28 }
 0x489   :  { %v310_v32 = vsub.f32 %v305_v20, %v309_v29 }
 0x48b   :  { %v311_v36 = vmul.f32 %v310_v32, %v310_v32 }
 0x48d   :  { %v312_v37 = vsel %vm43_vm0, %v311_v36, 0.0 }
 0x49e   :  { %v510_v30 = vpop.xlane.xlu0 %509 }
 0x49f   :  { %v511_v31 = vmul.f32 0.03125, %v510_v30 }
 0x4a1   :  { %v512_v33 = vsub.f32 %v507_v25, %v511_v31 }
 0x4a3   :  { %v513_v34 = vmul.f32 %v512_v33, %v512_v33 }
 0x4a5   :  { %v514_v35 = vsel %vm43_vm0, %v513_v34, 0.0 }
 0x4a6   :  { %515 = vadd.xlane.f32.xlu0 %v514_v35 }
 0x4aa   :  { %313 = vadd.xlane.f32.xlu0 %v312_v37 }
 0x533   :  { %v516_v45 = vpop.xlane.xlu0 %515 }
 0x534   :  { %v517_v47 = vmul.f32 0.03125, %v516_v45 }
 0x536   :  { %v518_v48 = vadd.f32 1e-05, %v517_v47 }
 0x537   :  { %v314_v50 = vpop.xlane.xlu0 %313 }
 0x538   :  { %1009 = vrsqrt.f32 %v518_v48  ;;  %v315_v51 = vmul.f32 0.03125, %v314_v50 }
 0x53a   :  { %v316_v52 = vadd.f32 1e-05, %v315_v51 }
 0x53c   :  { %1011 = vrsqrt.f32 %v316_v52 }
 0x542   :  { %v1010_v53 = vpop.eup %1009 }
 0x543   :  { %v520_v55 = vmul.f32 %v1010_v53, %v512_v33 }
 0x545   :  { %v521_v56 = vmul.f32 %v1217_v54, %v520_v55  ;;  %v17_v54 = vstv %s1369_s11 }
 0x546   :  { %v1012_v57 = vpop.eup %1011  ;;  %18 = vst [vmem:[#allocation4] sm:$0x1] %v17_v54 }
 0x547   :  { %v522_v61 = vadd.f32 %v1230_v59, %v521_v56  ;;  %v318_v62 = vmul.f32 %v1012_v57, %v310_v32 }
 0x549   :  { %523 = vst.msk [vmem:[#allocation2 + $0x1] sm:$0xff] %vm43_vm0, %v522_v61  ;;  %v325_v3 = vmul.f32 %v1309_v60, %v318_v62 }
 0x54b   :  { %v332_v4 = vadd.f32 %v717_v1, %v325_v3 }
 0x54d   :  { %851 = vmatmul.mubr.msk.f32.vlgmr.msra.gmra.mrb[2].mxu0 %vm43_vm0, %v332_v4 }
 0x54e   :  { %980 = vmatpush3.bf16.msra.mxu0 %v1183_v41  ;;  %904 = vmatprep.mubr.msk.f32.mxu0 %vm1017_vm2, %v1015_v0 }
 0x54f   :  { %981 = vmatprep.subr.bf16.mxu0 %v1016_v2 }
 0x550   :  { %v532_v59 = vld [vmem:[#allocation2 + $0x2] sm:$0xff] }
 0x551   :  { %v526_v6 = vld [vmem:[#allocation2 + $0x1] sm:$0xff]  ;;  %534 = vrot.lane.b32.xlu1 %v532_v59, %s1019_s26 }
 0x552   :  { %v524_v7 = vld [vmem:[#allocation2] sm:$0xff]  ;;  %528 = vrot.lane.b32.xlu0 %v526_v6, %s1018_s21  ;;  %983 = vmatpush3.bf16.msra.mxu0 %v1189_v43 }
 0x553   :  { %525 = vst.msk [vmem:[#allocation3] sm:$0xff] %vm43_vm0, %v524_v7  ;;  %984 = vmatprep.subr.bf16.mxu0 %v1016_v2 }
 0x556   :  { %986 = vmatpush3.bf16.msra.mxu0 %v1199_v46  ;;  %v718_v46 = vld [vmem:[#allocation4] ss:$0 sm:$0xff] }
 0x557   :  { %987 = vmatprep.subr.bf16.mxu0 %v1016_v2 }
 0x55a   :  { %989 = vmatpush3.bf16.msra.mxu0 %v1209_v49  ;;  %v412_v49 = vld [vmem:[%s1370_s1] sm:$0xff] }
 0x55b   :  { %990 = vmatprep.subr.bf16.mxu0 %v1016_v2 }
 0x55e   :  { %992 = vmatpush3.bf16.msra.mxu0 %v1225_v58 }
 0x55f   :  { %993 = vmatprep.subr.bf16.mxu0 %v1016_v2 }
 0x562   :  { %995 = vmatpush3.bf16.msra.mxu0 %v1241_v63 }
 0x5c3   :  { %v535_v0 = vpop.permute.xlu1 %534 }
 0x5c4   :  { %v529_v41 = vpop.permute.xlu0 %528 }
 0x5c5   :  { %531 = vst.msk [vmem:[#allocation3] sm:$0xff] %vm91_vm3, %v529_v41 }
 0x5c6   :  { %537 = vst.msk [vmem:[#allocation3] sm:$0xff] %vm98_vm4, %v535_v0 }
 0x5cd   :  { %v538_v43 = vld [vmem:[#allocation3] sm:$0xff] }
 0x5ce   :  { %905 = vmatmul.mubr.msk.f32.vlgmr.msra.gmra.mrb[4].mxu0 %vm107_vm5, %v538_v43 }
 0x620   :  { %v408_v9 = vpop.f32.mrb[2].mxu0 }
 0x621   :  { %v409_v58 = vadd.f32 %v718_v46, %v408_v9  ;;  %v852_v10 = vpop.f32.mrb[3].mxu0 }
 0x623   :  { %v413_v2 = vmul.f32 %v412_v49, %v409_v58 }
 0x625   :  { %415 = vst.msk [vmem:[%s1371_s12] sm:$0xff] %vm414_vm6, %v413_v2 }
 0x6a1   :  { %v608_v63 = vpop.f32.mrb[4].mxu0 }
 0x6a2   :  { %v609_v12 = vadd.f32 %v1282_v8, %v608_v63  ;;  %v906_v13 = vpop.f32.mrb[5].mxu0 }
 0x6a4   :  { %v612_v14 = vmax.f32 %v609_v12, 0.0 }
 0x6a6   :  { %v613_v15 = vsel %vm43_vm0, %v612_v14, 0.0 }
 0x6a7   :  { %614 = vadd.xlane.f32.xlu1 %v613_v15 }
 0x734   :  { %v615_v16 = vpop.xlane.xlu1 %614 }
 0x735   :  { %v616_v18 = vmul.f32 0.03125, %v615_v16 }
 0x737   :  { %v617_v5 = vsub.f32 %v612_v14, %v616_v18 }
 0x739   :  { %v618_v11 = vmul.f32 %v617_v5, %v617_v5 }
 0x73b   :  { %v619_v17 = vsel %vm43_vm0, %v618_v11, 0.0 }
 0x73c   :  { %620 = vadd.xlane.f32.xlu0 %v619_v17 }
 0x7c9   :  { %v621_v19 = vpop.xlane.xlu0 %620 }
 0x7ca   :  { %v622_v20 = vmul.f32 0.03125, %v621_v19 }
 0x7cc   :  { %v623_v21 = vadd.f32 1e-05, %v622_v20 }
 0x7ce   :  { %1013 = vrsqrt.f32 %v623_v21 }
 0x7d8   :  { %v1014_v22 = vpop.eup %1013 }
 0x7d9   :  { %v625_v23 = vmul.f32 %v1014_v22, %v617_v5 }
 0x7db   :  { %v626_v8 = vmul.f32 %v1309_v60, %v625_v23 }
 0x7dd   :  { %v627_v24 = vadd.f32 %v717_v1, %v626_v8 }
 0x7df   :  { %916 = vmatmul.mubr.msk.f32.vlgmr.msra.gmra.mrb[4].mxu1 %vm43_vm0, %v627_v24 }
 0x8b2   :  { %v697_v25 = vpop.f32.mrb[4].mxu1 }
 0x8b3   :  { %v698_v28 = vadd.f32 %v718_v46, %v697_v25  ;;  %v917_v29 = vpop.f32.mrb[5].mxu1 }
 0x8b5   :  { %v703_v30 = vmul.f32 %v724_v26, %v698_v28 }
 0x8b7   :  { %725 = vst.msk [vmem:[%s1371_s12 + $0x8] sm:$0xff] %vm414_vm6, %v703_v30 }

// kernel: fastspeech2_forward.14
= control target key start
LH: loop header
LB: loop body
LE: loop exit
PB: predicated region body
PF: predicated region fallthrough
CT: control target
= control target key end

     0   :  { %vm53_vm0 = vcmask 261120   ;;  %v3620_v0 = vmov 0.0|0.0   ;;  %vm3621_vm1 = vmmov 0   ;;  %v3622_v4 = vmov 0.0   ;;  %s3623_s29 = smov 80   ;;  %s3624_s30 = smov 96   ;;  %s4660_s4 = inlined_call_operand.vmem [shape: f32[32,96], index: 4, kind: input, shape index: {}]   ;;  %s4661_s0 = inlined_call_operand.vmem [shape: f32[2,24,32], index: 0, kind: input, shape index: {}]   ;;  %s4662_s1 = inlined_call_operand.vmem [shape: f32[24,32], index: 1, kind: input, shape index: {}]   ;;  %s4663_s5 = inlined_call_operand.vmem [shape: f32[1,96], index: 5, kind: input, shape index: {}]   ;;  %s4664_s2 = inlined_call_operand.vmem [shape: f32[2,1,24], index: 2, kind: input, shape index: {}]   ;;  %s4665_s6 = inlined_call_operand.vmem [shape: f32[32,32], index: 6, kind: input, shape index: {}]   ;;  %s4666_s7 = inlined_call_operand.vmem [shape: f32[1,32], index: 7, kind: input, shape index: {}]   ;;  %s4667_s3 = inlined_call_operand.vmem [shape: f32[2,24,1], index: 3, kind: input, shape index: {}]   ;;  %s4668_s10 = inlined_call_operand.vmem [shape: f32[288,64], index: 10, kind: input, shape index: {}]   ;;  %s4669_s8 = inlined_call_operand.vmem [shape: f32[1,32], index: 8, kind: input, shape index: {}]   ;;  %s4670_s9 = inlined_call_operand.vmem [shape: f32[1,32], index: 9, kind: input, shape index: {}]   ;;  %s4671_s12 = inlined_call_operand.vmem [shape: f32[64,32], index: 12, kind: input, shape index: {}]   ;;  %s4672_s11 = inlined_call_operand.vmem [shape: f32[1,64], index: 11, kind: input, shape index: {}]   ;;  %s4673_s13 = inlined_call_operand.vmem [shape: f32[1,32], index: 13, kind: input, shape index: {}]   ;;  %s4674_s14 = inlined_call_operand.vmem [shape: f32[1,32], index: 14, kind: input, shape index: {}]   ;;  %s4675_s15 = inlined_call_operand.vmem [shape: f32[1,32], index: 15, kind: input, shape index: {}]   ;;  %s4676_s16 = inlined_call_operand.vmem [shape: f32[2,24,32], index: 16, kind: output, shape index: {}]  }
   0x1   :  { %4680 = sst [smem:[#allocation4_spill]] %s4660_s4  ;;  %3336 = vmatprep.subr.bf16.mxu0 %v3620_v0  ;;  %3054 = vmatprep.mubr.msk.f32.mxu0 %vm3621_vm1, %v3622_v4  ;;  %54 = vst.msk [vmem:[#allocation2] sm:$0xff] %vm53_vm0, %v3622_v4  ;;  %55 = vst.msk [vmem:[#allocation2 + $0x8] sm:$0xff] %vm53_vm0, %v3622_v4  ;;  %v114_v8 = vld [vmem:[%s4662_s1] sm:$0xff]  ;;  %v115_v11 = vld [vmem:[%s4662_s1 + $0x8] sm:$0xff]  ;;  %s3625_s4 = smov 112   ;;  %v330_v42 = vlaneseq }
   0x2   :  { %s4681_s23 = sld [smem:[#allocation4_spill]]  ;;  %56 = vst.msk [vmem:[#allocation2 + $0x10] sm:$0xff] %vm53_vm0, %v3622_v4  ;;  %57 = vst.msk [vmem:[#allocation2 + $0x18] sm:$0xff] %vm53_vm0, %v3622_v4  ;;  %3342 = vmatprep.subr.bf16.mxu1 %v3620_v0  ;;  %3069 = vmatprep.mubr.msk.f32.mxu1 %vm3621_vm1, %v3622_v4  ;;  %v117_v9 = vld [vmem:[%s4661_s0] sm:$0xff]  ;;  %v118_v12 = vld [vmem:[%s4661_s0 + $0x8] sm:$0xff]  ;;  %vm233_vm2 = vcmask 130048  }
   0x3   :  { %v3753_v10 = vadd.f32 %v117_v9, %v114_v8  ;;  %v3765_v13 = vadd.f32 %v118_v12, %v115_v11  ;;  %v116_v14 = vld [vmem:[%s4662_s1 + $0x10] sm:$0xff]  ;;  %v2761_v19 = vld [vmem:[%s4663_s5] ss:$0 sm:$0xff]  ;;  %vm3806_vm3 = vmpackc.low %vm233_vm2, %vm233_vm2  ;;  %v3842_v45 = vshrl.u32 %v330_v42, 7  ;;  %vm338_vm4 = vcmask 195584   ;;  %s3626_s19 = smov 64  }
   0x4   :  { %v119_v15 = vld [vmem:[%s4661_s0 + $0x10] sm:$0xff]  ;;  %v126_v43 = vld [vmem:[%s4664_s2] sm:$0x1]  ;;  %s4678_s20 = smov 48   ;;  %s3629_s21 = smov 32   ;;  %vm1005_vm5 = vcmask 523520  }
   0x5   :  { %v3777_v16 = vadd.f32 %v119_v15, %v116_v14  ;;  %v2760_v44 = vadd.f32 -1.0, %v126_v43  ;;  %v332_v47 = vsub.s32 0, %v3842_v45  ;;  %vm1024_vm6 = vcmask 785920  }
   0x6   :  { %vm1043_vm7 = vcmask 1048320   ;;  %vm1306_vm8 = vcmask 523264  }
   0x7   :  { %v128_v46 = vmul.f32 1e+09, %v2760_v44 }
   0x8   :  { %v58_v1 = vld [vmem:[%s4681_s23] sm:$0xff]  ;;  %v59_v2 = vld [vmem:[%s4681_s23 + $0x8] sm:$0xff]  ;;  %v60_v3 = vld [vmem:[%s4681_s23 + $0x10] sm:$0xff] }
   0x9   :  { %v3735_v5 = vpack.c.bf16 %v59_v2, %v58_v1  ;;  %v61_v6 = vld [vmem:[%s4681_s23 + $0x18] sm:$0xff]  ;;  %v333_v48 = vrot.slane %v128_v46, %v332_v47 }
   0xa   :  { %v3744_v7 = vpack.c.bf16 %v61_v6, %v60_v3 }
   0xb   :  { %3338 = vmatpush3.bf16.msra.mxu0 %v3735_v5 }
   0xc   :  { %3339 = vmatprep.subr.bf16.mxu0 %v3620_v0 }
   0xf   :  { %3341 = vmatpush3.bf16.msra.mxu0 %v3744_v7 }
  0x10   :  { %3346 = vmatprep.subr.bf16.mxu0 %v3620_v0 }
  0x12   :  { %3055 = vmatmul.mubr.msk.f32.vlgmr.msra.gmra.mrb[0].mxu0 %vm53_vm0, %v3753_v10 }
  0x13   :  { %3057 = vmatprep.mubr.msk.f32.mxu0 %vm3621_vm1, %v3622_v4 }
  0x16   :  { %3058 = vmatmul.mubr.msk.f32.gmra.mrb[2].mxu0 %vm53_vm0, %v3765_v13 }
  0x17   :  { %3060 = vmatprep.mubr.msk.f32.mxu0 %vm3621_vm1, %v3622_v4 }
  0x1a   :  { %3061 = vmatmul.mubr.msk.f32.gmra.mrb[4].mxu0 %vm53_vm0, %v3777_v16 }
  0x1b   :  { %3084 = vmatprep.mubr.msk.f32.mxu0 %vm3621_vm1, %v3622_v4 }
  0xe5   :  { %v210_v17 = vpop.f32.mrb[0].mxu0 }
  0xe6   :  { %v3056_v18 = vpop.f32.mrb[1].mxu0  ;;  %v211_v21 = vadd.f32 %v2761_v19, %v210_v17 }
  0xe9   :  { %v215_v20 = vpop.f32.mrb[2].mxu0 }
  0xea   :  { %v216_v22 = vadd.f32 %v2761_v19, %v215_v20  ;;  %v3059_v23 = vpop.f32.mrb[3].mxu0 }
  0xec   :  { %v3788_v24 = vpack.i.bf16 %v216_v22, %v211_v21 }
  0xed   :  { %v220_v25 = vpop.f32.mrb[4].mxu0 }
  0xee   :  { %3504 = vrot.lane.b32.xlu1 %v3788_v24, %s3623_s29  ;;  %3499 = vrot.lane.b32.xlu0 %v3788_v24, %s3624_s30  ;;  %v3794_v26 = vadd.f32 %v2761_v19, %v220_v25  ;;  %v3062_v27 = vpop.f32.mrb[5].mxu0 }
  0xf2   :  { %482 = vrot.lane.b32.xlu1 %v3794_v26, %s3623_s29  ;;  %231 = vrot.lane.b32.xlu0 %v3794_v26, %s3624_s30 }
  0xf6   :  { %474 = vrot.lane.b32.xlu1 %v216_v22, %s3625_s4  ;;  %472 = vrot.lane.b32.xlu0 %v211_v21, %s3625_s4 }
  0xfa   :  { %476 = vrot.lane.b32.xlu0 %v3794_v26, %s3625_s4 }
 0x160   :  { %v3500_v28 = vpop.permute.xlu0 %3499  ;;  %v3505_v33 = vpop.permute.xlu1 %3504 }
 0x161   :  { %v3502_v29 = vunpack.i.h.bf16 %v3500_v28  ;;  %v3501_v30 = vunpack.i.l.bf16 %v3500_v28  ;;  %v3507_v34 = vunpack.i.h.bf16 %v3505_v33  ;;  %v3506_v35 = vunpack.i.l.bf16 %v3505_v33 }
 0x163   :  { %v3343_v32 = vpack.c.bf16 %v3502_v29, %v3501_v30  ;;  %v3350_v37 = vpack.c.bf16 %v3507_v34, %v3506_v35 }
 0x164   :  { %v232_v36 = vpop.permute.xlu0 %231  ;;  %v483_v38 = vpop.permute.xlu1 %482 }
 0x165   :  { %3345 = vmatpush3.bf16.xpose.msk.msra.mxu1 %vm3806_vm3, %v3343_v32 }
 0x166   :  { %3067 = vmatprep.subr.mxu1 %v3622_v4 }
 0x168   :  { %v473_v39 = vpop.permute.xlu0 %472  ;;  %v475_v40 = vpop.permute.xlu1 %474 }
 0x16c   :  { %v477_v41 = vpop.permute.xlu0 %476 }
 0x16d   :  { %3068 = vmatpush3.xpose.msk.msra.mxu1 %vm233_vm2, %v232_v36 }
 0x16e   :  { %3349 = vmatprep.subr.bf16.mxu1 %v3620_v0 }
 0x170   :  { %3070 = vmatmul.mubr.msk.f32.vlgmr.msra.gmra.mrb[0].mxu1 %vm233_vm2, %v211_v21 }
 0x171   :  { %3352 = vmatpush3.bf16.xpose.msk.msra.mxu1 %vm3806_vm3, %v3350_v37  ;;  %3072 = vmatprep.mubr.msk.f32.mxu1 %vm3621_vm1, %v3622_v4 }
 0x172   :  { %3097 = vmatprep.subr.mxu1 %v3622_v4 }
 0x174   :  { %3073 = vmatmul.mubr.msk.f32.gmra.mrb[2].mxu1 %vm233_vm2, %v216_v22 }
 0x175   :  { %3075 = vmatprep.mubr.msk.f32.mxu1 %vm3621_vm1, %v3622_v4 }
 0x178   :  { %3076 = vmatmul.mubr.msk.f32.gmra.mrb[4].mxu1 %vm233_vm2, %v3794_v26 }
 0x179   :  { %3098 = vmatpush3.xpose.msk.msra.mxu1 %vm233_vm2, %v483_v38  ;;  %3099 = vmatprep.mubr.msk.f32.mxu1 %vm3621_vm1, %v3622_v4 }
 0x17a   :  { %3356 = vmatprep.subr.bf16.mxu1 %v3620_v0 }
 0x17c   :  { %3100 = vmatmul.mubr.msk.f32.vlgmr.msra.gmra.mrb[6].mxu1 %vm233_vm2, %v473_v39 }
 0x17d   :  { %3102 = vmatprep.mubr.msk.f32.mxu1 %vm3621_vm1, %v3622_v4 }
 0x180   :  { %3103 = vmatmul.mubr.msk.f32.gmra.mrb[8].mxu1 %vm233_vm2, %v475_v40 }
 0x181   :  { %3105 = vmatprep.mubr.msk.f32.mxu1 %vm3621_vm1, %v3622_v4 }
 0x184   :  { %3106 = vmatmul.mubr.msk.f32.gmra.mrb[10].mxu1 %vm233_vm2, %v477_v41 }
 0x185   :  { %3127 = vmatprep.mubr.msk.f32.mxu1 %vm3621_vm1, %v3622_v4 }
 0x243   :  { %v312_v49 = vpop.f32.mrb[0].mxu1 }
 0x244   :  { %v326_v50 = vmul.f32 0.25, %v312_v49  ;;  %v3071_v51 = vpop.f32.mrb[1].mxu1 }
 0x246   :  { %v335_v52 = vadd.f32 %v333_v48, %v326_v50 }
 0x247   :  { %v317_v53 = vpop.f32.mrb[2].mxu1 }
 0x248   :  { %v327_v54 = vmul.f32 0.25, %v317_v53  ;;  %v3074_v55 = vpop.f32.mrb[3].mxu1  ;;  %v339_v56 = vsel %vm338_vm4, %v335_v52, -inf }
 0x249   :  { %340 = vmax.xlane.f32.xlu1 %v339_v56 }
 0x24a   :  { %v336_v57 = vadd.f32 %v333_v48, %v327_v54 }
 0x24b   :  { %v322_v58 = vpop.f32.mrb[4].mxu1 }
 0x24c   :  { %v328_v59 = vmul.f32 0.25, %v322_v58  ;;  %v3077_v60 = vpop.f32.mrb[5].mxu1  ;;  %v342_v61 = vsel %vm338_vm4, %v336_v57, -inf }
 0x24d   :  { %343 = vmax.xlane.f32.xlu0 %v342_v61 }
 0x24e   :  { %v337_v62 = vadd.f32 %v333_v48, %v328_v59 }
 0x24f   :  { %v562_v63 = vpop.f32.mrb[6].mxu1 }
 0x250   :  { %v576_v1 = vmul.f32 0.25, %v562_v63  ;;  %v3101_v2 = vpop.f32.mrb[7].mxu1  ;;  %v345_v3 = vsel %vm338_vm4, %v337_v62, -inf }
 0x251   :  { %346 = vmax.xlane.f32.xlu0 %v345_v3 }
 0x252   :  { %v579_v6 = vadd.f32 %v576_v1, %v333_v48 }
 0x253   :  { %v567_v8 = vpop.f32.mrb[8].mxu1 }
 0x254   :  { %v577_v9 = vmul.f32 0.25, %v567_v8  ;;  %v3104_v11 = vpop.f32.mrb[9].mxu1  ;;  %v582_v12 = vsel %vm338_vm4, %v579_v6, -inf }
 0x255   :  { %583 = vmax.xlane.f32.xlu1 %v582_v12 }
 0x256   :  { %v580_v14 = vadd.f32 %v577_v9, %v333_v48 }
 0x257   :  { %v572_v15 = vpop.f32.mrb[10].mxu1 }
 0x258   :  { %v578_v17 = vmul.f32 0.25, %v572_v15  ;;  %v3107_v18 = vpop.f32.mrb[11].mxu1  ;;  %v585_v19 = vsel %vm338_vm4, %v580_v14, -inf }
 0x259   :  { %586 = vmax.xlane.f32.xlu0 %v585_v19 }
 0x25a   :  { %v581_v20 = vadd.f32 %v578_v17, %v333_v48 }
 0x25c   :  { %v588_v21 = vsel %vm338_vm4, %v581_v20, -inf }
 0x25d   :  { %589 = vmax.xlane.f32.xlu1 %v588_v21  ;;  %v471_v21 = vld [vmem:[%s4665_s6 + $0x8] sm:$0xff] }
 0x26e   :  { %3509 = vrot.lane.b32.xlu1 %v3788_v24, %s3626_s19 }
 0x2d6   :  { %v341_v22 = vpop.xlane.xlu1 %340 }
 0x2d7   :  { %v348_v23 = vsub.f32 %v335_v52, %v341_v22 }
 0x2d9   :  { %v351_v25 = vmul.f32 1.442695, %v348_v23 }
 0x2da   :  { %v344_v27 = vpop.xlane.xlu0 %343 }
 0x2db   :  { %3540 = vpow2.f32 %v351_v25  ;;  %v349_v28 = vsub.f32 %v336_v57, %v344_v27 }
 0x2dd   :  { %v353_v29 = vmul.f32 1.442695, %v349_v28 }
 0x2de   :  { %v347_v30 = vpop.xlane.xlu0 %346 }
 0x2df   :  { %3542 = vpow2.f32 %v353_v29  ;;  %v350_v32 = vsub.f32 %v337_v62, %v347_v30 }
 0x2e1   :  { %v355_v33 = vmul.f32 1.442695, %v350_v32  ;;  %v713_v32 = vld [vmem:[%s4665_s6 + $0x10] sm:$0xff] }
 0x2e2   :  { %v584_v34 = vpop.xlane.xlu1 %583 }
 0x2e3   :  { %3544 = vpow2.f32 %v355_v33  ;;  %v591_v35 = vsub.f32 %v579_v6, %v584_v34  ;;  %v714_v33 = vld [vmem:[%s4665_s6 + $0x18] sm:$0xff] }
 0x2e4   :  { %v3357_v34 = vpack.c.bf16 %v714_v33, %v713_v32  ;;  %v101_v32 = vld [vmem:[%s4668_s10 + $0x108] sm:$0xff] }
 0x2e5   :  { %v3541_v36 = vpop.eup %3540  ;;  %v594_v37 = vmul.f32 1.442695, %v591_v35 }
 0x2e6   :  { %v587_v38 = vpop.xlane.xlu0 %586  ;;  %v357_v39 = vsel %vm338_vm4, %v3541_v36, 0.0  ;;  %3358 = vmatpush3.bf16.msra.mxu1 %v3357_v34 }
 0x2e7   :  { %3546 = vpow2.f32 %v594_v37  ;;  %v592_v40 = vsub.f32 %v580_v14, %v587_v38  ;;  %358 = vadd.xlane.f32.xlu0 %v357_v39 }
 0x2e9   :  { %v3543_v41 = vpop.eup %3542  ;;  %v596_v42 = vmul.f32 1.442695, %v592_v40 }
 0x2ea   :  { %v590_v43 = vpop.xlane.xlu1 %589  ;;  %v360_v44 = vsel %vm338_vm4, %v3543_v41, 0.0 }
 0x2eb   :  { %3548 = vpow2.f32 %v596_v42  ;;  %v593_v46 = vsub.f32 %v581_v20, %v590_v43  ;;  %361 = vadd.xlane.f32.xlu1 %v360_v44  ;;  %v470_v20 = vld [vmem:[%s4665_s6] sm:$0xff] }
 0x2ec   :  { %v3360_v23 = vpack.c.bf16 %v471_v21, %v470_v20 }
 0x2ed   :  { %v3545_v48 = vpop.eup %3544  ;;  %v598_v49 = vmul.f32 1.442695, %v593_v46 }
 0x2ee   :  { %v3510_v50 = vpop.permute.xlu1 %3509  ;;  %v363_v51 = vsel %vm338_vm4, %v3545_v48, 0.0 }
 0x2ef   :  { %3550 = vpow2.f32 %v598_v49  ;;  %v3512_v52 = vunpack.i.h.bf16 %v3510_v50  ;;  %v3511_v53 = vunpack.i.l.bf16 %v3510_v50  ;;  %364 = vadd.xlane.f32.xlu0 %v363_v51 }
 0x2f1   :  { %v3547_v54 = vpop.eup %3546  ;;  %v3347_v55 = vpack.c.bf16 %v3512_v52, %v3511_v53 }
 0x2f2   :  { %v600_v56 = vsel %vm338_vm4, %v3547_v54, 0.0 }
 0x2f3   :  { %3348 = vmatpush3.bf16.msra.mxu0 %v3347_v55  ;;  %601 = vadd.xlane.f32.xlu1 %v600_v56  ;;  %v2789_v55 = vld [vmem:[%s4666_s7] ss:$0 sm:$0xff] }
 0x2f4   :  { %3082 = vmatprep.subr.mxu0 %v3622_v4 }
 0x2f5   :  { %v3549_v57 = vpop.eup %3548 }
 0x2f6   :  { %v603_v58 = vsel %vm338_vm4, %v3549_v57, 0.0 }
 0x2f7   :  { %604 = vadd.xlane.f32.xlu0 %v603_v58 }
 0x2f9   :  { %v3551_v59 = vpop.eup %3550 }
 0x2fa   :  { %v606_v60 = vsel %vm338_vm4, %v3551_v59, 0.0 }
 0x2fb   :  { %607 = vadd.xlane.f32.xlu0 %v606_v60 }
 0x304   :  { %3514 = vrot.lane.b32.xlu1 %v3788_v24, %s4678_s20 }
 0x308   :  { %619 = vrot.lane.b32.xlu1 %v3794_v26, %s4678_s20 }
 0x311   :  { %376 = vrot.lane.b32.xlu0 %v3794_v26, %s3626_s19 }
 0x374   :  { %v359_v61 = vpop.xlane.xlu0 %358 }
 0x375   :  { %3552 = vrcp.f32 %v359_v61 }
 0x378   :  { %v362_v62 = vpop.xlane.xlu1 %361 }
 0x379   :  { %3554 = vrcp.f32 %v362_v62 }
 0x37c   :  { %v365_v63 = vpop.xlane.xlu0 %364 }
 0x37d   :  { %3556 = vrcp.f32 %v365_v63 }
 0x37f   :  { %v3553_v8 = vpop.eup %3552 }
 0x380   :  { %v602_v1 = vpop.xlane.xlu1 %601  ;;  %v367_v24 = vmul.f32 %v3553_v8, %v3541_v36 }
 0x381   :  { %3558 = vrcp.f32 %v602_v1 }
 0x383   :  { %v3555_v14 = vpop.eup %3554 }
 0x384   :  { %v605_v2 = vpop.xlane.xlu0 %604  ;;  %v3515_v3 = vpop.permute.xlu1 %3514  ;;  %v369_v26 = vmul.f32 %v3555_v14, %v3543_v41 }
 0x385   :  { %v3517_v9 = vunpack.i.h.bf16 %v3515_v3  ;;  %v3516_v11 = vunpack.i.l.bf16 %v3515_v3  ;;  %3560 = vrcp.f32 %v605_v2 }
 0x387   :  { %v3354_v15 = vpack.c.bf16 %v3517_v9, %v3516_v11  ;;  %v3557_v17 = vpop.eup %3556 }
 0x388   :  { %v608_v6 = vpop.xlane.xlu0 %607  ;;  %v620_v18 = vpop.permute.xlu1 %619  ;;  %v371_v19 = vmul.f32 %v3557_v17, %v3545_v48 }
 0x389   :  { %3562 = vrcp.f32 %v608_v6 }
 0x38b   :  { %v3559_v22 = vpop.eup %3558 }
 0x38c   :  { %v377_v12 = vpop.permute.xlu0 %376  ;;  %v610_v25 = vmul.f32 %v3559_v22, %v3547_v54 }
 0x38d   :  { %3083 = vmatpush3.msra.mxu0 %v377_v12 }
 0x38e   :  { %3085 = vmatmul.mubr.msk.f32.vlgmr.msra.gmra.mrb[6].mxu0 %vm338_vm4, %v367_v24  ;;  %3353 = vmatprep.subr.bf16.mxu0 %v3620_v0 }
 0x38f   :  { %3355 = vmatpush3.bf16.msra.mxu0 %v3354_v15  ;;  %3087 = vmatprep.mubr.msk.f32.mxu0 %vm3621_vm1, %v3622_v4  ;;  %v3561_v27 = vpop.eup %3560  ;;  %v3628_v15 = vmov 0  }
 0x390   :  { %3112 = vmatprep.subr.mxu0 %v3622_v4  ;;  %v612_v28 = vmul.f32 %v3561_v27, %v3549_v57  ;;  %3519 = vset.pattern.permute.xlu1 %v3628_v15 }
 0x391   :  { %3518 = vset.pattern.permute.xlu0 %v3628_v15 }
 0x392   :  { %3088 = vmatmul.mubr.msk.f32.gmra.mrb[8].mxu0 %vm338_vm4, %v369_v26 }
 0x393   :  { %3113 = vmatpush3.msra.mxu0 %v620_v18  ;;  %3090 = vmatprep.mubr.msk.f32.mxu0 %vm3621_vm1, %v3622_v4  ;;  %v3563_v29 = vpop.eup %3562 }
 0x394   :  { %3359 = vmatprep.subr.bf16.mxu0 %v3620_v0  ;;  %v614_v30 = vmul.f32 %v3563_v29, %v3551_v59 }
 0x396   :  { %3091 = vmatmul.mubr.msk.f32.gmra.mrb[10].mxu0 %vm338_vm4, %v371_v19 }
 0x397   :  { %3114 = vmatprep.mubr.msk.f32.mxu0 %vm3621_vm1, %v3622_v4 }
 0x39a   :  { %3115 = vmatmul.mubr.msk.f32.vlgmr.msra.gmra.mrb[12].mxu0 %vm338_vm4, %v610_v25  ;;  %v123_v25 = vld [vmem:[%s4667_s3] sm:$0xff] }
 0x39b   :  { %3117 = vmatprep.mubr.msk.f32.mxu0 %vm3621_vm1, %v3622_v4  ;;  %3361 = vmatpush3.bf16.msra.mxu0 %v3360_v23 }
 0x39c   :  { %3394 = vmatprep.subr.bf16.mxu0 %v3620_v0 }
 0x39e   :  { %3118 = vmatmul.mubr.msk.f32.gmra.mrb[14].mxu0 %vm338_vm4, %v612_v28 }
 0x39f   :  { %3120 = vmatprep.mubr.msk.f32.mxu0 %vm3621_vm1, %v3622_v4 }
 0x3a2   :  { %3121 = vmatmul.mubr.msk.f32.gmra.mrb[16].mxu0 %vm338_vm4, %v614_v30  ;;  %v100_v30 = vld [vmem:[%s4668_s10 + $0x100] sm:$0xff] }
 0x3a3   :  { %3140 = vmatprep.mubr.msk.f32.mxu0 %vm3621_vm1, %v3622_v4  ;;  %v3945_v34 = vpack.c.bf16 %v101_v32, %v100_v30  ;;  %v92_v30 = vld [vmem:[%s4668_s10 + $0xc0] sm:$0xff]  ;;  %v93_v32 = vld [vmem:[%s4668_s10 + $0xc8] sm:$0xff] }
 0x461   :  { %v456_v35 = vpop.f32.mrb[6].mxu0 }
 0x462   :  { %v3086_v36 = vpop.f32.mrb[7].mxu0  ;;  %3141 = vmatmul.mubr.msk.f32.vlgmr.msra.gmra.mrb[18].mxu0 %vm233_vm2, %v456_v35  ;;  %v102_v35 = vld [vmem:[%s4668_s10 + $0x110] sm:$0xff] }
 0x463   :  { %3143 = vmatprep.mubr.msk.f32.mxu0 %vm3621_vm1, %v3622_v4  ;;  %3396 = vmatpush3.bf16.msra.mxu0 %v3945_v34  ;;  %v103_v36 = vld [vmem:[%s4668_s10 + $0x118] sm:$0xff] }
 0x464   :  { %3397 = vmatprep.subr.bf16.mxu0 %v3620_v0 }
 0x465   :  { %v461_v37 = vpop.f32.mrb[8].mxu0 }
 0x466   :  { %v3089_v38 = vpop.f32.mrb[9].mxu0  ;;  %3144 = vmatmul.mubr.msk.f32.gmra.mrb[20].mxu0 %vm233_vm2, %v461_v37 }
 0x467   :  { %3146 = vmatprep.mubr.msk.f32.mxu0 %vm3621_vm1, %v3622_v4  ;;  %v3956_v38 = vpack.c.bf16 %v103_v36, %v102_v35  ;;  %v77_v35 = vld [vmem:[%s4668_s10 + $0x48] sm:$0xff]  ;;  %v4078_v36 = vpack.c.bf16 %v93_v32, %v92_v30 }
 0x469   :  { %v466_v39 = vpop.f32.mrb[10].mxu0  ;;  %3399 = vmatpush3.bf16.msra.mxu0 %v3956_v38 }
 0x46a   :  { %v3092_v40 = vpop.f32.mrb[11].mxu0  ;;  %3147 = vmatmul.mubr.msk.f32.gmra.mrb[22].mxu0 %vm233_vm2, %v466_v39  ;;  %3400 = vmatprep.subr.bf16.mxu0 %v3620_v0  ;;  %v125_v39 = vld [vmem:[%s4667_s3 + $0x10] sm:$0xff] }
 0x46b   :  { %3157 = vmatprep.mubr.msk.f32.mxu0 %vm3621_vm1, %v3622_v4  ;;  %v84_v40 = vld [vmem:[%s4668_s10 + $0x80] sm:$0xff] }
 0x46d   :  { %v699_v41 = vpop.f32.mrb[12].mxu0 }
 0x46e   :  { %v3116_v42 = vpop.f32.mrb[13].mxu0  ;;  %3128 = vmatmul.mubr.msk.f32.vlgmr.msra.gmra.mrb[12].mxu1 %vm233_vm2, %v699_v41  ;;  %v85_v41 = vld [vmem:[%s4668_s10 + $0x88] sm:$0xff] }
 0x46f   :  { %3130 = vmatprep.mubr.msk.f32.mxu1 %vm3621_vm1, %v3622_v4  ;;  %v68_v42 = vld [vmem:[%s4668_s10] sm:$0xff] }
 0x471   :  { %v704_v43 = vpop.f32.mrb[14].mxu0 }
 0x472   :  { %v3119_v44 = vpop.f32.mrb[15].mxu0  ;;  %3131 = vmatmul.mubr.msk.f32.gmra.mrb[14].mxu1 %vm233_vm2, %v704_v43  ;;  %v3972_v43 = vpack.c.bf16 %v85_v41, %v84_v40 }
 0x473   :  { %3133 = vmatprep.mubr.msk.f32.mxu1 %vm3621_vm1, %v3622_v4  ;;  %v69_v44 = vld [vmem:[%s4668_s10 + $0x8] sm:$0xff] }
 0x474   :  { %3363 = vmatprep.subr.bf16.mxu1 %v3972_v43 }
 0x475   :  { %v709_v46 = vpop.f32.mrb[16].mxu0 }
 0x476   :  { %v3122_v48 = vpop.f32.mrb[17].mxu0  ;;  %3134 = vmatmul.mubr.msk.f32.gmra.mrb[16].mxu1 %vm233_vm2, %v709_v46  ;;  %v3977_v46 = vpack.c.bf16 %v69_v44, %v68_v42  ;;  %v94_v42 = vld [vmem:[%s4668_s10 + $0xd0] sm:$0xff]  ;;  %v95_v44 = vld [vmem:[%s4668_s10 + $0xd8] sm:$0xff] }
 0x478   :  { %3365 = vmatpush3.bf16.msra.mxu1 %v3977_v46 }
 0x535   :  { %v879_v49 = vpop.f32.mrb[18].mxu0 }
 0x536   :  { %v3142_v50 = vpop.f32.mrb[19].mxu0 }
 0x539   :  { %v884_v51 = vpop.f32.mrb[20].mxu0 }
 0x53a   :  { %v3145_v52 = vpop.f32.mrb[21].mxu0 }
 0x53d   :  { %v889_v53 = vpop.f32.mrb[22].mxu0 }
 0x53e   :  { %v3148_v54 = vpop.f32.mrb[23].mxu0 }
 0x541   :  { %v790_v56 = vpop.f32.mrb[12].mxu1 }
 0x542   :  { %v880_v57 = vadd.f32 %v879_v49, %v790_v56  ;;  %v3129_v58 = vpop.f32.mrb[13].mxu1 }
 0x544   :  { %v899_v59 = vadd.f32 %v2789_v55, %v880_v57  ;;  %v3989_v57 = vld [vmem:[%s4670_s9] ss:$0 sm:$0xff] }
 0x545   :  { %v795_v60 = vpop.f32.mrb[14].mxu1 }
 0x546   :  { %v885_v61 = vadd.f32 %v884_v51, %v795_v60  ;;  %v3132_v62 = vpop.f32.mrb[15].mxu1  ;;  %v902_v63 = vadd.f32 %v899_v59, %v3753_v10 }
 0x547   :  { %v87_v62 = vld [vmem:[%s4668_s10 + $0x98] sm:$0xff] }
 0x548   :  { %v900_v1 = vadd.f32 %v2789_v55, %v885_v61  ;;  %v905_v2 = vsel %vm53_vm0, %v902_v63, 0.0  ;;  %v86_v61 = vld [vmem:[%s4668_s10 + $0x90] sm:$0xff] }
 0x549   :  { %v800_v3 = vpop.f32.mrb[16].mxu1  ;;  %906 = vadd.xlane.f32.xlu1 %v905_v2 }
 0x54a   :  { %v890_v6 = vadd.f32 %v889_v53, %v800_v3  ;;  %v3135_v8 = vpop.f32.mrb[17].mxu1  ;;  %v903_v9 = vadd.f32 %v900_v1, %v3765_v13  ;;  %v4004_v3 = vpack.c.bf16 %v87_v62, %v86_v61 }
 0x54c   :  { %v901_v11 = vadd.f32 %v2789_v55, %v890_v6  ;;  %v908_v24 = vsel %vm53_vm0, %v903_v9, 0.0  ;;  %v3984_v55 = vld [vmem:[%s4669_s8] ss:$0 sm:$0xff]  ;;  %v71_v6 = vld [vmem:[%s4668_s10 + $0x18] sm:$0xff]  ;;  %3367 = vmatprep.subr.bf16.mxu1 %v4004_v3 }
 0x54d   :  { %909 = vadd.xlane.f32.xlu0 %v908_v24  ;;  %v88_v24 = vld [vmem:[%s4668_s10 + $0xa0] sm:$0xff] }
 0x54e   :  { %v904_v12 = vadd.f32 %v901_v11, %v3777_v16  ;;  %v124_v16 = vld [vmem:[%s4667_s3 + $0x8] sm:$0xff] }
 0x550   :  { %v911_v14 = vsel %vm53_vm0, %v904_v12, 0.0 }
 0x551   :  { %912 = vadd.xlane.f32.xlu0 %v911_v14  ;;  %v72_v14 = vld [vmem:[%s4668_s10 + $0x20] sm:$0xff] }
 0x5d6   :  { %v907_v10 = vpop.xlane.xlu1 %906 }
 0x5d7   :  { %v915_v26 = vmul.f32 0.03125, %v907_v10 }
 0x5d9   :  { %v918_v17 = vsub.f32 %v902_v63, %v915_v26  ;;  %v70_v63 = vld [vmem:[%s4668_s10 + $0x10] sm:$0xff]  ;;  %v73_v26 = vld [vmem:[%s4668_s10 + $0x28] sm:$0xff] }
 0x5da   :  { %v910_v18 = vpop.xlane.xlu0 %909  ;;  %v4009_v8 = vpack.c.bf16 %v71_v6, %v70_v63 }
 0x5db   :  { %v916_v19 = vmul.f32 0.03125, %v910_v18  ;;  %v921_v20 = vmul.f32 %v918_v17, %v918_v17  ;;  %v4036_v18 = vpack.c.bf16 %v73_v26, %v72_v14 }
 0x5dc   :  { %3369 = vmatpush3.bf16.msra.mxu1 %v4009_v8 }
 0x5dd   :  { %v919_v21 = vsub.f32 %v903_v9, %v916_v19  ;;  %v924_v13 = vsel %vm53_vm0, %v921_v20, 0.0  ;;  %v90_v20 = vld [vmem:[%s4668_s10 + $0xb0] sm:$0xff] }
 0x5de   :  { %925 = vadd.xlane.f32.xlu1 %v924_v13  ;;  %v913_v27 = vpop.xlane.xlu0 %912  ;;  %v74_v13 = vld [vmem:[%s4668_s10 + $0x30] sm:$0xff] }
 0x5df   :  { %v922_v22 = vmul.f32 %v919_v21, %v919_v21  ;;  %v917_v28 = vmul.f32 0.03125, %v913_v27 }
 0x5e1   :  { %v927_v23 = vsel %vm53_vm0, %v922_v22, 0.0  ;;  %v3935_v29 = vsub.f32 %v904_v12, %v917_v28  ;;  %v89_v12 = vld [vmem:[%s4668_s10 + $0xa8] sm:$0xff] }
 0x5e2   :  { %928 = vadd.xlane.f32.xlu0 %v927_v23  ;;  %v4029_v10 = vpack.c.bf16 %v89_v12, %v88_v24  ;;  %v75_v23 = vld [vmem:[%s4668_s10 + $0x38] sm:$0xff] }
 0x5e3   :  { %v923_v33 = vmul.f32 %v3935_v29, %v3935_v29  ;;  %v83_v24 = vld [vmem:[%s4668_s10 + $0x78] sm:$0xff] }
 0x5e4   :  { %3371 = vmatprep.subr.bf16.mxu1 %v4029_v10 }
 0x5e5   :  { %v930_v37 = vsel %vm53_vm0, %v923_v33, 0.0  ;;  %3373 = vmatpush3.bf16.msra.mxu1 %v4036_v18  ;;  %v76_v33 = vld [vmem:[%s4668_s10 + $0x40] sm:$0xff] }
 0x5ef   :  { %970 = vperm.xlu1 %3519, %v124_v16   ;;  %v4059_v16 = vpack.c.bf16 %v75_v23, %v74_v13 }
 0x5f8   :  { %965 = vperm.xlu0 %3518, %v123_v25  }
 0x613   :  { %931 = vadd.xlane.f32.xlu1 %v930_v37  ;;  %v4080_v37 = vpack.c.bf16 %v77_v35, %v76_v33 }
 0x624   :  { %975 = vperm.xlu1 %3519, %v125_v39  }
 0x66b   :  { %v926_v48 = vpop.xlane.xlu1 %925 }
 0x66c   :  { %v933_v49 = vmul.f32 0.03125, %v926_v48  ;;  %v4093_v48 = vpack.c.bf16 %v95_v44, %v94_v42 }
 0x66e   :  { %v936_v50 = vadd.f32 1e-05, %v933_v49  ;;  %v78_v49 = vld [vmem:[%s4668_s10 + $0x50] sm:$0xff] }
 0x66f   :  { %v929_v51 = vpop.xlane.xlu0 %928 }
 0x670   :  { %3564 = vrsqrt.f32 %v936_v50  ;;  %v934_v52 = vmul.f32 0.03125, %v929_v51  ;;  %v79_v50 = vld [vmem:[%s4668_s10 + $0x58] sm:$0xff] }
 0x672   :  { %v937_v53 = vadd.f32 1e-05, %v934_v52  ;;  %v4101_v52 = vpack.c.bf16 %v79_v50, %v78_v49 }
 0x674   :  { %3566 = vrsqrt.f32 %v937_v53  ;;  %v96_v53 = vld [vmem:[%s4668_s10 + $0xe0] sm:$0xff] }
 0x677   :  { %v3992_v60 = vpop.permute.xlu0 %965 }
 0x67a   :  { %v3565_v54 = vpop.eup %3564 }
 0x67b   :  { %v942_v56 = vmul.f32 %v3565_v54, %v918_v17  ;;  %v4034_v17 = vpop.permute.xlu1 %970  ;;  %v97_v54 = vld [vmem:[%s4668_s10 + $0xe8] sm:$0xff] }
 0x67d   :  { %v951_v58 = vmul.f32 %v3984_v55, %v942_v56  ;;  %v80_v56 = vld [vmem:[%s4668_s10 + $0x60] sm:$0xff] }
 0x67e   :  { %v3567_v59 = vpop.eup %3566 }
 0x67f   :  { %v943_v1 = vmul.f32 %v3567_v59, %v919_v21  ;;  %v960_v2 = vadd.f32 %v3989_v57, %v951_v58  ;;  %v91_v21 = vld [vmem:[%s4668_s10 + $0xb8] sm:$0xff]  ;;  %v4115_v58 = vpack.c.bf16 %v97_v54, %v96_v53  ;;  %v81_v59 = vld [vmem:[%s4668_s10 + $0x68] sm:$0xff] }
 0x680   :  { %v4054_v22 = vpack.c.bf16 %v91_v21, %v90_v20  ;;  %v4121_v61 = vpack.c.bf16 %v81_v59, %v80_v56 }
 0x681   :  { %v952_v9 = vmul.f32 %v3984_v55, %v943_v1  ;;  %v4013_v11 = vmul.f32 %v3992_v60, %v960_v2  ;;  %v98_v1 = vld [vmem:[%s4668_s10 + $0xf0] sm:$0xff]  ;;  %v99_v2 = vld [vmem:[%s4668_s10 + $0xf8] sm:$0xff] }
 0x682   :  { %3375 = vmatprep.subr.bf16.mxu1 %v4054_v22  ;;  %v4132_v6 = vpack.c.bf16 %v99_v2, %v98_v1 }
 0x683   :  { %v961_v15 = vadd.f32 %v3989_v57, %v952_v9  ;;  %981 = vst.msk [vmem:[#allocation2 + $0x4] sm:$0xff] %vm53_vm0, %v4013_v11  ;;  %3377 = vmatpush3.bf16.msra.mxu1 %v4059_v16  ;;  %v82_v9 = vld [vmem:[%s4668_s10 + $0x70] sm:$0xff] }
 0x684   :  { %3379 = vmatprep.subr.bf16.mxu1 %v4078_v36  ;;  %v4143_v12 = vpack.c.bf16 %v83_v24, %v82_v9 }
 0x685   :  { %v4039_v19 = vmul.f32 %v4034_v17, %v961_v15 }
 0x687   :  { %982 = vst.msk [vmem:[#allocation2 + $0xc] sm:$0xff] %vm53_vm0, %v4039_v19  ;;  %3381 = vmatpush3.bf16.msra.mxu1 %v4080_v37 }
 0x688   :  { %3383 = vmatprep.subr.bf16.mxu1 %v4093_v48 }
 0x68a   :  { %v990_v25 = vld [vmem:[#allocation2 + $0x1] sm:$0xff] }
 0x68b   :  { %996 = vrot.lane.b32.xlu1 %v990_v25, %s3629_s21  ;;  %v984_v27 = vld [vmem:[#allocation2] sm:$0xff]  ;;  %3385 = vmatpush3.bf16.msra.mxu1 %v4101_v52 }
 0x68c   :  { %v1047_v28 = vld [vmem:[#allocation2 + $0x4] sm:$0xff]  ;;  %987 = vst.msk [vmem:[#allocation3] sm:$0xff] %vm53_vm0, %v984_v27  ;;  %3387 = vmatprep.subr.bf16.mxu1 %v4115_v58 }
 0x68d   :  { %1050 = vst.msk [vmem:[#allocation3 + $0x8] sm:$0xff] %vm53_vm0, %v1047_v28  ;;  %v1009_v40 = vld [vmem:[#allocation2 + $0x2] sm:$0xff] }
 0x68e   :  { %v1107_v39 = vld [vmem:[#allocation2 + $0x8] sm:$0xff] }
 0x68f   :  { %1110 = vst.msk [vmem:[#allocation3 + $0x10] sm:$0xff] %vm53_vm0, %v1107_v39  ;;  %1015 = vrot.lane.b32.xlu1 %v1009_v40, %s3626_s19  ;;  %988 = vst.msk [vmem:[#allocation3 + $0x18] sm:$0xff] %vm53_vm0, %v1107_v39  ;;  %v1028_v41 = vld [vmem:[#allocation2 + $0x3] sm:$0xff]  ;;  %v1048_v51 = vld [vmem:[#allocation2 + $0xc] sm:$0xff]  ;;  %3389 = vmatpush3.bf16.msra.mxu1 %v4121_v61 }
 0x690   :  { %1051 = vst.msk [vmem:[#allocation3 + $0x20] sm:$0xff] %vm53_vm0, %v1048_v51  ;;  %v1053_v62 = vld [vmem:[#allocation2 + $0x5] sm:$0xff]  ;;  %3391 = vmatprep.subr.bf16.mxu1 %v4132_v6 }
 0x691   :  { %v1071_v14 = vld [vmem:[#allocation2 + $0x6] sm:$0xff] }
 0x692   :  { %v1089_v15 = vld [vmem:[#allocation2 + $0x7] sm:$0xff] }
 0x693   :  { %1034 = vrot.lane.b32.xlu1 %v1028_v41, %s3624_s30  ;;  %3393 = vmatpush3.bf16.msra.mxu1 %v4143_v12  ;;  %v991_v21 = vld [vmem:[#allocation2 + $0x9] sm:$0xff] }
 0x694   :  { %3412 = vmatprep.subr.bf16.mxu1 %v3620_v0  ;;  %v1010_v23 = vld [vmem:[#allocation2 + $0xa] sm:$0xff] }
 0x695   :  { %v1029_v25 = vld [vmem:[#allocation2 + $0xb] sm:$0xff] }
 0x696   :  { %v1115_v63 = vld [vmem:[#allocation3 + $0x10] sm:$0xff] }
 0x697   :  { %3158 = vmatmul.mubr.msk.f32.vlgmr.msra.gmra.mrb[24].mxu0 %vm53_vm0, %v1115_v63  ;;  %1059 = vrot.lane.b32.xlu1 %v1053_v62, %s3629_s21 }
 0x698   :  { %3160 = vmatprep.mubr.msk.f32.mxu0 %vm3621_vm1, %v3622_v4 }
 0x69b   :  { %1077 = vrot.lane.b32.xlu1 %v1071_v14, %s3626_s19 }
 0x69f   :  { %1095 = vrot.lane.b32.xlu1 %v1089_v15, %s3624_s30 }
 0x6a0   :  { %v932_v26 = vpop.xlane.xlu1 %931 }
 0x6a1   :  { %v935_v20 = vmul.f32 0.03125, %v932_v26 }
 0x6a3   :  { %v938_v13 = vadd.f32 1e-05, %v935_v20  ;;  %998 = vrot.lane.b32.xlu1 %v991_v21, %s3629_s21  ;;  %v105_v21 = vld [vmem:[%s4671_s12] sm:$0xff] }
 0x6a4   :  { %v4156_v33 = vpop.permute.xlu1 %975 }
 0x6a5   :  { %3568 = vrsqrt.f32 %v938_v13  ;;  %v106_v13 = vld [vmem:[%s4671_s12 + $0x8] sm:$0xff] }
 0x6a7   :  { %1017 = vrot.lane.b32.xlu1 %v1010_v23, %s3626_s19  ;;  %v4204_v23 = vpack.c.bf16 %v106_v13, %v105_v21 }
 0x6a9   :  { %3402 = vmatpush3.bf16.msra.mxu0 %v4204_v23 }
 0x6aa   :  { %3403 = vmatprep.subr.bf16.mxu0 %v3620_v0 }
 0x6ab   :  { %1036 = vrot.lane.b32.xlu1 %v1029_v25, %s3624_s30 }
 0x6af   :  { %v3569_v27 = vpop.eup %3568 }
 0x6b0   :  { %v944_v28 = vmul.f32 %v3569_v27, %v3935_v29 }
 0x6b2   :  { %v953_v30 = vmul.f32 %v3984_v55, %v944_v28 }
 0x6b4   :  { %v962_v32 = vadd.f32 %v3989_v57, %v953_v30 }
 0x6b6   :  { %v4159_v35 = vmul.f32 %v4156_v33, %v962_v32 }
 0x6b8   :  { %983 = vst.msk [vmem:[#allocation2 + $0x14] sm:$0xff] %vm53_vm0, %v4159_v35 }
 0x6bf   :  { %v1054_v39 = vld [vmem:[#allocation2 + $0xd] sm:$0xff]  ;;  %v1109_v29 = vld [vmem:[#allocation2 + $0x18] sm:$0xff] }
 0x6c0   :  { %v992_v40 = vld [vmem:[#allocation2 + $0x11] sm:$0xff]  ;;  %1061 = vrot.lane.b32.xlu0 %v1054_v39, %s3629_s21  ;;  %1112 = vst.msk [vmem:[#allocation3 + $0x40] sm:$0xff] %vm53_vm0, %v1109_v29 }
 0x6c1   :  { %1000 = vrot.lane.b32.xlu1 %v992_v40, %s3629_s21  ;;  %v1108_v41 = vld [vmem:[#allocation2 + $0x10] sm:$0xff] }
 0x6c2   :  { %1111 = vst.msk [vmem:[#allocation3 + $0x28] sm:$0xff] %vm53_vm0, %v1108_v41  ;;  %989 = vst.msk [vmem:[#allocation3 + $0x30] sm:$0xff] %vm53_vm0, %v1108_v41  ;;  %v1049_v55 = vld [vmem:[#allocation2 + $0x14] sm:$0xff] }
 0x6c3   :  { %v1072_v57 = vld [vmem:[#allocation2 + $0xe] sm:$0xff]  ;;  %1052 = vst.msk [vmem:[#allocation3 + $0x38] sm:$0xff] %vm53_vm0, %v1049_v55  ;;  %v1073_v54 = vld [vmem:[#allocation2 + $0x16] sm:$0xff] }
 0x6c4   :  { %v1011_v42 = vld [vmem:[#allocation2 + $0x12] sm:$0xff]  ;;  %1079 = vrot.lane.b32.xlu0 %v1072_v57, %s3626_s19 }
 0x6c5   :  { %1019 = vrot.lane.b32.xlu1 %v1011_v42, %s3626_s19  ;;  %v1090_v44 = vld [vmem:[#allocation2 + $0xf] sm:$0xff]  ;;  %v1091_v56 = vld [vmem:[#allocation2 + $0x17] sm:$0xff] }
 0x6c6   :  { %v1030_v49 = vld [vmem:[#allocation2 + $0x13] sm:$0xff] }
 0x6c7   :  { %v1055_v51 = vld [vmem:[#allocation2 + $0x15] sm:$0xff]  ;;  %v1121_v53 = vld [vmem:[#allocation3 + $0x40] sm:$0xff] }
 0x6c8   :  { %1097 = vrot.lane.b32.xlu0 %v1090_v44, %s3624_s30  ;;  %v2802_v44 = vld [vmem:[%s4661_s0 + $0x18] sm:$0xff] }
 0x6c9   :  { %v1118_v50 = vld [vmem:[#allocation3 + $0x28] sm:$0xff]  ;;  %1038 = vrot.lane.b32.xlu1 %v1030_v49, %s3624_s30 }
 0x6ca   :  { %3161 = vmatmul.mubr.msk.f32.gmra.mrb[26].mxu0 %vm53_vm0, %v1118_v50 }
 0x6cb   :  { %3163 = vmatprep.mubr.msk.f32.mxu0 %vm3621_vm1, %v3622_v4 }
 0x6cc   :  { %1063 = vrot.lane.b32.xlu0 %v1055_v51, %s3629_s21  ;;  %v3612_v51 = vld [vmem:[%s4662_s1] sm:$0xff] }
 0x6ce   :  { %3164 = vmatmul.mubr.msk.f32.gmra.mrb[28].mxu0 %vm53_vm0, %v1121_v53  ;;  %v4230_v53 = vadd.f32 %v3612_v51, %v2802_v44 }
 0x6cf   :  { %3182 = vmatprep.mubr.msk.f32.mxu0 %vm3621_vm1, %v3622_v4 }
 0x6d0   :  { %1081 = vrot.lane.b32.xlu0 %v1073_v54, %s3626_s19  ;;  %v2803_v54 = vld [vmem:[%s4661_s0 + $0x20] sm:$0xff] }
 0x6d4   :  { %1099 = vrot.lane.b32.xlu0 %v1091_v56, %s3624_s30  ;;  %v3613_v56 = vld [vmem:[%s4662_s1 + $0x8] sm:$0xff] }
 0x6fd   :  { %v997_v59 = vpop.permute.xlu1 %996 }
 0x6fe   :  { %1006 = vst.msk [vmem:[#allocation3] sm:$0xff] %vm1005_vm5, %v997_v59  ;;  %v4242_v59 = vadd.f32 %v3613_v56, %v2803_v54 }
 0x701   :  { %v1016_v62 = vpop.permute.xlu1 %1015 }
 0x702   :  { %1025 = vst.msk [vmem:[#allocation3] sm:$0xff] %vm1024_vm6, %v1016_v62  ;;  %v2804_v62 = vld [vmem:[%s4661_s0 + $0x28] sm:$0xff] }
 0x705   :  { %v1035_v63 = vpop.permute.xlu1 %1034 }
 0x706   :  { %1044 = vst.msk [vmem:[#allocation3] sm:$0xff] %vm1043_vm7, %v1035_v63  ;;  %v3614_v63 = vld [vmem:[%s4662_s1 + $0x10] sm:$0xff] }
 0x709   :  { %v1060_v1 = vpop.permute.xlu1 %1059 }
 0x70a   :  { %1068 = vst.msk [vmem:[#allocation3 + $0x8] sm:$0xff] %vm1005_vm5, %v1060_v1  ;;  %v4254_v1 = vadd.f32 %v3614_v63, %v2804_v62 }
 0x70d   :  { %v1078_v2 = vpop.permute.xlu1 %1077  ;;  %v1113_v26 = vld [vmem:[#allocation3] sm:$0xff] }
 0x70e   :  { %1086 = vst.msk [vmem:[#allocation3 + $0x8] sm:$0xff] %vm1024_vm6, %v1078_v2 }
 0x711   :  { %v1096_v9 = vpop.permute.xlu1 %1095 }
 0x712   :  { %1104 = vst.msk [vmem:[#allocation3 + $0x8] sm:$0xff] %vm1043_vm7, %v1096_v9 }
 0x715   :  { %v999_v24 = vpop.permute.xlu1 %998 }
 0x716   :  { %1007 = vst.msk [vmem:[#allocation3 + $0x18] sm:$0xff] %vm1005_vm5, %v999_v24  ;;  %v109_v24 = vld [vmem:[%s4671_s12 + $0x20] sm:$0xff] }
 0x719   :  { %v1018_v14 = vpop.permute.xlu1 %1017  ;;  %v1114_v15 = vld [vmem:[#allocation3 + $0x8] sm:$0xff] }
 0x71a   :  { %1026 = vst.msk [vmem:[#allocation3 + $0x18] sm:$0xff] %vm1024_vm6, %v1018_v14  ;;  %1201 = vmatprep.mubr.f32.mxu1 %v1114_v15  ;;  %v110_v14 = vld [vmem:[%s4671_s12 + $0x28] sm:$0xff] }
 0x71b   :  { %1202 = vmatmul.mubr.f32.vlgmr.msra.gmra.mrb[18].mxu1 %v1113_v26  ;;  %v4268_v15 = vpack.c.bf16 %v110_v14, %v109_v24  ;;  %v111_v26 = vld [vmem:[%s4671_s12 + $0x30] sm:$0xff] }
 0x71c   :  { %3414 = vmatpush3.bf16.msra.mxu1 %v3735_v5  ;;  %v107_v5 = vld [vmem:[%s4671_s12 + $0x10] sm:$0xff] }
 0x71d   :  { %v1037_v20 = vpop.permute.xlu1 %1036  ;;  %3415 = vmatprep.subr.bf16.mxu1 %v3620_v0 }
 0x71e   :  { %1045 = vst.msk [vmem:[#allocation3 + $0x18] sm:$0xff] %vm1043_vm7, %v1037_v20  ;;  %v112_v20 = vld [vmem:[%s4671_s12 + $0x38] sm:$0xff] }
 0x71f   :  { %v4278_v21 = vpack.c.bf16 %v112_v20, %v111_v26  ;;  %v3615_v26 = vld [vmem:[%s4663_s5] ss:$0 sm:$0xff] }
 0x720   :  { %3417 = vmatpush3.bf16.msra.mxu1 %v3744_v7  ;;  %v108_v7 = vld [vmem:[%s4671_s12 + $0x18] sm:$0xff] }
 0x721   :  { %3422 = vmatprep.subr.bf16.mxu1 %v3620_v0  ;;  %v4210_v25 = vpack.c.bf16 %v108_v7, %v107_v5 }
 0x723   :  { %3405 = vmatpush3.bf16.msra.mxu0 %v4210_v25 }
 0x724   :  { %3406 = vmatprep.subr.bf16.mxu0 %v3620_v0 }
 0x725   :  { %v1116_v57 = vld [vmem:[#allocation3 + $0x18] sm:$0xff] }
 0x727   :  { %3408 = vmatpush3.bf16.msra.mxu0 %v4268_v15 }
 0x728   :  { %3409 = vmatprep.subr.bf16.mxu0 %v3620_v0 }
 0x72b   :  { %3411 = vmatpush3.bf16.msra.mxu0 %v4278_v21 }
 0x72c   :  { %3418 = vmatprep.subr.bf16.mxu0 %v3620_v0 }
 0x732   :  { %v1062_v28 = vpop.permute.xlu0 %1061 }
 0x733   :  { %v1001_v27 = vpop.permute.xlu1 %1000  ;;  %1069 = vst.msk [vmem:[#allocation3 + $0x20] sm:$0xff] %vm1005_vm5, %v1062_v28 }
 0x734   :  { %1008 = vst.msk [vmem:[#allocation3 + $0x30] sm:$0xff] %vm1005_vm5, %v1001_v27 }
 0x736   :  { %v1080_v32 = vpop.permute.xlu0 %1079 }
 0x737   :  { %v1020_v30 = vpop.permute.xlu1 %1019  ;;  %1087 = vst.msk [vmem:[#allocation3 + $0x20] sm:$0xff] %vm1024_vm6, %v1080_v32 }
 0x738   :  { %1027 = vst.msk [vmem:[#allocation3 + $0x30] sm:$0xff] %vm1024_vm6, %v1020_v30  ;;  %v4285_v30 = vld [vmem:[%s4672_s11] ss:$0 sm:$0xff] }
 0x73a   :  { %v1098_v40 = vpop.permute.xlu0 %1097 }
 0x73b   :  { %v1039_v39 = vpop.permute.xlu1 %1038  ;;  %1105 = vst.msk [vmem:[#allocation3 + $0x20] sm:$0xff] %vm1043_vm7, %v1098_v40 }
 0x73c   :  { %1046 = vst.msk [vmem:[#allocation3 + $0x30] sm:$0xff] %vm1043_vm7, %v1039_v39 }
 0x73e   :  { %v1064_v41 = vpop.permute.xlu0 %1063 }
 0x73f   :  { %1070 = vst.msk [vmem:[#allocation3 + $0x38] sm:$0xff] %vm1005_vm5, %v1064_v41 }
 0x742   :  { %v1082_v29 = vpop.permute.xlu0 %1081  ;;  %v1117_v55 = vld [vmem:[#allocation3 + $0x20] sm:$0xff] }
 0x743   :  { %1088 = vst.msk [vmem:[#allocation3 + $0x38] sm:$0xff] %vm1024_vm6, %v1082_v29  ;;  %1206 = vmatprep.mubr.f32.mxu1 %v1117_v55  ;;  %v1119_v50 = vld [vmem:[#allocation3 + $0x30] sm:$0xff] }
 0x744   :  { %1207 = vmatmul.mubr.f32.gmra.mrb[20].mxu1 %v1116_v57 }
 0x746   :  { %v1100_v42 = vpop.permute.xlu0 %1099 }
 0x747   :  { %1106 = vst.msk [vmem:[#allocation3 + $0x38] sm:$0xff] %vm1043_vm7, %v1100_v42 }
 0x74e   :  { %v1120_v49 = vld [vmem:[#allocation3 + $0x38] sm:$0xff] }
 0x74f   :  { %1211 = vmatprep.mubr.f32.mxu1 %v1120_v49 }
 0x750   :  { %1212 = vmatmul.mubr.f32.gmra.mrb[22].mxu1 %v1119_v50 }
 0x751   :  { %3199 = vmatprep.mubr.msk.f32.mxu1 %vm3621_vm1, %v3622_v4 }
 0x754   :  { %3200 = vmatmul.mubr.msk.f32.vlgmr.msra.gmra.mrb[24].mxu1 %vm53_vm0, %v4230_v53 }
 0x755   :  { %3202 = vmatprep.mubr.msk.f32.mxu1 %vm3621_vm1, %v3622_v4 }
 0x758   :  { %3203 = vmatmul.mubr.msk.f32.gmra.mrb[26].mxu1 %vm53_vm0, %v4242_v59 }
 0x759   :  { %3205 = vmatprep.mubr.msk.f32.mxu1 %vm3621_vm1, %v3622_v4 }
 0x75c   :  { %3206 = vmatmul.mubr.msk.f32.gmra.mrb[28].mxu1 %vm53_vm0, %v4254_v1 }
 0x75d   :  { %3229 = vmatprep.mubr.msk.f32.mxu1 %vm3621_vm1, %v3622_v4 }
 0x76a   :  { %v1283_v2 = vpop.f32.mrb[24].mxu0 }
 0x76b   :  { %v3159_v9 = vpop.f32.mrb[25].mxu0 }
 0x79d   :  { %v1288_v13 = vpop.f32.mrb[26].mxu0 }
 0x79e   :  { %v3162_v5 = vpop.f32.mrb[27].mxu0 }
 0x7a1   :  { %v1293_v7 = vpop.f32.mrb[28].mxu0 }
 0x7a2   :  { %v3165_v27 = vpop.f32.mrb[29].mxu0 }
 0x7ee   :  { %v2919_v28 = vpop.f32.mrb[18].mxu1 }
 0x7ef   :  { %v2920_v32 = vpop.f32.mrb[19].mxu1 }
 0x7f0   :  { %v2921_v39 = vadd.f32 %v2920_v32, %v2919_v28 }
 0x7f2   :  { %v1204_v40 = vadd.f32 %v2921_v39, %v4285_v30 }
 0x7f4   :  { %v1284_v41 = vadd.f32 %v1283_v2, %v1204_v40 }
 0x7f6   :  { %v1297_v29 = vmax.f32 %v1284_v41, 0.0 }
 0x7f8   :  { %3183 = vmatmul.mubr.msk.f32.vlgmr.msra.gmra.mrb[30].mxu0 %vm1306_vm8, %v1297_v29 }
 0x7f9   :  { %3185 = vmatprep.mubr.msk.f32.mxu0 %vm3621_vm1, %v3622_v4 }
 0x817   :  { %v2922_v55 = vpop.f32.mrb[20].mxu1 }
 0x818   :  { %v2923_v57 = vpop.f32.mrb[21].mxu1 }
 0x819   :  { %v2924_v42 = vadd.f32 %v2923_v57, %v2922_v55 }
 0x81b   :  { %v1209_v44 = vadd.f32 %v2924_v42, %v4285_v30 }
 0x81d   :  { %v1289_v49 = vadd.f32 %v1288_v13, %v1209_v44 }
 0x81f   :  { %v1298_v50 = vmax.f32 %v1289_v49, 0.0 }
 0x821   :  { %3186 = vmatmul.mubr.msk.f32.gmra.mrb[32].mxu0 %vm1306_vm8, %v1298_v50 }
 0x822   :  { %3188 = vmatprep.mubr.msk.f32.mxu0 %vm3621_vm1, %v3622_v4 }
 0x823   :  { %v2925_v51 = vpop.f32.mrb[22].mxu1 }
 0x824   :  { %v2926_v54 = vpop.f32.mrb[23].mxu1 }
 0x825   :  { %v2927_v56 = vadd.f32 %v2926_v54, %v2925_v51 }
 0x827   :  { %v1214_v62 = vadd.f32 %v2927_v56, %v4285_v30  ;;  %v1552_v63 = vpop.f32.mrb[24].mxu1 }
 0x828   :  { %v3201_v2 = vpop.f32.mrb[25].mxu1  ;;  %v1553_v20 = vadd.f32 %v3615_v26, %v1552_v63 }
 0x829   :  { %v1294_v9 = vadd.f32 %v1293_v7, %v1214_v62 }
 0x82b   :  { %v1299_v24 = vmax.f32 %v1294_v9, 0.0  ;;  %v1557_v14 = vpop.f32.mrb[26].mxu1 }
 0x82c   :  { %v1558_v13 = vadd.f32 %v3615_v26, %v1557_v14  ;;  %v3204_v5 = vpop.f32.mrb[27].mxu1  ;;  %v2808_v14 = vld [vmem:[%s4664_s2 + $0x1] sm:$0x1]  ;;  %s4684_s2 = smov 48  }
 0x82d   :  { %3189 = vmatmul.mubr.msk.f32.gmra.mrb[34].mxu0 %vm1306_vm8, %v1299_v24 }
 0x82e   :  { %v4300_v27 = vpack.i.bf16 %v1558_v13, %v1553_v20  ;;  %3214 = vmatprep.mubr.msk.f32.mxu0 %vm3621_vm1, %v3622_v4 }
 0x82f   :  { %v1562_v28 = vpop.f32.mrb[28].mxu1 }
 0x830   :  { %v4304_v32 = vadd.f32 %v3615_v26, %v1562_v28  ;;  %3521 = vrot.lane.b32.xlu0 %v4300_v27, %s3624_s30  ;;  %v3207_v7 = vpop.f32.mrb[29].mxu1  ;;  %v2809_v26 = vadd.f32 -1.0, %v2808_v14 }
 0x832   :  { %1573 = vrot.lane.b32.xlu1 %v4304_v32, %s3624_s30 }
 0x834   :  { %3526 = vrot.lane.b32.xlu0 %v4300_v27, %s3623_s29 }
 0x836   :  { %1822 = vrot.lane.b32.xlu1 %v4304_v32, %s3623_s29 }
 0x838   :  { %1812 = vrot.lane.b32.xlu0 %v1553_v20, %s3625_s4 }
 0x83a   :  { %1814 = vrot.lane.b32.xlu1 %v1558_v13, %s3625_s4 }
 0x83c   :  { %1816 = vrot.lane.b32.xlu0 %v4304_v32, %s3625_s4 }
 0x8a2   :  { %v3522_v39 = vpop.permute.xlu0 %3521 }
 0x8a3   :  { %v3524_v40 = vunpack.i.h.bf16 %v3522_v39  ;;  %v3523_v41 = vunpack.i.l.bf16 %v3522_v39 }
 0x8a4   :  { %v1574_v44 = vpop.permute.xlu1 %1573 }
 0x8a5   :  { %v3419_v29 = vpack.c.bf16 %v3524_v40, %v3523_v41 }
 0x8a6   :  { %v3527_v55 = vpop.permute.xlu0 %3526 }
 0x8a7   :  { %3421 = vmatpush3.bf16.xpose.msk.msra.mxu0 %vm3806_vm3, %v3419_v29  ;;  %v3529_v57 = vunpack.i.h.bf16 %v3527_v55  ;;  %v3528_v42 = vunpack.i.l.bf16 %v3527_v55 }
 0x8a8   :  { %3212 = vmatprep.subr.mxu0 %v3622_v4  ;;  %v1823_v50 = vpop.permute.xlu1 %1822 }
 0x8a9   :  { %v3426_v49 = vpack.c.bf16 %v3529_v57, %v3528_v42 }
 0x8aa   :  { %v1813_v31 = vpop.permute.xlu0 %1812 }
 0x8ac   :  { %v1815_v51 = vpop.permute.xlu1 %1814 }
 0x8ae   :  { %v1817_v54 = vpop.permute.xlu0 %1816 }
 0x8af   :  { %3213 = vmatpush3.xpose.msk.msra.mxu0 %vm233_vm2, %v1574_v44 }
 0x8b0   :  { %3425 = vmatprep.subr.bf16.mxu0 %v3620_v0 }
 0x8b2   :  { %3215 = vmatmul.mubr.msk.f32.vlgmr.msra.gmra.mrb[36].mxu0 %vm233_vm2, %v1553_v20  ;;  %v1476_v20 = vmul.f32 1e+09, %v2809_v26 }
 0x8b3   :  { %3428 = vmatpush3.bf16.xpose.msk.msra.mxu0 %vm3806_vm3, %v3426_v49  ;;  %3217 = vmatprep.mubr.msk.f32.mxu0 %vm3621_vm1, %v3622_v4 }
 0x8b4   :  { %3242 = vmatprep.subr.mxu0 %v3622_v4 }
 0x8b6   :  { %3218 = vmatmul.mubr.msk.f32.gmra.mrb[38].mxu0 %vm233_vm2, %v1558_v13  ;;  %v1674_v13 = vrot.slane %v1476_v20, %v332_v47 }
 0x8b7   :  { %3220 = vmatprep.mubr.msk.f32.mxu0 %vm3621_vm1, %v3622_v4 }
 0x8ba   :  { %3221 = vmatmul.mubr.msk.f32.gmra.mrb[40].mxu0 %vm233_vm2, %v4304_v32 }
 0x8bb   :  { %3243 = vmatpush3.xpose.msk.msra.mxu0 %vm233_vm2, %v1823_v50  ;;  %3244 = vmatprep.mubr.msk.f32.mxu0 %vm3621_vm1, %v3622_v4 }
 0x8bc   :  { %3432 = vmatprep.subr.bf16.mxu0 %v3620_v0 }
 0x8be   :  { %3245 = vmatmul.mubr.msk.f32.vlgmr.msra.gmra.mrb[42].mxu0 %vm233_vm2, %v1813_v31 }
 0x8bf   :  { %3247 = vmatprep.mubr.msk.f32.mxu0 %vm3621_vm1, %v3622_v4 }
 0x8c2   :  { %3248 = vmatmul.mubr.msk.f32.gmra.mrb[44].mxu0 %vm233_vm2, %v1815_v51 }
 0x8c3   :  { %3250 = vmatprep.mubr.msk.f32.mxu0 %vm3621_vm1, %v3622_v4 }
 0x8c6   :  { %3251 = vmatmul.mubr.msk.f32.gmra.mrb[46].mxu0 %vm233_vm2, %v1817_v54 }
 0x8c7   :  { %3272 = vmatprep.mubr.msk.f32.mxu0 %vm3621_vm1, %v3622_v4 }
 0x8cb   :  { %v4347_v56 = vpop.f32.mrb[30].mxu0 }
 0x8cc   :  { %v3184_v62 = vpop.f32.mrb[31].mxu0 }
 0x8f4   :  { %v4349_v63 = vpop.f32.mrb[32].mxu0 }
 0x8f5   :  { %v3187_v2 = vpop.f32.mrb[33].mxu0 }
 0x900   :  { %v4351_v9 = vpop.f32.mrb[34].mxu0 }
 0x901   :  { %v3190_v24 = vpop.f32.mrb[35].mxu0 }
 0x985   :  { %v1653_v5 = vpop.f32.mrb[36].mxu0 }
 0x986   :  { %v1667_v28 = vmul.f32 0.25, %v1653_v5  ;;  %v3216_v7 = vpop.f32.mrb[37].mxu0 }
 0x988   :  { %v1676_v39 = vadd.f32 %v1674_v13, %v1667_v28 }
 0x989   :  { %v1658_v40 = vpop.f32.mrb[38].mxu0 }
 0x98a   :  { %v1668_v41 = vmul.f32 0.25, %v1658_v40  ;;  %v3219_v29 = vpop.f32.mrb[39].mxu0  ;;  %v1679_v55 = vsel %vm338_vm4, %v1676_v39, -inf }
 0x98b   :  { %1680 = vmax.xlane.f32.xlu1 %v1679_v55 }
 0x98c   :  { %v1677_v57 = vadd.f32 %v1674_v13, %v1668_v41 }
 0x98d   :  { %v1663_v42 = vpop.f32.mrb[40].mxu0 }
 0x98e   :  { %v1669_v44 = vmul.f32 0.25, %v1663_v42  ;;  %v3222_v49 = vpop.f32.mrb[41].mxu0  ;;  %v1682_v50 = vsel %vm338_vm4, %v1677_v57, -inf }
 0x98f   :  { %1683 = vmax.xlane.f32.xlu0 %v1682_v50 }
 0x990   :  { %v1678_v31 = vadd.f32 %v1674_v13, %v1669_v44 }
 0x991   :  { %v1902_v45 = vpop.f32.mrb[42].mxu0 }
 0x992   :  { %v1916_v47 = vmul.f32 0.25, %v1902_v45  ;;  %v3246_v51 = vpop.f32.mrb[43].mxu0  ;;  %v1685_v54 = vsel %vm338_vm4, %v1678_v31, -inf }
 0x993   :  { %1686 = vmax.xlane.f32.xlu0 %v1685_v54 }
 0x994   :  { %v1919_v62 = vadd.f32 %v1916_v47, %v1674_v13 }
 0x995   :  { %v1907_v2 = vpop.f32.mrb[44].mxu0 }
 0x996   :  { %v1917_v24 = vmul.f32 0.25, %v1907_v2  ;;  %v3249_v14 = vpop.f32.mrb[45].mxu0  ;;  %v1922_v26 = vsel %vm338_vm4, %v1919_v62, -inf }
 0x997   :  { %1923 = vmax.xlane.f32.xlu1 %v1922_v26 }
 0x998   :  { %v1920_v20 = vadd.f32 %v1917_v24, %v1674_v13 }
 0x999   :  { %v1912_v5 = vpop.f32.mrb[46].mxu0 }
 0x99a   :  { %v1918_v28 = vmul.f32 0.25, %v1912_v5  ;;  %v3252_v7 = vpop.f32.mrb[47].mxu0  ;;  %v1925_v40 = vsel %vm338_vm4, %v1920_v20, -inf }
 0x99b   :  { %1926 = vmax.xlane.f32.xlu0 %v1925_v40 }
 0x99c   :  { %v1921_v41 = vadd.f32 %v1918_v28, %v1674_v13 }
 0x99e   :  { %v1928_v29 = vsel %vm338_vm4, %v1921_v41, -inf }
 0x99f   :  { %1929 = vmax.xlane.f32.xlu1 %v1928_v29 }
 0x9b0   :  { %3531 = vrot.lane.b32.xlu1 %v4300_v27, %s3626_s19 }
 0xa18   :  { %v1681_v55 = vpop.xlane.xlu1 %1680 }
 0xa19   :  { %v1688_v42 = vsub.f32 %v1676_v39, %v1681_v55 }
 0xa1b   :  { %v1691_v44 = vmul.f32 1.442695, %v1688_v42 }
 0xa1c   :  { %v1684_v49 = vpop.xlane.xlu0 %1683 }
 0xa1d   :  { %3570 = vpow2.f32 %v1691_v44  ;;  %v1689_v50 = vsub.f32 %v1677_v57, %v1684_v49 }
 0xa1f   :  { %v1693_v45 = vmul.f32 1.442695, %v1689_v50 }
 0xa20   :  { %v1687_v47 = vpop.xlane.xlu0 %1686 }
 0xa21   :  { %3572 = vpow2.f32 %v1693_v45  ;;  %v1690_v51 = vsub.f32 %v1678_v31, %v1687_v47 }
 0xa23   :  { %v1695_v54 = vmul.f32 1.442695, %v1690_v51 }
 0xa24   :  { %v1924_v2 = vpop.xlane.xlu1 %1923 }
 0xa25   :  { %3574 = vpow2.f32 %v1695_v54  ;;  %v1931_v13 = vsub.f32 %v1919_v62, %v1924_v2 }
 0xa27   :  { %v3571_v24 = vpop.eup %3570  ;;  %v1934_v14 = vmul.f32 1.442695, %v1931_v13 }
 0xa28   :  { %v1927_v26 = vpop.xlane.xlu0 %1926  ;;  %v1697_v5 = vsel %vm338_vm4, %v3571_v24, 0.0 }
 0xa29   :  { %3576 = vpow2.f32 %v1934_v14  ;;  %v1932_v28 = vsub.f32 %v1920_v20, %v1927_v26  ;;  %1698 = vadd.xlane.f32.xlu0 %v1697_v5 }
 0xa2b   :  { %v3573_v39 = vpop.eup %3572  ;;  %v1936_v7 = vmul.f32 1.442695, %v1932_v28 }
 0xa2c   :  { %v1930_v40 = vpop.xlane.xlu1 %1929  ;;  %v1700_v57 = vsel %vm338_vm4, %v3573_v39, 0.0 }
 0xa2d   :  { %3578 = vpow2.f32 %v1936_v7  ;;  %v1933_v29 = vsub.f32 %v1921_v41, %v1930_v40  ;;  %1701 = vadd.xlane.f32.xlu1 %v1700_v57 }
 0xa2f   :  { %v3575_v31 = vpop.eup %3574  ;;  %v1938_v55 = vmul.f32 1.442695, %v1933_v29 }
 0xa30   :  { %v3532_v42 = vpop.permute.xlu1 %3531  ;;  %v1703_v62 = vsel %vm338_vm4, %v3575_v31, 0.0 }
 0xa31   :  { %3580 = vpow2.f32 %v1938_v55  ;;  %v3534_v44 = vunpack.i.h.bf16 %v3532_v42  ;;  %v3533_v49 = vunpack.i.l.bf16 %v3532_v42  ;;  %1704 = vadd.xlane.f32.xlu0 %v1703_v62 }
 0xa33   :  { %v3577_v50 = vpop.eup %3576  ;;  %v3423_v20 = vpack.c.bf16 %v3534_v44, %v3533_v49 }
 0xa34   :  { %v1940_v45 = vsel %vm338_vm4, %v3577_v50, 0.0 }
 0xa35   :  { %1941 = vadd.xlane.f32.xlu1 %v1940_v45  ;;  %3424 = vmatpush3.bf16.msra.mxu1 %v3423_v20  ;;  %v1810_v20 = vld [vmem:[%s4665_s6] sm:$0xff] }
 0xa36   :  { %3227 = vmatprep.subr.mxu1 %v3622_v4 }
 0xa37   :  { %v3579_v47 = vpop.eup %3578 }
 0xa38   :  { %v1943_v41 = vsel %vm338_vm4, %v3579_v47, 0.0 }
 0xa39   :  { %1944 = vadd.xlane.f32.xlu0 %v1943_v41 }
 0xa3b   :  { %v3581_v51 = vpop.eup %3580 }
 0xa3c   :  { %v1946_v54 = vsel %vm338_vm4, %v3581_v51, 0.0 }
 0xa3d   :  { %1947 = vadd.xlane.f32.xlu0 %v1946_v54 }
 0xa46   :  { %3536 = vrot.lane.b32.xlu1 %v4300_v27, %s4684_s2 }
 0xa4a   :  { %1959 = vrot.lane.b32.xlu1 %v4304_v32, %s4684_s2 }
 0xa53   :  { %1716 = vrot.lane.b32.xlu0 %v4304_v32, %s3626_s19 }
 0xab6   :  { %v1699_v2 = vpop.xlane.xlu0 %1698 }
 0xab7   :  { %3582 = vrcp.f32 %v1699_v2 }
 0xaba   :  { %v1702_v13 = vpop.xlane.xlu1 %1701 }
 0xabb   :  { %3584 = vrcp.f32 %v1702_v13 }
 0xabe   :  { %v1705_v14 = vpop.xlane.xlu0 %1704 }
 0xabf   :  { %3586 = vrcp.f32 %v1705_v14 }
 0xac1   :  { %v3583_v40 = vpop.eup %3582 }
 0xac2   :  { %v1942_v26 = vpop.xlane.xlu1 %1941  ;;  %v1707_v27 = vmul.f32 %v3583_v40, %v3571_v24 }
 0xac3   :  { %3588 = vrcp.f32 %v1942_v26 }
 0xac5   :  { %v3585_v42 = vpop.eup %3584 }
 0xac6   :  { %v1945_v5 = vpop.xlane.xlu0 %1944  ;;  %v3537_v28 = vpop.permute.xlu1 %3536  ;;  %v1709_v32 = vmul.f32 %v3585_v42, %v3573_v39  ;;  %v1811_v39 = vld [vmem:[%s4665_s6 + $0x8] sm:$0xff] }
 0xac7   :  { %v3539_v57 = vunpack.i.h.bf16 %v3537_v28  ;;  %v3538_v29 = vunpack.i.l.bf16 %v3537_v28  ;;  %3590 = vrcp.f32 %v1945_v5  ;;  %v3436_v41 = vpack.c.bf16 %v1811_v39, %v1810_v20 }
 0xac9   :  { %v3430_v62 = vpack.c.bf16 %v3539_v57, %v3538_v29  ;;  %v3587_v44 = vpop.eup %3586 }
 0xaca   :  { %v1948_v7 = vpop.xlane.xlu0 %1947  ;;  %v1960_v49 = vpop.permute.xlu1 %1959  ;;  %v1711_v24 = vmul.f32 %v3587_v44, %v3575_v31 }
 0xacb   :  { %3592 = vrcp.f32 %v1948_v7 }
 0xacd   :  { %v3589_v45 = vpop.eup %3588 }
 0xace   :  { %v1717_v55 = vpop.permute.xlu0 %1716  ;;  %v1950_v54 = vmul.f32 %v3589_v45, %v3577_v50  ;;  %v2053_v50 = vld [vmem:[%s4665_s6 + $0x10] sm:$0xff] }
 0xacf   :  { %3228 = vmatpush3.msra.mxu1 %v1717_v55 }
 0xad0   :  { %3230 = vmatmul.mubr.msk.f32.vlgmr.msra.gmra.mrb[30].mxu1 %vm338_vm4, %v1707_v27  ;;  %3429 = vmatprep.subr.bf16.mxu1 %v3620_v0 }
 0xad1   :  { %3431 = vmatpush3.bf16.msra.mxu1 %v3430_v62  ;;  %3232 = vmatprep.mubr.msk.f32.mxu1 %vm3621_vm1, %v3622_v4  ;;  %v3591_v2 = vpop.eup %3590 }
 0xad2   :  { %3257 = vmatprep.subr.mxu1 %v3622_v4  ;;  %v1952_v31 = vmul.f32 %v3591_v2, %v3579_v47  ;;  %v2054_v47 = vld [vmem:[%s4665_s6 + $0x18] sm:$0xff] }
 0xad3   :  { %v3433_v26 = vpack.c.bf16 %v2054_v47, %v2053_v50 }
 0xad4   :  { %3233 = vmatmul.mubr.msk.f32.gmra.mrb[32].mxu1 %vm338_vm4, %v1709_v32 }
 0xad5   :  { %3258 = vmatpush3.msra.mxu1 %v1960_v49  ;;  %3235 = vmatprep.mubr.msk.f32.mxu1 %vm3621_vm1, %v3622_v4  ;;  %v3593_v13 = vpop.eup %3592 }
 0xad6   :  { %3435 = vmatprep.subr.bf16.mxu1 %v3620_v0  ;;  %v1954_v14 = vmul.f32 %v3593_v13, %v3581_v51  ;;  %3434 = vmatpush3.bf16.msra.mxu0 %v3433_v26 }
 0xad7   :  { %3439 = vmatprep.subr.bf16.mxu0 %v3972_v43 }
 0xad8   :  { %3236 = vmatmul.mubr.msk.f32.gmra.mrb[34].mxu1 %vm338_vm4, %v1711_v24 }
 0xad9   :  { %3259 = vmatprep.mubr.msk.f32.mxu1 %vm3621_vm1, %v3622_v4 }
 0xadc   :  { %3260 = vmatmul.mubr.msk.f32.vlgmr.msra.gmra.mrb[36].mxu1 %vm338_vm4, %v1950_v54 }
 0xadd   :  { %3262 = vmatprep.mubr.msk.f32.mxu1 %vm3621_vm1, %v3622_v4  ;;  %3437 = vmatpush3.bf16.msra.mxu1 %v3436_v41 }
 0xade   :  { %3470 = vmatprep.subr.bf16.mxu1 %v3620_v0 }
 0xae0   :  { %3263 = vmatmul.mubr.msk.f32.gmra.mrb[38].mxu1 %vm338_vm4, %v1952_v31 }
 0xae1   :  { %3265 = vmatprep.mubr.msk.f32.mxu1 %vm3621_vm1, %v3622_v4 }
 0xae4   :  { %3266 = vmatmul.mubr.msk.f32.gmra.mrb[40].mxu1 %vm338_vm4, %v1954_v14 }
 0xae5   :  { %3285 = vmatprep.mubr.msk.f32.mxu1 %vm3621_vm1, %v3622_v4 }
 0xba3   :  { %v1796_v5 = vpop.f32.mrb[30].mxu1 }
 0xba4   :  { %v3231_v28 = vpop.f32.mrb[31].mxu1  ;;  %3286 = vmatmul.mubr.msk.f32.vlgmr.msra.gmra.mrb[42].mxu1 %vm233_vm2, %v1796_v5  ;;  %v2805_v5 = vld [vmem:[%s4667_s3 + $0x18] sm:$0xff] }
 0xba5   :  { %3288 = vmatprep.mubr.msk.f32.mxu1 %vm3621_vm1, %v3622_v4  ;;  %3472 = vmatpush3.bf16.msra.mxu1 %v3945_v34 }
 0xba6   :  { %3473 = vmatprep.subr.bf16.mxu1 %v3620_v0 }
 0xba7   :  { %v1801_v51 = vpop.f32.mrb[32].mxu1 }
 0xba8   :  { %v3234_v7 = vpop.f32.mrb[33].mxu1  ;;  %3289 = vmatmul.mubr.msk.f32.gmra.mrb[44].mxu1 %vm233_vm2, %v1801_v51 }
 0xba9   :  { %3291 = vmatprep.mubr.msk.f32.mxu1 %vm3621_vm1, %v3622_v4  ;;  %3475 = vmatpush3.bf16.msra.mxu1 %v3956_v38 }
 0xbaa   :  { %3476 = vmatprep.subr.bf16.mxu1 %v3620_v0 }
 0xbab   :  { %v1806_v43 = vpop.f32.mrb[34].mxu1 }
 0xbac   :  { %v3237_v40 = vpop.f32.mrb[35].mxu1  ;;  %3292 = vmatmul.mubr.msk.f32.gmra.mrb[46].mxu1 %vm233_vm2, %v1806_v43 }
 0xbad   :  { %3302 = vmatprep.mubr.msk.f32.mxu1 %vm3621_vm1, %v3622_v4 }
 0xbaf   :  { %v2039_v34 = vpop.f32.mrb[36].mxu1 }
 0xbb0   :  { %v3261_v57 = vpop.f32.mrb[37].mxu1  ;;  %3273 = vmatmul.mubr.msk.f32.vlgmr.msra.gmra.mrb[48].mxu0 %vm233_vm2, %v2039_v34  ;;  %v2807_v34 = vld [vmem:[%s4667_s3 + $0x28] sm:$0xff] }
 0xbb1   :  { %3275 = vmatprep.mubr.msk.f32.mxu0 %vm3621_vm1, %v3622_v4  ;;  %3441 = vmatpush3.bf16.msra.mxu0 %v3977_v46 }
 0xbb2   :  { %3443 = vmatprep.subr.bf16.mxu0 %v4004_v3 }
 0xbb3   :  { %v2044_v38 = vpop.f32.mrb[38].mxu1 }
 0xbb4   :  { %v3264_v29 = vpop.f32.mrb[39].mxu1  ;;  %3276 = vmatmul.mubr.msk.f32.gmra.mrb[50].mxu0 %vm233_vm2, %v2044_v38 }
 0xbb5   :  { %3278 = vmatprep.mubr.msk.f32.mxu0 %vm3621_vm1, %v3622_v4  ;;  %3445 = vmatpush3.bf16.msra.mxu0 %v4009_v8 }
 0xbb6   :  { %3447 = vmatprep.subr.bf16.mxu0 %v4029_v10 }
 0xbb7   :  { %v2049_v27 = vpop.f32.mrb[40].mxu1 }
 0xbb8   :  { %v3267_v55 = vpop.f32.mrb[41].mxu1  ;;  %3279 = vmatmul.mubr.msk.f32.gmra.mrb[52].mxu0 %vm233_vm2, %v2049_v27 }
 0xbb9   :  { %3449 = vmatpush3.bf16.msra.mxu0 %v4036_v18 }
 0xbba   :  { %3451 = vmatprep.subr.bf16.mxu0 %v4054_v22 }
 0xbbd   :  { %3453 = vmatpush3.bf16.msra.mxu0 %v4059_v16 }
 0xbbe   :  { %3455 = vmatprep.subr.bf16.mxu0 %v4078_v36 }
 0xbc1   :  { %3457 = vmatpush3.bf16.msra.mxu0 %v4080_v37 }
 0xbc2   :  { %3459 = vmatprep.subr.bf16.mxu0 %v4093_v48  ;;  %v3616_v48 = vld [vmem:[%s4666_s7] ss:$0 sm:$0xff] }
 0xbc5   :  { %3461 = vmatpush3.bf16.msra.mxu0 %v4101_v52 }
 0xbc6   :  { %3463 = vmatprep.subr.bf16.mxu0 %v4115_v58 }
 0xbc9   :  { %3465 = vmatpush3.bf16.msra.mxu0 %v4121_v61 }
 0xbca   :  { %3467 = vmatprep.subr.bf16.mxu0 %v4132_v6 }
 0xbcd   :  { %3469 = vmatpush3.bf16.msra.mxu0 %v4143_v12 }
 0xc77   :  { %v2219_v46 = vpop.f32.mrb[42].mxu1 }
 0xc78   :  { %v3287_v3 = vpop.f32.mrb[43].mxu1 }
 0xc7b   :  { %v2224_v8 = vpop.f32.mrb[44].mxu1 }
 0xc7c   :  { %v3290_v10 = vpop.f32.mrb[45].mxu1 }
 0xc7d   :  { %v3617_v10 = vld [vmem:[%s4669_s8] ss:$0 sm:$0xff] }
 0xc7f   :  { %v2229_v18 = vpop.f32.mrb[46].mxu1 }
 0xc80   :  { %v3293_v22 = vpop.f32.mrb[47].mxu1 }
 0xc83   :  { %v2130_v16 = vpop.f32.mrb[48].mxu0 }
 0xc84   :  { %v2220_v36 = vadd.f32 %v2219_v46, %v2130_v16  ;;  %v3274_v37 = vpop.f32.mrb[49].mxu0 }
 0xc86   :  { %v2233_v52 = vadd.f32 %v3616_v48, %v2220_v36  ;;  %v3618_v36 = vld [vmem:[%s4670_s9] ss:$0 sm:$0xff] }
 0xc87   :  { %v2135_v58 = vpop.f32.mrb[50].mxu0 }
 0xc88   :  { %v2225_v61 = vadd.f32 %v2224_v8, %v2135_v58  ;;  %v3277_v42 = vpop.f32.mrb[51].mxu0  ;;  %v2236_v6 = vadd.f32 %v2233_v52, %v4230_v53 }
 0xc8a   :  { %v2234_v12 = vadd.f32 %v3616_v48, %v2225_v61  ;;  %v2239_v62 = vsel %vm53_vm0, %v2236_v6, 0.0 }
 0xc8b   :  { %2240 = vadd.xlane.f32.xlu1 %v2239_v62  ;;  %v2140_v32 = vpop.f32.mrb[52].mxu0 }
 0xc8c   :  { %v2230_v44 = vadd.f32 %v2229_v18, %v2140_v32  ;;  %v3280_v49 = vpop.f32.mrb[53].mxu0  ;;  %v2237_v24 = vadd.f32 %v2234_v12, %v4242_v59 }
 0xc8e   :  { %v2235_v20 = vadd.f32 %v3616_v48, %v2230_v44  ;;  %v2242_v39 = vsel %vm53_vm0, %v2237_v24, 0.0 }
 0xc8f   :  { %2243 = vadd.xlane.f32.xlu0 %v2242_v39 }
 0xc90   :  { %v2238_v45 = vadd.f32 %v2235_v20, %v4254_v1  ;;  %v2806_v1 = vld [vmem:[%s4667_s3 + $0x20] sm:$0xff] }
 0xc92   :  { %v2245_v41 = vsel %vm53_vm0, %v2238_v45, 0.0 }
 0xc93   :  { %2246 = vadd.xlane.f32.xlu0 %v2245_v41 }
 0xd18   :  { %v2241_v54 = vpop.xlane.xlu1 %2240 }
 0xd19   :  { %v2248_v53 = vmul.f32 0.03125, %v2241_v54 }
 0xd1b   :  { %v2251_v2 = vsub.f32 %v2236_v6, %v2248_v53 }
 0xd1c   :  { %v2244_v31 = vpop.xlane.xlu0 %2243 }
 0xd1d   :  { %v2249_v13 = vmul.f32 0.03125, %v2244_v31  ;;  %v2254_v14 = vmul.f32 %v2251_v2, %v2251_v2 }
 0xd1f   :  { %v2252_v50 = vsub.f32 %v2237_v24, %v2249_v13  ;;  %v2257_v47 = vsel %vm53_vm0, %v2254_v14, 0.0 }
 0xd20   :  { %2258 = vadd.xlane.f32.xlu1 %v2257_v47  ;;  %v2247_v28 = vpop.xlane.xlu0 %2246 }
 0xd21   :  { %v2255_v59 = vmul.f32 %v2252_v50, %v2252_v50  ;;  %v2250_v51 = vmul.f32 0.03125, %v2247_v28 }
 0xd23   :  { %v2260_v26 = vsel %vm53_vm0, %v2255_v59, 0.0  ;;  %v4466_v7 = vsub.f32 %v2238_v45, %v2250_v51 }
 0xd24   :  { %2261 = vadd.xlane.f32.xlu0 %v2260_v26 }
 0xd25   :  { %v2256_v43 = vmul.f32 %v4466_v7, %v4466_v7 }
 0xd27   :  { %v2263_v40 = vsel %vm53_vm0, %v2256_v43, 0.0 }
 0xd31   :  { %2291 = vperm.xlu1 %3519, %v2806_v1  }
 0xd3a   :  { %2286 = vperm.xlu0 %3518, %v2805_v5  }
 0xd55   :  { %2264 = vadd.xlane.f32.xlu1 %v2263_v40 }
 0xd66   :  { %2296 = vperm.xlu1 %3519, %v2807_v34  }
 0xdad   :  { %v2259_v57 = vpop.xlane.xlu1 %2258 }
 0xdae   :  { %v2266_v38 = vmul.f32 0.03125, %v2259_v57 }
 0xdb0   :  { %v2269_v29 = vadd.f32 1e-05, %v2266_v38 }
 0xdb1   :  { %v2262_v27 = vpop.xlane.xlu0 %2261  ;;  %v4487_v42 = vpop.permute.xlu1 %2291 }
 0xdb2   :  { %3594 = vrsqrt.f32 %v2269_v29  ;;  %v2267_v55 = vmul.f32 0.03125, %v2262_v27 }
 0xdb4   :  { %v2270_v46 = vadd.f32 1e-05, %v2267_v55  ;;  %v4548_v55 = vld [vmem:[%s4673_s13] ss:$0 sm:$0xff] }
 0xdb6   :  { %3596 = vrsqrt.f32 %v2270_v46  ;;  %v1388_v46 = vadd.f32 %v4548_v55, %v4349_v63 }
 0xdb9   :  { %v4480_v48 = vpop.permute.xlu0 %2286 }
 0xdbc   :  { %v3595_v3 = vpop.eup %3594 }
 0xdbd   :  { %v2275_v8 = vmul.f32 %v3595_v3, %v2251_v2  ;;  %v4553_v3 = vadd.f32 %v1388_v46, %v4039_v19 }
 0xdbf   :  { %v2278_v18 = vmul.f32 %v3617_v10, %v2275_v8  ;;  %v1383_v8 = vadd.f32 %v4548_v55, %v4347_v56 }
 0xdc0   :  { %v3597_v22 = vpop.eup %3596 }
 0xdc1   :  { %v2276_v16 = vmul.f32 %v3597_v22, %v2252_v50  ;;  %v2281_v37 = vadd.f32 %v3618_v36, %v2278_v18  ;;  %v1393_v18 = vadd.f32 %v4548_v55, %v4351_v9  ;;  %v4562_v22 = vadd.f32 %v1383_v8, %v4013_v11 }
 0xdc3   :  { %v2279_v52 = vmul.f32 %v3617_v10, %v2276_v16  ;;  %v4483_v58 = vmul.f32 %v4480_v48, %v2281_v37  ;;  %v1399_v16 = vsel %vm53_vm0, %v4562_v22, 0.0  ;;  %v4567_v63 = vadd.f32 %v1393_v18, %v4159_v35 }
 0xdc5   :  { %v2282_v61 = vadd.f32 %v3618_v36, %v2279_v52  ;;  %2302 = vst.msk [vmem:[#allocation2 + $0x4] sm:$0xff] %vm53_vm0, %v4483_v58  ;;  %v1405_v19 = vsel %vm53_vm0, %v4567_v63, 0.0 }
 0xdc7   :  { %v4490_v6 = vmul.f32 %v4487_v42, %v2282_v61 }
 0xdc9   :  { %2303 = vst.msk [vmem:[#allocation2 + $0xc] sm:$0xff] %vm53_vm0, %v4490_v6 }
 0xdcc   :  { %v2311_v12 = vld [vmem:[#allocation2 + $0x1] sm:$0xff] }
 0xdcd   :  { %2317 = vrot.lane.b32.xlu1 %v2311_v12, %s3629_s21  ;;  %v2305_v62 = vld [vmem:[#allocation2] sm:$0xff] }
 0xdce   :  { %v2365_v32 = vld [vmem:[#allocation2 + $0x4] sm:$0xff]  ;;  %2308 = vst.msk [vmem:[#allocation3] sm:$0xff] %vm53_vm0, %v2305_v62 }
 0xdcf   :  { %2368 = vst.msk [vmem:[#allocation3 + $0x8] sm:$0xff] %vm53_vm0, %v2365_v32  ;;  %v2329_v49 = vld [vmem:[#allocation2 + $0x2] sm:$0xff] }
 0xdd0   :  { %v2371_v44 = vld [vmem:[#allocation2 + $0x5] sm:$0xff] }
 0xdd1   :  { %v2425_v24 = vld [vmem:[#allocation2 + $0x8] sm:$0xff]  ;;  %2377 = vrot.lane.b32.xlu0 %v2371_v44, %s3629_s21  ;;  %2335 = vrot.lane.b32.xlu1 %v2329_v49, %s3626_s19 }
 0xdd2   :  { %2428 = vst.msk [vmem:[#allocation3 + $0x10] sm:$0xff] %vm53_vm0, %v2425_v24  ;;  %2309 = vst.msk [vmem:[#allocation3 + $0x18] sm:$0xff] %vm53_vm0, %v2425_v24  ;;  %v2366_v20 = vld [vmem:[#allocation2 + $0xc] sm:$0xff]  ;;  %v2347_v45 = vld [vmem:[#allocation2 + $0x3] sm:$0xff] }
 0xdd3   :  { %2369 = vst.msk [vmem:[#allocation3 + $0x20] sm:$0xff] %vm53_vm0, %v2366_v20  ;;  %v2389_v39 = vld [vmem:[#allocation2 + $0x6] sm:$0xff] }
 0xdd4   :  { %v2407_v54 = vld [vmem:[#allocation2 + $0x7] sm:$0xff] }
 0xdd5   :  { %2395 = vrot.lane.b32.xlu0 %v2389_v39, %s3626_s19  ;;  %2353 = vrot.lane.b32.xlu1 %v2347_v45, %s3624_s30  ;;  %v2312_v53 = vld [vmem:[#allocation2 + $0x9] sm:$0xff] }
 0xdd6   :  { %v2330_v2 = vld [vmem:[#allocation2 + $0xa] sm:$0xff] }
 0xdd7   :  { %v2348_v31 = vld [vmem:[#allocation2 + $0xb] sm:$0xff] }
 0xdd9   :  { %v2433_v41 = vld [vmem:[#allocation3 + $0x10] sm:$0xff]  ;;  %2413 = vrot.lane.b32.xlu0 %v2407_v54, %s3624_s30  ;;  %2319 = vrot.lane.b32.xlu1 %v2312_v53, %s3629_s21 }
 0xdda   :  { %3303 = vmatmul.mubr.msk.f32.vlgmr.msra.gmra.mrb[48].mxu1 %vm53_vm0, %v2433_v41 }
 0xddb   :  { %3305 = vmatprep.mubr.msk.f32.mxu1 %vm3621_vm1, %v3622_v4  ;;  %3478 = vmatpush3.bf16.msra.mxu1 %v4204_v23 }
 0xddc   :  { %3479 = vmatprep.subr.bf16.mxu1 %v3620_v0 }
 0xddd   :  { %2337 = vrot.lane.b32.xlu1 %v2330_v2, %s3626_s19 }
 0xddf   :  { %3481 = vmatpush3.bf16.msra.mxu1 %v4210_v25 }
 0xde0   :  { %3482 = vmatprep.subr.bf16.mxu1 %v3620_v0 }
 0xde1   :  { %2355 = vrot.lane.b32.xlu1 %v2348_v31, %s3624_s30 }
 0xde2   :  { %v2265_v13 = vpop.xlane.xlu1 %2264 }
 0xde3   :  { %v2268_v14 = vmul.f32 0.03125, %v2265_v13  ;;  %3484 = vmatpush3.bf16.msra.mxu1 %v4268_v15 }
 0xde4   :  { %3485 = vmatprep.subr.bf16.mxu1 %v3620_v0 }
 0xde5   :  { %v2271_v50 = vadd.f32 1e-05, %v2268_v14 }
 0xde6   :  { %v4519_v26 = vpop.permute.xlu1 %2296 }
 0xde7   :  { %3598 = vrsqrt.f32 %v2271_v50  ;;  %3487 = vmatpush3.bf16.msra.mxu1 %v4278_v21 }
 0xdf1   :  { %v3599_v23 = vpop.eup %3598 }
 0xdf2   :  { %v2277_v47 = vmul.f32 %v3599_v23, %v4466_v7 }
 0xdf4   :  { %v2280_v59 = vmul.f32 %v3617_v10, %v2277_v47  ;;  %v1402_v10 = vsel %vm53_vm0, %v4553_v3, 0.0 }
 0xdf6   :  { %v2283_v25 = vadd.f32 %v3618_v36, %v2280_v59 }
 0xdf8   :  { %v4522_v1 = vmul.f32 %v4519_v26, %v2283_v25 }
 0xdfa   :  { %2304 = vst.msk [vmem:[#allocation2 + $0x14] sm:$0xff] %vm53_vm0, %v4522_v1 }
 0xe01   :  { %v2372_v15 = vld [vmem:[#allocation2 + $0xd] sm:$0xff]  ;;  %v2427_v21 = vld [vmem:[#allocation2 + $0x18] sm:$0xff] }
 0xe02   :  { %v2313_v5 = vld [vmem:[#allocation2 + $0x11] sm:$0xff]  ;;  %2379 = vrot.lane.b32.xlu0 %v2372_v15, %s3629_s21  ;;  %2430 = vst.msk [vmem:[#allocation3 + $0x40] sm:$0xff] %vm53_vm0, %v2427_v21 }
 0xe03   :  { %2321 = vrot.lane.b32.xlu1 %v2313_v5, %s3629_s21  ;;  %v2426_v0 = vld [vmem:[#allocation2 + $0x10] sm:$0xff] }
 0xe04   :  { %2429 = vst.msk [vmem:[#allocation3 + $0x28] sm:$0xff] %vm53_vm0, %v2426_v0  ;;  %2310 = vst.msk [vmem:[#allocation3 + $0x30] sm:$0xff] %vm53_vm0, %v2426_v0  ;;  %v2367_v28 = vld [vmem:[#allocation2 + $0x14] sm:$0xff] }
 0xe05   :  { %v2390_v51 = vld [vmem:[#allocation2 + $0xe] sm:$0xff]  ;;  %2370 = vst.msk [vmem:[#allocation3 + $0x38] sm:$0xff] %vm53_vm0, %v2367_v28  ;;  %v2391_v29 = vld [vmem:[#allocation2 + $0x16] sm:$0xff] }
 0xe06   :  { %v2331_v7 = vld [vmem:[#allocation2 + $0x12] sm:$0xff]  ;;  %2397 = vrot.lane.b32.xlu0 %v2390_v51, %s3626_s19 }
 0xe07   :  { %2339 = vrot.lane.b32.xlu1 %v2331_v7, %s3626_s19  ;;  %v2408_v43 = vld [vmem:[#allocation2 + $0xf] sm:$0xff]  ;;  %v2409_v27 = vld [vmem:[#allocation2 + $0x17] sm:$0xff] }
 0xe08   :  { %v2349_v40 = vld [vmem:[#allocation2 + $0x13] sm:$0xff] }
 0xe09   :  { %v2373_v57 = vld [vmem:[#allocation2 + $0x15] sm:$0xff]  ;;  %v2439_v38 = vld [vmem:[#allocation3 + $0x40] sm:$0xff] }
 0xe0a   :  { %2415 = vrot.lane.b32.xlu0 %v2408_v43, %s3624_s30 }
 0xe0b   :  { %v2436_v34 = vld [vmem:[#allocation3 + $0x28] sm:$0xff]  ;;  %2357 = vrot.lane.b32.xlu1 %v2349_v40, %s3624_s30 }
 0xe0c   :  { %3306 = vmatmul.mubr.msk.f32.gmra.mrb[50].mxu1 %vm53_vm0, %v2436_v34 }
 0xe0d   :  { %3308 = vmatprep.mubr.msk.f32.mxu1 %vm3621_vm1, %v3622_v4 }
 0xe0e   :  { %2381 = vrot.lane.b32.xlu0 %v2373_v57, %s3629_s21 }
 0xe10   :  { %3309 = vmatmul.mubr.msk.f32.gmra.mrb[52].mxu1 %vm53_vm0, %v2439_v38 }
 0xe11   :  { %3327 = vmatprep.mubr.msk.f32.mxu1 %vm3621_vm1, %v3622_v4 }
 0xe12   :  { %2399 = vrot.lane.b32.xlu0 %v2391_v29, %s3626_s19 }
 0xe16   :  { %2417 = vrot.lane.b32.xlu0 %v2409_v27, %s3624_s30 }
 0xe2f   :  { %1403 = vadd.xlane.f32.xlu1 %v1402_v10  ;;  %v3619_v10 = vld [vmem:[%s4672_s11] ss:$0 sm:$0xff] }
 0xe35   :  { %1400 = vadd.xlane.f32.xlu0 %v1399_v16 }
 0xe39   :  { %1406 = vadd.xlane.f32.xlu0 %v1405_v19 }
 0xe3f   :  { %v2318_v56 = vpop.permute.xlu1 %2317 }
 0xe40   :  { %2326 = vst.msk [vmem:[#allocation3] sm:$0xff] %vm1005_vm5, %v2318_v56 }
 0xe43   :  { %v2378_v36 = vpop.permute.xlu0 %2377  ;;  %v2336_v37 = vpop.permute.xlu1 %2335 }
 0xe44   :  { %2386 = vst.msk [vmem:[#allocation3 + $0x8] sm:$0xff] %vm1005_vm5, %v2378_v36 }
 0xe45   :  { %2344 = vst.msk [vmem:[#allocation3] sm:$0xff] %vm1024_vm6, %v2336_v37 }
 0xe47   :  { %v2396_v11 = vpop.permute.xlu0 %2395  ;;  %v2354_v9 = vpop.permute.xlu1 %2353 }
 0xe48   :  { %2404 = vst.msk [vmem:[#allocation3 + $0x8] sm:$0xff] %vm1024_vm6, %v2396_v11 }
 0xe49   :  { %2362 = vst.msk [vmem:[#allocation3] sm:$0xff] %vm1043_vm7, %v2354_v9 }
 0xe4b   :  { %v2414_v35 = vpop.permute.xlu0 %2413  ;;  %v2320_v52 = vpop.permute.xlu1 %2319 }
 0xe4c   :  { %2422 = vst.msk [vmem:[#allocation3 + $0x8] sm:$0xff] %vm1043_vm7, %v2414_v35 }
 0xe4d   :  { %2327 = vst.msk [vmem:[#allocation3 + $0x18] sm:$0xff] %vm1005_vm5, %v2320_v52 }
 0xe4f   :  { %v2338_v61 = vpop.permute.xlu1 %2337 }
 0xe50   :  { %2345 = vst.msk [vmem:[#allocation3 + $0x18] sm:$0xff] %vm1024_vm6, %v2338_v61  ;;  %v2431_v32 = vld [vmem:[#allocation3] sm:$0xff] }
 0xe53   :  { %v2432_v12 = vld [vmem:[#allocation3 + $0x8] sm:$0xff]  ;;  %v2356_v62 = vpop.permute.xlu1 %2355 }
 0xe54   :  { %2513 = vmatprep.mubr.f32.mxu0 %v2432_v12  ;;  %2363 = vst.msk [vmem:[#allocation3 + $0x18] sm:$0xff] %vm1043_vm7, %v2356_v62 }
 0xe55   :  { %2514 = vmatmul.mubr.f32.vlgmr.msra.gmra.mrb[54].mxu0 %v2431_v32 }
 0xe5b   :  { %v2434_v2 = vld [vmem:[#allocation3 + $0x18] sm:$0xff] }
 0xe74   :  { %v2380_v44 = vpop.permute.xlu0 %2379 }
 0xe75   :  { %v2322_v49 = vpop.permute.xlu1 %2321  ;;  %2387 = vst.msk [vmem:[#allocation3 + $0x20] sm:$0xff] %vm1005_vm5, %v2380_v44 }
 0xe76   :  { %2328 = vst.msk [vmem:[#allocation3 + $0x30] sm:$0xff] %vm1005_vm5, %v2322_v49 }
 0xe78   :  { %v2398_v24 = vpop.permute.xlu0 %2397 }
 0xe79   :  { %v2340_v20 = vpop.permute.xlu1 %2339  ;;  %2405 = vst.msk [vmem:[#allocation3 + $0x20] sm:$0xff] %vm1024_vm6, %v2398_v24 }
 0xe7a   :  { %2346 = vst.msk [vmem:[#allocation3 + $0x30] sm:$0xff] %vm1024_vm6, %v2340_v20 }
 0xe7c   :  { %v2416_v39 = vpop.permute.xlu0 %2415 }
 0xe7d   :  { %v2358_v45 = vpop.permute.xlu1 %2357  ;;  %2423 = vst.msk [vmem:[#allocation3 + $0x20] sm:$0xff] %vm1043_vm7, %v2416_v39 }
 0xe7e   :  { %2364 = vst.msk [vmem:[#allocation3 + $0x30] sm:$0xff] %vm1043_vm7, %v2358_v45 }
 0xe80   :  { %v2382_v41 = vpop.permute.xlu0 %2381 }
 0xe81   :  { %2388 = vst.msk [vmem:[#allocation3 + $0x38] sm:$0xff] %vm1005_vm5, %v2382_v41 }
 0xe84   :  { %v2400_v54 = vpop.permute.xlu0 %2399  ;;  %v2435_v53 = vld [vmem:[#allocation3 + $0x20] sm:$0xff] }
 0xe85   :  { %2406 = vst.msk [vmem:[#allocation3 + $0x38] sm:$0xff] %vm1024_vm6, %v2400_v54  ;;  %2518 = vmatprep.mubr.f32.mxu0 %v2435_v53  ;;  %v2437_v14 = vld [vmem:[#allocation3 + $0x30] sm:$0xff] }
 0xe86   :  { %2519 = vmatmul.mubr.f32.gmra.mrb[56].mxu0 %v2434_v2 }
 0xe88   :  { %v2418_v31 = vpop.permute.xlu0 %2417 }
 0xe89   :  { %2424 = vst.msk [vmem:[#allocation3 + $0x38] sm:$0xff] %vm1043_vm7, %v2418_v31 }
 0xe90   :  { %v2438_v13 = vld [vmem:[#allocation3 + $0x38] sm:$0xff] }
 0xe91   :  { %2523 = vmatprep.mubr.f32.mxu0 %v2438_v13 }
 0xe92   :  { %2524 = vmatmul.mubr.f32.gmra.mrb[58].mxu0 %v2437_v14 }
 0xead   :  { %v2595_v50 = vpop.f32.mrb[48].mxu1 }
 0xeae   :  { %v3304_v23 = vpop.f32.mrb[49].mxu1 }
 0xebc   :  { %v1404_v20 = vpop.xlane.xlu1 %1403 }
 0xebd   :  { %v1409_v39 = vmul.f32 0.03125, %v1404_v20 }
 0xec2   :  { %v1401_v11 = vpop.xlane.xlu0 %1400 }
 0xec3   :  { %v1408_v9 = vmul.f32 0.03125, %v1401_v11 }
 0xec5   :  { %v1411_v61 = vsub.f32 %v4562_v22, %v1408_v9  ;;  %v1412_v22 = vsub.f32 %v4553_v3, %v1409_v39 }
 0xec6   :  { %v1407_v35 = vpop.xlane.xlu0 %1406 }
 0xec7   :  { %v1410_v12 = vmul.f32 0.03125, %v1407_v35  ;;  %v1415_v13 = vmul.f32 %v1412_v22, %v1412_v22 }
 0xec9   :  { %v1413_v49 = vsub.f32 %v4567_v63, %v1410_v12  ;;  %v1420_v14 = vsel %vm53_vm0, %v1415_v13, 0.0 }
 0xecb   :  { %v1416_v41 = vmul.f32 %v1413_v49, %v1413_v49 }
 0xedf   :  { %v2600_v47 = vpop.f32.mrb[50].mxu1 }
 0xee0   :  { %v3307_v59 = vpop.f32.mrb[51].mxu1 }
 0xee3   :  { %v2605_v25 = vpop.f32.mrb[52].mxu1 }
 0xee4   :  { %v3310_v15 = vpop.f32.mrb[53].mxu1 }
 0xf28   :  { %v3019_v5 = vpop.f32.mrb[54].mxu0 }
 0xf29   :  { %v3020_v0 = vpop.f32.mrb[55].mxu0 }
 0xf2a   :  { %v3021_v21 = vadd.f32 %v3020_v0, %v3019_v5 }
 0xf2c   :  { %v2516_v28 = vadd.f32 %v3021_v21, %v4285_v30 }
 0xf2e   :  { %v2596_v51 = vadd.f32 %v2595_v50, %v2516_v28 }
 0xf30   :  { %v2609_v7 = vmax.f32 %v2596_v51, 0.0 }
 0xf32   :  { %3328 = vmatmul.mubr.msk.f32.vlgmr.msra.gmra.mrb[54].mxu1 %vm1306_vm8, %v2609_v7 }
 0xf33   :  { %3330 = vmatprep.mubr.msk.f32.mxu1 %vm3621_vm1, %v3622_v4 }
 0xf59   :  { %v3022_v43 = vpop.f32.mrb[56].mxu0 }
 0xf5a   :  { %v3023_v40 = vpop.f32.mrb[57].mxu0 }
 0xf5b   :  { %v3024_v34 = vadd.f32 %v3023_v40, %v3022_v43 }
 0xf5d   :  { %v2521_v57 = vadd.f32 %v3024_v34, %v4285_v30 }
 0xf5f   :  { %v2601_v38 = vadd.f32 %v2600_v47, %v2521_v57 }
 0xf61   :  { %v2610_v29 = vmax.f32 %v2601_v38, 0.0 }
 0xf63   :  { %3331 = vmatmul.mubr.msk.f32.gmra.mrb[56].mxu1 %vm1306_vm8, %v2610_v29 }
 0xf64   :  { %3333 = vmatprep.mubr.msk.f32.mxu1 %vm3621_vm1, %v3622_v4 }
 0xf65   :  { %v3025_v27 = vpop.f32.mrb[58].mxu0 }
 0xf66   :  { %v3026_v46 = vpop.f32.mrb[59].mxu0 }
 0xf67   :  { %v3027_v8 = vadd.f32 %v3026_v46, %v3025_v27 }
 0xf69   :  { %v2526_v18 = vadd.f32 %v3619_v10, %v3027_v8  ;;  %v2800_v8 = vld [vmem:[%s4674_s14] ss:$0 sm:$0xff] }
 0xf6b   :  { %v2606_v16 = vadd.f32 %v2605_v25, %v2526_v18 }
 0xf6d   :  { %v2611_v19 = vmax.f32 %v2606_v16, 0.0 }
 0xf6f   :  { %3334 = vmatmul.mubr.msk.f32.gmra.mrb[58].mxu1 %vm1306_vm8, %v2611_v19  ;;  %v2801_v19 = vld [vmem:[%s4675_s15] ss:$0 sm:$0xff] }
0x1005   :  { %v2687_v30 = vpop.f32.mrb[54].mxu1 }
0x1006   :  { %v2688_v56 = vadd.f32 %v4548_v55, %v2687_v30  ;;  %v3329_v36 = vpop.f32.mrb[55].mxu1 }
0x1008   :  { %v2701_v37 = vadd.f32 %v2688_v56, %v4483_v58  ;;  %v1414_v58 = vmul.f32 %v1411_v61, %v1411_v61 }
0x100a   :  { %v2704_v4 = vsel %vm53_vm0, %v2701_v37, 0.0  ;;  %v1417_v45 = vsel %vm53_vm0, %v1414_v58, 0.0 }
0x100b   :  { %2705 = vadd.xlane.f32.xlu0 %v2704_v4 }
0x1036   :  { %v2692_v52 = vpop.f32.mrb[56].mxu1 }
0x1037   :  { %v2693_v62 = vadd.f32 %v4548_v55, %v2692_v52  ;;  %v3332_v32 = vpop.f32.mrb[57].mxu1 }
0x1039   :  { %v2702_v44 = vadd.f32 %v2693_v62, %v4490_v6  ;;  %v1423_v6 = vsel %vm53_vm0, %v1416_v41, 0.0 }
0x103b   :  { %v2707_v24 = vsel %vm53_vm0, %v2702_v44, 0.0 }
0x103c   :  { %2708 = vadd.xlane.f32.xlu1 %v2707_v24 }
0x1040   :  { %1418 = vadd.xlane.f32.xlu1 %v1417_v45 }
0x1042   :  { %v2697_v54 = vpop.f32.mrb[58].mxu1 }
0x1043   :  { %v2698_v53 = vadd.f32 %v4548_v55, %v2697_v54  ;;  %v3335_v2 = vpop.f32.mrb[59].mxu1 }
0x1044   :  { %1424 = vadd.xlane.f32.xlu1 %v1423_v6 }
0x1045   :  { %v2703_v63 = vadd.f32 %v2698_v53, %v4522_v1 }
0x1047   :  { %v2710_v31 = vsel %vm53_vm0, %v2703_v63, 0.0 }
0x1048   :  { %2711 = vadd.xlane.f32.xlu0 %v2710_v31 }
0x104c   :  { %1421 = vadd.xlane.f32.xlu0 %v1420_v14 }
0x1098   :  { %v2706_v50 = vpop.xlane.xlu0 %2705 }
0x1099   :  { %v2713_v23 = vmul.f32 0.03125, %v2706_v50 }
0x109b   :  { %v2716_v47 = vsub.f32 %v2701_v37, %v2713_v23 }
0x109d   :  { %v2719_v59 = vmul.f32 %v2716_v47, %v2716_v47 }
0x109f   :  { %v2722_v3 = vsel %vm53_vm0, %v2719_v59, 0.0 }
0x10a0   :  { %2723 = vadd.xlane.f32.xlu0 %v2722_v3 }
0x10c9   :  { %v2709_v55 = vpop.xlane.xlu1 %2708 }
0x10ca   :  { %v2714_v25 = vmul.f32 0.03125, %v2709_v55 }
0x10cc   :  { %v4617_v15 = vsub.f32 %v2702_v44, %v2714_v25 }
0x10cd   :  { %v1419_v5 = vpop.xlane.xlu1 %1418 }
0x10ce   :  { %v1426_v1 = vmul.f32 0.03125, %v1419_v5  ;;  %v2720_v0 = vmul.f32 %v4617_v15, %v4617_v15 }
0x10d0   :  { %v1429_v21 = vadd.f32 1e-05, %v1426_v1  ;;  %v2725_v28 = vsel %vm53_vm0, %v2720_v0, 0.0 }
0x10d1   :  { %2726 = vadd.xlane.f32.xlu1 %v2725_v28  ;;  %v1425_v51 = vpop.xlane.xlu1 %1424 }
0x10d2   :  { %3600 = vrsqrt.f32 %v1429_v21  ;;  %v1428_v7 = vmul.f32 0.03125, %v1425_v51 }
0x10d4   :  { %v1431_v43 = vadd.f32 1e-05, %v1428_v7 }
0x10d5   :  { %v2712_v40 = vpop.xlane.xlu0 %2711 }
0x10d6   :  { %3602 = vrsqrt.f32 %v1431_v43  ;;  %v2715_v34 = vmul.f32 0.03125, %v2712_v40 }
0x10d8   :  { %v2718_v57 = vsub.f32 %v2703_v63, %v2715_v34 }
0x10d9   :  { %v1422_v38 = vpop.xlane.xlu0 %1421 }
0x10da   :  { %v1427_v29 = vmul.f32 0.03125, %v1422_v38  ;;  %v2721_v27 = vmul.f32 %v2718_v57, %v2718_v57 }
0x10dc   :  { %v3601_v46 = vpop.eup %3600  ;;  %v1430_v10 = vadd.f32 1e-05, %v1427_v29  ;;  %v2728_v18 = vsel %vm53_vm0, %v2721_v27, 0.0 }
0x10dd   :  { %v1435_v16 = vmul.f32 %v3601_v46, %v1411_v61  ;;  %2729 = vadd.xlane.f32.xlu0 %v2728_v18 }
0x10de   :  { %3604 = vrsqrt.f32 %v1430_v10 }
0x10df   :  { %v1444_v30 = vmul.f32 %v2800_v8, %v1435_v16 }
0x10e0   :  { %v3603_v56 = vpop.eup %3602 }
0x10e1   :  { %v1453_v36 = vadd.f32 %v2801_v19, %v1444_v30  ;;  %v1437_v37 = vmul.f32 %v3603_v56, %v1413_v49 }
0x10e3   :  { %v1456_v4 = vmul.f32 %v1453_v36, %v3992_v60  ;;  %v1446_v11 = vmul.f32 %v2800_v8, %v1437_v37 }
0x10e5   :  { %1459 = vst.msk [vmem:[%s4676_s16] sm:$0xff] %vm53_vm0, %v1456_v4  ;;  %v1455_v9 = vadd.f32 %v2801_v19, %v1446_v11 }
0x10e7   :  { %v1458_v35 = vmul.f32 %v1455_v9, %v4156_v33 }
0x10e8   :  { %v3605_v52 = vpop.eup %3604 }
0x10e9   :  { %1461 = vst.msk [vmem:[%s4676_s16 + $0x10] sm:$0xff] %vm53_vm0, %v1458_v35  ;;  %v1436_v61 = vmul.f32 %v3605_v52, %v1412_v22 }
0x10eb   :  { %v1445_v12 = vmul.f32 %v2800_v8, %v1436_v61 }
0x10ed   :  { %v1454_v62 = vadd.f32 %v2801_v19, %v1445_v12 }
0x10ef   :  { %v1457_v60 = vmul.f32 %v1454_v62, %v4034_v17 }
0x10f1   :  { %1460 = vst.msk [vmem:[%s4676_s16 + $0x8] sm:$0xff] %vm53_vm0, %v1457_v60 }
0x112d   :  { %v2724_v32 = vpop.xlane.xlu0 %2723 }
0x112e   :  { %v2731_v44 = vmul.f32 0.03125, %v2724_v32 }
0x1130   :  { %v2734_v49 = vadd.f32 1e-05, %v2731_v44 }
0x1132   :  { %3606 = vrsqrt.f32 %v2734_v49 }
0x113c   :  { %v3607_v33 = vpop.eup %3606 }
0x113d   :  { %v2740_v24 = vmul.f32 %v3607_v33, %v2716_v47 }
0x113f   :  { %v2743_v58 = vmul.f32 %v2800_v8, %v2740_v24 }
0x1141   :  { %v2746_v20 = vadd.f32 %v2801_v19, %v2743_v58 }
0x1143   :  { %v2749_v39 = vmul.f32 %v2746_v20, %v4480_v48 }
0x1145   :  { %2843 = vst.msk [vmem:[%s4676_s16 + $0x18] sm:$0xff] %vm53_vm0, %v2749_v39 }
0x115e   :  { %v2727_v17 = vpop.xlane.xlu1 %2726 }
0x115f   :  { %v2732_v45 = vmul.f32 0.03125, %v2727_v17 }
0x1161   :  { %v2735_v41 = vadd.f32 1e-05, %v2732_v45 }
0x1163   :  { %3608 = vrsqrt.f32 %v2735_v41 }
0x116a   :  { %v2730_v54 = vpop.xlane.xlu0 %2729 }
0x116b   :  { %v2733_v22 = vmul.f32 0.03125, %v2730_v54 }
0x116d   :  { %v3609_v53 = vpop.eup %3608  ;;  %v2736_v2 = vadd.f32 1e-05, %v2733_v22 }
0x116e   :  { %v2741_v6 = vmul.f32 %v3609_v53, %v4617_v15 }
0x116f   :  { %3610 = vrsqrt.f32 %v2736_v2 }
0x1170   :  { %v2744_v63 = vmul.f32 %v2800_v8, %v2741_v6 }
0x1172   :  { %v2747_v31 = vadd.f32 %v2801_v19, %v2744_v63 }
0x1174   :  { %v2750_v48 = vmul.f32 %v2747_v31, %v4487_v42 }
0x1176   :  { %2844 = vst.msk [vmem:[%s4676_s16 + $0x20] sm:$0xff] %vm53_vm0, %v2750_v48 }
0x1179   :  { %v3611_v13 = vpop.eup %3610 }
0x117a   :  { %v2742_v14 = vmul.f32 %v3611_v13, %v2718_v57 }
0x117c   :  { %v2745_v50 = vmul.f32 %v2800_v8, %v2742_v14 }
0x117e   :  { %v2748_v23 = vadd.f32 %v2801_v19, %v2745_v50 }
0x1180   :  { %v2751_v47 = vmul.f32 %v2748_v23, %v4519_v26 }
0x1182   :  { %2845 = vst.msk [vmem:[%s4676_s16 + $0x28] sm:$0xff] %vm53_vm0, %v2751_v47 }

// kernel: fastspeech2_forward.17
= control target key start
LH: loop header
LB: loop body
LE: loop exit
PB: predicated region body
PF: predicated region fallthrough
CT: control target
= control target key end

     0   :  { %vm44_vm0 = vcmask 261120   ;;  %v2671_v0 = vmov 0.0|0.0   ;;  %vm2672_vm1 = vmmov 0   ;;  %v2673_v4 = vmov 0.0   ;;  %s2674_s14 = smov 8   ;;  %s2675_s17 = smov 16   ;;  %s3815_s1 = inlined_call_operand.vmem [shape: f32[32,8], index: 1, kind: input, shape index: {}]   ;;  %s3816_s0 = inlined_call_operand.vmem [shape: f32[2,24,32], index: 0, kind: input, shape index: {}]   ;;  %s3817_s2 = inlined_call_operand.vmem [shape: f32[1,8], index: 2, kind: input, shape index: {}]   ;;  %s3818_s3 = inlined_call_operand.vmem [shape: f32[40,32], index: 3, kind: input, shape index: {}]   ;;  %s3819_s5 = inlined_call_operand.vmem [shape: f32[160,32], index: 5, kind: input, shape index: {}]   ;;  %s3820_s4 = inlined_call_operand.vmem [shape: f32[1,32], index: 4, kind: input, shape index: {}]   ;;  %s3821_s7 = inlined_call_operand.vmem [shape: f32[160,32], index: 7, kind: input, shape index: {}]   ;;  %s3822_s6 = inlined_call_operand.vmem [shape: f32[1,32], index: 6, kind: input, shape index: {}]   ;;  %s3823_s9 = inlined_call_operand.vmem [shape: f32[160,32], index: 9, kind: input, shape index: {}]   ;;  %s3824_s8 = inlined_call_operand.vmem [shape: f32[1,32], index: 8, kind: input, shape index: {}]   ;;  %s3825_s11 = inlined_call_operand.vmem [shape: f32[160,8], index: 11, kind: input, shape index: {}]   ;;  %s3826_s10 = inlined_call_operand.vmem [shape: f32[1,32], index: 10, kind: input, shape index: {}]   ;;  %s3827_s12 = inlined_call_operand.vmem [shape: f32[1,8], index: 12, kind: input, shape index: {}]   ;;  %s3828_s13 = inlined_call_operand.vmem [shape: f32[2,24,8], index: 13, kind: output, shape index: {}]  }
   0x1   :  { %2349 = vmatprep.subr.bf16.mxu0 %v2671_v0  ;;  %v50_v1 = vld [vmem:[%s3815_s1] sm:$0xff]  ;;  %v51_v2 = vld [vmem:[%s3815_s1 + $0x8] sm:$0xff]  ;;  %v52_v3 = vld [vmem:[%s3815_s1 + $0x10] sm:$0xff]  ;;  %2285 = vmatprep.mubr.msk.f32.mxu0 %vm2672_vm1, %v2673_v4  ;;  %45 = vst.msk [vmem:[#allocation2] sm:$0xff] %vm44_vm0, %v2673_v4  ;;  %vm48_vm2 = vcmask 257024   ;;  %vm159_vm3 = vcmask 64512  }
   0x2   :  { %46 = vst.msk [vmem:[#allocation2 + $0x8] sm:$0xff] %vm44_vm0, %v2673_v4  ;;  %47 = vst.msk [vmem:[#allocation2 + $0x10] sm:$0xff] %vm44_vm0, %v2673_v4  ;;  %v2768_v5 = vpack.c.bf16 %v51_v2, %v50_v1  ;;  %v53_v6 = vld [vmem:[%s3815_s1 + $0x18] sm:$0xff]  ;;  %2355 = vmatprep.subr.bf16.mxu1 %v2671_v0  ;;  %2304 = vmatprep.mubr.msk.f32.mxu1 %vm2672_vm1, %v2673_v4  ;;  %v55_v8 = vld [vmem:[%s3816_s0] sm:$0xff]  ;;  %s2676_s1 = smov 24   ;;  %s2677_s18 = smov 32  }
   0x3   :  { %v2777_v7 = vpack.c.bf16 %v53_v6, %v52_v3  ;;  %v56_v9 = vld [vmem:[%s3816_s0 + $0x8] sm:$0xff]  ;;  %v57_v10 = vld [vmem:[%s3816_s0 + $0x10] sm:$0xff]  ;;  %49 = vst.msk [vmem:[#allocation2 + $0x18] sm:$0xf] %vm48_vm2, %v2673_v4  ;;  %v2194_v11 = vld [vmem:[%s3817_s2] ss:$0 sm:$0xff] }
   0x4   :  { %2351 = vmatpush3.bf16.msra.mxu0 %v2768_v5  ;;  %v153_v15 = vld [vmem:[%s3818_s3] sm:$0xff]  ;;  %v154_v16 = vld [vmem:[%s3818_s3 + $0x8] sm:$0xff]  ;;  %v155_v21 = vld [vmem:[%s3818_s3 + $0x10] sm:$0xff]  ;;  %vm184_vm4 = vcmask 130112   ;;  %vm203_vm5 = vcmask 195712   ;;  %vm222_vm6 = vcmask 261312  }
   0x5   :  { %2352 = vmatprep.subr.bf16.mxu0 %v2671_v0  ;;  %v2356_v18 = vpack.c.bf16 %v154_v16, %v153_v15  ;;  %v156_v22 = vld [vmem:[%s3818_s3 + $0x18] sm:$0xff]  ;;  %v157_v29 = vld [vmem:[%s3818_s3 + $0x20] sm:$0xff]  ;;  %vm241_vm7 = vcmask 326912   ;;  %vm254_vm8 = vcmask 326656   ;;  %v348_v59 = vld [vmem:[%s3819_s5 + $0x8] sm:$0xff]  ;;  %s2678_s19 = smov 64  }
   0x6   :  { %v2359_v23 = vpack.c.bf16 %v156_v22, %v155_v21  ;;  %v347_v58 = vld [vmem:[%s3819_s5] sm:$0xff]  ;;  %v349_v60 = vld [vmem:[%s3819_s5 + $0x10] sm:$0xff]  ;;  %v350_v62 = vld [vmem:[%s3819_s5 + $0x18] sm:$0xff]  ;;  %s2679_s20 = smov 96   ;;  %vm392_vm9 = vcmask 523520   ;;  %vm411_vm10 = vcmask 785920  }
   0x7   :  { %2357 = vmatpush3.bf16.msra.mxu1 %v2356_v18  ;;  %v2362_v61 = vpack.c.bf16 %v348_v59, %v347_v58  ;;  %v2365_v63 = vpack.c.bf16 %v350_v62, %v349_v60  ;;  %v351_v1 = vld [vmem:[%s3819_s5 + $0x20] sm:$0xff]  ;;  %v352_v2 = vld [vmem:[%s3819_s5 + $0x28] sm:$0xff]  ;;  %v353_v6 = vld [vmem:[%s3819_s5 + $0x30] sm:$0xff]  ;;  %vm430_vm11 = vcmask 1048320  }
   0x8   :  { %2354 = vmatpush3.bf16.msra.mxu0 %v2777_v7  ;;  %2358 = vmatprep.subr.bf16.mxu1 %v2671_v0  ;;  %v2368_v3 = vpack.c.bf16 %v352_v2, %v351_v1  ;;  %v358_v15 = vld [vmem:[%s3819_s5 + $0x58] sm:$0xff] }
   0x9   :  { %2361 = vmatprep.subr.bf16.mxu0 %v2671_v0 }
   0xb   :  { %2286 = vmatmul.mubr.msk.f32.vlgmr.msra.gmra.mrb[0].mxu0 %vm44_vm0, %v55_v8  ;;  %2360 = vmatpush3.bf16.msra.mxu1 %v2359_v23  ;;  %v354_v8 = vld [vmem:[%s3819_s5 + $0x38] sm:$0xff]  ;;  %v359_v23 = vld [vmem:[%s3819_s5 + $0x60] sm:$0xff] }
   0xc   :  { %2288 = vmatprep.mubr.msk.f32.mxu0 %vm2672_vm1, %v2673_v4  ;;  %2302 = vmatprep.subr.mxu1 %v2673_v4 }
   0xd   :  { %2363 = vmatpush1.bf16.msra.mxu0 %v2362_v61 }
   0xe   :  { %2364 = vmatprep.subr.bf16.mxu0 %v2671_v0 }
   0xf   :  { %2289 = vmatmul.mubr.msk.f32.gmra.mrb[2].mxu0 %vm44_vm0, %v56_v9  ;;  %2303 = vmatpush3.msra.mxu1 %v157_v29  ;;  %v2371_v9 = vpack.c.bf16 %v354_v8, %v353_v6  ;;  %v361_v29 = vld [vmem:[%s3819_s5 + $0x70] sm:$0xff] }
  0x10   :  { %2291 = vmatprep.mubr.msk.f32.mxu0 %vm2672_vm1, %v2673_v4  ;;  %2391 = vmatprep.subr.bf16.mxu1 %v2671_v0 }
  0x11   :  { %2366 = vmatpush1.bf16.msra.mxu0 %v2365_v63 }
  0x12   :  { %2367 = vmatprep.subr.bf16.mxu0 %v2671_v0 }
  0x13   :  { %2292 = vmatmul.mubr.msk.f32.gmra.mrb[4].mxu0 %vm44_vm0, %v57_v10  ;;  %v355_v10 = vld [vmem:[%s3819_s5 + $0x40] sm:$0xff] }
  0x15   :  { %2369 = vmatpush1.bf16.msra.mxu0 %v2368_v3 }
  0x16   :  { %2370 = vmatprep.subr.bf16.mxu0 %v2671_v0 }
  0x19   :  { %2372 = vmatpush1.bf16.msra.mxu0 %v2371_v9 }
  0x1a   :  { %2373 = vmatprep.subr.bf16.mxu0 %v2671_v0 }
  0xde   :  { %v139_v12 = vpop.f32.mrb[0].mxu0 }
  0xdf   :  { %v2802_v13 = vadd.f32 %v2194_v11, %v139_v12  ;;  %v2287_v14 = vpop.f32.mrb[1].mxu0 }
  0xe0   :  { %v357_v14 = vld [vmem:[%s3819_s5 + $0x50] sm:$0xff] }
  0xe1   :  { %160 = vst.msk [vmem:[#allocation2 + $0x2] sm:$0xff] %vm159_vm3, %v2802_v13  ;;  %v2377_v16 = vpack.c.bf16 %v358_v15, %v357_v14  ;;  %v544_v15 = vld [vmem:[%s3821_s7] sm:$0xff] }
  0xe2   :  { %v144_v17 = vpop.f32.mrb[2].mxu0 }
  0xe3   :  { %v2812_v19 = vadd.f32 %v2194_v11, %v144_v17  ;;  %v2290_v20 = vpop.f32.mrb[3].mxu0  ;;  %v2198_v17 = vld [vmem:[%s3820_s4] ss:$0 sm:$0xff] }
  0xe5   :  { %161 = vst.msk [vmem:[#allocation2 + $0xa] sm:$0xff] %vm159_vm3, %v2812_v19 }
  0xe6   :  { %v149_v24 = vpop.f32.mrb[4].mxu0 }
  0xe7   :  { %v2823_v25 = vadd.f32 %v2194_v11, %v149_v24  ;;  %v2293_v26 = vpop.f32.mrb[5].mxu0  ;;  %v356_v11 = vld [vmem:[%s3819_s5 + $0x48] sm:$0xff] }
  0xe8   :  { %v169_v27 = vld [vmem:[#allocation2 + $0x1] sm:$0xff]  ;;  %v2374_v12 = vpack.c.bf16 %v356_v11, %v355_v10 }
  0xe9   :  { %v163_v28 = vld [vmem:[#allocation2] sm:$0xff]  ;;  %162 = vst.msk [vmem:[#allocation2 + $0x12] sm:$0xff] %vm159_vm3, %v2823_v25  ;;  %175 = vrot.lane.b32.xlu0 %v169_v27, %s2674_s14  ;;  %v360_v24 = vld [vmem:[%s3819_s5 + $0x68] sm:$0xff] }
  0xea   :  { %166 = vst.msk [vmem:[#allocation3] sm:$0xff] %vm159_vm3, %v163_v28  ;;  %v188_v32 = vld [vmem:[#allocation2 + $0x2] sm:$0xff]  ;;  %2375 = vmatpush1.bf16.msra.mxu0 %v2374_v12  ;;  %v2380_v28 = vpack.c.bf16 %v360_v24, %v359_v23 }
  0xeb   :  { %2376 = vmatprep.subr.bf16.mxu0 %v2671_v0  ;;  %v549_v23 = vld [vmem:[%s3821_s7 + $0x28] sm:$0xff] }
  0xec   :  { %v164_v30 = vld [vmem:[#allocation2 + $0x8] sm:$0xff] }
  0xed   :  { %v207_v31 = vld [vmem:[#allocation2 + $0x3] sm:$0xff]  ;;  %167 = vst.msk [vmem:[#allocation3 + $0x10] sm:$0xff] %vm159_vm3, %v164_v30  ;;  %194 = vrot.lane.b32.xlu0 %v188_v32, %s2675_s17  ;;  %v362_v30 = vld [vmem:[%s3819_s5 + $0x78] sm:$0xff] }
  0xee   :  { %213 = vrot.lane.b32.xlu1 %v207_v31, %s2676_s1  ;;  %v170_v33 = vld [vmem:[#allocation2 + $0x9] sm:$0xff]  ;;  %2378 = vmatpush1.bf16.msra.mxu0 %v2377_v16  ;;  %v2383_v31 = vpack.c.bf16 %v362_v30, %v361_v29  ;;  %v552_v29 = vld [vmem:[%s3821_s7 + $0x40] sm:$0xff] }
  0xef   :  { %v226_v34 = vld [vmem:[#allocation2 + $0x4] sm:$0xff]  ;;  %2379 = vmatprep.subr.bf16.mxu0 %v2671_v0 }
  0xf0   :  { %v165_v35 = vld [vmem:[#allocation2 + $0x10] sm:$0xff]  ;;  %v545_v16 = vld [vmem:[%s3821_s7 + $0x8] sm:$0xff] }
  0xf1   :  { %168 = vst.msk [vmem:[#allocation3 + $0x20] sm:$0xff] %vm159_vm3, %v165_v35  ;;  %177 = vrot.lane.b32.xlu0 %v170_v33, %s2674_s14  ;;  %v208_v36 = vld [vmem:[#allocation2 + $0xb] sm:$0xff]  ;;  %v209_v41 = vld [vmem:[#allocation2 + $0x13] sm:$0xff] }
  0xf2   :  { %232 = vrot.lane.b32.xlu1 %v226_v34, %s2677_s18  ;;  %v189_v37 = vld [vmem:[#allocation2 + $0xa] sm:$0xff]  ;;  %v190_v40 = vld [vmem:[#allocation2 + $0x12] sm:$0xff]  ;;  %2381 = vmatpush1.bf16.msra.mxu0 %v2380_v28  ;;  %v363_v34 = vld [vmem:[%s3819_s5 + $0x80] sm:$0xff] }
  0xf3   :  { %v171_v38 = vld [vmem:[#allocation2 + $0x11] sm:$0xff]  ;;  %2382 = vmatprep.subr.bf16.mxu0 %v2671_v0  ;;  %v364_v35 = vld [vmem:[%s3819_s5 + $0x88] sm:$0xff] }
  0xf4   :  { %v227_v39 = vld [vmem:[#allocation2 + $0xc] sm:$0xff]  ;;  %v228_v42 = vld [vmem:[#allocation2 + $0x14] sm:$0xff] }
  0xf5   :  { %215 = vrot.lane.b32.xlu0 %v208_v36, %s2676_s1  ;;  %v553_v30 = vld [vmem:[%s3821_s7 + $0x48] sm:$0xff] }
  0xf6   :  { %196 = vrot.lane.b32.xlu1 %v189_v37, %s2675_s17  ;;  %2384 = vmatpush1.bf16.msra.mxu0 %v2383_v31  ;;  %v2404_v31 = vpack.c.bf16 %v553_v30, %v552_v29 }
  0xf7   :  { %2385 = vmatprep.subr.bf16.mxu0 %v2671_v0 }
  0xf9   :  { %179 = vrot.lane.b32.xlu0 %v171_v38, %s2674_s14  ;;  %v2386_v38 = vpack.c.bf16 %v364_v35, %v363_v34  ;;  %v2202_v35 = vld [vmem:[%s3822_s6] ss:$0 sm:$0xff] }
  0xfa   :  { %234 = vrot.lane.b32.xlu1 %v227_v39, %s2677_s18  ;;  %v365_v39 = vld [vmem:[%s3819_s5 + $0x90] sm:$0xff] }
  0xfb   :  { %2387 = vmatpush1.bf16.msra.mxu0 %v2386_v38 }
  0xfc   :  { %2388 = vmatprep.subr.bf16.mxu0 %v2671_v0 }
  0xfd   :  { %217 = vrot.lane.b32.xlu0 %v209_v41, %s2676_s1 }
  0xfe   :  { %198 = vrot.lane.b32.xlu1 %v190_v40, %s2675_s17  ;;  %v366_v40 = vld [vmem:[%s3819_s5 + $0x98] sm:$0xff] }
 0x102   :  { %236 = vrot.lane.b32.xlu1 %v228_v42, %s2677_s18 }
 0x15b   :  { %v176_v43 = vpop.permute.xlu0 %175 }
 0x15c   :  { %185 = vst.msk [vmem:[#allocation3] sm:$0xff] %vm184_vm4, %v176_v43 }
 0x15f   :  { %v195_v44 = vpop.permute.xlu0 %194 }
 0x160   :  { %v214_v45 = vpop.permute.xlu1 %213  ;;  %204 = vst.msk [vmem:[#allocation3] sm:$0xff] %vm203_vm5, %v195_v44 }
 0x161   :  { %223 = vst.msk [vmem:[#allocation3] sm:$0xff] %vm222_vm6, %v214_v45  ;;  %v2389_v45 = vpack.c.bf16 %v366_v40, %v365_v39 }
 0x163   :  { %v178_v47 = vpop.permute.xlu0 %177  ;;  %2390 = vmatpush1.bf16.msra.mxu0 %v2389_v45  ;;  %v558_v45 = vld [vmem:[%s3821_s7 + $0x70] sm:$0xff] }
 0x164   :  { %v233_v46 = vpop.permute.xlu1 %232  ;;  %186 = vst.msk [vmem:[#allocation3 + $0x10] sm:$0xff] %vm184_vm4, %v178_v47  ;;  %2421 = vmatprep.subr.bf16.mxu0 %v2671_v0 }
 0x165   :  { %242 = vst.msk [vmem:[#allocation3] sm:$0xff] %vm241_vm7, %v233_v46 }
 0x167   :  { %v216_v49 = vpop.permute.xlu0 %215 }
 0x168   :  { %v197_v48 = vpop.permute.xlu1 %196 }
 0x169   :  { %205 = vst.msk [vmem:[#allocation3 + $0x10] sm:$0xff] %vm203_vm5, %v197_v48 }
 0x16a   :  { %224 = vst.msk [vmem:[#allocation3 + $0x10] sm:$0xff] %vm222_vm6, %v216_v49 }
 0x16b   :  { %v180_v51 = vpop.permute.xlu0 %179 }
 0x16c   :  { %v235_v50 = vpop.permute.xlu1 %234  ;;  %v245_v52 = vld [vmem:[#allocation3] sm:$0xff]  ;;  %187 = vst.msk [vmem:[#allocation3 + $0x20] sm:$0xff] %vm184_vm4, %v180_v51 }
 0x16d   :  { %243 = vst.msk [vmem:[#allocation3 + $0x10] sm:$0xff] %vm241_vm7, %v235_v50  ;;  %2305 = vmatmul.mubr.msk.f32.vlgmr.msra.gmra.mrb[0].mxu1 %vm254_vm8, %v245_v52 }
 0x16e   :  { %2307 = vmatprep.mubr.msk.f32.mxu1 %vm2672_vm1, %v2673_v4 }
 0x16f   :  { %v218_v54 = vpop.permute.xlu0 %217 }
 0x170   :  { %v199_v53 = vpop.permute.xlu1 %198 }
 0x171   :  { %206 = vst.msk [vmem:[#allocation3 + $0x20] sm:$0xff] %vm203_vm5, %v199_v53 }
 0x172   :  { %225 = vst.msk [vmem:[#allocation3 + $0x20] sm:$0xff] %vm222_vm6, %v218_v54 }
 0x174   :  { %v237_v55 = vpop.permute.xlu1 %236  ;;  %v246_v56 = vld [vmem:[#allocation3 + $0x10] sm:$0xff] }
 0x175   :  { %244 = vst.msk [vmem:[#allocation3 + $0x20] sm:$0xff] %vm241_vm7, %v237_v55  ;;  %2308 = vmatmul.mubr.msk.f32.gmra.mrb[2].mxu1 %vm254_vm8, %v246_v56 }
 0x176   :  { %2310 = vmatprep.mubr.msk.f32.mxu1 %vm2672_vm1, %v2673_v4 }
 0x17c   :  { %v247_v57 = vld [vmem:[#allocation3 + $0x20] sm:$0xff] }
 0x17d   :  { %2311 = vmatmul.mubr.msk.f32.gmra.mrb[4].mxu1 %vm254_vm8, %v247_v57 }
 0x240   :  { %v330_v18 = vpop.f32.mrb[0].mxu1 }
 0x241   :  { %v331_v20 = vadd.f32 %v2198_v17, %v330_v18  ;;  %v2306_v21 = vpop.f32.mrb[1].mxu1  ;;  %v2392_v18 = vpack.c.bf16 %v545_v16, %v544_v15 }
 0x243   :  { %2622 = vtanh.f32 %v331_v20  ;;  %v547_v20 = vld [vmem:[%s3821_s7 + $0x18] sm:$0xff]  ;;  %2393 = vmatpush1.bf16.msra.mxu1 %v2392_v18 }
 0x244   :  { %2394 = vmatprep.subr.bf16.mxu1 %v2671_v0 }
 0x248   :  { %v335_v22 = vpop.f32.mrb[2].mxu1 }
 0x249   :  { %v336_v26 = vadd.f32 %v2198_v17, %v335_v22  ;;  %v2309_v27 = vpop.f32.mrb[3].mxu1  ;;  %v548_v22 = vld [vmem:[%s3821_s7 + $0x20] sm:$0xff] }
 0x24a   :  { %v2398_v24 = vpack.c.bf16 %v549_v23, %v548_v22  ;;  %v551_v27 = vld [vmem:[%s3821_s7 + $0x38] sm:$0xff] }
 0x24b   :  { %2624 = vtanh.f32 %v336_v26  ;;  %v550_v26 = vld [vmem:[%s3821_s7 + $0x30] sm:$0xff] }
 0x24c   :  { %v2401_v28 = vpack.c.bf16 %v551_v27, %v550_v26 }
 0x24d   :  { %v2623_v32 = vpop.eup %2622 }
 0x24e   :  { %368 = vst.msk [vmem:[#allocation2 + $0x2] sm:$0xff] %vm44_vm0, %v2623_v32  ;;  %v554_v32 = vld [vmem:[%s3821_s7 + $0x50] sm:$0xff] }
 0x250   :  { %v340_v33 = vpop.f32.mrb[4].mxu1 }
 0x251   :  { %v341_v36 = vadd.f32 %v2198_v17, %v340_v33  ;;  %v2312_v37 = vpop.f32.mrb[5].mxu1  ;;  %v546_v17 = vld [vmem:[%s3821_s7 + $0x10] sm:$0xff]  ;;  %v555_v33 = vld [vmem:[%s3821_s7 + $0x58] sm:$0xff] }
 0x252   :  { %v2395_v21 = vpack.c.bf16 %v547_v20, %v546_v17  ;;  %v2407_v34 = vpack.c.bf16 %v555_v33, %v554_v32  ;;  %v738_v33 = vld [vmem:[%s3823_s9] sm:$0xff] }
 0x253   :  { %2626 = vtanh.f32 %v341_v36 }
 0x254   :  { %2396 = vmatpush1.bf16.msra.mxu1 %v2395_v21 }
 0x255   :  { %v2625_v41 = vpop.eup %2624  ;;  %v396_v42 = vld [vmem:[#allocation2 + $0x2] sm:$0xff]  ;;  %2397 = vmatprep.subr.bf16.mxu1 %v2671_v0 }
 0x256   :  { %v377_v43 = vld [vmem:[#allocation2 + $0x1] sm:$0xff]  ;;  %369 = vst.msk [vmem:[#allocation2 + $0xa] sm:$0xff] %vm44_vm0, %v2625_v41  ;;  %402 = vrot.lane.b32.xlu1 %v396_v42, %s2678_s19 }
 0x257   :  { %v371_v44 = vld [vmem:[#allocation2] sm:$0xff]  ;;  %383 = vrot.lane.b32.xlu0 %v377_v43, %s2677_s18  ;;  %v557_v43 = vld [vmem:[%s3821_s7 + $0x68] sm:$0xff] }
 0x258   :  { %374 = vst.msk [vmem:[#allocation3] sm:$0xff] %vm44_vm0, %v371_v44  ;;  %2399 = vmatpush1.bf16.msra.mxu1 %v2398_v24  ;;  %v556_v42 = vld [vmem:[%s3821_s7 + $0x60] sm:$0xff] }
 0x259   :  { %2400 = vmatprep.subr.bf16.mxu1 %v2671_v0  ;;  %v2410_v44 = vpack.c.bf16 %v557_v43, %v556_v42  ;;  %v744_v42 = vld [vmem:[%s3823_s9 + $0x30] sm:$0xff]  ;;  %v745_v43 = vld [vmem:[%s3823_s9 + $0x38] sm:$0xff] }
 0x25c   :  { %2402 = vmatpush1.bf16.msra.mxu1 %v2401_v28 }
 0x25d   :  { %v2627_v46 = vpop.eup %2626  ;;  %v372_v47 = vld [vmem:[#allocation2 + $0x8] sm:$0xff]  ;;  %2403 = vmatprep.subr.bf16.mxu1 %v2671_v0 }
 0x25e   :  { %v378_v48 = vld [vmem:[#allocation2 + $0x9] sm:$0xff]  ;;  %370 = vst.msk [vmem:[#allocation2 + $0x12] sm:$0xff] %vm44_vm0, %v2627_v46  ;;  %375 = vst.msk [vmem:[#allocation3 + $0x10] sm:$0xff] %vm44_vm0, %v372_v47  ;;  %v559_v46 = vld [vmem:[%s3821_s7 + $0x78] sm:$0xff] }
 0x25f   :  { %v415_v49 = vld [vmem:[#allocation2 + $0x3] sm:$0xff]  ;;  %385 = vrot.lane.b32.xlu1 %v378_v48, %s2677_s18  ;;  %v2413_v47 = vpack.c.bf16 %v559_v46, %v558_v45 }
 0x260   :  { %v434_v50 = vld [vmem:[#allocation2 + $0x4] sm:$0xff]  ;;  %421 = vrot.lane.b32.xlu0 %v415_v49, %s2679_s20  ;;  %2405 = vmatpush1.bf16.msra.mxu1 %v2404_v31 }
 0x261   :  { %437 = vst.msk [vmem:[#allocation3 + $0x8] sm:$0xff] %vm44_vm0, %v434_v50  ;;  %v397_v51 = vld [vmem:[#allocation2 + $0xa] sm:$0xff]  ;;  %2406 = vmatprep.subr.bf16.mxu1 %v2671_v0  ;;  %v746_v45 = vld [vmem:[%s3823_s9 + $0x40] sm:$0xff] }
 0x262   :  { %v747_v46 = vld [vmem:[%s3823_s9 + $0x48] sm:$0xff] }
 0x264   :  { %404 = vrot.lane.b32.xlu0 %v397_v51, %s2678_s19  ;;  %2408 = vmatpush1.bf16.msra.mxu1 %v2407_v34  ;;  %v739_v34 = vld [vmem:[%s3823_s9 + $0x8] sm:$0xff] }
 0x265   :  { %v416_v52 = vld [vmem:[#allocation2 + $0xb] sm:$0xff]  ;;  %v436_v57 = vld [vmem:[#allocation2 + $0x14] sm:$0xff]  ;;  %2409 = vmatprep.subr.bf16.mxu1 %v2671_v0 }
 0x266   :  { %v379_v53 = vld [vmem:[#allocation2 + $0x11] sm:$0xff]  ;;  %423 = vrot.lane.b32.xlu1 %v416_v52, %s2679_s20  ;;  %439 = vst.msk [vmem:[#allocation3 + $0x28] sm:$0xff] %vm44_vm0, %v436_v57  ;;  %v560_v52 = vld [vmem:[%s3821_s7 + $0x80] sm:$0xff] }
 0x267   :  { %v373_v55 = vld [vmem:[#allocation2 + $0x10] sm:$0xff] }
 0x268   :  { %v441_v54 = vld [vmem:[#allocation3 + $0x8] sm:$0xff]  ;;  %387 = vrot.lane.b32.xlu0 %v379_v53, %s2677_s18  ;;  %376 = vst.msk [vmem:[#allocation3 + $0x20] sm:$0xff] %vm44_vm0, %v373_v55  ;;  %v398_v58 = vld [vmem:[#allocation2 + $0x12] sm:$0xff]  ;;  %2411 = vmatpush1.bf16.msra.mxu1 %v2410_v44  ;;  %v2431_v44 = vpack.c.bf16 %v745_v43, %v744_v42 }
 0x269   :  { %2203 = vmatprep.mubr.msk.f32.mxu0 %vm44_vm0, %v441_v54  ;;  %v435_v56 = vld [vmem:[#allocation2 + $0xc] sm:$0xff]  ;;  %2412 = vmatprep.subr.bf16.mxu1 %v2671_v0 }
 0x26a   :  { %438 = vst.msk [vmem:[#allocation3 + $0x18] sm:$0xff] %vm44_vm0, %v435_v56  ;;  %v417_v59 = vld [vmem:[#allocation2 + $0x13] sm:$0xff]  ;;  %406 = vrot.lane.b32.xlu1 %v398_v58, %s2678_s19  ;;  %v561_v53 = vld [vmem:[%s3821_s7 + $0x88] sm:$0xff] }
 0x26b   :  { %v2416_v54 = vpack.c.bf16 %v561_v53, %v560_v52  ;;  %v751_v52 = vld [vmem:[%s3823_s9 + $0x68] sm:$0xff] }
 0x26c   :  { %425 = vrot.lane.b32.xlu0 %v417_v59, %s2679_s20  ;;  %2414 = vmatpush1.bf16.msra.mxu1 %v2413_v47  ;;  %v562_v59 = vld [vmem:[%s3821_s7 + $0x90] sm:$0xff]  ;;  %v2434_v47 = vpack.c.bf16 %v747_v46, %v746_v45 }
 0x26d   :  { %v445_v12 = vld [vmem:[#allocation3 + $0x28] sm:$0xff]  ;;  %2415 = vmatprep.subr.bf16.mxu1 %v2671_v0 }
 0x270   :  { %2417 = vmatpush1.bf16.msra.mxu1 %v2416_v54  ;;  %v2206_v54 = vld [vmem:[%s3824_s8] ss:$0 sm:$0xff] }
 0x271   :  { %v443_v8 = vld [vmem:[#allocation3 + $0x18] sm:$0xff]  ;;  %2418 = vmatprep.subr.bf16.mxu1 %v2671_v0 }
 0x2c8   :  { %v403_v60 = vpop.permute.xlu1 %402 }
 0x2c9   :  { %v384_v61 = vpop.permute.xlu0 %383 }
 0x2ca   :  { %393 = vst.msk [vmem:[#allocation3] sm:$0xff] %vm392_vm9, %v384_v61 }
 0x2cb   :  { %412 = vst.msk [vmem:[#allocation3] sm:$0xff] %vm411_vm10, %v403_v60  ;;  %v563_v60 = vld [vmem:[%s3821_s7 + $0x98] sm:$0xff] }
 0x2cc   :  { %v2419_v61 = vpack.c.bf16 %v563_v60, %v562_v59 }
 0x2ce   :  { %2420 = vmatpush1.bf16.msra.mxu1 %v2419_v61  ;;  %v752_v61 = vld [vmem:[%s3823_s9 + $0x70] sm:$0xff] }
 0x2cf   :  { %2451 = vmatprep.subr.bf16.mxu1 %v2671_v0 }
 0x2d1   :  { %v386_v63 = vpop.permute.xlu1 %385 }
 0x2d2   :  { %v422_v62 = vpop.permute.xlu0 %421  ;;  %394 = vst.msk [vmem:[#allocation3 + $0x10] sm:$0xff] %vm392_vm9, %v386_v63 }
 0x2d3   :  { %431 = vst.msk [vmem:[#allocation3] sm:$0xff] %vm430_vm11, %v422_v62 }
 0x2d6   :  { %v405_v1 = vpop.permute.xlu0 %404 }
 0x2d7   :  { %413 = vst.msk [vmem:[#allocation3 + $0x10] sm:$0xff] %vm411_vm10, %v405_v1 }
 0x2d8   :  { %v424_v2 = vpop.permute.xlu1 %423 }
 0x2d9   :  { %432 = vst.msk [vmem:[#allocation3 + $0x10] sm:$0xff] %vm430_vm11, %v424_v2 }
 0x2da   :  { %v388_v3 = vpop.permute.xlu0 %387  ;;  %v440_v6 = vld [vmem:[#allocation3] sm:$0xff] }
 0x2db   :  { %395 = vst.msk [vmem:[#allocation3 + $0x20] sm:$0xff] %vm392_vm9, %v388_v3  ;;  %526 = vmatmul.mubr.f32.vlgmr.msra.gmra.mrb[6].mxu0 %v440_v6 }
 0x2dc   :  { %2204 = vmatprep.mubr.msk.f32.mxu0 %vm44_vm0, %v443_v8  ;;  %v407_v9 = vpop.permute.xlu1 %406 }
 0x2dd   :  { %414 = vst.msk [vmem:[#allocation3 + $0x20] sm:$0xff] %vm411_vm10, %v407_v9 }
 0x2de   :  { %v426_v10 = vpop.permute.xlu0 %425 }
 0x2df   :  { %433 = vst.msk [vmem:[#allocation3 + $0x20] sm:$0xff] %vm430_vm11, %v426_v10 }
 0x2e0   :  { %v442_v11 = vld [vmem:[#allocation3 + $0x10] sm:$0xff] }
 0x2e1   :  { %531 = vmatmul.mubr.f32.gmra.mrb[8].mxu0 %v442_v11 }
 0x2e2   :  { %2205 = vmatprep.mubr.msk.f32.mxu0 %vm44_vm0, %v445_v12 }
 0x2e6   :  { %v444_v14 = vld [vmem:[#allocation3 + $0x20] sm:$0xff] }
 0x2e7   :  { %536 = vmatmul.mubr.f32.gmra.mrb[10].mxu0 %v444_v14 }
 0x3ae   :  { %v527_v36 = vpop.f32.mrb[6].mxu0 }
 0x3af   :  { %v528_v37 = vadd.f32 %v2202_v35, %v527_v36  ;;  %v529_v38 = vpop.f32.mrb[7].mxu0  ;;  %v2422_v36 = vpack.c.bf16 %v739_v34, %v738_v33 }
 0x3b1   :  { %2628 = vtanh.f32 %v528_v37  ;;  %v741_v37 = vld [vmem:[%s3823_s9 + $0x18] sm:$0xff]  ;;  %2423 = vmatpush1.bf16.msra.mxu0 %v2422_v36 }
 0x3b2   :  { %2424 = vmatprep.subr.bf16.mxu0 %v2671_v0 }
 0x3b4   :  { %v532_v39 = vpop.f32.mrb[8].mxu0 }
 0x3b5   :  { %v533_v40 = vadd.f32 %v2202_v35, %v532_v39  ;;  %v534_v41 = vpop.f32.mrb[9].mxu0  ;;  %v742_v39 = vld [vmem:[%s3823_s9 + $0x20] sm:$0xff] }
 0x3b7   :  { %2630 = vtanh.f32 %v533_v40  ;;  %v743_v40 = vld [vmem:[%s3823_s9 + $0x28] sm:$0xff] }
 0x3b8   :  { %v2428_v41 = vpack.c.bf16 %v743_v40, %v742_v39 }
 0x3ba   :  { %v537_v49 = vpop.f32.mrb[10].mxu0 }
 0x3bb   :  { %v2629_v48 = vpop.eup %2628  ;;  %v538_v50 = vadd.f32 %v2202_v35, %v537_v49  ;;  %v539_v51 = vpop.f32.mrb[11].mxu0  ;;  %v740_v35 = vld [vmem:[%s3823_s9 + $0x10] sm:$0xff]  ;;  %v749_v49 = vld [vmem:[%s3823_s9 + $0x58] sm:$0xff] }
 0x3bc   :  { %565 = vst.msk [vmem:[#allocation2 + $0x2] sm:$0xff] %vm44_vm0, %v2629_v48  ;;  %v2425_v38 = vpack.c.bf16 %v741_v37, %v740_v35  ;;  %v748_v48 = vld [vmem:[%s3823_s9 + $0x50] sm:$0xff]  ;;  %v750_v51 = vld [vmem:[%s3823_s9 + $0x60] sm:$0xff] }
 0x3bd   :  { %2632 = vtanh.f32 %v538_v50  ;;  %v2437_v50 = vpack.c.bf16 %v749_v49, %v748_v48  ;;  %v2440_v53 = vpack.c.bf16 %v751_v52, %v750_v51  ;;  %v2220_v49 = vld [vmem:[%s3816_s0 + $0x28] sm:$0xff]  ;;  %v934_v52 = vld [vmem:[%s3825_s11 + $0x10] sm:$0xff] }
 0x3be   :  { %2426 = vmatpush1.bf16.msra.mxu0 %v2425_v38  ;;  %v933_v51 = vld [vmem:[%s3825_s11 + $0x8] sm:$0xff] }
 0x3bf   :  { %2427 = vmatprep.subr.bf16.mxu0 %v2671_v0 }
 0x3c1   :  { %v2631_v55 = vpop.eup %2630 }
 0x3c2   :  { %566 = vst.msk [vmem:[#allocation2 + $0xa] sm:$0xff] %vm44_vm0, %v2631_v55  ;;  %2429 = vmatpush1.bf16.msra.mxu0 %v2428_v41 }
 0x3c3   :  { %v592_v56 = vld [vmem:[#allocation2 + $0x2] sm:$0xff]  ;;  %2430 = vmatprep.subr.bf16.mxu0 %v2671_v0 }
 0x3c4   :  { %v574_v57 = vld [vmem:[#allocation2 + $0x1] sm:$0xff]  ;;  %598 = vrot.lane.b32.xlu0 %v592_v56, %s2678_s19 }
 0x3c5   :  { %v568_v58 = vld [vmem:[#allocation2] sm:$0xff]  ;;  %580 = vrot.lane.b32.xlu1 %v574_v57, %s2677_s18 }
 0x3c6   :  { %571 = vst.msk [vmem:[#allocation3] sm:$0xff] %vm44_vm0, %v568_v58  ;;  %2432 = vmatpush1.bf16.msra.mxu0 %v2431_v44 }
 0x3c7   :  { %v2633_v62 = vpop.eup %2632  ;;  %2433 = vmatprep.subr.bf16.mxu0 %v2671_v0 }
 0x3c8   :  { %567 = vst.msk [vmem:[#allocation2 + $0x12] sm:$0xff] %vm44_vm0, %v2633_v62  ;;  %v753_v62 = vld [vmem:[%s3823_s9 + $0x78] sm:$0xff] }
 0x3c9   :  { %v575_v63 = vld [vmem:[#allocation2 + $0x9] sm:$0xff] }
 0x3ca   :  { %v610_v1 = vld [vmem:[#allocation2 + $0x3] sm:$0xff]  ;;  %582 = vrot.lane.b32.xlu0 %v575_v63, %s2677_s18  ;;  %2435 = vmatpush1.bf16.msra.mxu0 %v2434_v47  ;;  %v2443_v63 = vpack.c.bf16 %v753_v62, %v752_v61 }
 0x3cb   :  { %616 = vrot.lane.b32.xlu1 %v610_v1, %s2679_s20  ;;  %v628_v2 = vld [vmem:[#allocation2 + $0x4] sm:$0xff]  ;;  %2436 = vmatprep.subr.bf16.mxu0 %v2671_v0 }
 0x3cc   :  { %v569_v3 = vld [vmem:[#allocation2 + $0x8] sm:$0xff]  ;;  %631 = vst.msk [vmem:[#allocation3 + $0x8] sm:$0xff] %vm44_vm0, %v628_v2  ;;  %v940_v62 = vld [vmem:[%s3825_s11 + $0x40] sm:$0xff] }
 0x3cd   :  { %572 = vst.msk [vmem:[#allocation3 + $0x10] sm:$0xff] %vm44_vm0, %v569_v3  ;;  %v593_v6 = vld [vmem:[#allocation2 + $0xa] sm:$0xff] }
 0x3ce   :  { %2438 = vmatpush1.bf16.msra.mxu0 %v2437_v50  ;;  %v932_v50 = vld [vmem:[%s3825_s11] sm:$0xff] }
 0x3cf   :  { %600 = vrot.lane.b32.xlu1 %v593_v6, %s2678_s19  ;;  %v611_v8 = vld [vmem:[#allocation2 + $0xb] sm:$0xff]  ;;  %v630_v11 = vld [vmem:[#allocation2 + $0x14] sm:$0xff]  ;;  %2439 = vmatprep.subr.bf16.mxu0 %v2671_v0 }
 0x3d0   :  { %618 = vrot.lane.b32.xlu0 %v611_v8, %s2679_s20  ;;  %v570_v9 = vld [vmem:[#allocation2 + $0x10] sm:$0xff]  ;;  %633 = vst.msk [vmem:[#allocation3 + $0x28] sm:$0xff] %vm44_vm0, %v630_v11  ;;  %v754_v8 = vld [vmem:[%s3823_s9 + $0x80] sm:$0xff] }
 0x3d1   :  { %v629_v10 = vld [vmem:[#allocation2 + $0xc] sm:$0xff]  ;;  %573 = vst.msk [vmem:[#allocation3 + $0x20] sm:$0xff] %vm44_vm0, %v570_v9 }
 0x3d2   :  { %632 = vst.msk [vmem:[#allocation3 + $0x18] sm:$0xff] %vm44_vm0, %v629_v10  ;;  %v576_v12 = vld [vmem:[#allocation2 + $0x11] sm:$0xff]  ;;  %2441 = vmatpush1.bf16.msra.mxu0 %v2440_v53  ;;  %v755_v9 = vld [vmem:[%s3823_s9 + $0x88] sm:$0xff]  ;;  %v2452_v53 = vpack.c.bf16 %v933_v51, %v932_v50 }
 0x3d3   :  { %v635_v14 = vld [vmem:[#allocation3 + $0x8] sm:$0xff]  ;;  %584 = vrot.lane.b32.xlu1 %v576_v12, %s2677_s18  ;;  %v594_v15 = vld [vmem:[#allocation2 + $0x12] sm:$0xff]  ;;  %2442 = vmatprep.subr.bf16.mxu0 %v2671_v0  ;;  %v2446_v10 = vpack.c.bf16 %v755_v9, %v754_v8  ;;  %v2210_v8 = vld [vmem:[%s3826_s10] ss:$0 sm:$0xff] }
 0x3d4   :  { %2207 = vmatprep.mubr.msk.f32.mxu1 %vm44_vm0, %v635_v14  ;;  %602 = vrot.lane.b32.xlu0 %v594_v15, %s2678_s19  ;;  %v612_v16 = vld [vmem:[#allocation2 + $0x13] sm:$0xff] }
 0x3d5   :  { %v756_v12 = vld [vmem:[%s3823_s9 + $0x90] sm:$0xff]  ;;  %v757_v14 = vld [vmem:[%s3823_s9 + $0x98] sm:$0xff] }
 0x3d6   :  { %2444 = vmatpush1.bf16.msra.mxu0 %v2443_v63  ;;  %v2449_v15 = vpack.c.bf16 %v757_v14, %v756_v12  ;;  %v941_v63 = vld [vmem:[%s3825_s11 + $0x48] sm:$0xff] }
 0x3d7   :  { %620 = vrot.lane.b32.xlu1 %v612_v16, %s2679_s20  ;;  %v639_v31 = vld [vmem:[#allocation3 + $0x28] sm:$0xff]  ;;  %2445 = vmatprep.subr.bf16.mxu0 %v2671_v0 }
 0x3d9   :  { %v637_v28 = vld [vmem:[#allocation3 + $0x18] sm:$0xff] }
 0x3da   :  { %2447 = vmatpush1.bf16.msra.mxu0 %v2446_v10 }
 0x3db   :  { %2448 = vmatprep.subr.bf16.mxu0 %v2671_v0 }
 0x3de   :  { %2450 = vmatpush1.bf16.msra.mxu0 %v2449_v15 }
 0x3df   :  { %2481 = vmatprep.subr.bf16.mxu0 %v2671_v0 }
 0x436   :  { %v599_v17 = vpop.permute.xlu0 %598 }
 0x437   :  { %v581_v18 = vpop.permute.xlu1 %580 }
 0x438   :  { %589 = vst.msk [vmem:[#allocation3] sm:$0xff] %vm392_vm9, %v581_v18 }
 0x439   :  { %607 = vst.msk [vmem:[#allocation3] sm:$0xff] %vm411_vm10, %v599_v17 }
 0x43c   :  { %v583_v20 = vpop.permute.xlu0 %582 }
 0x43d   :  { %v617_v21 = vpop.permute.xlu1 %616  ;;  %590 = vst.msk [vmem:[#allocation3 + $0x10] sm:$0xff] %vm392_vm9, %v583_v20 }
 0x43e   :  { %625 = vst.msk [vmem:[#allocation3] sm:$0xff] %vm430_vm11, %v617_v21 }
 0x441   :  { %v601_v22 = vpop.permute.xlu1 %600 }
 0x442   :  { %608 = vst.msk [vmem:[#allocation3 + $0x10] sm:$0xff] %vm411_vm10, %v601_v22  ;;  %v619_v23 = vpop.permute.xlu0 %618 }
 0x443   :  { %626 = vst.msk [vmem:[#allocation3 + $0x10] sm:$0xff] %vm430_vm11, %v619_v23 }
 0x445   :  { %v585_v24 = vpop.permute.xlu1 %584  ;;  %v634_v26 = vld [vmem:[#allocation3] sm:$0xff] }
 0x446   :  { %591 = vst.msk [vmem:[#allocation3 + $0x20] sm:$0xff] %vm392_vm9, %v585_v24  ;;  %v603_v27 = vpop.permute.xlu0 %602  ;;  %720 = vmatmul.mubr.f32.vlgmr.msra.gmra.mrb[6].mxu1 %v634_v26 }
 0x447   :  { %609 = vst.msk [vmem:[#allocation3 + $0x20] sm:$0xff] %vm411_vm10, %v603_v27  ;;  %2208 = vmatprep.mubr.msk.f32.mxu1 %vm44_vm0, %v637_v28  ;;  %2453 = vmatpush1.bf16.msra.mxu1 %v2452_v53 }
 0x448   :  { %2454 = vmatprep.subr.bf16.mxu1 %v2671_v0 }
 0x449   :  { %v621_v29 = vpop.permute.xlu1 %620 }
 0x44a   :  { %627 = vst.msk [vmem:[#allocation3 + $0x20] sm:$0xff] %vm430_vm11, %v621_v29  ;;  %v636_v30 = vld [vmem:[#allocation3 + $0x10] sm:$0xff] }
 0x44b   :  { %725 = vmatmul.mubr.f32.gmra.mrb[8].mxu1 %v636_v30 }
 0x44c   :  { %2209 = vmatprep.mubr.msk.f32.mxu1 %vm44_vm0, %v639_v31 }
 0x451   :  { %v638_v32 = vld [vmem:[#allocation3 + $0x20] sm:$0xff] }
 0x452   :  { %730 = vmatmul.mubr.f32.gmra.mrb[10].mxu1 %v638_v32 }
 0x519   :  { %v721_v55 = vpop.f32.mrb[6].mxu1 }
 0x51a   :  { %v722_v56 = vadd.f32 %v2206_v54, %v721_v55  ;;  %v723_v57 = vpop.f32.mrb[7].mxu1 }
 0x51b   :  { %v937_v57 = vld [vmem:[%s3825_s11 + $0x28] sm:$0xff] }
 0x51c   :  { %2634 = vtanh.f32 %v722_v56  ;;  %v936_v56 = vld [vmem:[%s3825_s11 + $0x20] sm:$0xff] }
 0x51e   :  { %v726_v58 = vpop.f32.mrb[8].mxu1 }
 0x51f   :  { %v727_v59 = vadd.f32 %v2206_v54, %v726_v58  ;;  %v728_v60 = vpop.f32.mrb[9].mxu1  ;;  %v2458_v58 = vpack.c.bf16 %v937_v57, %v936_v56 }
 0x520   :  { %v939_v60 = vld [vmem:[%s3825_s11 + $0x38] sm:$0xff] }
 0x521   :  { %2636 = vtanh.f32 %v727_v59  ;;  %v938_v59 = vld [vmem:[%s3825_s11 + $0x30] sm:$0xff] }
 0x522   :  { %v2461_v61 = vpack.c.bf16 %v939_v60, %v938_v59 }
 0x525   :  { %v731_v1 = vpop.f32.mrb[10].mxu1 }
 0x526   :  { %v2635_v2 = vpop.eup %2634  ;;  %v732_v3 = vadd.f32 %v2206_v54, %v731_v1  ;;  %v733_v6 = vpop.f32.mrb[11].mxu1  ;;  %v935_v54 = vld [vmem:[%s3825_s11 + $0x18] sm:$0xff]  ;;  %v2464_v1 = vpack.c.bf16 %v941_v63, %v940_v62 }
 0x527   :  { %759 = vst.msk [vmem:[#allocation2 + $0x2] sm:$0xff] %vm44_vm0, %v2635_v2  ;;  %v2455_v55 = vpack.c.bf16 %v935_v54, %v934_v52  ;;  %v942_v2 = vld [vmem:[%s3825_s11 + $0x50] sm:$0xff] }
 0x528   :  { %2638 = vtanh.f32 %v732_v3  ;;  %v943_v3 = vld [vmem:[%s3825_s11 + $0x58] sm:$0xff] }
 0x529   :  { %2456 = vmatpush1.bf16.msra.mxu1 %v2455_v55  ;;  %v2467_v6 = vpack.c.bf16 %v943_v3, %v942_v2 }
 0x52a   :  { %2457 = vmatprep.subr.bf16.mxu1 %v2671_v0 }
 0x52b   :  { %v2637_v11 = vpop.eup %2636 }
 0x52c   :  { %760 = vst.msk [vmem:[#allocation2 + $0xa] sm:$0xff] %vm44_vm0, %v2637_v11 }
 0x52d   :  { %2459 = vmatpush1.bf16.msra.mxu1 %v2458_v58 }
 0x52e   :  { %v786_v16 = vld [vmem:[#allocation2 + $0x2] sm:$0xff]  ;;  %2460 = vmatprep.subr.bf16.mxu1 %v2671_v0 }
 0x52f   :  { %v768_v17 = vld [vmem:[#allocation2 + $0x1] sm:$0xff]  ;;  %792 = vrot.lane.b32.xlu1 %v786_v16, %s2678_s19 }
 0x530   :  { %v762_v18 = vld [vmem:[#allocation2] sm:$0xff]  ;;  %774 = vrot.lane.b32.xlu0 %v768_v17, %s2677_s18  ;;  %v945_v17 = vld [vmem:[%s3825_s11 + $0x68] sm:$0xff] }
 0x531   :  { %765 = vst.msk [vmem:[#allocation3] sm:$0xff] %vm44_vm0, %v762_v18  ;;  %2462 = vmatpush1.bf16.msra.mxu1 %v2461_v61  ;;  %v944_v16 = vld [vmem:[%s3825_s11 + $0x60] sm:$0xff] }
 0x532   :  { %v2639_v20 = vpop.eup %2638  ;;  %2463 = vmatprep.subr.bf16.mxu1 %v2671_v0  ;;  %v2470_v18 = vpack.c.bf16 %v945_v17, %v944_v16  ;;  %v1222_v17 = vld [vmem:[%s3818_s3] sm:$0xff] }
 0x533   :  { %761 = vst.msk [vmem:[#allocation2 + $0x12] sm:$0xff] %vm44_vm0, %v2639_v20  ;;  %v769_v21 = vld [vmem:[#allocation2 + $0x9] sm:$0xff] }
 0x534   :  { %v804_v22 = vld [vmem:[#allocation2 + $0x3] sm:$0xff]  ;;  %776 = vrot.lane.b32.xlu1 %v769_v21, %s2677_s18  ;;  %v946_v20 = vld [vmem:[%s3825_s11 + $0x70] sm:$0xff]  ;;  %v947_v21 = vld [vmem:[%s3825_s11 + $0x78] sm:$0xff] }
 0x535   :  { %810 = vrot.lane.b32.xlu0 %v804_v22, %s2679_s20  ;;  %v822_v23 = vld [vmem:[#allocation2 + $0x4] sm:$0xff]  ;;  %2465 = vmatpush1.bf16.msra.mxu1 %v2464_v1  ;;  %v2473_v22 = vpack.c.bf16 %v947_v21, %v946_v20 }
 0x536   :  { %v763_v24 = vld [vmem:[#allocation2 + $0x8] sm:$0xff]  ;;  %825 = vst.msk [vmem:[#allocation3 + $0x8] sm:$0xff] %vm44_vm0, %v822_v23  ;;  %2466 = vmatprep.subr.bf16.mxu1 %v2671_v0 }
 0x537   :  { %766 = vst.msk [vmem:[#allocation3 + $0x10] sm:$0xff] %vm44_vm0, %v763_v24  ;;  %v787_v26 = vld [vmem:[#allocation2 + $0xa] sm:$0xff] }
 0x539   :  { %794 = vrot.lane.b32.xlu0 %v787_v26, %s2678_s19  ;;  %2468 = vmatpush1.bf16.msra.mxu1 %v2467_v6 }
 0x53a   :  { %v805_v27 = vld [vmem:[#allocation2 + $0xb] sm:$0xff]  ;;  %v824_v32 = vld [vmem:[#allocation2 + $0x14] sm:$0xff]  ;;  %2469 = vmatprep.subr.bf16.mxu1 %v2671_v0 }
 0x53b   :  { %v770_v28 = vld [vmem:[#allocation2 + $0x11] sm:$0xff]  ;;  %812 = vrot.lane.b32.xlu1 %v805_v27, %s2679_s20  ;;  %827 = vst.msk [vmem:[#allocation3 + $0x28] sm:$0xff] %vm44_vm0, %v824_v32 }
 0x53c   :  { %v764_v29 = vld [vmem:[#allocation2 + $0x10] sm:$0xff] }
 0x53d   :  { %v823_v30 = vld [vmem:[#allocation2 + $0xc] sm:$0xff]  ;;  %778 = vrot.lane.b32.xlu0 %v770_v28, %s2677_s18  ;;  %767 = vst.msk [vmem:[#allocation3 + $0x20] sm:$0xff] %vm44_vm0, %v764_v29  ;;  %2471 = vmatpush1.bf16.msra.mxu1 %v2470_v18  ;;  %v948_v29 = vld [vmem:[%s3825_s11 + $0x80] sm:$0xff] }
 0x53e   :  { %v829_v31 = vld [vmem:[#allocation3 + $0x8] sm:$0xff]  ;;  %826 = vst.msk [vmem:[#allocation3 + $0x18] sm:$0xff] %vm44_vm0, %v823_v30  ;;  %v788_v33 = vld [vmem:[#allocation2 + $0x12] sm:$0xff]  ;;  %2472 = vmatprep.subr.bf16.mxu1 %v2671_v0 }
 0x53f   :  { %2211 = vmatprep.mubr.msk.f32.mxu0 %vm44_vm0, %v829_v31  ;;  %796 = vrot.lane.b32.xlu1 %v788_v33, %s2678_s19  ;;  %v806_v34 = vld [vmem:[#allocation2 + $0x13] sm:$0xff]  ;;  %v949_v30 = vld [vmem:[%s3825_s11 + $0x88] sm:$0xff] }
 0x540   :  { %v2476_v32 = vpack.c.bf16 %v949_v30, %v948_v29  ;;  %v1223_v18 = vld [vmem:[%s3818_s3 + $0x8] sm:$0xff] }
 0x541   :  { %814 = vrot.lane.b32.xlu0 %v806_v34, %s2679_s20  ;;  %2474 = vmatpush1.bf16.msra.mxu1 %v2473_v22  ;;  %v2488_v22 = vpack.c.bf16 %v1223_v18, %v1222_v17 }
 0x542   :  { %v833_v47 = vld [vmem:[#allocation3 + $0x28] sm:$0xff]  ;;  %2475 = vmatprep.subr.bf16.mxu1 %v2671_v0 }
 0x545   :  { %v831_v43 = vld [vmem:[#allocation3 + $0x18] sm:$0xff]  ;;  %2477 = vmatpush1.bf16.msra.mxu1 %v2476_v32 }
 0x546   :  { %2478 = vmatprep.subr.bf16.mxu1 %v2671_v0 }
 0x5a1   :  { %v793_v35 = vpop.permute.xlu1 %792 }
 0x5a2   :  { %v775_v36 = vpop.permute.xlu0 %774 }
 0x5a3   :  { %783 = vst.msk [vmem:[#allocation3] sm:$0xff] %vm392_vm9, %v775_v36  ;;  %v951_v36 = vld [vmem:[%s3825_s11 + $0x98] sm:$0xff] }
 0x5a4   :  { %801 = vst.msk [vmem:[#allocation3] sm:$0xff] %vm411_vm10, %v793_v35  ;;  %v950_v35 = vld [vmem:[%s3825_s11 + $0x90] sm:$0xff] }
 0x5a6   :  { %v777_v37 = vpop.permute.xlu1 %776 }
 0x5a7   :  { %v811_v38 = vpop.permute.xlu0 %810  ;;  %784 = vst.msk [vmem:[#allocation3 + $0x10] sm:$0xff] %vm392_vm9, %v777_v37 }
 0x5a8   :  { %819 = vst.msk [vmem:[#allocation3] sm:$0xff] %vm430_vm11, %v811_v38 }
 0x5ab   :  { %v795_v39 = vpop.permute.xlu0 %794 }
 0x5ac   :  { %802 = vst.msk [vmem:[#allocation3 + $0x10] sm:$0xff] %vm411_vm10, %v795_v39 }
 0x5ad   :  { %v813_v40 = vpop.permute.xlu1 %812 }
 0x5ae   :  { %820 = vst.msk [vmem:[#allocation3 + $0x10] sm:$0xff] %vm430_vm11, %v813_v40 }
 0x5af   :  { %v779_v41 = vpop.permute.xlu0 %778  ;;  %v828_v42 = vld [vmem:[#allocation3] sm:$0xff] }
 0x5b0   :  { %785 = vst.msk [vmem:[#allocation3 + $0x20] sm:$0xff] %vm392_vm9, %v779_v41  ;;  %914 = vmatmul.mubr.f32.vlgmr.msra.gmra.mrb[12].mxu0 %v828_v42  ;;  %v2479_v41 = vpack.c.bf16 %v951_v36, %v950_v35 }
 0x5b1   :  { %2212 = vmatprep.mubr.msk.f32.mxu0 %vm44_vm0, %v831_v43  ;;  %2483 = vmatpush3.bf16.msra.mxu0 %v2768_v5  ;;  %v797_v44 = vpop.permute.xlu1 %796  ;;  %v2218_v5 = vld [vmem:[%s3816_s0 + $0x18] sm:$0xff] }
 0x5b2   :  { %2484 = vmatprep.subr.bf16.mxu0 %v2671_v0  ;;  %803 = vst.msk [vmem:[#allocation3 + $0x20] sm:$0xff] %vm411_vm10, %v797_v44  ;;  %2480 = vmatpush1.bf16.msra.mxu1 %v2479_v41 }
 0x5b3   :  { %v815_v45 = vpop.permute.xlu0 %814  ;;  %2487 = vmatprep.subr.bf16.mxu1 %v2671_v0 }
 0x5b4   :  { %821 = vst.msk [vmem:[#allocation3 + $0x20] sm:$0xff] %vm430_vm11, %v815_v45  ;;  %v2670_v45 = vld [vmem:[%s3817_s2] ss:$0 sm:$0xff] }
 0x5b5   :  { %2486 = vmatpush3.bf16.msra.mxu0 %v2777_v7  ;;  %v830_v46 = vld [vmem:[#allocation3 + $0x10] sm:$0xff]  ;;  %v2219_v7 = vld [vmem:[%s3816_s0 + $0x20] sm:$0xff] }
 0x5b6   :  { %2493 = vmatprep.subr.bf16.mxu0 %v2671_v0  ;;  %919 = vmatmul.mubr.f32.gmra.mrb[14].mxu0 %v830_v46 }
 0x5b7   :  { %2213 = vmatprep.mubr.msk.f32.mxu0 %vm44_vm0, %v833_v47 }
 0x5bb   :  { %v832_v48 = vld [vmem:[#allocation3 + $0x20] sm:$0xff] }
 0x5bc   :  { %924 = vmatmul.mubr.f32.gmra.mrb[16].mxu0 %v832_v48 }
 0x5bd   :  { %2321 = vmatprep.mubr.msk.f32.mxu0 %vm2672_vm1, %v2673_v4 }
 0x5c0   :  { %2322 = vmatmul.mubr.msk.f32.vlgmr.msra.gmra.mrb[18].mxu0 %vm44_vm0, %v2218_v5 }
 0x5c1   :  { %2324 = vmatprep.mubr.msk.f32.mxu0 %vm2672_vm1, %v2673_v4 }
 0x5c4   :  { %2325 = vmatmul.mubr.msk.f32.gmra.mrb[20].mxu0 %vm44_vm0, %v2219_v7 }
 0x5c5   :  { %2327 = vmatprep.mubr.msk.f32.mxu0 %vm2672_vm1, %v2673_v4 }
 0x5c8   :  { %2328 = vmatmul.mubr.msk.f32.gmra.mrb[22].mxu0 %vm44_vm0, %v2220_v49 }
 0x683   :  { %v915_v9 = vpop.f32.mrb[12].mxu0 }
 0x684   :  { %v916_v10 = vadd.f32 %v2210_v8, %v915_v9  ;;  %v917_v11 = vpop.f32.mrb[13].mxu0 }
 0x686   :  { %2640 = vtanh.f32 %v916_v10 }
 0x689   :  { %v920_v12 = vpop.f32.mrb[14].mxu0 }
 0x68a   :  { %v921_v14 = vadd.f32 %v2210_v8, %v920_v12  ;;  %v922_v15 = vpop.f32.mrb[15].mxu0 }
 0x68c   :  { %2642 = vtanh.f32 %v921_v14 }
 0x68f   :  { %v925_v23 = vpop.f32.mrb[16].mxu0 }
 0x690   :  { %v2641_v24 = vpop.eup %2640  ;;  %v926_v26 = vadd.f32 %v2210_v8, %v925_v23  ;;  %v927_v27 = vpop.f32.mrb[17].mxu0 }
 0x691   :  { %953 = vst.msk [vmem:[#allocation2 + $0x2] sm:$0xff] %vm44_vm0, %v2641_v24  ;;  %v1224_v27 = vld [vmem:[%s3818_s3 + $0x10] sm:$0xff] }
 0x692   :  { %2644 = vtanh.f32 %v926_v26 }
 0x693   :  { %v1208_v28 = vpop.f32.mrb[18].mxu0 }
 0x694   :  { %v2323_v31 = vpop.f32.mrb[19].mxu0  ;;  %v3279_v46 = vadd.f32 %v2670_v45, %v1208_v28  ;;  %v1225_v28 = vld [vmem:[%s3818_s3 + $0x18] sm:$0xff] }
 0x695   :  { %v2491_v31 = vpack.c.bf16 %v1225_v28, %v1224_v27  ;;  %v2224_v27 = vld [vmem:[%s3820_s4] ss:$0 sm:$0xff] }
 0x696   :  { %v2643_v33 = vpop.eup %2642 }
 0x697   :  { %v1213_v34 = vpop.f32.mrb[20].mxu0  ;;  %954 = vst.msk [vmem:[#allocation2 + $0xa] sm:$0xff] %vm44_vm0, %v2643_v33 }
 0x698   :  { %v980_v37 = vld [vmem:[#allocation2 + $0x2] sm:$0xff]  ;;  %v2326_v39 = vpop.f32.mrb[21].mxu0  ;;  %v3287_v49 = vadd.f32 %v2670_v45, %v1213_v34 }
 0x699   :  { %v962_v38 = vld [vmem:[#allocation2 + $0x1] sm:$0xff]  ;;  %986 = vrot.lane.b32.xlu0 %v980_v37, %s2678_s19 }
 0x69a   :  { %v956_v40 = vld [vmem:[#allocation2] sm:$0xff]  ;;  %968 = vrot.lane.b32.xlu1 %v962_v38, %s2677_s18 }
 0x69b   :  { %959 = vst.msk [vmem:[#allocation3] sm:$0xff] %vm44_vm0, %v956_v40  ;;  %v1218_v42 = vpop.f32.mrb[22].mxu0  ;;  %v1226_v38 = vld [vmem:[%s3818_s3 + $0x20] sm:$0xff] }
 0x69c   :  { %v2645_v43 = vpop.eup %2644  ;;  %v2329_v44 = vpop.f32.mrb[23].mxu0  ;;  %v3289_v51 = vadd.f32 %v2670_v45, %v1218_v42 }
 0x69d   :  { %955 = vst.msk [vmem:[#allocation2 + $0x12] sm:$0xff] %vm44_vm0, %v2645_v43 }
 0x69e   :  { %v963_v47 = vld [vmem:[#allocation2 + $0x9] sm:$0xff] }
 0x69f   :  { %v998_v48 = vld [vmem:[#allocation2 + $0x3] sm:$0xff]  ;;  %970 = vrot.lane.b32.xlu0 %v963_v47, %s2677_s18 }
 0x6a0   :  { %1004 = vrot.lane.b32.xlu1 %v998_v48, %s2679_s20  ;;  %v1016_v5 = vld [vmem:[#allocation2 + $0x4] sm:$0xff] }
 0x6a1   :  { %v957_v7 = vld [vmem:[#allocation2 + $0x8] sm:$0xff]  ;;  %1019 = vst.msk [vmem:[#allocation3 + $0x8] sm:$0xff] %vm44_vm0, %v1016_v5 }
 0x6a2   :  { %1228 = vst.msk [vmem:[#allocation2 + $0x2] sm:$0xff] %vm159_vm3, %v3279_v46  ;;  %v981_v50 = vld [vmem:[#allocation2 + $0xa] sm:$0xff] }
 0x6a3   :  { %960 = vst.msk [vmem:[#allocation3 + $0x10] sm:$0xff] %vm44_vm0, %v957_v7 }
 0x6a4   :  { %988 = vrot.lane.b32.xlu1 %v981_v50, %s2678_s19  ;;  %v999_v52 = vld [vmem:[#allocation2 + $0xb] sm:$0xff]  ;;  %v1000_v57 = vld [vmem:[#allocation2 + $0x13] sm:$0xff] }
 0x6a5   :  { %1006 = vrot.lane.b32.xlu0 %v999_v52, %s2679_s20  ;;  %v964_v53 = vld [vmem:[#allocation2 + $0x11] sm:$0xff] }
 0x6a6   :  { %v958_v54 = vld [vmem:[#allocation2 + $0x10] sm:$0xff] }
 0x6a7   :  { %v1017_v55 = vld [vmem:[#allocation2 + $0xc] sm:$0xff]  ;;  %961 = vst.msk [vmem:[#allocation3 + $0x20] sm:$0xff] %vm44_vm0, %v958_v54  ;;  %v1018_v58 = vld [vmem:[#allocation2 + $0x14] sm:$0xff] }
 0x6a8   :  { %v982_v56 = vld [vmem:[#allocation2 + $0x12] sm:$0xff]  ;;  %1229 = vst.msk [vmem:[#allocation2 + $0xa] sm:$0xff] %vm159_vm3, %v3287_v49  ;;  %v1023_v59 = vld [vmem:[#allocation3 + $0x8] sm:$0xff]  ;;  %972 = vrot.lane.b32.xlu1 %v964_v53, %s2677_s18 }
 0x6a9   :  { %1020 = vst.msk [vmem:[#allocation3 + $0x18] sm:$0xff] %vm44_vm0, %v1017_v55  ;;  %1021 = vst.msk [vmem:[#allocation3 + $0x28] sm:$0xff] %vm44_vm0, %v1018_v58  ;;  %2215 = vmatprep.mubr.msk.f32.mxu1 %vm44_vm0, %v1023_v59  ;;  %990 = vrot.lane.b32.xlu0 %v982_v56, %s2678_s19  ;;  %v1237_v60 = vld [vmem:[#allocation2 + $0x1] sm:$0xff] }
 0x6aa   :  { %1230 = vst.msk [vmem:[#allocation2 + $0x12] sm:$0xff] %vm159_vm3, %v3289_v51  ;;  %v1255_v61 = vld [vmem:[#allocation2 + $0x2] sm:$0xff] }
 0x6ab   :  { %v1231_v23 = vld [vmem:[#allocation2] sm:$0xff]  ;;  %v1411_v56 = vld [vmem:[%s3819_s5 + $0x8] sm:$0xff] }
 0x6ac   :  { %1008 = vrot.lane.b32.xlu1 %v1000_v57, %s2679_s20  ;;  %v1410_v55 = vld [vmem:[%s3819_s5] sm:$0xff]  ;;  %v1412_v57 = vld [vmem:[%s3819_s5 + $0x10] sm:$0xff] }
 0x6ad   :  { %1243 = vrot.lane.b32.xlu0 %v1237_v60, %s2674_s14  ;;  %v2494_v58 = vpack.c.bf16 %v1411_v56, %v1410_v55  ;;  %v1414_v60 = vld [vmem:[%s3819_s5 + $0x20] sm:$0xff] }
 0x6af   :  { %v1273_v62 = vld [vmem:[#allocation2 + $0x3] sm:$0xff]  ;;  %2495 = vmatpush1.bf16.msra.mxu0 %v2494_v58 }
 0x6b0   :  { %1261 = vrot.lane.b32.xlu1 %v1255_v61, %s2675_s17  ;;  %v1291_v63 = vld [vmem:[#allocation2 + $0x4] sm:$0xff]  ;;  %v1025_v30 = vld [vmem:[#allocation3 + $0x18] sm:$0xff]  ;;  %2496 = vmatprep.subr.bf16.mxu0 %v2671_v0 }
 0x6b1   :  { %1279 = vrot.lane.b32.xlu0 %v1273_v62, %s2676_s1  ;;  %v1238_v1 = vld [vmem:[#allocation2 + $0x9] sm:$0xff]  ;;  %v1239_v8 = vld [vmem:[#allocation2 + $0x11] sm:$0xff] }
 0x6b2   :  { %v1256_v2 = vld [vmem:[#allocation2 + $0xa] sm:$0xff]  ;;  %v1257_v9 = vld [vmem:[#allocation2 + $0x12] sm:$0xff] }
 0x6b3   :  { %v1274_v3 = vld [vmem:[#allocation2 + $0xb] sm:$0xff]  ;;  %v1275_v10 = vld [vmem:[#allocation2 + $0x13] sm:$0xff] }
 0x6b4   :  { %1297 = vrot.lane.b32.xlu1 %v1291_v63, %s2677_s18  ;;  %v1292_v6 = vld [vmem:[#allocation2 + $0xc] sm:$0xff]  ;;  %v1293_v11 = vld [vmem:[#allocation2 + $0x14] sm:$0xff] }
 0x6b5   :  { %1245 = vrot.lane.b32.xlu0 %v1238_v1, %s2674_s14  ;;  %v1232_v35 = vld [vmem:[#allocation2 + $0x8] sm:$0xff]  ;;  %v1233_v42 = vld [vmem:[#allocation2 + $0x10] sm:$0xff]  ;;  %v1417_v1 = vld [vmem:[%s3819_s5 + $0x38] sm:$0xff] }
 0x6b6   :  { %v1027_v36 = vld [vmem:[#allocation3 + $0x28] sm:$0xff]  ;;  %v1416_v63 = vld [vmem:[%s3819_s5 + $0x30] sm:$0xff] }
 0x6b7   :  { %v1415_v61 = vld [vmem:[%s3819_s5 + $0x28] sm:$0xff] }
 0x6b8   :  { %1263 = vrot.lane.b32.xlu1 %v1256_v2, %s2675_s17  ;;  %v2500_v62 = vpack.c.bf16 %v1415_v61, %v1414_v60  ;;  %v2503_v2 = vpack.c.bf16 %v1417_v1, %v1416_v63 }
 0x6b9   :  { %1281 = vrot.lane.b32.xlu0 %v1274_v3, %s2676_s1  ;;  %v1418_v3 = vld [vmem:[%s3819_s5 + $0x40] sm:$0xff] }
 0x6bc   :  { %1299 = vrot.lane.b32.xlu1 %v1292_v6, %s2677_s18  ;;  %v1419_v6 = vld [vmem:[%s3819_s5 + $0x48] sm:$0xff] }
 0x6bd   :  { %1247 = vrot.lane.b32.xlu0 %v1239_v8, %s2674_s14  ;;  %v2506_v8 = vpack.c.bf16 %v1419_v6, %v1418_v3 }
 0x6c0   :  { %1265 = vrot.lane.b32.xlu1 %v1257_v9, %s2675_s17  ;;  %v1420_v9 = vld [vmem:[%s3819_s5 + $0x50] sm:$0xff] }
 0x6c1   :  { %1283 = vrot.lane.b32.xlu0 %v1275_v10, %s2676_s1  ;;  %v1421_v10 = vld [vmem:[%s3819_s5 + $0x58] sm:$0xff] }
 0x6c4   :  { %1301 = vrot.lane.b32.xlu1 %v1293_v11, %s2677_s18  ;;  %v2509_v11 = vpack.c.bf16 %v1421_v10, %v1420_v9 }
 0x70b   :  { %v987_v12 = vpop.permute.xlu0 %986 }
 0x70c   :  { %v969_v14 = vpop.permute.xlu1 %968 }
 0x70d   :  { %977 = vst.msk [vmem:[#allocation3] sm:$0xff] %vm392_vm9, %v969_v14 }
 0x70e   :  { %995 = vst.msk [vmem:[#allocation3] sm:$0xff] %vm411_vm10, %v987_v12  ;;  %v2214_v12 = vld [vmem:[%s3827_s12] ss:$0 sm:$0xff] }
 0x711   :  { %v971_v15 = vpop.permute.xlu0 %970 }
 0x712   :  { %v1005_v16 = vpop.permute.xlu1 %1004  ;;  %978 = vst.msk [vmem:[#allocation3 + $0x10] sm:$0xff] %vm392_vm9, %v971_v15 }
 0x713   :  { %1013 = vst.msk [vmem:[#allocation3] sm:$0xff] %vm430_vm11, %v1005_v16 }
 0x716   :  { %v989_v20 = vpop.permute.xlu1 %988 }
 0x717   :  { %996 = vst.msk [vmem:[#allocation3 + $0x10] sm:$0xff] %vm411_vm10, %v989_v20  ;;  %v1007_v21 = vpop.permute.xlu0 %1006 }
 0x718   :  { %1014 = vst.msk [vmem:[#allocation3 + $0x10] sm:$0xff] %vm430_vm11, %v1007_v21 }
 0x71a   :  { %v973_v24 = vpop.permute.xlu1 %972  ;;  %v1022_v26 = vld [vmem:[#allocation3] sm:$0xff] }
 0x71b   :  { %979 = vst.msk [vmem:[#allocation3 + $0x20] sm:$0xff] %vm392_vm9, %v973_v24  ;;  %v991_v29 = vpop.permute.xlu0 %990  ;;  %1108 = vmatmul.mubr.f32.vlgmr.msra.gmra.mrb[12].mxu1 %v1022_v26 }
 0x71c   :  { %1234 = vst.msk [vmem:[#allocation3] sm:$0xff] %vm159_vm3, %v1231_v23  ;;  %2216 = vmatprep.mubr.msk.f32.mxu1 %vm44_vm0, %v1025_v30  ;;  %2489 = vmatpush3.bf16.msra.mxu1 %v2488_v22 }
 0x71d   :  { %997 = vst.msk [vmem:[#allocation3 + $0x20] sm:$0xff] %vm411_vm10, %v991_v29  ;;  %2490 = vmatprep.subr.bf16.mxu1 %v2671_v0 }
 0x71e   :  { %v1009_v32 = vpop.permute.xlu1 %1008 }
 0x71f   :  { %1015 = vst.msk [vmem:[#allocation3 + $0x20] sm:$0xff] %vm430_vm11, %v1009_v32  ;;  %v1244_v33 = vpop.permute.xlu0 %1243  ;;  %v1024_v34 = vld [vmem:[#allocation3 + $0x10] sm:$0xff] }
 0x720   :  { %1252 = vst.msk [vmem:[#allocation3] sm:$0xff] %vm184_vm4, %v1244_v33  ;;  %1113 = vmatmul.mubr.f32.gmra.mrb[14].mxu1 %v1024_v34  ;;  %v1423_v33 = vld [vmem:[%s3819_s5 + $0x68] sm:$0xff]  ;;  %v1424_v34 = vld [vmem:[%s3819_s5 + $0x70] sm:$0xff] }
 0x721   :  { %1235 = vst.msk [vmem:[#allocation3 + $0x10] sm:$0xff] %vm159_vm3, %v1232_v35  ;;  %2217 = vmatprep.mubr.msk.f32.mxu1 %vm44_vm0, %v1027_v36  ;;  %2492 = vmatpush3.bf16.msra.mxu1 %v2491_v31  ;;  %v1425_v36 = vld [vmem:[%s3819_s5 + $0x78] sm:$0xff] }
 0x722   :  { %v1262_v37 = vpop.permute.xlu1 %1261  ;;  %2338 = vmatprep.subr.mxu1 %v2673_v4 }
 0x723   :  { %1270 = vst.msk [vmem:[#allocation3] sm:$0xff] %vm203_vm5, %v1262_v37  ;;  %v1280_v39 = vpop.permute.xlu0 %1279 }
 0x724   :  { %1288 = vst.msk [vmem:[#allocation3] sm:$0xff] %vm222_vm6, %v1280_v39 }
 0x725   :  { %2339 = vmatpush3.msra.mxu1 %v1226_v38  ;;  %v2515_v38 = vpack.c.bf16 %v1425_v36, %v1424_v34  ;;  %v1615_v36 = vld [vmem:[%s3821_s7 + $0x58] sm:$0xff] }
 0x726   :  { %v1298_v40 = vpop.permute.xlu1 %1297  ;;  %v1026_v41 = vld [vmem:[#allocation3 + $0x20] sm:$0xff]  ;;  %2523 = vmatprep.subr.bf16.mxu1 %v2671_v0 }
 0x727   :  { %1306 = vst.msk [vmem:[#allocation3] sm:$0xff] %vm241_vm7, %v1298_v40  ;;  %v1246_v43 = vpop.permute.xlu0 %1245  ;;  %1118 = vmatmul.mubr.f32.gmra.mrb[16].mxu1 %v1026_v41 }
 0x728   :  { %1236 = vst.msk [vmem:[#allocation3 + $0x20] sm:$0xff] %vm159_vm3, %v1233_v42  ;;  %2340 = vmatprep.mubr.msk.f32.mxu1 %vm2672_vm1, %v2673_v4  ;;  %v1426_v42 = vld [vmem:[%s3819_s5 + $0x80] sm:$0xff] }
 0x729   :  { %1253 = vst.msk [vmem:[#allocation3 + $0x10] sm:$0xff] %vm184_vm4, %v1246_v43  ;;  %v1427_v43 = vld [vmem:[%s3819_s5 + $0x88] sm:$0xff] }
 0x72a   :  { %v1264_v44 = vpop.permute.xlu1 %1263 }
 0x72b   :  { %1271 = vst.msk [vmem:[#allocation3 + $0x10] sm:$0xff] %vm203_vm5, %v1264_v44  ;;  %v1282_v45 = vpop.permute.xlu0 %1281  ;;  %v2518_v44 = vpack.c.bf16 %v1427_v43, %v1426_v42 }
 0x72c   :  { %1289 = vst.msk [vmem:[#allocation3 + $0x10] sm:$0xff] %vm222_vm6, %v1282_v45 }
 0x72e   :  { %v1300_v47 = vpop.permute.xlu1 %1299  ;;  %v1309_v48 = vld [vmem:[#allocation3] sm:$0xff] }
 0x72f   :  { %1307 = vst.msk [vmem:[#allocation3 + $0x10] sm:$0xff] %vm241_vm7, %v1300_v47  ;;  %v1248_v5 = vpop.permute.xlu0 %1247  ;;  %2341 = vmatmul.mubr.msk.f32.vlgmr.msra.gmra.mrb[18].mxu1 %vm254_vm8, %v1309_v48 }
 0x730   :  { %1254 = vst.msk [vmem:[#allocation3 + $0x20] sm:$0xff] %vm184_vm4, %v1248_v5  ;;  %2343 = vmatprep.mubr.msk.f32.mxu1 %vm2672_vm1, %v2673_v4 }
 0x732   :  { %v1266_v7 = vpop.permute.xlu1 %1265 }
 0x733   :  { %1272 = vst.msk [vmem:[#allocation3 + $0x20] sm:$0xff] %vm203_vm5, %v1266_v7  ;;  %v1284_v50 = vpop.permute.xlu0 %1283  ;;  %v1428_v7 = vld [vmem:[%s3819_s5 + $0x90] sm:$0xff] }
 0x734   :  { %1290 = vst.msk [vmem:[#allocation3 + $0x20] sm:$0xff] %vm222_vm6, %v1284_v50  ;;  %v1429_v50 = vld [vmem:[%s3819_s5 + $0x98] sm:$0xff] }
 0x736   :  { %v1302_v52 = vpop.permute.xlu1 %1301  ;;  %v1310_v53 = vld [vmem:[#allocation3 + $0x10] sm:$0xff] }
 0x737   :  { %1308 = vst.msk [vmem:[#allocation3 + $0x20] sm:$0xff] %vm241_vm7, %v1302_v52  ;;  %2344 = vmatmul.mubr.msk.f32.gmra.mrb[20].mxu1 %vm254_vm8, %v1310_v53  ;;  %v2521_v52 = vpack.c.bf16 %v1429_v50, %v1428_v7  ;;  %v1619_v7 = vld [vmem:[%s3821_s7 + $0x78] sm:$0xff] }
 0x738   :  { %2346 = vmatprep.mubr.msk.f32.mxu1 %vm2672_vm1, %v2673_v4  ;;  %v1413_v4 = vld [vmem:[%s3819_s5 + $0x18] sm:$0xff] }
 0x739   :  { %v2497_v59 = vpack.c.bf16 %v1413_v4, %v1412_v57 }
 0x73b   :  { %2498 = vmatpush1.bf16.msra.mxu0 %v2497_v59 }
 0x73c   :  { %2499 = vmatprep.subr.bf16.mxu0 %v2671_v0 }
 0x73e   :  { %v1311_v54 = vld [vmem:[#allocation3 + $0x20] sm:$0xff] }
 0x73f   :  { %2347 = vmatmul.mubr.msk.f32.gmra.mrb[22].mxu1 %vm254_vm8, %v1311_v54  ;;  %2501 = vmatpush1.bf16.msra.mxu0 %v2500_v62 }
 0x740   :  { %2502 = vmatprep.subr.bf16.mxu0 %v2671_v0 }
 0x743   :  { %2504 = vmatpush1.bf16.msra.mxu0 %v2503_v2 }
 0x744   :  { %2505 = vmatprep.subr.bf16.mxu0 %v2671_v0 }
 0x747   :  { %2507 = vmatpush1.bf16.msra.mxu0 %v2506_v8 }
 0x748   :  { %2508 = vmatprep.subr.bf16.mxu0 %v2671_v0 }
 0x74b   :  { %2510 = vmatpush1.bf16.msra.mxu0 %v2509_v11 }
 0x74c   :  { %2511 = vmatprep.subr.bf16.mxu0 %v2671_v0 }
 0x7ee   :  { %v1109_v14 = vpop.f32.mrb[12].mxu1 }
 0x7ef   :  { %v1110_v15 = vadd.f32 %v2214_v12, %v1109_v14  ;;  %v1111_v16 = vpop.f32.mrb[13].mxu1 }
 0x7f1   :  { %v1123_v17 = vadd.f32 %v1110_v15, %v2802_v13 }
 0x7f3   :  { %1126 = vst.msk [vmem:[%s3828_s13] sm:$0xff] %vm159_vm3, %v1123_v17  ;;  %v1114_v18 = vpop.f32.mrb[14].mxu1 }
 0x7f4   :  { %v1115_v20 = vadd.f32 %v2214_v12, %v1114_v18  ;;  %v1116_v21 = vpop.f32.mrb[15].mxu1 }
 0x7f6   :  { %v1124_v22 = vadd.f32 %v1115_v20, %v2812_v19 }
 0x7f8   :  { %1127 = vst.msk [vmem:[%s3828_s13 + $0x8] sm:$0xff] %vm159_vm3, %v1124_v22  ;;  %v1604_v22 = vld [vmem:[%s3821_s7] sm:$0xff] }
 0x7fa   :  { %v1119_v23 = vpop.f32.mrb[16].mxu1 }
 0x7fb   :  { %v1120_v24 = vadd.f32 %v2214_v12, %v1119_v23  ;;  %v1121_v26 = vpop.f32.mrb[17].mxu1  ;;  %v1605_v23 = vld [vmem:[%s3821_s7 + $0x8] sm:$0xff] }
 0x7fc   :  { %v2524_v26 = vpack.c.bf16 %v1605_v23, %v1604_v22 }
 0x7fd   :  { %v1125_v13 = vadd.f32 %v1120_v24, %v2823_v25  ;;  %v1422_v25 = vld [vmem:[%s3819_s5 + $0x60] sm:$0xff]  ;;  %v1606_v24 = vld [vmem:[%s3821_s7 + $0x10] sm:$0xff] }
 0x7fe   :  { %v2512_v35 = vpack.c.bf16 %v1423_v33, %v1422_v25  ;;  %2525 = vmatpush1.bf16.msra.mxu1 %v2524_v26  ;;  %v1612_v25 = vld [vmem:[%s3821_s7 + $0x40] sm:$0xff]  ;;  %v1613_v33 = vld [vmem:[%s3821_s7 + $0x48] sm:$0xff] }
 0x7ff   :  { %1128 = vst.msk [vmem:[%s3828_s13 + $0x10] sm:$0xff] %vm159_vm3, %v1125_v13  ;;  %v1607_v13 = vld [vmem:[%s3821_s7 + $0x18] sm:$0xff]  ;;  %2526 = vmatprep.subr.bf16.mxu1 %v2671_v0  ;;  %v2536_v34 = vpack.c.bf16 %v1613_v33, %v1612_v25  ;;  %v1798_v33 = vld [vmem:[%s3823_s9] sm:$0xff] }
 0x800   :  { %2513 = vmatpush1.bf16.msra.mxu0 %v2512_v35  ;;  %v1614_v35 = vld [vmem:[%s3821_s7 + $0x50] sm:$0xff] }
 0x801   :  { %2514 = vmatprep.subr.bf16.mxu0 %v2671_v0 }
 0x802   :  { %v1393_v19 = vpop.f32.mrb[18].mxu1 }
 0x803   :  { %v1394_v28 = vadd.f32 %v2224_v27, %v1393_v19  ;;  %v2342_v29 = vpop.f32.mrb[19].mxu1  ;;  %v1608_v19 = vld [vmem:[%s3821_s7 + $0x20] sm:$0xff] }
 0x804   :  { %2516 = vmatpush1.bf16.msra.mxu0 %v2515_v38  ;;  %v2228_v38 = vld [vmem:[%s3822_s6] ss:$0 sm:$0xff] }
 0x805   :  { %2646 = vtanh.f32 %v1394_v28  ;;  %2517 = vmatprep.subr.bf16.mxu0 %v2671_v0  ;;  %v1609_v28 = vld [vmem:[%s3821_s7 + $0x28] sm:$0xff] }
 0x806   :  { %v2530_v29 = vpack.c.bf16 %v1609_v28, %v1608_v19 }
 0x808   :  { %2519 = vmatpush1.bf16.msra.mxu0 %v2518_v44 }
 0x809   :  { %2520 = vmatprep.subr.bf16.mxu0 %v2671_v0 }
 0x80a   :  { %v1398_v30 = vpop.f32.mrb[20].mxu1 }
 0x80b   :  { %v1399_v31 = vadd.f32 %v2224_v27, %v1398_v30  ;;  %v2345_v32 = vpop.f32.mrb[21].mxu1  ;;  %v1610_v30 = vld [vmem:[%s3821_s7 + $0x30] sm:$0xff] }
 0x80c   :  { %2522 = vmatpush1.bf16.msra.mxu0 %v2521_v52 }
 0x80d   :  { %2648 = vtanh.f32 %v1399_v31  ;;  %2553 = vmatprep.subr.bf16.mxu0 %v2671_v0  ;;  %v1611_v31 = vld [vmem:[%s3821_s7 + $0x38] sm:$0xff] }
 0x80e   :  { %v2533_v32 = vpack.c.bf16 %v1611_v31, %v1610_v30 }
 0x80f   :  { %v2647_v37 = vpop.eup %2646 }
 0x810   :  { %1431 = vst.msk [vmem:[#allocation2 + $0x2] sm:$0xff] %vm44_vm0, %v2647_v37  ;;  %v2539_v37 = vpack.c.bf16 %v1615_v36, %v1614_v35  ;;  %v1800_v35 = vld [vmem:[%s3823_s9 + $0x10] sm:$0xff] }
 0x812   :  { %v1403_v39 = vpop.f32.mrb[22].mxu1 }
 0x813   :  { %v1404_v40 = vadd.f32 %v2224_v27, %v1403_v39  ;;  %v2348_v41 = vpop.f32.mrb[23].mxu1  ;;  %v2527_v27 = vpack.c.bf16 %v1607_v13, %v1606_v24 }
 0x815   :  { %2650 = vtanh.f32 %v1404_v40  ;;  %2528 = vmatpush1.bf16.msra.mxu1 %v2527_v27 }
 0x816   :  { %2529 = vmatprep.subr.bf16.mxu1 %v2671_v0 }
 0x817   :  { %v2649_v45 = vpop.eup %2648  ;;  %v1458_v47 = vld [vmem:[#allocation2 + $0x2] sm:$0xff] }
 0x818   :  { %v1440_v48 = vld [vmem:[#allocation2 + $0x1] sm:$0xff]  ;;  %1432 = vst.msk [vmem:[#allocation2 + $0xa] sm:$0xff] %vm44_vm0, %v2649_v45  ;;  %1464 = vrot.lane.b32.xlu1 %v1458_v47, %s2678_s19 }
 0x819   :  { %v1434_v5 = vld [vmem:[#allocation2] sm:$0xff]  ;;  %1446 = vrot.lane.b32.xlu0 %v1440_v48, %s2677_s18  ;;  %2531 = vmatpush1.bf16.msra.mxu1 %v2530_v29  ;;  %v1617_v47 = vld [vmem:[%s3821_s7 + $0x68] sm:$0xff]  ;;  %v1618_v48 = vld [vmem:[%s3821_s7 + $0x70] sm:$0xff] }
 0x81a   :  { %1437 = vst.msk [vmem:[#allocation3] sm:$0xff] %vm44_vm0, %v1434_v5  ;;  %2532 = vmatprep.subr.bf16.mxu1 %v2671_v0  ;;  %v1616_v45 = vld [vmem:[%s3821_s7 + $0x60] sm:$0xff] }
 0x81b   :  { %v2542_v5 = vpack.c.bf16 %v1617_v47, %v1616_v45  ;;  %v1806_v45 = vld [vmem:[%s3823_s9 + $0x40] sm:$0xff]  ;;  %v1807_v47 = vld [vmem:[%s3823_s9 + $0x48] sm:$0xff] }
 0x81d   :  { %2534 = vmatpush1.bf16.msra.mxu1 %v2533_v32 }
 0x81e   :  { %2535 = vmatprep.subr.bf16.mxu1 %v2671_v0 }
 0x81f   :  { %v2651_v53 = vpop.eup %2650  ;;  %v1476_v54 = vld [vmem:[#allocation2 + $0x3] sm:$0xff] }
 0x820   :  { %v1441_v55 = vld [vmem:[#allocation2 + $0x9] sm:$0xff]  ;;  %1433 = vst.msk [vmem:[#allocation2 + $0x12] sm:$0xff] %vm44_vm0, %v2651_v53  ;;  %1482 = vrot.lane.b32.xlu0 %v1476_v54, %s2679_s20  ;;  %v2545_v53 = vpack.c.bf16 %v1619_v7, %v1618_v48  ;;  %v2566_v48 = vpack.c.bf16 %v1807_v47, %v1806_v45  ;;  %v1809_v7 = vld [vmem:[%s3823_s9 + $0x58] sm:$0xff]  ;;  %v1992_v47 = vld [vmem:[%s3825_s11] sm:$0xff] }
 0x821   :  { %1448 = vrot.lane.b32.xlu1 %v1441_v55, %s2677_s18  ;;  %v1494_v56 = vld [vmem:[#allocation2 + $0x4] sm:$0xff]  ;;  %2537 = vmatpush1.bf16.msra.mxu1 %v2536_v34 }
 0x822   :  { %v1435_v57 = vld [vmem:[#allocation2 + $0x8] sm:$0xff]  ;;  %1497 = vst.msk [vmem:[#allocation3 + $0x8] sm:$0xff] %vm44_vm0, %v1494_v56  ;;  %2538 = vmatprep.subr.bf16.mxu1 %v2671_v0  ;;  %v1620_v56 = vld [vmem:[%s3821_s7 + $0x80] sm:$0xff] }
 0x823   :  { %1438 = vst.msk [vmem:[#allocation3 + $0x10] sm:$0xff] %vm44_vm0, %v1435_v57  ;;  %v1459_v58 = vld [vmem:[#allocation2 + $0xa] sm:$0xff] }
 0x824   :  { %1466 = vrot.lane.b32.xlu0 %v1459_v58, %s2678_s19  ;;  %v1621_v57 = vld [vmem:[%s3821_s7 + $0x88] sm:$0xff] }
 0x825   :  { %2540 = vmatpush1.bf16.msra.mxu1 %v2539_v37  ;;  %v2548_v58 = vpack.c.bf16 %v1621_v57, %v1620_v56  ;;  %v1799_v34 = vld [vmem:[%s3823_s9 + $0x8] sm:$0xff]  ;;  %v1801_v37 = vld [vmem:[%s3823_s9 + $0x18] sm:$0xff] }
 0x826   :  { %2541 = vmatprep.subr.bf16.mxu1 %v2671_v0  ;;  %v2554_v36 = vpack.c.bf16 %v1799_v34, %v1798_v33 }
 0x827   :  { %v1477_v4 = vld [vmem:[#allocation2 + $0xb] sm:$0xff]  ;;  %v1496_v63 = vld [vmem:[#allocation2 + $0x14] sm:$0xff] }
 0x828   :  { %v1442_v59 = vld [vmem:[#allocation2 + $0x11] sm:$0xff]  ;;  %1484 = vrot.lane.b32.xlu1 %v1477_v4, %s2679_s20  ;;  %1499 = vst.msk [vmem:[#allocation3 + $0x28] sm:$0xff] %vm44_vm0, %v1496_v63 }
 0x829   :  { %v1501_v60 = vld [vmem:[#allocation3 + $0x8] sm:$0xff]  ;;  %1450 = vrot.lane.b32.xlu0 %v1442_v59, %s2677_s18  ;;  %v1436_v61 = vld [vmem:[#allocation2 + $0x10] sm:$0xff]  ;;  %2543 = vmatpush1.bf16.msra.mxu1 %v2542_v5  ;;  %v1623_v63 = vld [vmem:[%s3821_s7 + $0x98] sm:$0xff] }
 0x82a   :  { %2229 = vmatprep.mubr.msk.f32.mxu0 %vm44_vm0, %v1501_v60  ;;  %1439 = vst.msk [vmem:[#allocation3 + $0x20] sm:$0xff] %vm44_vm0, %v1436_v61  ;;  %v1495_v62 = vld [vmem:[#allocation2 + $0xc] sm:$0xff]  ;;  %2544 = vmatprep.subr.bf16.mxu1 %v2671_v0 }
 0x82b   :  { %1498 = vst.msk [vmem:[#allocation3 + $0x18] sm:$0xff] %vm44_vm0, %v1495_v62  ;;  %v1460_v1 = vld [vmem:[#allocation2 + $0x12] sm:$0xff] }
 0x82c   :  { %v1478_v2 = vld [vmem:[#allocation2 + $0x13] sm:$0xff]  ;;  %1468 = vrot.lane.b32.xlu1 %v1460_v1, %s2678_s19 }
 0x82d   :  { %1486 = vrot.lane.b32.xlu0 %v1478_v2, %s2679_s20  ;;  %2546 = vmatpush1.bf16.msra.mxu1 %v2545_v53  ;;  %v1622_v62 = vld [vmem:[%s3821_s7 + $0x90] sm:$0xff]  ;;  %v1811_v53 = vld [vmem:[%s3823_s9 + $0x68] sm:$0xff] }
 0x82e   :  { %2547 = vmatprep.subr.bf16.mxu1 %v2671_v0  ;;  %v2551_v1 = vpack.c.bf16 %v1623_v63, %v1622_v62  ;;  %v1808_v5 = vld [vmem:[%s3823_s9 + $0x50] sm:$0xff]  ;;  %v1813_v62 = vld [vmem:[%s3823_s9 + $0x78] sm:$0xff] }
 0x82f   :  { %v1505_v20 = vld [vmem:[#allocation3 + $0x28] sm:$0xff] }
 0x831   :  { %2549 = vmatpush1.bf16.msra.mxu1 %v2548_v58 }
 0x832   :  { %v1503_v15 = vld [vmem:[#allocation3 + $0x18] sm:$0xff]  ;;  %2550 = vmatprep.subr.bf16.mxu1 %v2671_v0 }
 0x835   :  { %2552 = vmatpush1.bf16.msra.mxu1 %v2551_v1 }
 0x836   :  { %2583 = vmatprep.subr.bf16.mxu1 %v2671_v0 }
 0x88a   :  { %v1465_v3 = vpop.permute.xlu1 %1464 }
 0x88b   :  { %v1447_v6 = vpop.permute.xlu0 %1446 }
 0x88c   :  { %1455 = vst.msk [vmem:[#allocation3] sm:$0xff] %vm392_vm9, %v1447_v6 }
 0x88d   :  { %1473 = vst.msk [vmem:[#allocation3] sm:$0xff] %vm411_vm10, %v1465_v3 }
 0x892   :  { %v1483_v8 = vpop.permute.xlu0 %1482 }
 0x893   :  { %v1449_v9 = vpop.permute.xlu1 %1448  ;;  %1491 = vst.msk [vmem:[#allocation3] sm:$0xff] %vm430_vm11, %v1483_v8 }
 0x894   :  { %1456 = vst.msk [vmem:[#allocation3 + $0x10] sm:$0xff] %vm392_vm9, %v1449_v9 }
 0x896   :  { %v1467_v10 = vpop.permute.xlu0 %1466 }
 0x897   :  { %1474 = vst.msk [vmem:[#allocation3 + $0x10] sm:$0xff] %vm411_vm10, %v1467_v10 }
 0x89a   :  { %v1485_v11 = vpop.permute.xlu1 %1484  ;;  %v1500_v14 = vld [vmem:[#allocation3] sm:$0xff] }
 0x89b   :  { %v1451_v12 = vpop.permute.xlu0 %1450  ;;  %1492 = vst.msk [vmem:[#allocation3 + $0x10] sm:$0xff] %vm430_vm11, %v1485_v11  ;;  %1586 = vmatmul.mubr.f32.vlgmr.msra.gmra.mrb[24].mxu0 %v1500_v14 }
 0x89c   :  { %1457 = vst.msk [vmem:[#allocation3 + $0x20] sm:$0xff] %vm392_vm9, %v1451_v12  ;;  %2230 = vmatprep.mubr.msk.f32.mxu0 %vm44_vm0, %v1503_v15  ;;  %2555 = vmatpush1.bf16.msra.mxu0 %v2554_v36 }
 0x89d   :  { %2556 = vmatprep.subr.bf16.mxu0 %v2671_v0 }
 0x89e   :  { %v1469_v16 = vpop.permute.xlu1 %1468 }
 0x89f   :  { %v1487_v17 = vpop.permute.xlu0 %1486  ;;  %1475 = vst.msk [vmem:[#allocation3 + $0x20] sm:$0xff] %vm411_vm10, %v1469_v16 }
 0x8a0   :  { %1493 = vst.msk [vmem:[#allocation3 + $0x20] sm:$0xff] %vm430_vm11, %v1487_v17 }
 0x8a2   :  { %v1502_v18 = vld [vmem:[#allocation3 + $0x10] sm:$0xff] }
 0x8a3   :  { %1591 = vmatmul.mubr.f32.gmra.mrb[26].mxu0 %v1502_v18 }
 0x8a4   :  { %2231 = vmatprep.mubr.msk.f32.mxu0 %vm44_vm0, %v1505_v20 }
 0x8a7   :  { %v1504_v21 = vld [vmem:[#allocation3 + $0x20] sm:$0xff] }
 0x8a8   :  { %1596 = vmatmul.mubr.f32.gmra.mrb[28].mxu0 %v1504_v21 }
 0x96e   :  { %v1587_v39 = vpop.f32.mrb[24].mxu0 }
 0x96f   :  { %v1588_v40 = vadd.f32 %v2228_v38, %v1587_v39  ;;  %v1589_v41 = vpop.f32.mrb[25].mxu0  ;;  %v1802_v39 = vld [vmem:[%s3823_s9 + $0x20] sm:$0xff] }
 0x971   :  { %2652 = vtanh.f32 %v1588_v40  ;;  %v1803_v40 = vld [vmem:[%s3823_s9 + $0x28] sm:$0xff] }
 0x972   :  { %v2560_v41 = vpack.c.bf16 %v1803_v40, %v1802_v39 }
 0x976   :  { %v1592_v42 = vpop.f32.mrb[26].mxu0 }
 0x977   :  { %v1593_v43 = vadd.f32 %v2228_v38, %v1592_v42  ;;  %v1594_v44 = vpop.f32.mrb[27].mxu0  ;;  %v1804_v42 = vld [vmem:[%s3823_s9 + $0x30] sm:$0xff] }
 0x979   :  { %2654 = vtanh.f32 %v1593_v43  ;;  %v1805_v43 = vld [vmem:[%s3823_s9 + $0x38] sm:$0xff] }
 0x97a   :  { %v2563_v44 = vpack.c.bf16 %v1805_v43, %v1804_v42 }
 0x97b   :  { %v2653_v50 = vpop.eup %2652  ;;  %v1597_v52 = vpop.f32.mrb[28].mxu0 }
 0x97c   :  { %1625 = vst.msk [vmem:[#allocation2 + $0x2] sm:$0xff] %vm44_vm0, %v2653_v50  ;;  %v1598_v54 = vadd.f32 %v2228_v38, %v1597_v52  ;;  %v1599_v55 = vpop.f32.mrb[29].mxu0  ;;  %v2557_v38 = vpack.c.bf16 %v1801_v37, %v1800_v35  ;;  %v2569_v50 = vpack.c.bf16 %v1809_v7, %v1808_v5  ;;  %v1810_v52 = vld [vmem:[%s3823_s9 + $0x60] sm:$0xff]  ;;  %v1994_v5 = vld [vmem:[%s3825_s11 + $0x10] sm:$0xff] }
 0x97d   :  { %v2232_v55 = vld [vmem:[%s3824_s8] ss:$0 sm:$0xff] }
 0x97e   :  { %2656 = vtanh.f32 %v1598_v54  ;;  %2558 = vmatpush1.bf16.msra.mxu0 %v2557_v38  ;;  %v2572_v54 = vpack.c.bf16 %v1811_v53, %v1810_v52  ;;  %v1996_v53 = vld [vmem:[%s3825_s11 + $0x20] sm:$0xff] }
 0x97f   :  { %2559 = vmatprep.subr.bf16.mxu0 %v2671_v0 }
 0x982   :  { %2561 = vmatpush1.bf16.msra.mxu0 %v2560_v41 }
 0x983   :  { %v2655_v4 = vpop.eup %2654  ;;  %v1634_v59 = vld [vmem:[#allocation2 + $0x1] sm:$0xff]  ;;  %2562 = vmatprep.subr.bf16.mxu0 %v2671_v0 }
 0x984   :  { %v1652_v60 = vld [vmem:[#allocation2 + $0x2] sm:$0xff]  ;;  %1626 = vst.msk [vmem:[#allocation2 + $0xa] sm:$0xff] %vm44_vm0, %v2655_v4  ;;  %1640 = vrot.lane.b32.xlu1 %v1634_v59, %s2677_s18 }
 0x985   :  { %v1628_v61 = vld [vmem:[#allocation2] sm:$0xff]  ;;  %1658 = vrot.lane.b32.xlu0 %v1652_v60, %s2678_s19 }
 0x986   :  { %1631 = vst.msk [vmem:[#allocation3] sm:$0xff] %vm44_vm0, %v1628_v61  ;;  %2564 = vmatpush1.bf16.msra.mxu0 %v2563_v44  ;;  %v1812_v61 = vld [vmem:[%s3823_s9 + $0x70] sm:$0xff] }
 0x987   :  { %2565 = vmatprep.subr.bf16.mxu0 %v2671_v0  ;;  %v2575_v63 = vpack.c.bf16 %v1813_v62, %v1812_v61  ;;  %v2002_v61 = vld [vmem:[%s3825_s11 + $0x50] sm:$0xff]  ;;  %v2003_v62 = vld [vmem:[%s3825_s11 + $0x58] sm:$0xff] }
 0x988   :  { %v2657_v2 = vpop.eup %2656 }
 0x989   :  { %1627 = vst.msk [vmem:[#allocation2 + $0x12] sm:$0xff] %vm44_vm0, %v2657_v2 }
 0x98a   :  { %2567 = vmatpush1.bf16.msra.mxu0 %v2566_v48  ;;  %v1993_v48 = vld [vmem:[%s3825_s11 + $0x8] sm:$0xff] }
 0x98b   :  { %v1670_v3 = vld [vmem:[#allocation2 + $0x3] sm:$0xff]  ;;  %2568 = vmatprep.subr.bf16.mxu0 %v2671_v0  ;;  %v2584_v7 = vpack.c.bf16 %v1993_v48, %v1992_v47 }
 0x98c   :  { %v1635_v6 = vld [vmem:[#allocation2 + $0x9] sm:$0xff]  ;;  %1676 = vrot.lane.b32.xlu1 %v1670_v3, %s2679_s20 }
 0x98d   :  { %1642 = vrot.lane.b32.xlu0 %v1635_v6, %s2677_s18  ;;  %v1688_v8 = vld [vmem:[#allocation2 + $0x4] sm:$0xff] }
 0x98e   :  { %v1629_v9 = vld [vmem:[#allocation2 + $0x8] sm:$0xff]  ;;  %1691 = vst.msk [vmem:[#allocation3 + $0x8] sm:$0xff] %vm44_vm0, %v1688_v8  ;;  %2570 = vmatpush1.bf16.msra.mxu0 %v2569_v50  ;;  %v1814_v8 = vld [vmem:[%s3823_s9 + $0x80] sm:$0xff]  ;;  %v1995_v50 = vld [vmem:[%s3825_s11 + $0x18] sm:$0xff] }
 0x98f   :  { %1632 = vst.msk [vmem:[#allocation3 + $0x10] sm:$0xff] %vm44_vm0, %v1629_v9  ;;  %v1653_v10 = vld [vmem:[#allocation2 + $0xa] sm:$0xff]  ;;  %2571 = vmatprep.subr.bf16.mxu0 %v2671_v0  ;;  %v2587_v52 = vpack.c.bf16 %v1995_v50, %v1994_v5 }
 0x990   :  { %1660 = vrot.lane.b32.xlu1 %v1653_v10, %s2678_s19  ;;  %v1671_v11 = vld [vmem:[#allocation2 + $0xb] sm:$0xff]  ;;  %v1690_v15 = vld [vmem:[#allocation2 + $0x14] sm:$0xff] }
 0x991   :  { %1678 = vrot.lane.b32.xlu0 %v1671_v11, %s2679_s20  ;;  %v1630_v12 = vld [vmem:[#allocation2 + $0x10] sm:$0xff]  ;;  %1693 = vst.msk [vmem:[#allocation3 + $0x28] sm:$0xff] %vm44_vm0, %v1690_v15  ;;  %v1815_v9 = vld [vmem:[%s3823_s9 + $0x88] sm:$0xff] }
 0x992   :  { %v1689_v14 = vld [vmem:[#allocation2 + $0xc] sm:$0xff]  ;;  %1633 = vst.msk [vmem:[#allocation3 + $0x20] sm:$0xff] %vm44_vm0, %v1630_v12  ;;  %2573 = vmatpush1.bf16.msra.mxu0 %v2572_v54  ;;  %v2578_v10 = vpack.c.bf16 %v1815_v9, %v1814_v8 }
 0x993   :  { %1692 = vst.msk [vmem:[#allocation3 + $0x18] sm:$0xff] %vm44_vm0, %v1689_v14  ;;  %v1636_v16 = vld [vmem:[#allocation2 + $0x11] sm:$0xff]  ;;  %2574 = vmatprep.subr.bf16.mxu0 %v2671_v0  ;;  %v1997_v54 = vld [vmem:[%s3825_s11 + $0x28] sm:$0xff] }
 0x994   :  { %1644 = vrot.lane.b32.xlu1 %v1636_v16, %s2677_s18  ;;  %v1654_v18 = vld [vmem:[#allocation2 + $0x12] sm:$0xff] }
 0x995   :  { %v1695_v17 = vld [vmem:[#allocation3 + $0x8] sm:$0xff]  ;;  %1662 = vrot.lane.b32.xlu0 %v1654_v18, %s2678_s19  ;;  %v1672_v20 = vld [vmem:[#allocation2 + $0x13] sm:$0xff] }
 0x996   :  { %2233 = vmatprep.mubr.msk.f32.mxu1 %vm44_vm0, %v1695_v17  ;;  %2576 = vmatpush1.bf16.msra.mxu0 %v2575_v63  ;;  %v1816_v12 = vld [vmem:[%s3823_s9 + $0x90] sm:$0xff]  ;;  %v1817_v14 = vld [vmem:[%s3823_s9 + $0x98] sm:$0xff]  ;;  %v2599_v63 = vpack.c.bf16 %v2003_v62, %v2002_v61 }
 0x997   :  { %2577 = vmatprep.subr.bf16.mxu0 %v2671_v0  ;;  %v2581_v15 = vpack.c.bf16 %v1817_v14, %v1816_v12  ;;  %v2005_v12 = vld [vmem:[%s3825_s11 + $0x68] sm:$0xff]  ;;  %v2006_v14 = vld [vmem:[%s3825_s11 + $0x70] sm:$0xff] }
 0x998   :  { %1680 = vrot.lane.b32.xlu1 %v1672_v20, %s2679_s20  ;;  %v1699_v32 = vld [vmem:[#allocation3 + $0x28] sm:$0xff] }
 0x99a   :  { %v1697_v29 = vld [vmem:[#allocation3 + $0x18] sm:$0xff]  ;;  %2579 = vmatpush1.bf16.msra.mxu0 %v2578_v10 }
 0x99b   :  { %2580 = vmatprep.subr.bf16.mxu0 %v2671_v0 }
 0x99e   :  { %2582 = vmatpush1.bf16.msra.mxu0 %v2581_v15 }
 0x9f6   :  { %v1641_v21 = vpop.permute.xlu1 %1640 }
 0x9f7   :  { %v1659_v22 = vpop.permute.xlu0 %1658  ;;  %1649 = vst.msk [vmem:[#allocation3] sm:$0xff] %vm392_vm9, %v1641_v21 }
 0x9f8   :  { %1667 = vst.msk [vmem:[#allocation3] sm:$0xff] %vm411_vm10, %v1659_v22 }
 0x9fe   :  { %v1677_v23 = vpop.permute.xlu1 %1676 }
 0x9ff   :  { %v1643_v24 = vpop.permute.xlu0 %1642  ;;  %1685 = vst.msk [vmem:[#allocation3] sm:$0xff] %vm430_vm11, %v1677_v23 }
 0xa00   :  { %1650 = vst.msk [vmem:[#allocation3 + $0x10] sm:$0xff] %vm392_vm9, %v1643_v24 }
 0xa02   :  { %v1661_v26 = vpop.permute.xlu1 %1660 }
 0xa03   :  { %1668 = vst.msk [vmem:[#allocation3 + $0x10] sm:$0xff] %vm411_vm10, %v1661_v26  ;;  %v1679_v13 = vpop.permute.xlu0 %1678 }
 0xa04   :  { %1686 = vst.msk [vmem:[#allocation3 + $0x10] sm:$0xff] %vm430_vm11, %v1679_v13 }
 0xa06   :  { %v1645_v27 = vpop.permute.xlu1 %1644  ;;  %v1694_v19 = vld [vmem:[#allocation3] sm:$0xff] }
 0xa07   :  { %1651 = vst.msk [vmem:[#allocation3 + $0x20] sm:$0xff] %vm392_vm9, %v1645_v27  ;;  %1780 = vmatmul.mubr.f32.vlgmr.msra.gmra.mrb[24].mxu1 %v1694_v19  ;;  %v1663_v28 = vpop.permute.xlu0 %1662 }
 0xa08   :  { %1669 = vst.msk [vmem:[#allocation3 + $0x20] sm:$0xff] %vm411_vm10, %v1663_v28  ;;  %2234 = vmatprep.mubr.msk.f32.mxu1 %vm44_vm0, %v1697_v29  ;;  %2585 = vmatpush1.bf16.msra.mxu1 %v2584_v7 }
 0xa09   :  { %2586 = vmatprep.subr.bf16.mxu1 %v2671_v0 }
 0xa0a   :  { %v1681_v30 = vpop.permute.xlu1 %1680 }
 0xa0b   :  { %1687 = vst.msk [vmem:[#allocation3 + $0x20] sm:$0xff] %vm430_vm11, %v1681_v30  ;;  %v1696_v31 = vld [vmem:[#allocation3 + $0x10] sm:$0xff] }
 0xa0c   :  { %1785 = vmatmul.mubr.f32.gmra.mrb[26].mxu1 %v1696_v31 }
 0xa0d   :  { %2235 = vmatprep.mubr.msk.f32.mxu1 %vm44_vm0, %v1699_v32  ;;  %2588 = vmatpush1.bf16.msra.mxu1 %v2587_v52 }
 0xa0e   :  { %2589 = vmatprep.subr.bf16.mxu1 %v2671_v0 }
 0xa12   :  { %v1698_v25 = vld [vmem:[#allocation3 + $0x20] sm:$0xff] }
 0xa13   :  { %1790 = vmatmul.mubr.f32.gmra.mrb[28].mxu1 %v1698_v25 }
 0xada   :  { %v1781_v56 = vpop.f32.mrb[24].mxu1 }
 0xadb   :  { %v1782_v57 = vadd.f32 %v2232_v55, %v1781_v56  ;;  %v1783_v58 = vpop.f32.mrb[25].mxu1  ;;  %v1998_v56 = vld [vmem:[%s3825_s11 + $0x30] sm:$0xff] }
 0xadd   :  { %2658 = vtanh.f32 %v1782_v57  ;;  %v1999_v57 = vld [vmem:[%s3825_s11 + $0x38] sm:$0xff] }
 0xade   :  { %v2593_v58 = vpack.c.bf16 %v1999_v57, %v1998_v56 }
 0xadf   :  { %v1786_v4 = vpop.f32.mrb[26].mxu1 }
 0xae0   :  { %v1787_v59 = vadd.f32 %v2232_v55, %v1786_v4  ;;  %v1788_v60 = vpop.f32.mrb[27].mxu1  ;;  %v2000_v4 = vld [vmem:[%s3825_s11 + $0x40] sm:$0xff] }
 0xae2   :  { %2660 = vtanh.f32 %v1787_v59  ;;  %v2001_v59 = vld [vmem:[%s3825_s11 + $0x48] sm:$0xff] }
 0xae3   :  { %v2596_v60 = vpack.c.bf16 %v2001_v59, %v2000_v4  ;;  %v2240_v4 = vld [vmem:[%s3827_s12] ss:$0 sm:$0xff] }
 0xae6   :  { %v1791_v1 = vpop.f32.mrb[28].mxu1 }
 0xae7   :  { %v2659_v2 = vpop.eup %2658  ;;  %v1792_v3 = vadd.f32 %v2232_v55, %v1791_v1  ;;  %v1793_v6 = vpop.f32.mrb[29].mxu1  ;;  %v2590_v55 = vpack.c.bf16 %v1997_v54, %v1996_v53  ;;  %v2236_v1 = vld [vmem:[%s3826_s10] ss:$0 sm:$0xff] }
 0xae8   :  { %1819 = vst.msk [vmem:[#allocation2 + $0x2] sm:$0xff] %vm44_vm0, %v2659_v2 }
 0xae9   :  { %2662 = vtanh.f32 %v1792_v3  ;;  %2591 = vmatpush1.bf16.msra.mxu1 %v2590_v55 }
 0xaea   :  { %2592 = vmatprep.subr.bf16.mxu1 %v2671_v0 }
 0xaec   :  { %v2661_v11 = vpop.eup %2660 }
 0xaed   :  { %1820 = vst.msk [vmem:[#allocation2 + $0xa] sm:$0xff] %vm44_vm0, %v2661_v11  ;;  %2594 = vmatpush1.bf16.msra.mxu1 %v2593_v58  ;;  %v2004_v11 = vld [vmem:[%s3825_s11 + $0x60] sm:$0xff] }
 0xaee   :  { %2595 = vmatprep.subr.bf16.mxu1 %v2671_v0  ;;  %v2602_v15 = vpack.c.bf16 %v2005_v12, %v2004_v11 }
 0xaef   :  { %v1846_v16 = vld [vmem:[#allocation2 + $0x2] sm:$0xff] }
 0xaf0   :  { %v1828_v17 = vld [vmem:[#allocation2 + $0x1] sm:$0xff]  ;;  %1852 = vrot.lane.b32.xlu1 %v1846_v16, %s2678_s19  ;;  %v2007_v16 = vld [vmem:[%s3825_s11 + $0x78] sm:$0xff] }
 0xaf1   :  { %v1822_v18 = vld [vmem:[#allocation2] sm:$0xff]  ;;  %1834 = vrot.lane.b32.xlu0 %v1828_v17, %s2677_s18  ;;  %2597 = vmatpush1.bf16.msra.mxu1 %v2596_v60 }
 0xaf2   :  { %1825 = vst.msk [vmem:[#allocation3] sm:$0xff] %vm44_vm0, %v1822_v18  ;;  %2598 = vmatprep.subr.bf16.mxu1 %v2671_v0 }
 0xaf3   :  { %v2663_v20 = vpop.eup %2662 }
 0xaf4   :  { %1821 = vst.msk [vmem:[#allocation2 + $0x12] sm:$0xff] %vm44_vm0, %v2663_v20  ;;  %v1829_v21 = vld [vmem:[#allocation2 + $0x9] sm:$0xff] }
 0xaf5   :  { %v1864_v22 = vld [vmem:[#allocation2 + $0x3] sm:$0xff]  ;;  %1836 = vrot.lane.b32.xlu1 %v1829_v21, %s2677_s18  ;;  %2600 = vmatpush1.bf16.msra.mxu1 %v2599_v63 }
 0xaf6   :  { %1870 = vrot.lane.b32.xlu0 %v1864_v22, %s2679_s20  ;;  %v1882_v23 = vld [vmem:[#allocation2 + $0x4] sm:$0xff]  ;;  %2601 = vmatprep.subr.bf16.mxu1 %v2671_v0  ;;  %v2605_v22 = vpack.c.bf16 %v2007_v16, %v2006_v14 }
 0xaf7   :  { %v1823_v24 = vld [vmem:[#allocation2 + $0x8] sm:$0xff]  ;;  %1885 = vst.msk [vmem:[#allocation3 + $0x8] sm:$0xff] %vm44_vm0, %v1882_v23  ;;  %v2008_v23 = vld [vmem:[%s3825_s11 + $0x80] sm:$0xff] }
 0xaf8   :  { %1826 = vst.msk [vmem:[#allocation3 + $0x10] sm:$0xff] %vm44_vm0, %v1823_v24  ;;  %v1847_v26 = vld [vmem:[#allocation2 + $0xa] sm:$0xff] }
 0xaf9   :  { %2603 = vmatpush1.bf16.msra.mxu1 %v2602_v15  ;;  %v2009_v24 = vld [vmem:[%s3825_s11 + $0x88] sm:$0xff] }
 0xafa   :  { %1854 = vrot.lane.b32.xlu0 %v1847_v26, %s2678_s19  ;;  %2604 = vmatprep.subr.bf16.mxu1 %v2671_v0  ;;  %v2608_v26 = vpack.c.bf16 %v2009_v24, %v2008_v23 }
 0xafb   :  { %v1865_v13 = vld [vmem:[#allocation2 + $0xb] sm:$0xff]  ;;  %v1884_v30 = vld [vmem:[#allocation2 + $0x14] sm:$0xff] }
 0xafc   :  { %v1830_v27 = vld [vmem:[#allocation2 + $0x11] sm:$0xff]  ;;  %1872 = vrot.lane.b32.xlu1 %v1865_v13, %s2679_s20  ;;  %1887 = vst.msk [vmem:[#allocation3 + $0x28] sm:$0xff] %vm44_vm0, %v1884_v30 }
 0xafd   :  { %v1824_v19 = vld [vmem:[#allocation2 + $0x10] sm:$0xff]  ;;  %2606 = vmatpush1.bf16.msra.mxu1 %v2605_v22  ;;  %v2011_v30 = vld [vmem:[%s3825_s11 + $0x98] sm:$0xff] }
 0xafe   :  { %v1883_v28 = vld [vmem:[#allocation2 + $0xc] sm:$0xff]  ;;  %1838 = vrot.lane.b32.xlu0 %v1830_v27, %s2677_s18  ;;  %1827 = vst.msk [vmem:[#allocation3 + $0x20] sm:$0xff] %vm44_vm0, %v1824_v19  ;;  %2607 = vmatprep.subr.bf16.mxu1 %v2671_v0 }
 0xaff   :  { %v1889_v29 = vld [vmem:[#allocation3 + $0x8] sm:$0xff]  ;;  %1886 = vst.msk [vmem:[#allocation3 + $0x18] sm:$0xff] %vm44_vm0, %v1883_v28  ;;  %v1848_v31 = vld [vmem:[#allocation2 + $0x12] sm:$0xff] }
 0xb00   :  { %2237 = vmatprep.mubr.msk.f32.mxu0 %vm44_vm0, %v1889_v29  ;;  %1856 = vrot.lane.b32.xlu1 %v1848_v31, %s2678_s19  ;;  %v1866_v32 = vld [vmem:[#allocation2 + $0x13] sm:$0xff] }
 0xb01   :  { %2609 = vmatpush1.bf16.msra.mxu1 %v2608_v26  ;;  %v2010_v29 = vld [vmem:[%s3825_s11 + $0x90] sm:$0xff] }
 0xb02   :  { %1874 = vrot.lane.b32.xlu0 %v1866_v32, %s2679_s20  ;;  %2610 = vmatprep.subr.bf16.mxu1 %v2671_v0  ;;  %v2611_v31 = vpack.c.bf16 %v2011_v30, %v2010_v29 }
 0xb03   :  { %v1893_v44 = vld [vmem:[#allocation3 + $0x28] sm:$0xff] }
 0xb05   :  { %2612 = vmatpush1.bf16.msra.mxu1 %v2611_v31 }
 0xb06   :  { %v1891_v40 = vld [vmem:[#allocation3 + $0x18] sm:$0xff] }
 0xb62   :  { %v1853_v25 = vpop.permute.xlu1 %1852 }
 0xb63   :  { %v1835_v33 = vpop.permute.xlu0 %1834 }
 0xb64   :  { %1843 = vst.msk [vmem:[#allocation3] sm:$0xff] %vm392_vm9, %v1835_v33 }
 0xb65   :  { %1861 = vst.msk [vmem:[#allocation3] sm:$0xff] %vm411_vm10, %v1853_v25 }
 0xb67   :  { %v1837_v34 = vpop.permute.xlu1 %1836 }
 0xb68   :  { %v1871_v35 = vpop.permute.xlu0 %1870  ;;  %1844 = vst.msk [vmem:[#allocation3 + $0x10] sm:$0xff] %vm392_vm9, %v1837_v34 }
 0xb69   :  { %1879 = vst.msk [vmem:[#allocation3] sm:$0xff] %vm430_vm11, %v1871_v35 }
 0xb6c   :  { %v1855_v36 = vpop.permute.xlu0 %1854 }
 0xb6d   :  { %1862 = vst.msk [vmem:[#allocation3 + $0x10] sm:$0xff] %vm411_vm10, %v1855_v36 }
 0xb6e   :  { %v1873_v37 = vpop.permute.xlu1 %1872 }
 0xb6f   :  { %1880 = vst.msk [vmem:[#allocation3 + $0x10] sm:$0xff] %vm430_vm11, %v1873_v37 }
 0xb70   :  { %v1839_v38 = vpop.permute.xlu0 %1838  ;;  %v1888_v39 = vld [vmem:[#allocation3] sm:$0xff] }
 0xb71   :  { %1845 = vst.msk [vmem:[#allocation3 + $0x20] sm:$0xff] %vm392_vm9, %v1839_v38  ;;  %1974 = vmatmul.mubr.f32.vlgmr.msra.gmra.mrb[30].mxu0 %v1888_v39 }
 0xb72   :  { %2238 = vmatprep.mubr.msk.f32.mxu0 %vm44_vm0, %v1891_v40  ;;  %v1857_v41 = vpop.permute.xlu1 %1856 }
 0xb73   :  { %1863 = vst.msk [vmem:[#allocation3 + $0x20] sm:$0xff] %vm411_vm10, %v1857_v41 }
 0xb74   :  { %v1875_v42 = vpop.permute.xlu0 %1874 }
 0xb75   :  { %1881 = vst.msk [vmem:[#allocation3 + $0x20] sm:$0xff] %vm430_vm11, %v1875_v42 }
 0xb76   :  { %v1890_v43 = vld [vmem:[#allocation3 + $0x10] sm:$0xff] }
 0xb77   :  { %1979 = vmatmul.mubr.f32.gmra.mrb[32].mxu0 %v1890_v43 }
 0xb78   :  { %2239 = vmatprep.mubr.msk.f32.mxu0 %vm44_vm0, %v1893_v44 }
 0xb7c   :  { %v1892_v45 = vld [vmem:[#allocation3 + $0x20] sm:$0xff] }
 0xb7d   :  { %1984 = vmatmul.mubr.f32.gmra.mrb[34].mxu0 %v1892_v45 }
 0xc44   :  { %v1975_v2 = vpop.f32.mrb[30].mxu0 }
 0xc45   :  { %v1976_v3 = vadd.f32 %v2236_v1, %v1975_v2  ;;  %v1977_v6 = vpop.f32.mrb[31].mxu0 }
 0xc47   :  { %2664 = vtanh.f32 %v1976_v3 }
 0xc4a   :  { %v1980_v8 = vpop.f32.mrb[32].mxu0 }
 0xc4b   :  { %v1981_v9 = vadd.f32 %v2236_v1, %v1980_v8  ;;  %v1982_v10 = vpop.f32.mrb[33].mxu0 }
 0xc4d   :  { %2666 = vtanh.f32 %v1981_v9 }
 0xc50   :  { %v1985_v17 = vpop.f32.mrb[34].mxu0 }
 0xc51   :  { %v2665_v18 = vpop.eup %2664  ;;  %v1986_v20 = vadd.f32 %v2236_v1, %v1985_v17  ;;  %v1987_v21 = vpop.f32.mrb[35].mxu0 }
 0xc52   :  { %2013 = vst.msk [vmem:[#allocation2 + $0x2] sm:$0xff] %vm44_vm0, %v2665_v18 }
 0xc53   :  { %2668 = vtanh.f32 %v1986_v20 }
 0xc57   :  { %v2667_v13 = vpop.eup %2666 }
 0xc58   :  { %2014 = vst.msk [vmem:[#allocation2 + $0xa] sm:$0xff] %vm44_vm0, %v2667_v13 }
 0xc59   :  { %v2040_v27 = vld [vmem:[#allocation2 + $0x2] sm:$0xff] }
 0xc5a   :  { %v2022_v19 = vld [vmem:[#allocation2 + $0x1] sm:$0xff]  ;;  %2046 = vrot.lane.b32.xlu0 %v2040_v27, %s2678_s19 }
 0xc5b   :  { %v2016_v28 = vld [vmem:[#allocation2] sm:$0xff]  ;;  %2028 = vrot.lane.b32.xlu1 %v2022_v19, %s2677_s18 }
 0xc5c   :  { %2019 = vst.msk [vmem:[#allocation3] sm:$0xff] %vm44_vm0, %v2016_v28 }
 0xc5d   :  { %v2669_v32 = vpop.eup %2668 }
 0xc5e   :  { %2015 = vst.msk [vmem:[#allocation2 + $0x12] sm:$0xff] %vm44_vm0, %v2669_v32 }
 0xc5f   :  { %v2023_v25 = vld [vmem:[#allocation2 + $0x9] sm:$0xff] }
 0xc60   :  { %v2058_v33 = vld [vmem:[#allocation2 + $0x3] sm:$0xff]  ;;  %2030 = vrot.lane.b32.xlu0 %v2023_v25, %s2677_s18 }
 0xc61   :  { %2064 = vrot.lane.b32.xlu1 %v2058_v33, %s2679_s20  ;;  %v2076_v34 = vld [vmem:[#allocation2 + $0x4] sm:$0xff] }
 0xc62   :  { %v2017_v35 = vld [vmem:[#allocation2 + $0x8] sm:$0xff]  ;;  %2079 = vst.msk [vmem:[#allocation3 + $0x8] sm:$0xff] %vm44_vm0, %v2076_v34 }
 0xc63   :  { %2020 = vst.msk [vmem:[#allocation3 + $0x10] sm:$0xff] %vm44_vm0, %v2017_v35  ;;  %v2041_v36 = vld [vmem:[#allocation2 + $0xa] sm:$0xff] }
 0xc65   :  { %2048 = vrot.lane.b32.xlu1 %v2041_v36, %s2678_s19  ;;  %v2059_v0 = vld [vmem:[#allocation2 + $0xb] sm:$0xff]  ;;  %v2078_v39 = vld [vmem:[#allocation2 + $0x14] sm:$0xff] }
 0xc66   :  { %2066 = vrot.lane.b32.xlu0 %v2059_v0, %s2679_s20  ;;  %v2018_v37 = vld [vmem:[#allocation2 + $0x10] sm:$0xff]  ;;  %2081 = vst.msk [vmem:[#allocation3 + $0x28] sm:$0xff] %vm44_vm0, %v2078_v39 }
 0xc67   :  { %v2077_v38 = vld [vmem:[#allocation2 + $0xc] sm:$0xff]  ;;  %2021 = vst.msk [vmem:[#allocation3 + $0x20] sm:$0xff] %vm44_vm0, %v2018_v37 }
 0xc68   :  { %2080 = vst.msk [vmem:[#allocation3 + $0x18] sm:$0xff] %vm44_vm0, %v2077_v38  ;;  %v2024_v40 = vld [vmem:[#allocation2 + $0x11] sm:$0xff] }
 0xc69   :  { %v2083_v41 = vld [vmem:[#allocation3 + $0x8] sm:$0xff]  ;;  %2032 = vrot.lane.b32.xlu1 %v2024_v40, %s2677_s18  ;;  %v2042_v42 = vld [vmem:[#allocation2 + $0x12] sm:$0xff] }
 0xc6a   :  { %2241 = vmatprep.mubr.msk.f32.mxu1 %vm44_vm0, %v2083_v41  ;;  %2050 = vrot.lane.b32.xlu0 %v2042_v42, %s2678_s19  ;;  %v2060_v43 = vld [vmem:[#allocation2 + $0x13] sm:$0xff] }
 0xc6d   :  { %2068 = vrot.lane.b32.xlu1 %v2060_v43, %s2679_s20  ;;  %v2087_v57 = vld [vmem:[#allocation3 + $0x28] sm:$0xff] }
 0xc6f   :  { %v2085_v54 = vld [vmem:[#allocation3 + $0x18] sm:$0xff] }
 0xccc   :  { %v2047_v44 = vpop.permute.xlu0 %2046 }
 0xccd   :  { %v2029_v45 = vpop.permute.xlu1 %2028 }
 0xcce   :  { %2037 = vst.msk [vmem:[#allocation3] sm:$0xff] %vm392_vm9, %v2029_v45 }
 0xccf   :  { %2055 = vst.msk [vmem:[#allocation3] sm:$0xff] %vm411_vm10, %v2047_v44 }
 0xcd2   :  { %v2031_v47 = vpop.permute.xlu0 %2030 }
 0xcd3   :  { %v2065_v48 = vpop.permute.xlu1 %2064  ;;  %2038 = vst.msk [vmem:[#allocation3 + $0x10] sm:$0xff] %vm392_vm9, %v2031_v47 }
 0xcd4   :  { %2073 = vst.msk [vmem:[#allocation3] sm:$0xff] %vm430_vm11, %v2065_v48 }
 0xcd7   :  { %v2049_v5 = vpop.permute.xlu1 %2048 }
 0xcd8   :  { %2056 = vst.msk [vmem:[#allocation3 + $0x10] sm:$0xff] %vm411_vm10, %v2049_v5  ;;  %v2067_v7 = vpop.permute.xlu0 %2066 }
 0xcd9   :  { %2074 = vst.msk [vmem:[#allocation3 + $0x10] sm:$0xff] %vm430_vm11, %v2067_v7 }
 0xcdb   :  { %v2033_v50 = vpop.permute.xlu1 %2032  ;;  %v2082_v52 = vld [vmem:[#allocation3] sm:$0xff] }
 0xcdc   :  { %2039 = vst.msk [vmem:[#allocation3 + $0x20] sm:$0xff] %vm392_vm9, %v2033_v50  ;;  %v2051_v53 = vpop.permute.xlu0 %2050  ;;  %2168 = vmatmul.mubr.f32.vlgmr.msra.gmra.mrb[30].mxu1 %v2082_v52 }
 0xcdd   :  { %2057 = vst.msk [vmem:[#allocation3 + $0x20] sm:$0xff] %vm411_vm10, %v2051_v53  ;;  %2242 = vmatprep.mubr.msk.f32.mxu1 %vm44_vm0, %v2085_v54 }
 0xcdf   :  { %v2069_v55 = vpop.permute.xlu1 %2068 }
 0xce0   :  { %2075 = vst.msk [vmem:[#allocation3 + $0x20] sm:$0xff] %vm430_vm11, %v2069_v55  ;;  %v2084_v56 = vld [vmem:[#allocation3 + $0x10] sm:$0xff] }
 0xce1   :  { %2173 = vmatmul.mubr.f32.gmra.mrb[32].mxu1 %v2084_v56 }
 0xce2   :  { %2243 = vmatprep.mubr.msk.f32.mxu1 %vm44_vm0, %v2087_v57 }
 0xce7   :  { %v2086_v58 = vld [vmem:[#allocation3 + $0x20] sm:$0xff] }
 0xce8   :  { %2178 = vmatmul.mubr.f32.gmra.mrb[34].mxu1 %v2086_v58 }
 0xdaf   :  { %v2169_v59 = vpop.f32.mrb[30].mxu1 }
 0xdb0   :  { %v2170_v60 = vadd.f32 %v2240_v4, %v2169_v59  ;;  %v2171_v61 = vpop.f32.mrb[31].mxu1 }
 0xdb2   :  { %v2183_v62 = vadd.f32 %v2170_v60, %v3279_v46 }
 0xdb4   :  { %2244 = vst.msk [vmem:[%s3828_s13 + $0x18] sm:$0xff] %vm159_vm3, %v2183_v62  ;;  %v2174_v63 = vpop.f32.mrb[32].mxu1 }
 0xdb5   :  { %v2175_v1 = vadd.f32 %v2240_v4, %v2174_v63  ;;  %v2176_v2 = vpop.f32.mrb[33].mxu1 }
 0xdb7   :  { %v2184_v3 = vadd.f32 %v2175_v1, %v3287_v49 }
 0xdb9   :  { %2245 = vst.msk [vmem:[%s3828_s13 + $0x20] sm:$0xff] %vm159_vm3, %v2184_v3 }
 0xdbb   :  { %v2179_v6 = vpop.f32.mrb[34].mxu1 }
 0xdbc   :  { %v2180_v8 = vadd.f32 %v2240_v4, %v2179_v6  ;;  %v2181_v9 = vpop.f32.mrb[35].mxu1 }
 0xdbe   :  { %v2185_v46 = vadd.f32 %v2180_v8, %v3289_v51 }
 0xdc0   :  { %2246 = vst.msk [vmem:[%s3828_s13 + $0x28] sm:$0xff] %vm159_vm3, %v2185_v46 }

</bundles_post_ra>
